<compile_context>
chip_gen: v5e
topology: v5e:2x2
jax: 0.10.0
libtpu: 0.0.40
codegen_flags: <defaults>
</compile_context>

<pallas_src>
import functools

import jax
import jax.numpy as jnp
from jax import lax
from jax.experimental import pallas as pl
from jax.experimental.pallas import tpu as pltpu

KH = KW = 3
PAD = 2
NUM_CLASSES = 10
CONV_CHANNELS = (16, 32, 64, 128, 128, 128)
POOLS = (True, True, True, True, False, False)
LANE = 128        # lane-dense width for the classifier output
LINEAR_TK = 512   # K tile for the classifier matmul


# ---------------------------------------------------------------------------
# Pallas kernels
# ---------------------------------------------------------------------------
def _conv_relu_pool_kernel(x_ref, w_ref, b_ref, o_ref, ybuf,
                           *, wp, ho, wo, cin, cout, pool):
    """Fused 3x3 conv (padding pre-applied) + bias + ReLU (+ fused 2x2 maxpool).

    x_ref : (1, Hp*Wp, Cin)  bf16  one sample, padded NHWC image flattened over (H,W)
    w_ref : (9, Cin, Cout)   bf16  taps in (kh, kw) order
    b_ref : (1, Cout)        f32
    o_ref : (1, Ho', Wo', Cout) bf16   (Ho', Wo' are the pooled dims when pool=True)
    ybuf  : (L, Cout)        f32   VMEM scratch holding the pre-pool conv output
    """
    L = (ho - 1) * wp + wo  # contiguous flat range covering every valid output position
    acc = jnp.zeros((L, cout), jnp.float32)
    for kh in range(KH):
        for kw in range(KW):
            off = kh * wp + kw
            xs = x_ref[0, pl.ds(off, L), :]          # (L, Cin), contiguous bf16 slice
            wt = w_ref[kh * KW + kw]                 # (Cin, Cout) bf16
            if cin == 1:
                # VPU path: contraction depth 1 -> broadcast FMA, skip the MXU.
                acc = acc + xs.astype(jnp.float32) * wt.astype(jnp.float32)
            else:
                # MXU path: bf16 x bf16 with f32 accumulation.
                acc = acc + jnp.dot(xs, wt, preferred_element_type=jnp.float32)

    # Bias + ReLU epilogue in f32.  Columns j >= wo of each flat row are junk
    # (windows wrapping across rows) and are never read back below.
    ybuf[...] = jnp.maximum(acc + b_ref[...], 0.0)

    if pool:
        hp2, wp2 = ho // 2, wo // 2
        for r in range(hp2):
            b0 = (2 * r) * wp
            b1 = (2 * r + 1) * wp
            e0 = ybuf[pl.ds(b0, wp2, stride=2), :]       # row 2r,   even cols
            o0 = ybuf[pl.ds(b0 + 1, wp2, stride=2), :]   # row 2r,   odd  cols
            e1 = ybuf[pl.ds(b1, wp2, stride=2), :]       # row 2r+1, even cols
            o1 = ybuf[pl.ds(b1 + 1, wp2, stride=2), :]   # row 2r+1, odd  cols
            m = jnp.maximum(jnp.maximum(e0, o0), jnp.maximum(e1, o1))
            o_ref[0, r, :, :] = m.astype(o_ref.dtype)
    else:
        for i in range(ho):
            o_ref[0, i, :, :] = ybuf[pl.ds(i * wp, wo), :].astype(o_ref.dtype)


def _linear_kernel(x_ref, w_ref, b_ref, o_ref, acc_ref):
    """K-tiled classifier: o = x @ w + b with a resident f32 accumulator."""
    @pl.when(pl.program_id(0) == 0)
    def _():
        acc_ref[...] = jnp.zeros_like(acc_ref)

    acc_ref[...] += jnp.dot(x_ref[...], w_ref[...],
                            preferred_element_type=jnp.float32)

    @pl.when(pl.program_id(0) == pl.num_programs(0) - 1)
    def _():
        o_ref[...] = acc_ref[...] + b_ref[...]


# ---------------------------------------------------------------------------
# Wrappers (pallas_call setup) + thin XLA glue (padding / flatten only)
# ---------------------------------------------------------------------------
def conv_block(x, w9, b, *, pool):
    """x: (N, H, W, Cin) bf16; w9: (9, Cin, Cout) bf16; b: (1, Cout) f32."""
    n, h, w_, cin = x.shape
    cout = w9.shape[-1]
    hp, wp = h + 2 * PAD, w_ + 2 * PAD
    ho, wo = hp - KH + 1, wp - KW + 1
    ho_out, wo_out = (ho // 2, wo // 2) if pool else (ho, wo)
    L = (ho - 1) * wp + wo

    xp = jnp.pad(x, ((0, 0), (PAD, PAD), (PAD, PAD), (0, 0)))
    xf = xp.reshape(n, hp * wp, cin)                 # free flat view of padded NHWC

    kernel = functools.partial(_conv_relu_pool_kernel, wp=wp, ho=ho, wo=wo,
                               cin=cin, cout=cout, pool=pool)
    return pl.pallas_call(
        kernel,
        out_shape=jax.ShapeDtypeStruct((n, ho_out, wo_out, cout), jnp.bfloat16),
        grid=(n,),
        in_specs=[
            pl.BlockSpec((1, hp * wp, cin), lambda i: (i, 0, 0)),
            pl.BlockSpec((KH * KW, cin, cout), lambda i: (0, 0, 0)),
            pl.BlockSpec((1, cout), lambda i: (0, 0)),
        ],
        out_specs=pl.BlockSpec((1, ho_out, wo_out, cout), lambda i: (i, 0, 0, 0)),
        scratch_shapes=[pltpu.VMEM((L, cout), jnp.float32)],
        compiler_params=pltpu.CompilerParams(
            dimension_semantics=("parallel",)),   # batch splits across TCs on v7x
    )(xf, w9, b)


def linear_padded(x_flat, w_fold, b_pad, *, tk=LINEAR_TK):
    """x_flat: (N, Fp) bf16; w_fold: (Fp, 128) bf16; b_pad: (1, 128) f32."""
    n, fpad = x_flat.shape
    ncols = w_fold.shape[1]
    return pl.pallas_call(
        _linear_kernel,
        out_shape=jax.ShapeDtypeStruct((n, ncols), jnp.float32),
        grid=(fpad // tk,),
        in_specs=[
            pl.BlockSpec((n, tk), lambda k: (0, k)),
            pl.BlockSpec((tk, ncols), lambda k: (k, 0)),
            pl.BlockSpec((1, ncols), lambda k: (0, 0)),
        ],
        out_specs=pl.BlockSpec((n, ncols), lambda k: (0, 0)),
        scratch_shapes=[pltpu.VMEM((n, ncols), jnp.float32)],
        compiler_params=pltpu.CompilerParams(
            dimension_semantics=("arbitrary",)),
    )(x_flat, w_fold, b_pad)


def bird_classifier_forward(x_nchw, kconv_params, klinear_params):
    x = jnp.transpose(x_nchw, (0, 2, 3, 1)).astype(jnp.bfloat16)   # NCHW -> NHWC bf16
    for (w9, b), pool in zip(kconv_params, POOLS):
        x = conv_block(x, w9, b, pool=pool)
    n = x.shape[0]
    wl_f, bl_p = klinear_params
    x_flat = x.reshape(n, -1)                       # NHWC flatten; NCHW order folded into wl_f
    fpad = wl_f.shape[0]
    x_flat = jnp.pad(x_flat, ((0, 0), (0, fpad - x_flat.shape[1])))
    logits = linear_padded(x_flat, wl_f, bl_p)
    return logits[:, :NUM_CLASSES]                  # drop the lane-padding classes


# ---------------------------------------------------------------------------
# Parameter init (PyTorch-style) and one-time kernel-layout preparation
# ---------------------------------------------------------------------------
def init_params(key, h, w):
    conv_params = []
    cin = 1
    for cout in CONV_CHANNELS:
        key, kw_, kb_ = jax.random.split(key, 3)
        bound = (KH * KW * cin) ** -0.5
        wc = jax.random.uniform(kw_, (KH, KW, cin, cout), jnp.float32, -bound, bound)
        bc = jax.random.uniform(kb_, (cout,), jnp.float32, -bound, bound)
        conv_params.append((wc, bc))
        cin = cout
    for _ in range(4):                               # 4x (conv +2 then pool //2)
        h, w = (h + 2) // 2, (w + 2) // 2
    h, w = h + 4, w + 4                              # 2x conv (+2 each)
    in_features = CONV_CHANNELS[-1] * h * w
    key, kw_, kb_ = jax.random.split(key, 3)
    bound = in_features ** -0.5
    wl = jax.random.uniform(kw_, (NUM_CLASSES, in_features), jnp.float32, -bound, bound)
    bl = jax.random.uniform(kb_, (NUM_CLASSES,), jnp.float32, -bound, bound)
    return conv_params, (wl, bl)


def prepare_params(conv_params, linear_params, input_hw):
    """One-time layout work: bf16 weights, tap-major conv weights, folded linear weight."""
    h, w = input_hw
    kconv = []
    for (wc, bc), pool in zip(conv_params, POOLS):
        cin, cout = wc.shape[2], wc.shape[3]
        w9 = wc.reshape(KH * KW, cin, cout).astype(jnp.bfloat16)
        kconv.append((w9, bc.reshape(1, cout).astype(jnp.float32)))
        h, w = h + 2, w + 2
        if pool:
            h, w = h // 2, w // 2
    wl, bl = linear_params                           # wl: (classes, C*H*W) NCHW-flatten order
    c_last = CONV_CHANNELS[-1]
    # Fold the NCHW flatten into the weight (so the activation can stay NHWC),
    # pre-transpose to (in_features, classes), pad classes to a lane-dense 128 and
    # in_features up to a multiple of the K tile.
    wl_f = wl.reshape(NUM_CLASSES, c_last, h, w).transpose(2, 3, 1, 0)
    wl_f = wl_f.reshape(h * w * c_last, NUM_CLASSES)
    f = wl_f.shape[0]
    fpad = ((f + LINEAR_TK - 1) // LINEAR_TK) * LINEAR_TK
    wl_f = jnp.pad(wl_f, ((0, fpad - f), (0, LANE - NUM_CLASSES))).astype(jnp.bfloat16)
    bl_p = jnp.pad(bl, (0, LANE - NUM_CLASSES)).reshape(1, LANE).astype(jnp.float32)
    return kconv, (wl_f, bl_p)


# ---------------------------------------------------------------------------
# Pure-JAX f32 reference (for correctness check)
# ---------------------------------------------------------------------------
def reference_forward(x_nchw, conv_params, linear_params):
    x = jnp.transpose(x_nchw, (0, 2, 3, 1)).astype(jnp.float32)
    for (w, b), pool in zip(conv_params, POOLS):
        dn = lax.conv_dimension_numbers(x.shape, w.shape, ('NHWC', 'HWIO', 'NHWC'))
        x = lax.conv_general_dilated(x, w, (1, 1), [(PAD, PAD), (PAD, PAD)],
                                     dimension_numbers=dn)
        x = jax.nn.relu(x + b.reshape(1, 1, 1, -1))
        if pool:
            x = lax.reduce_window(x, -jnp.inf, lax.max,
                                  (1, 2, 2, 1), (1, 2, 2, 1), 'VALID')
    n = x.shape[0]
    x = jnp.transpose(x, (0, 3, 1, 2)).reshape(n, -1)
    wl, bl = linear_params
    return x @ wl.T + bl


if __name__ == "__main__":
    key = jax.random.PRNGKey(0)
    key, kx = jax.random.split(key)
    H = W = 16
    x = jax.random.normal(kx, (2, 1, H, W), jnp.float32)          # NCHW like PyTorch

    conv_params, linear_params = init_params(key, H, W)
    kconv, klinear = prepare_params(conv_params, linear_params, (H, W))

    fwd = jax.jit(bird_classifier_forward)
    out = fwd(x, kconv, klinear)
    out = jax.block_until_ready(out)

    ref = reference_forward(x, conv_params, linear_params)
    assert out.shape == (2, NUM_CLASSES), out.shape
    max_err = jnp.max(jnp.abs(out - ref))
    # bf16 operands / bf16 inter-layer activations (f32 accumulation) -> loosened tolerance.
    assert jnp.allclose(out, ref, atol=5e-2, rtol=5e-2), f"max abs err {max_err}"

    print("KERNEL_OK")
</pallas_src>

<mosaic_0001>
module attributes {stable_mosaic.version = 11 : i64} {
  func.func @_conv_relu_pool_kernel(%arg0: i32, %arg1: memref<1x400x1xbf16, #tpu.memory_space<vmem>>, %arg2: memref<9x1x16xbf16, #tpu.memory_space<vmem>>, %arg3: memref<1x16xf32, #tpu.memory_space<vmem>>, %arg4: memref<1x9x9x16xbf16, #tpu.memory_space<vmem>>, %arg5: memref<358x16xf32, #tpu.memory_space<vmem>>) attributes {dimension_semantics = [#tpu.dimension_semantics<parallel>], iteration_bounds = array<i64: 2>, scalar_prefetch = 0 : i64, scratch_operands = 1 : i64, tpu.core_type = #tpu.core_type<tc>, window_params = [{transform_indices = @transform_0, window_bounds = array<i64: 1, 400, 1>}, {pipeline_mode = #tpu.pipeline_mode<synchronous>, transform_indices = @transform_1, window_bounds = array<i64: 9, 1, 16>}, {pipeline_mode = #tpu.pipeline_mode<synchronous>, transform_indices = @transform_2, window_bounds = array<i64: 1, 16>}, {transform_indices = @transform_3, window_bounds = array<i64: 1, 9, 9, 16>}]} {
    %cst = arith.constant 0.000000e+00 : f32
    %0 = vector.broadcast %cst : f32 to vector<358x16xf32>
    %c0 = arith.constant 0 : index
    %c0_0 = arith.constant 0 : index
    %c0_1 = arith.constant 0 : index
    %1 = vector.load %arg1[%c0, %c0_0, %c0_1] : memref<1x400x1xbf16, #tpu.memory_space<vmem>>, vector<1x358x1xbf16>
    %2 = vector.shape_cast %1 : vector<1x358x1xbf16> to vector<358x1xbf16>
    %c0_2 = arith.constant 0 : index
    %c0_3 = arith.constant 0 : index
    %c0_4 = arith.constant 0 : index
    %3 = vector.load %arg2[%c0_2, %c0_3, %c0_4] : memref<9x1x16xbf16, #tpu.memory_space<vmem>>, vector<1x1x16xbf16>
    %4 = vector.shape_cast %3 : vector<1x1x16xbf16> to vector<1x16xbf16>
    %5 = arith.extf %2 : vector<358x1xbf16> to vector<358x1xf32>
    %6 = arith.extf %4 : vector<1x16xbf16> to vector<1x16xf32>
    %7 = vector.broadcast %5 : vector<358x1xf32> to vector<358x16xf32>
    %8 = vector.broadcast %6 : vector<1x16xf32> to vector<358x16xf32>
    %9 = arith.mulf %7, %8 : vector<358x16xf32>
    %10 = arith.addf %0, %9 : vector<358x16xf32>
    %c0_5 = arith.constant 0 : index
    %c1 = arith.constant 1 : index
    %c0_6 = arith.constant 0 : index
    %11 = vector.load %arg1[%c0_5, %c1, %c0_6] : memref<1x400x1xbf16, #tpu.memory_space<vmem>>, vector<1x358x1xbf16>
    %12 = vector.shape_cast %11 : vector<1x358x1xbf16> to vector<358x1xbf16>
    %c1_7 = arith.constant 1 : index
    %c0_8 = arith.constant 0 : index
    %c0_9 = arith.constant 0 : index
    %13 = vector.load %arg2[%c1_7, %c0_8, %c0_9] : memref<9x1x16xbf16, #tpu.memory_space<vmem>>, vector<1x1x16xbf16>
    %14 = vector.shape_cast %13 : vector<1x1x16xbf16> to vector<1x16xbf16>
    %15 = arith.extf %12 : vector<358x1xbf16> to vector<358x1xf32>
    %16 = arith.extf %14 : vector<1x16xbf16> to vector<1x16xf32>
    %17 = vector.broadcast %15 : vector<358x1xf32> to vector<358x16xf32>
    %18 = vector.broadcast %16 : vector<1x16xf32> to vector<358x16xf32>
    %19 = arith.mulf %17, %18 : vector<358x16xf32>
    %20 = arith.addf %10, %19 : vector<358x16xf32>
    %c0_10 = arith.constant 0 : index
    %c2 = arith.constant 2 : index
    %c0_11 = arith.constant 0 : index
    %21 = vector.load %arg1[%c0_10, %c2, %c0_11] : memref<1x400x1xbf16, #tpu.memory_space<vmem>>, vector<1x358x1xbf16>
    %22 = vector.shape_cast %21 : vector<1x358x1xbf16> to vector<358x1xbf16>
    %c2_12 = arith.constant 2 : index
    %c0_13 = arith.constant 0 : index
    %c0_14 = arith.constant 0 : index
    %23 = vector.load %arg2[%c2_12, %c0_13, %c0_14] : memref<9x1x16xbf16, #tpu.memory_space<vmem>>, vector<1x1x16xbf16>
    %24 = vector.shape_cast %23 : vector<1x1x16xbf16> to vector<1x16xbf16>
    %25 = arith.extf %22 : vector<358x1xbf16> to vector<358x1xf32>
    %26 = arith.extf %24 : vector<1x16xbf16> to vector<1x16xf32>
    %27 = vector.broadcast %25 : vector<358x1xf32> to vector<358x16xf32>
    %28 = vector.broadcast %26 : vector<1x16xf32> to vector<358x16xf32>
    %29 = arith.mulf %27, %28 : vector<358x16xf32>
    %30 = arith.addf %20, %29 : vector<358x16xf32>
    %c0_15 = arith.constant 0 : index
    %c20 = arith.constant 20 : index
    %c0_16 = arith.constant 0 : index
    %31 = vector.load %arg1[%c0_15, %c20, %c0_16] : memref<1x400x1xbf16, #tpu.memory_space<vmem>>, vector<1x358x1xbf16>
    %32 = vector.shape_cast %31 : vector<1x358x1xbf16> to vector<358x1xbf16>
    %c3 = arith.constant 3 : index
    %c0_17 = arith.constant 0 : index
    %c0_18 = arith.constant 0 : index
    %33 = vector.load %arg2[%c3, %c0_17, %c0_18] : memref<9x1x16xbf16, #tpu.memory_space<vmem>>, vector<1x1x16xbf16>
    %34 = vector.shape_cast %33 : vector<1x1x16xbf16> to vector<1x16xbf16>
    %35 = arith.extf %32 : vector<358x1xbf16> to vector<358x1xf32>
    %36 = arith.extf %34 : vector<1x16xbf16> to vector<1x16xf32>
    %37 = vector.broadcast %35 : vector<358x1xf32> to vector<358x16xf32>
    %38 = vector.broadcast %36 : vector<1x16xf32> to vector<358x16xf32>
    %39 = arith.mulf %37, %38 : vector<358x16xf32>
    %40 = arith.addf %30, %39 : vector<358x16xf32>
    %c0_19 = arith.constant 0 : index
    %c21 = arith.constant 21 : index
    %c0_20 = arith.constant 0 : index
    %41 = vector.load %arg1[%c0_19, %c21, %c0_20] : memref<1x400x1xbf16, #tpu.memory_space<vmem>>, vector<1x358x1xbf16>
    %42 = vector.shape_cast %41 : vector<1x358x1xbf16> to vector<358x1xbf16>
    %c4 = arith.constant 4 : index
    %c0_21 = arith.constant 0 : index
    %c0_22 = arith.constant 0 : index
    %43 = vector.load %arg2[%c4, %c0_21, %c0_22] : memref<9x1x16xbf16, #tpu.memory_space<vmem>>, vector<1x1x16xbf16>
    %44 = vector.shape_cast %43 : vector<1x1x16xbf16> to vector<1x16xbf16>
    %45 = arith.extf %42 : vector<358x1xbf16> to vector<358x1xf32>
    %46 = arith.extf %44 : vector<1x16xbf16> to vector<1x16xf32>
    %47 = vector.broadcast %45 : vector<358x1xf32> to vector<358x16xf32>
    %48 = vector.broadcast %46 : vector<1x16xf32> to vector<358x16xf32>
    %49 = arith.mulf %47, %48 : vector<358x16xf32>
    %50 = arith.addf %40, %49 : vector<358x16xf32>
    %c0_23 = arith.constant 0 : index
    %c22 = arith.constant 22 : index
    %c0_24 = arith.constant 0 : index
    %51 = vector.load %arg1[%c0_23, %c22, %c0_24] : memref<1x400x1xbf16, #tpu.memory_space<vmem>>, vector<1x358x1xbf16>
    %52 = vector.shape_cast %51 : vector<1x358x1xbf16> to vector<358x1xbf16>
    %c5 = arith.constant 5 : index
    %c0_25 = arith.constant 0 : index
    %c0_26 = arith.constant 0 : index
    %53 = vector.load %arg2[%c5, %c0_25, %c0_26] : memref<9x1x16xbf16, #tpu.memory_space<vmem>>, vector<1x1x16xbf16>
    %54 = vector.shape_cast %53 : vector<1x1x16xbf16> to vector<1x16xbf16>
    %55 = arith.extf %52 : vector<358x1xbf16> to vector<358x1xf32>
    %56 = arith.extf %54 : vector<1x16xbf16> to vector<1x16xf32>
    %57 = vector.broadcast %55 : vector<358x1xf32> to vector<358x16xf32>
    %58 = vector.broadcast %56 : vector<1x16xf32> to vector<358x16xf32>
    %59 = arith.mulf %57, %58 : vector<358x16xf32>
    %60 = arith.addf %50, %59 : vector<358x16xf32>
    %c0_27 = arith.constant 0 : index
    %c40 = arith.constant 40 : index
    %c0_28 = arith.constant 0 : index
    %61 = vector.load %arg1[%c0_27, %c40, %c0_28] : memref<1x400x1xbf16, #tpu.memory_space<vmem>>, vector<1x358x1xbf16>
    %62 = vector.shape_cast %61 : vector<1x358x1xbf16> to vector<358x1xbf16>
    %c6 = arith.constant 6 : index
    %c0_29 = arith.constant 0 : index
    %c0_30 = arith.constant 0 : index
    %63 = vector.load %arg2[%c6, %c0_29, %c0_30] : memref<9x1x16xbf16, #tpu.memory_space<vmem>>, vector<1x1x16xbf16>
    %64 = vector.shape_cast %63 : vector<1x1x16xbf16> to vector<1x16xbf16>
    %65 = arith.extf %62 : vector<358x1xbf16> to vector<358x1xf32>
    %66 = arith.extf %64 : vector<1x16xbf16> to vector<1x16xf32>
    %67 = vector.broadcast %65 : vector<358x1xf32> to vector<358x16xf32>
    %68 = vector.broadcast %66 : vector<1x16xf32> to vector<358x16xf32>
    %69 = arith.mulf %67, %68 : vector<358x16xf32>
    %70 = arith.addf %60, %69 : vector<358x16xf32>
    %c0_31 = arith.constant 0 : index
    %c41 = arith.constant 41 : index
    %c0_32 = arith.constant 0 : index
    %71 = vector.load %arg1[%c0_31, %c41, %c0_32] : memref<1x400x1xbf16, #tpu.memory_space<vmem>>, vector<1x358x1xbf16>
    %72 = vector.shape_cast %71 : vector<1x358x1xbf16> to vector<358x1xbf16>
    %c7 = arith.constant 7 : index
    %c0_33 = arith.constant 0 : index
    %c0_34 = arith.constant 0 : index
    %73 = vector.load %arg2[%c7, %c0_33, %c0_34] : memref<9x1x16xbf16, #tpu.memory_space<vmem>>, vector<1x1x16xbf16>
    %74 = vector.shape_cast %73 : vector<1x1x16xbf16> to vector<1x16xbf16>
    %75 = arith.extf %72 : vector<358x1xbf16> to vector<358x1xf32>
    %76 = arith.extf %74 : vector<1x16xbf16> to vector<1x16xf32>
    %77 = vector.broadcast %75 : vector<358x1xf32> to vector<358x16xf32>
    %78 = vector.broadcast %76 : vector<1x16xf32> to vector<358x16xf32>
    %79 = arith.mulf %77, %78 : vector<358x16xf32>
    %80 = arith.addf %70, %79 : vector<358x16xf32>
    %c0_35 = arith.constant 0 : index
    %c42 = arith.constant 42 : index
    %c0_36 = arith.constant 0 : index
    %81 = vector.load %arg1[%c0_35, %c42, %c0_36] : memref<1x400x1xbf16, #tpu.memory_space<vmem>>, vector<1x358x1xbf16>
    %82 = vector.shape_cast %81 : vector<1x358x1xbf16> to vector<358x1xbf16>
    %c8 = arith.constant 8 : index
    %c0_37 = arith.constant 0 : index
    %c0_38 = arith.constant 0 : index
    %83 = vector.load %arg2[%c8, %c0_37, %c0_38] : memref<9x1x16xbf16, #tpu.memory_space<vmem>>, vector<1x1x16xbf16>
    %84 = vector.shape_cast %83 : vector<1x1x16xbf16> to vector<1x16xbf16>
    %85 = arith.extf %82 : vector<358x1xbf16> to vector<358x1xf32>
    %86 = arith.extf %84 : vector<1x16xbf16> to vector<1x16xf32>
    %87 = vector.broadcast %85 : vector<358x1xf32> to vector<358x16xf32>
    %88 = vector.broadcast %86 : vector<1x16xf32> to vector<358x16xf32>
    %89 = arith.mulf %87, %88 : vector<358x16xf32>
    %90 = arith.addf %80, %89 : vector<358x16xf32>
    %c0_39 = arith.constant 0 : index
    %c0_40 = arith.constant 0 : index
    %91 = vector.load %arg3[%c0_39, %c0_40] : memref<1x16xf32, #tpu.memory_space<vmem>>, vector<1x16xf32>
    %92 = vector.broadcast %91 : vector<1x16xf32> to vector<358x16xf32>
    %93 = arith.addf %90, %92 : vector<358x16xf32>
    %cst_41 = arith.constant 0.000000e+00 : f32
    %94 = vector.broadcast %cst_41 : f32 to vector<358x16xf32>
    %95 = arith.maximumf %93, %94 : vector<358x16xf32>
    %c0_42 = arith.constant 0 : index
    %c0_43 = arith.constant 0 : index
    %96 = vector.load %arg5[%c0_42, %c0_43] : memref<358x16xf32, #tpu.memory_space<vmem>>, vector<358x16xf32>
    tpu.vector_store %arg5[%c0_42, %c0_43], %95 {strides = array<i32>} : memref<358x16xf32, #tpu.memory_space<vmem>>, vector<358x16xf32>,
    %c0_44 = arith.constant 0 : index
    %c0_45 = arith.constant 0 : index
    %97 = tpu.strided_load %arg5[%c0_44, %c0_45] {strides = array<i32: 2, 1>} : memref<358x16xf32, #tpu.memory_space<vmem>>, vector<9x16xf32>
    %c1_46 = arith.constant 1 : index
    %c0_47 = arith.constant 0 : index
    %98 = tpu.strided_load %arg5[%c1_46, %c0_47] {strides = array<i32: 2, 1>} : memref<358x16xf32, #tpu.memory_space<vmem>>, vector<9x16xf32>
    %c20_48 = arith.constant 20 : index
    %c0_49 = arith.constant 0 : index
    %99 = tpu.strided_load %arg5[%c20_48, %c0_49] {strides = array<i32: 2, 1>} : memref<358x16xf32, #tpu.memory_space<vmem>>, vector<9x16xf32>
    %c21_50 = arith.constant 21 : index
    %c0_51 = arith.constant 0 : index
    %100 = tpu.strided_load %arg5[%c21_50, %c0_51] {strides = array<i32: 2, 1>} : memref<358x16xf32, #tpu.memory_space<vmem>>, vector<9x16xf32>
    %101 = arith.maximumf %97, %98 : vector<9x16xf32>
    %102 = arith.maximumf %99, %100 : vector<9x16xf32>
    %103 = arith.maximumf %101, %102 : vector<9x16xf32>
    %104 = arith.truncf %103 : vector<9x16xf32> to vector<9x16xbf16>
    %c0_52 = arith.constant 0 : index
    %c0_53 = arith.constant 0 : index
    %c0_54 = arith.constant 0 : index
    %c0_55 = arith.constant 0 : index
    %105 = vector.load %arg4[%c0_52, %c0_53, %c0_54, %c0_55] : memref<1x9x9x16xbf16, #tpu.memory_space<vmem>>, vector<1x1x9x16xbf16>
    %106 = vector.shape_cast %105 : vector<1x1x9x16xbf16> to vector<9x16xbf16>
    %107 = vector.shape_cast %104 : vector<9x16xbf16> to vector<1x1x9x16xbf16>
    tpu.vector_store %arg4[%c0_52, %c0_53, %c0_54, %c0_55], %107 {strides = array<i32>} : memref<1x9x9x16xbf16, #tpu.memory_space<vmem>>, vector<1x1x9x16xbf16>,
    %c40_56 = arith.constant 40 : index
    %c0_57 = arith.constant 0 : index
    %108 = tpu.strided_load %arg5[%c40_56, %c0_57] {strides = array<i32: 2, 1>} : memref<358x16xf32, #tpu.memory_space<vmem>>, vector<9x16xf32>
    %c41_58 = arith.constant 41 : index
    %c0_59 = arith.constant 0 : index
    %109 = tpu.strided_load %arg5[%c41_58, %c0_59] {strides = array<i32: 2, 1>} : memref<358x16xf32, #tpu.memory_space<vmem>>, vector<9x16xf32>
    %c60 = arith.constant 60 : index
    %c0_60 = arith.constant 0 : index
    %110 = tpu.strided_load %arg5[%c60, %c0_60] {strides = array<i32: 2, 1>} : memref<358x16xf32, #tpu.memory_space<vmem>>, vector<9x16xf32>
    %c61 = arith.constant 61 : index
    %c0_61 = arith.constant 0 : index
    %111 = tpu.strided_load %arg5[%c61, %c0_61] {strides = array<i32: 2, 1>} : memref<358x16xf32, #tpu.memory_space<vmem>>, vector<9x16xf32>
    %112 = arith.maximumf %108, %109 : vector<9x16xf32>
    %113 = arith.maximumf %110, %111 : vector<9x16xf32>
    %114 = arith.maximumf %112, %113 : vector<9x16xf32>
    %115 = arith.truncf %114 : vector<9x16xf32> to vector<9x16xbf16>
    %c0_62 = arith.constant 0 : index
    %c1_63 = arith.constant 1 : index
    %c0_64 = arith.constant 0 : index
    %c0_65 = arith.constant 0 : index
    %116 = vector.load %arg4[%c0_62, %c1_63, %c0_64, %c0_65] : memref<1x9x9x16xbf16, #tpu.memory_space<vmem>>, vector<1x1x9x16xbf16>
    %117 = vector.shape_cast %116 : vector<1x1x9x16xbf16> to vector<9x16xbf16>
    %118 = vector.shape_cast %115 : vector<9x16xbf16> to vector<1x1x9x16xbf16>
    tpu.vector_store %arg4[%c0_62, %c1_63, %c0_64, %c0_65], %118 {strides = array<i32>} : memref<1x9x9x16xbf16, #tpu.memory_space<vmem>>, vector<1x1x9x16xbf16>,
    %c80 = arith.constant 80 : index
    %c0_66 = arith.constant 0 : index
    %119 = tpu.strided_load %arg5[%c80, %c0_66] {strides = array<i32: 2, 1>} : memref<358x16xf32, #tpu.memory_space<vmem>>, vector<9x16xf32>
    %c81 = arith.constant 81 : index
    %c0_67 = arith.constant 0 : index
    %120 = tpu.strided_load %arg5[%c81, %c0_67] {strides = array<i32: 2, 1>} : memref<358x16xf32, #tpu.memory_space<vmem>>, vector<9x16xf32>
    %c100 = arith.constant 100 : index
    %c0_68 = arith.constant 0 : index
    %121 = tpu.strided_load %arg5[%c100, %c0_68] {strides = array<i32: 2, 1>} : memref<358x16xf32, #tpu.memory_space<vmem>>, vector<9x16xf32>
    %c101 = arith.constant 101 : index
    %c0_69 = arith.constant 0 : index
    %122 = tpu.strided_load %arg5[%c101, %c0_69] {strides = array<i32: 2, 1>} : memref<358x16xf32, #tpu.memory_space<vmem>>, vector<9x16xf32>
    %123 = arith.maximumf %119, %120 : vector<9x16xf32>
    %124 = arith.maximumf %121, %122 : vector<9x16xf32>
    %125 = arith.maximumf %123, %124 : vector<9x16xf32>
    %126 = arith.truncf %125 : vector<9x16xf32> to vector<9x16xbf16>
    %c0_70 = arith.constant 0 : index
    %c2_71 = arith.constant 2 : index
    %c0_72 = arith.constant 0 : index
    %c0_73 = arith.constant 0 : index
    %127 = vector.load %arg4[%c0_70, %c2_71, %c0_72, %c0_73] : memref<1x9x9x16xbf16, #tpu.memory_space<vmem>>, vector<1x1x9x16xbf16>
    %128 = vector.shape_cast %127 : vector<1x1x9x16xbf16> to vector<9x16xbf16>
    %129 = vector.shape_cast %126 : vector<9x16xbf16> to vector<1x1x9x16xbf16>
    tpu.vector_store %arg4[%c0_70, %c2_71, %c0_72, %c0_73], %129 {strides = array<i32>} : memref<1x9x9x16xbf16, #tpu.memory_space<vmem>>, vector<1x1x9x16xbf16>,
    %c120 = arith.constant 120 : index
    %c0_74 = arith.constant 0 : index
    %130 = tpu.strided_load %arg5[%c120, %c0_74] {strides = array<i32: 2, 1>} : memref<358x16xf32, #tpu.memory_space<vmem>>, vector<9x16xf32>
    %c121 = arith.constant 121 : index
    %c0_75 = arith.constant 0 : index
    %131 = tpu.strided_load %arg5[%c121, %c0_75] {strides = array<i32: 2, 1>} : memref<358x16xf32, #tpu.memory_space<vmem>>, vector<9x16xf32>
    %c140 = arith.constant 140 : index
    %c0_76 = arith.constant 0 : index
    %132 = tpu.strided_load %arg5[%c140, %c0_76] {strides = array<i32: 2, 1>} : memref<358x16xf32, #tpu.memory_space<vmem>>, vector<9x16xf32>
    %c141 = arith.constant 141 : index
    %c0_77 = arith.constant 0 : index
    %133 = tpu.strided_load %arg5[%c141, %c0_77] {strides = array<i32: 2, 1>} : memref<358x16xf32, #tpu.memory_space<vmem>>, vector<9x16xf32>
    %134 = arith.maximumf %130, %131 : vector<9x16xf32>
    %135 = arith.maximumf %132, %133 : vector<9x16xf32>
    %136 = arith.maximumf %134, %135 : vector<9x16xf32>
    %137 = arith.truncf %136 : vector<9x16xf32> to vector<9x16xbf16>
    %c0_78 = arith.constant 0 : index
    %c3_79 = arith.constant 3 : index
    %c0_80 = arith.constant 0 : index
    %c0_81 = arith.constant 0 : index
    %138 = vector.load %arg4[%c0_78, %c3_79, %c0_80, %c0_81] : memref<1x9x9x16xbf16, #tpu.memory_space<vmem>>, vector<1x1x9x16xbf16>
    %139 = vector.shape_cast %138 : vector<1x1x9x16xbf16> to vector<9x16xbf16>
    %140 = vector.shape_cast %137 : vector<9x16xbf16> to vector<1x1x9x16xbf16>
    tpu.vector_store %arg4[%c0_78, %c3_79, %c0_80, %c0_81], %140 {strides = array<i32>} : memref<1x9x9x16xbf16, #tpu.memory_space<vmem>>, vector<1x1x9x16xbf16>,
    %c160 = arith.constant 160 : index
    %c0_82 = arith.constant 0 : index
    %141 = tpu.strided_load %arg5[%c160, %c0_82] {strides = array<i32: 2, 1>} : memref<358x16xf32, #tpu.memory_space<vmem>>, vector<9x16xf32>
    %c161 = arith.constant 161 : index
    %c0_83 = arith.constant 0 : index
    %142 = tpu.strided_load %arg5[%c161, %c0_83] {strides = array<i32: 2, 1>} : memref<358x16xf32, #tpu.memory_space<vmem>>, vector<9x16xf32>
    %c180 = arith.constant 180 : index
    %c0_84 = arith.constant 0 : index
    %143 = tpu.strided_load %arg5[%c180, %c0_84] {strides = array<i32: 2, 1>} : memref<358x16xf32, #tpu.memory_space<vmem>>, vector<9x16xf32>
    %c181 = arith.constant 181 : index
    %c0_85 = arith.constant 0 : index
    %144 = tpu.strided_load %arg5[%c181, %c0_85] {strides = array<i32: 2, 1>} : memref<358x16xf32, #tpu.memory_space<vmem>>, vector<9x16xf32>
    %145 = arith.maximumf %141, %142 : vector<9x16xf32>
    %146 = arith.maximumf %143, %144 : vector<9x16xf32>
    %147 = arith.maximumf %145, %146 : vector<9x16xf32>
    %148 = arith.truncf %147 : vector<9x16xf32> to vector<9x16xbf16>
    %c0_86 = arith.constant 0 : index
    %c4_87 = arith.constant 4 : index
    %c0_88 = arith.constant 0 : index
    %c0_89 = arith.constant 0 : index
    %149 = vector.load %arg4[%c0_86, %c4_87, %c0_88, %c0_89] : memref<1x9x9x16xbf16, #tpu.memory_space<vmem>>, vector<1x1x9x16xbf16>
    %150 = vector.shape_cast %149 : vector<1x1x9x16xbf16> to vector<9x16xbf16>
    %151 = vector.shape_cast %148 : vector<9x16xbf16> to vector<1x1x9x16xbf16>
    tpu.vector_store %arg4[%c0_86, %c4_87, %c0_88, %c0_89], %151 {strides = array<i32>} : memref<1x9x9x16xbf16, #tpu.memory_space<vmem>>, vector<1x1x9x16xbf16>,
    %c200 = arith.constant 200 : index
    %c0_90 = arith.constant 0 : index
    %152 = tpu.strided_load %arg5[%c200, %c0_90] {strides = array<i32: 2, 1>} : memref<358x16xf32, #tpu.memory_space<vmem>>, vector<9x16xf32>
    %c201 = arith.constant 201 : index
    %c0_91 = arith.constant 0 : index
    %153 = tpu.strided_load %arg5[%c201, %c0_91] {strides = array<i32: 2, 1>} : memref<358x16xf32, #tpu.memory_space<vmem>>, vector<9x16xf32>
    %c220 = arith.constant 220 : index
    %c0_92 = arith.constant 0 : index
    %154 = tpu.strided_load %arg5[%c220, %c0_92] {strides = array<i32: 2, 1>} : memref<358x16xf32, #tpu.memory_space<vmem>>, vector<9x16xf32>
    %c221 = arith.constant 221 : index
    %c0_93 = arith.constant 0 : index
    %155 = tpu.strided_load %arg5[%c221, %c0_93] {strides = array<i32: 2, 1>} : memref<358x16xf32, #tpu.memory_space<vmem>>, vector<9x16xf32>
    %156 = arith.maximumf %152, %153 : vector<9x16xf32>
    %157 = arith.maximumf %154, %155 : vector<9x16xf32>
    %158 = arith.maximumf %156, %157 : vector<9x16xf32>
    %159 = arith.truncf %158 : vector<9x16xf32> to vector<9x16xbf16>
    %c0_94 = arith.constant 0 : index
    %c5_95 = arith.constant 5 : index
    %c0_96 = arith.constant 0 : index
    %c0_97 = arith.constant 0 : index
    %160 = vector.load %arg4[%c0_94, %c5_95, %c0_96, %c0_97] : memref<1x9x9x16xbf16, #tpu.memory_space<vmem>>, vector<1x1x9x16xbf16>
    %161 = vector.shape_cast %160 : vector<1x1x9x16xbf16> to vector<9x16xbf16>
    %162 = vector.shape_cast %159 : vector<9x16xbf16> to vector<1x1x9x16xbf16>
    tpu.vector_store %arg4[%c0_94, %c5_95, %c0_96, %c0_97], %162 {strides = array<i32>} : memref<1x9x9x16xbf16, #tpu.memory_space<vmem>>, vector<1x1x9x16xbf16>,
    %c240 = arith.constant 240 : index
    %c0_98 = arith.constant 0 : index
    %163 = tpu.strided_load %arg5[%c240, %c0_98] {strides = array<i32: 2, 1>} : memref<358x16xf32, #tpu.memory_space<vmem>>, vector<9x16xf32>
    %c241 = arith.constant 241 : index
    %c0_99 = arith.constant 0 : index
    %164 = tpu.strided_load %arg5[%c241, %c0_99] {strides = array<i32: 2, 1>} : memref<358x16xf32, #tpu.memory_space<vmem>>, vector<9x16xf32>
    %c260 = arith.constant 260 : index
    %c0_100 = arith.constant 0 : index
    %165 = tpu.strided_load %arg5[%c260, %c0_100] {strides = array<i32: 2, 1>} : memref<358x16xf32, #tpu.memory_space<vmem>>, vector<9x16xf32>
    %c261 = arith.constant 261 : index
    %c0_101 = arith.constant 0 : index
    %166 = tpu.strided_load %arg5[%c261, %c0_101] {strides = array<i32: 2, 1>} : memref<358x16xf32, #tpu.memory_space<vmem>>, vector<9x16xf32>
    %167 = arith.maximumf %163, %164 : vector<9x16xf32>
    %168 = arith.maximumf %165, %166 : vector<9x16xf32>
    %169 = arith.maximumf %167, %168 : vector<9x16xf32>
    %170 = arith.truncf %169 : vector<9x16xf32> to vector<9x16xbf16>
    %c0_102 = arith.constant 0 : index
    %c6_103 = arith.constant 6 : index
    %c0_104 = arith.constant 0 : index
    %c0_105 = arith.constant 0 : index
    %171 = vector.load %arg4[%c0_102, %c6_103, %c0_104, %c0_105] : memref<1x9x9x16xbf16, #tpu.memory_space<vmem>>, vector<1x1x9x16xbf16>
    %172 = vector.shape_cast %171 : vector<1x1x9x16xbf16> to vector<9x16xbf16>
    %173 = vector.shape_cast %170 : vector<9x16xbf16> to vector<1x1x9x16xbf16>
    tpu.vector_store %arg4[%c0_102, %c6_103, %c0_104, %c0_105], %173 {strides = array<i32>} : memref<1x9x9x16xbf16, #tpu.memory_space<vmem>>, vector<1x1x9x16xbf16>,
    %c280 = arith.constant 280 : index
    %c0_106 = arith.constant 0 : index
    %174 = tpu.strided_load %arg5[%c280, %c0_106] {strides = array<i32: 2, 1>} : memref<358x16xf32, #tpu.memory_space<vmem>>, vector<9x16xf32>
    %c281 = arith.constant 281 : index
    %c0_107 = arith.constant 0 : index
    %175 = tpu.strided_load %arg5[%c281, %c0_107] {strides = array<i32: 2, 1>} : memref<358x16xf32, #tpu.memory_space<vmem>>, vector<9x16xf32>
    %c300 = arith.constant 300 : index
    %c0_108 = arith.constant 0 : index
    %176 = tpu.strided_load %arg5[%c300, %c0_108] {strides = array<i32: 2, 1>} : memref<358x16xf32, #tpu.memory_space<vmem>>, vector<9x16xf32>
    %c301 = arith.constant 301 : index
    %c0_109 = arith.constant 0 : index
    %177 = tpu.strided_load %arg5[%c301, %c0_109] {strides = array<i32: 2, 1>} : memref<358x16xf32, #tpu.memory_space<vmem>>, vector<9x16xf32>
    %178 = arith.maximumf %174, %175 : vector<9x16xf32>
    %179 = arith.maximumf %176, %177 : vector<9x16xf32>
    %180 = arith.maximumf %178, %179 : vector<9x16xf32>
    %181 = arith.truncf %180 : vector<9x16xf32> to vector<9x16xbf16>
    %c0_110 = arith.constant 0 : index
    %c7_111 = arith.constant 7 : index
    %c0_112 = arith.constant 0 : index
    %c0_113 = arith.constant 0 : index
    %182 = vector.load %arg4[%c0_110, %c7_111, %c0_112, %c0_113] : memref<1x9x9x16xbf16, #tpu.memory_space<vmem>>, vector<1x1x9x16xbf16>
    %183 = vector.shape_cast %182 : vector<1x1x9x16xbf16> to vector<9x16xbf16>
    %184 = vector.shape_cast %181 : vector<9x16xbf16> to vector<1x1x9x16xbf16>
    tpu.vector_store %arg4[%c0_110, %c7_111, %c0_112, %c0_113], %184 {strides = array<i32>} : memref<1x9x9x16xbf16, #tpu.memory_space<vmem>>, vector<1x1x9x16xbf16>,
    %c320 = arith.constant 320 : index
    %c0_114 = arith.constant 0 : index
    %185 = tpu.strided_load %arg5[%c320, %c0_114] {strides = array<i32: 2, 1>} : memref<358x16xf32, #tpu.memory_space<vmem>>, vector<9x16xf32>
    %c321 = arith.constant 321 : index
    %c0_115 = arith.constant 0 : index
    %186 = tpu.strided_load %arg5[%c321, %c0_115] {strides = array<i32: 2, 1>} : memref<358x16xf32, #tpu.memory_space<vmem>>, vector<9x16xf32>
    %c340 = arith.constant 340 : index
    %c0_116 = arith.constant 0 : index
    %187 = tpu.strided_load %arg5[%c340, %c0_116] {strides = array<i32: 2, 1>} : memref<358x16xf32, #tpu.memory_space<vmem>>, vector<9x16xf32>
    %c341 = arith.constant 341 : index
    %c0_117 = arith.constant 0 : index
    %188 = tpu.strided_load %arg5[%c341, %c0_117] {strides = array<i32: 2, 1>} : memref<358x16xf32, #tpu.memory_space<vmem>>, vector<9x16xf32>
    %189 = arith.maximumf %185, %186 : vector<9x16xf32>
    %190 = arith.maximumf %187, %188 : vector<9x16xf32>
    %191 = arith.maximumf %189, %190 : vector<9x16xf32>
    %192 = arith.truncf %191 : vector<9x16xf32> to vector<9x16xbf16>
    %c0_118 = arith.constant 0 : index
    %c8_119 = arith.constant 8 : index
    %c0_120 = arith.constant 0 : index
    %c0_121 = arith.constant 0 : index
    %193 = vector.load %arg4[%c0_118, %c8_119, %c0_120, %c0_121] : memref<1x9x9x16xbf16, #tpu.memory_space<vmem>>, vector<1x1x9x16xbf16>
    %194 = vector.shape_cast %193 : vector<1x1x9x16xbf16> to vector<9x16xbf16>
    %195 = vector.shape_cast %192 : vector<9x16xbf16> to vector<1x1x9x16xbf16>
    tpu.vector_store %arg4[%c0_118, %c8_119, %c0_120, %c0_121], %195 {strides = array<i32>} : memref<1x9x9x16xbf16, #tpu.memory_space<vmem>>, vector<1x1x9x16xbf16>,
    return
  }
  func.func @transform_0(%arg0: i32) -> (i32, i32, i32) {
    %c0_i32 = arith.constant 0 : i32
    %c0_i32_0 = arith.constant 0 : i32
    %c0_i32_1 = arith.constant 0 : i32
    return %arg0, %c0_i32, %c0_i32_0 : i32, i32, i32
  }
  func.func @transform_1(%arg0: i32) -> (i32, i32, i32) {
    %c0_i32 = arith.constant 0 : i32
    %c0_i32_0 = arith.constant 0 : i32
    %c0_i32_1 = arith.constant 0 : i32
    %c0_i32_2 = arith.constant 0 : i32
    return %c0_i32, %c0_i32_0, %c0_i32_1 : i32, i32, i32
  }
  func.func @transform_2(%arg0: i32) -> (i32, i32) {
    %c0_i32 = arith.constant 0 : i32
    %c0_i32_0 = arith.constant 0 : i32
    %c0_i32_1 = arith.constant 0 : i32
    return %c0_i32, %c0_i32_0 : i32, i32
  }
  func.func @transform_3(%arg0: i32) -> (i32, i32, i32, i32) {
    %c0_i32 = arith.constant 0 : i32
    %c0_i32_0 = arith.constant 0 : i32
    %c0_i32_1 = arith.constant 0 : i32
    %c0_i32_2 = arith.constant 0 : i32
    return %arg0, %c0_i32, %c0_i32_0, %c0_i32_1 : i32, i32, i32, i32
  }
}

module attributes {stable_mosaic.version = 11 : i64} {
  func.func @_conv_relu_pool_kernel(%arg0: i32, %arg1: memref<1x169x16xbf16, #tpu.memory_space<vmem>>, %arg2: memref<9x16x32xbf16, #tpu.memory_space<vmem>>, %arg3: memref<1x32xf32, #tpu.memory_space<vmem>>, %arg4: memref<1x5x5x32xbf16, #tpu.memory_space<vmem>>, %arg5: memref<141x32xf32, #tpu.memory_space<vmem>>) attributes {dimension_semantics = [#tpu.dimension_semantics<parallel>], iteration_bounds = array<i64: 2>, scalar_prefetch = 0 : i64, scratch_operands = 1 : i64, tpu.core_type = #tpu.core_type<tc>, window_params = [{transform_indices = @transform_0, window_bounds = array<i64: 1, 169, 16>}, {pipeline_mode = #tpu.pipeline_mode<synchronous>, transform_indices = @transform_1, window_bounds = array<i64: 9, 16, 32>}, {pipeline_mode = #tpu.pipeline_mode<synchronous>, transform_indices = @transform_2, window_bounds = array<i64: 1, 32>}, {transform_indices = @transform_3, window_bounds = array<i64: 1, 5, 5, 32>}]} {
    %cst = arith.constant 0.000000e+00 : f32
    %0 = vector.broadcast %cst : f32 to vector<141x32xf32>
    %c0 = arith.constant 0 : index
    %c0_0 = arith.constant 0 : index
    %c0_1 = arith.constant 0 : index
    %1 = vector.load %arg1[%c0, %c0_0, %c0_1] : memref<1x169x16xbf16, #tpu.memory_space<vmem>>, vector<1x141x16xbf16>
    %2 = vector.shape_cast %1 : vector<1x141x16xbf16> to vector<141x16xbf16>
    %c0_2 = arith.constant 0 : index
    %c0_3 = arith.constant 0 : index
    %c0_4 = arith.constant 0 : index
    %3 = vector.load %arg2[%c0_2, %c0_3, %c0_4] : memref<9x16x32xbf16, #tpu.memory_space<vmem>>, vector<1x16x32xbf16>
    %4 = vector.shape_cast %3 : vector<1x16x32xbf16> to vector<16x32xbf16>
    %cst_5 = arith.constant dense<0.000000e+00> : vector<141x32xf32>
    %5 = tpu.matmul %2, %4, %cst_5 {dimension_numbers = #tpu.dot_dimension_numbers<[1], [0], [0], [1], [0, 0, 1, 1], [], []>} : vector<141x16xbf16>, vector<16x32xbf16>, vector<141x32xf32> -> vector<141x32xf32>
    %6 = arith.addf %0, %5 : vector<141x32xf32>
    %c0_6 = arith.constant 0 : index
    %c1 = arith.constant 1 : index
    %c0_7 = arith.constant 0 : index
    %7 = vector.load %arg1[%c0_6, %c1, %c0_7] : memref<1x169x16xbf16, #tpu.memory_space<vmem>>, vector<1x141x16xbf16>
    %8 = vector.shape_cast %7 : vector<1x141x16xbf16> to vector<141x16xbf16>
    %c1_8 = arith.constant 1 : index
    %c0_9 = arith.constant 0 : index
    %c0_10 = arith.constant 0 : index
    %9 = vector.load %arg2[%c1_8, %c0_9, %c0_10] : memref<9x16x32xbf16, #tpu.memory_space<vmem>>, vector<1x16x32xbf16>
    %10 = vector.shape_cast %9 : vector<1x16x32xbf16> to vector<16x32xbf16>
    %cst_11 = arith.constant dense<0.000000e+00> : vector<141x32xf32>
    %11 = tpu.matmul %8, %10, %cst_11 {dimension_numbers = #tpu.dot_dimension_numbers<[1], [0], [0], [1], [0, 0, 1, 1], [], []>} : vector<141x16xbf16>, vector<16x32xbf16>, vector<141x32xf32> -> vector<141x32xf32>
    %12 = arith.addf %6, %11 : vector<141x32xf32>
    %c0_12 = arith.constant 0 : index
    %c2 = arith.constant 2 : index
    %c0_13 = arith.constant 0 : index
    %13 = vector.load %arg1[%c0_12, %c2, %c0_13] : memref<1x169x16xbf16, #tpu.memory_space<vmem>>, vector<1x141x16xbf16>
    %14 = vector.shape_cast %13 : vector<1x141x16xbf16> to vector<141x16xbf16>
    %c2_14 = arith.constant 2 : index
    %c0_15 = arith.constant 0 : index
    %c0_16 = arith.constant 0 : index
    %15 = vector.load %arg2[%c2_14, %c0_15, %c0_16] : memref<9x16x32xbf16, #tpu.memory_space<vmem>>, vector<1x16x32xbf16>
    %16 = vector.shape_cast %15 : vector<1x16x32xbf16> to vector<16x32xbf16>
    %cst_17 = arith.constant dense<0.000000e+00> : vector<141x32xf32>
    %17 = tpu.matmul %14, %16, %cst_17 {dimension_numbers = #tpu.dot_dimension_numbers<[1], [0], [0], [1], [0, 0, 1, 1], [], []>} : vector<141x16xbf16>, vector<16x32xbf16>, vector<141x32xf32> -> vector<141x32xf32>
    %18 = arith.addf %12, %17 : vector<141x32xf32>
    %c0_18 = arith.constant 0 : index
    %c13 = arith.constant 13 : index
    %c0_19 = arith.constant 0 : index
    %19 = vector.load %arg1[%c0_18, %c13, %c0_19] : memref<1x169x16xbf16, #tpu.memory_space<vmem>>, vector<1x141x16xbf16>
    %20 = vector.shape_cast %19 : vector<1x141x16xbf16> to vector<141x16xbf16>
    %c3 = arith.constant 3 : index
    %c0_20 = arith.constant 0 : index
    %c0_21 = arith.constant 0 : index
    %21 = vector.load %arg2[%c3, %c0_20, %c0_21] : memref<9x16x32xbf16, #tpu.memory_space<vmem>>, vector<1x16x32xbf16>
    %22 = vector.shape_cast %21 : vector<1x16x32xbf16> to vector<16x32xbf16>
    %cst_22 = arith.constant dense<0.000000e+00> : vector<141x32xf32>
    %23 = tpu.matmul %20, %22, %cst_22 {dimension_numbers = #tpu.dot_dimension_numbers<[1], [0], [0], [1], [0, 0, 1, 1], [], []>} : vector<141x16xbf16>, vector<16x32xbf16>, vector<141x32xf32> -> vector<141x32xf32>
    %24 = arith.addf %18, %23 : vector<141x32xf32>
    %c0_23 = arith.constant 0 : index
    %c14 = arith.constant 14 : index
    %c0_24 = arith.constant 0 : index
    %25 = vector.load %arg1[%c0_23, %c14, %c0_24] : memref<1x169x16xbf16, #tpu.memory_space<vmem>>, vector<1x141x16xbf16>
    %26 = vector.shape_cast %25 : vector<1x141x16xbf16> to vector<141x16xbf16>
    %c4 = arith.constant 4 : index
    %c0_25 = arith.constant 0 : index
    %c0_26 = arith.constant 0 : index
    %27 = vector.load %arg2[%c4, %c0_25, %c0_26] : memref<9x16x32xbf16, #tpu.memory_space<vmem>>, vector<1x16x32xbf16>
    %28 = vector.shape_cast %27 : vector<1x16x32xbf16> to vector<16x32xbf16>
    %cst_27 = arith.constant dense<0.000000e+00> : vector<141x32xf32>
    %29 = tpu.matmul %26, %28, %cst_27 {dimension_numbers = #tpu.dot_dimension_numbers<[1], [0], [0], [1], [0, 0, 1, 1], [], []>} : vector<141x16xbf16>, vector<16x32xbf16>, vector<141x32xf32> -> vector<141x32xf32>
    %30 = arith.addf %24, %29 : vector<141x32xf32>
    %c0_28 = arith.constant 0 : index
    %c15 = arith.constant 15 : index
    %c0_29 = arith.constant 0 : index
    %31 = vector.load %arg1[%c0_28, %c15, %c0_29] : memref<1x169x16xbf16, #tpu.memory_space<vmem>>, vector<1x141x16xbf16>
    %32 = vector.shape_cast %31 : vector<1x141x16xbf16> to vector<141x16xbf16>
    %c5 = arith.constant 5 : index
    %c0_30 = arith.constant 0 : index
    %c0_31 = arith.constant 0 : index
    %33 = vector.load %arg2[%c5, %c0_30, %c0_31] : memref<9x16x32xbf16, #tpu.memory_space<vmem>>, vector<1x16x32xbf16>
    %34 = vector.shape_cast %33 : vector<1x16x32xbf16> to vector<16x32xbf16>
    %cst_32 = arith.constant dense<0.000000e+00> : vector<141x32xf32>
    %35 = tpu.matmul %32, %34, %cst_32 {dimension_numbers = #tpu.dot_dimension_numbers<[1], [0], [0], [1], [0, 0, 1, 1], [], []>} : vector<141x16xbf16>, vector<16x32xbf16>, vector<141x32xf32> -> vector<141x32xf32>
    %36 = arith.addf %30, %35 : vector<141x32xf32>
    %c0_33 = arith.constant 0 : index
    %c26 = arith.constant 26 : index
    %c0_34 = arith.constant 0 : index
    %37 = vector.load %arg1[%c0_33, %c26, %c0_34] : memref<1x169x16xbf16, #tpu.memory_space<vmem>>, vector<1x141x16xbf16>
    %38 = vector.shape_cast %37 : vector<1x141x16xbf16> to vector<141x16xbf16>
    %c6 = arith.constant 6 : index
    %c0_35 = arith.constant 0 : index
    %c0_36 = arith.constant 0 : index
    %39 = vector.load %arg2[%c6, %c0_35, %c0_36] : memref<9x16x32xbf16, #tpu.memory_space<vmem>>, vector<1x16x32xbf16>
    %40 = vector.shape_cast %39 : vector<1x16x32xbf16> to vector<16x32xbf16>
    %cst_37 = arith.constant dense<0.000000e+00> : vector<141x32xf32>
    %41 = tpu.matmul %38, %40, %cst_37 {dimension_numbers = #tpu.dot_dimension_numbers<[1], [0], [0], [1], [0, 0, 1, 1], [], []>} : vector<141x16xbf16>, vector<16x32xbf16>, vector<141x32xf32> -> vector<141x32xf32>
    %42 = arith.addf %36, %41 : vector<141x32xf32>
    %c0_38 = arith.constant 0 : index
    %c27 = arith.constant 27 : index
    %c0_39 = arith.constant 0 : index
    %43 = vector.load %arg1[%c0_38, %c27, %c0_39] : memref<1x169x16xbf16, #tpu.memory_space<vmem>>, vector<1x141x16xbf16>
    %44 = vector.shape_cast %43 : vector<1x141x16xbf16> to vector<141x16xbf16>
    %c7 = arith.constant 7 : index
    %c0_40 = arith.constant 0 : index
    %c0_41 = arith.constant 0 : index
    %45 = vector.load %arg2[%c7, %c0_40, %c0_41] : memref<9x16x32xbf16, #tpu.memory_space<vmem>>, vector<1x16x32xbf16>
    %46 = vector.shape_cast %45 : vector<1x16x32xbf16> to vector<16x32xbf16>
    %cst_42 = arith.constant dense<0.000000e+00> : vector<141x32xf32>
    %47 = tpu.matmul %44, %46, %cst_42 {dimension_numbers = #tpu.dot_dimension_numbers<[1], [0], [0], [1], [0, 0, 1, 1], [], []>} : vector<141x16xbf16>, vector<16x32xbf16>, vector<141x32xf32> -> vector<141x32xf32>
    %48 = arith.addf %42, %47 : vector<141x32xf32>
    %c0_43 = arith.constant 0 : index
    %c28 = arith.constant 28 : index
    %c0_44 = arith.constant 0 : index
    %49 = vector.load %arg1[%c0_43, %c28, %c0_44] : memref<1x169x16xbf16, #tpu.memory_space<vmem>>, vector<1x141x16xbf16>
    %50 = vector.shape_cast %49 : vector<1x141x16xbf16> to vector<141x16xbf16>
    %c8 = arith.constant 8 : index
    %c0_45 = arith.constant 0 : index
    %c0_46 = arith.constant 0 : index
    %51 = vector.load %arg2[%c8, %c0_45, %c0_46] : memref<9x16x32xbf16, #tpu.memory_space<vmem>>, vector<1x16x32xbf16>
    %52 = vector.shape_cast %51 : vector<1x16x32xbf16> to vector<16x32xbf16>
    %cst_47 = arith.constant dense<0.000000e+00> : vector<141x32xf32>
    %53 = tpu.matmul %50, %52, %cst_47 {dimension_numbers = #tpu.dot_dimension_numbers<[1], [0], [0], [1], [0, 0, 1, 1], [], []>} : vector<141x16xbf16>, vector<16x32xbf16>, vector<141x32xf32> -> vector<141x32xf32>
    %54 = arith.addf %48, %53 : vector<141x32xf32>
    %c0_48 = arith.constant 0 : index
    %c0_49 = arith.constant 0 : index
    %55 = vector.load %arg3[%c0_48, %c0_49] : memref<1x32xf32, #tpu.memory_space<vmem>>, vector<1x32xf32>
    %56 = vector.broadcast %55 : vector<1x32xf32> to vector<141x32xf32>
    %57 = arith.addf %54, %56 : vector<141x32xf32>
    %cst_50 = arith.constant 0.000000e+00 : f32
    %58 = vector.broadcast %cst_50 : f32 to vector<141x32xf32>
    %59 = arith.maximumf %57, %58 : vector<141x32xf32>
    %c0_51 = arith.constant 0 : index
    %c0_52 = arith.constant 0 : index
    %60 = vector.load %arg5[%c0_51, %c0_52] : memref<141x32xf32, #tpu.memory_space<vmem>>, vector<141x32xf32>
    tpu.vector_store %arg5[%c0_51, %c0_52], %59 {strides = array<i32>} : memref<141x32xf32, #tpu.memory_space<vmem>>, vector<141x32xf32>,
    %c0_53 = arith.constant 0 : index
    %c0_54 = arith.constant 0 : index
    %61 = tpu.strided_load %arg5[%c0_53, %c0_54] {strides = array<i32: 2, 1>} : memref<141x32xf32, #tpu.memory_space<vmem>>, vector<5x32xf32>
    %c1_55 = arith.constant 1 : index
    %c0_56 = arith.constant 0 : index
    %62 = tpu.strided_load %arg5[%c1_55, %c0_56] {strides = array<i32: 2, 1>} : memref<141x32xf32, #tpu.memory_space<vmem>>, vector<5x32xf32>
    %c13_57 = arith.constant 13 : index
    %c0_58 = arith.constant 0 : index
    %63 = tpu.strided_load %arg5[%c13_57, %c0_58] {strides = array<i32: 2, 1>} : memref<141x32xf32, #tpu.memory_space<vmem>>, vector<5x32xf32>
    %c14_59 = arith.constant 14 : index
    %c0_60 = arith.constant 0 : index
    %64 = tpu.strided_load %arg5[%c14_59, %c0_60] {strides = array<i32: 2, 1>} : memref<141x32xf32, #tpu.memory_space<vmem>>, vector<5x32xf32>
    %65 = arith.maximumf %61, %62 : vector<5x32xf32>
    %66 = arith.maximumf %63, %64 : vector<5x32xf32>
    %67 = arith.maximumf %65, %66 : vector<5x32xf32>
    %68 = arith.truncf %67 : vector<5x32xf32> to vector<5x32xbf16>
    %c0_61 = arith.constant 0 : index
    %c0_62 = arith.constant 0 : index
    %c0_63 = arith.constant 0 : index
    %c0_64 = arith.constant 0 : index
    %69 = vector.load %arg4[%c0_61, %c0_62, %c0_63, %c0_64] : memref<1x5x5x32xbf16, #tpu.memory_space<vmem>>, vector<1x1x5x32xbf16>
    %70 = vector.shape_cast %69 : vector<1x1x5x32xbf16> to vector<5x32xbf16>
    %71 = vector.shape_cast %68 : vector<5x32xbf16> to vector<1x1x5x32xbf16>
    tpu.vector_store %arg4[%c0_61, %c0_62, %c0_63, %c0_64], %71 {strides = array<i32>} : memref<1x5x5x32xbf16, #tpu.memory_space<vmem>>, vector<1x1x5x32xbf16>,
    %c26_65 = arith.constant 26 : index
    %c0_66 = arith.constant 0 : index
    %72 = tpu.strided_load %arg5[%c26_65, %c0_66] {strides = array<i32: 2, 1>} : memref<141x32xf32, #tpu.memory_space<vmem>>, vector<5x32xf32>
    %c27_67 = arith.constant 27 : index
    %c0_68 = arith.constant 0 : index
    %73 = tpu.strided_load %arg5[%c27_67, %c0_68] {strides = array<i32: 2, 1>} : memref<141x32xf32, #tpu.memory_space<vmem>>, vector<5x32xf32>
    %c39 = arith.constant 39 : index
    %c0_69 = arith.constant 0 : index
    %74 = tpu.strided_load %arg5[%c39, %c0_69] {strides = array<i32: 2, 1>} : memref<141x32xf32, #tpu.memory_space<vmem>>, vector<5x32xf32>
    %c40 = arith.constant 40 : index
    %c0_70 = arith.constant 0 : index
    %75 = tpu.strided_load %arg5[%c40, %c0_70] {strides = array<i32: 2, 1>} : memref<141x32xf32, #tpu.memory_space<vmem>>, vector<5x32xf32>
    %76 = arith.maximumf %72, %73 : vector<5x32xf32>
    %77 = arith.maximumf %74, %75 : vector<5x32xf32>
    %78 = arith.maximumf %76, %77 : vector<5x32xf32>
    %79 = arith.truncf %78 : vector<5x32xf32> to vector<5x32xbf16>
    %c0_71 = arith.constant 0 : index
    %c1_72 = arith.constant 1 : index
    %c0_73 = arith.constant 0 : index
    %c0_74 = arith.constant 0 : index
    %80 = vector.load %arg4[%c0_71, %c1_72, %c0_73, %c0_74] : memref<1x5x5x32xbf16, #tpu.memory_space<vmem>>, vector<1x1x5x32xbf16>
    %81 = vector.shape_cast %80 : vector<1x1x5x32xbf16> to vector<5x32xbf16>
    %82 = vector.shape_cast %79 : vector<5x32xbf16> to vector<1x1x5x32xbf16>
    tpu.vector_store %arg4[%c0_71, %c1_72, %c0_73, %c0_74], %82 {strides = array<i32>} : memref<1x5x5x32xbf16, #tpu.memory_space<vmem>>, vector<1x1x5x32xbf16>,
    %c52 = arith.constant 52 : index
    %c0_75 = arith.constant 0 : index
    %83 = tpu.strided_load %arg5[%c52, %c0_75] {strides = array<i32: 2, 1>} : memref<141x32xf32, #tpu.memory_space<vmem>>, vector<5x32xf32>
    %c53 = arith.constant 53 : index
    %c0_76 = arith.constant 0 : index
    %84 = tpu.strided_load %arg5[%c53, %c0_76] {strides = array<i32: 2, 1>} : memref<141x32xf32, #tpu.memory_space<vmem>>, vector<5x32xf32>
    %c65 = arith.constant 65 : index
    %c0_77 = arith.constant 0 : index
    %85 = tpu.strided_load %arg5[%c65, %c0_77] {strides = array<i32: 2, 1>} : memref<141x32xf32, #tpu.memory_space<vmem>>, vector<5x32xf32>
    %c66 = arith.constant 66 : index
    %c0_78 = arith.constant 0 : index
    %86 = tpu.strided_load %arg5[%c66, %c0_78] {strides = array<i32: 2, 1>} : memref<141x32xf32, #tpu.memory_space<vmem>>, vector<5x32xf32>
    %87 = arith.maximumf %83, %84 : vector<5x32xf32>
    %88 = arith.maximumf %85, %86 : vector<5x32xf32>
    %89 = arith.maximumf %87, %88 : vector<5x32xf32>
    %90 = arith.truncf %89 : vector<5x32xf32> to vector<5x32xbf16>
    %c0_79 = arith.constant 0 : index
    %c2_80 = arith.constant 2 : index
    %c0_81 = arith.constant 0 : index
    %c0_82 = arith.constant 0 : index
    %91 = vector.load %arg4[%c0_79, %c2_80, %c0_81, %c0_82] : memref<1x5x5x32xbf16, #tpu.memory_space<vmem>>, vector<1x1x5x32xbf16>
    %92 = vector.shape_cast %91 : vector<1x1x5x32xbf16> to vector<5x32xbf16>
    %93 = vector.shape_cast %90 : vector<5x32xbf16> to vector<1x1x5x32xbf16>
    tpu.vector_store %arg4[%c0_79, %c2_80, %c0_81, %c0_82], %93 {strides = array<i32>} : memref<1x5x5x32xbf16, #tpu.memory_space<vmem>>, vector<1x1x5x32xbf16>,
    %c78 = arith.constant 78 : index
    %c0_83 = arith.constant 0 : index
    %94 = tpu.strided_load %arg5[%c78, %c0_83] {strides = array<i32: 2, 1>} : memref<141x32xf32, #tpu.memory_space<vmem>>, vector<5x32xf32>
    %c79 = arith.constant 79 : index
    %c0_84 = arith.constant 0 : index
    %95 = tpu.strided_load %arg5[%c79, %c0_84] {strides = array<i32: 2, 1>} : memref<141x32xf32, #tpu.memory_space<vmem>>, vector<5x32xf32>
    %c91 = arith.constant 91 : index
    %c0_85 = arith.constant 0 : index
    %96 = tpu.strided_load %arg5[%c91, %c0_85] {strides = array<i32: 2, 1>} : memref<141x32xf32, #tpu.memory_space<vmem>>, vector<5x32xf32>
    %c92 = arith.constant 92 : index
    %c0_86 = arith.constant 0 : index
    %97 = tpu.strided_load %arg5[%c92, %c0_86] {strides = array<i32: 2, 1>} : memref<141x32xf32, #tpu.memory_space<vmem>>, vector<5x32xf32>
    %98 = arith.maximumf %94, %95 : vector<5x32xf32>
    %99 = arith.maximumf %96, %97 : vector<5x32xf32>
    %100 = arith.maximumf %98, %99 : vector<5x32xf32>
    %101 = arith.truncf %100 : vector<5x32xf32> to vector<5x32xbf16>
    %c0_87 = arith.constant 0 : index
    %c3_88 = arith.constant 3 : index
    %c0_89 = arith.constant 0 : index
    %c0_90 = arith.constant 0 : index
    %102 = vector.load %arg4[%c0_87, %c3_88, %c0_89, %c0_90] : memref<1x5x5x32xbf16, #tpu.memory_space<vmem>>, vector<1x1x5x32xbf16>
    %103 = vector.shape_cast %102 : vector<1x1x5x32xbf16> to vector<5x32xbf16>
    %104 = vector.shape_cast %101 : vector<5x32xbf16> to vector<1x1x5x32xbf16>
    tpu.vector_store %arg4[%c0_87, %c3_88, %c0_89, %c0_90], %104 {strides = array<i32>} : memref<1x5x5x32xbf16, #tpu.memory_space<vmem>>, vector<1x1x5x32xbf16>,
    %c104 = arith.constant 104 : index
    %c0_91 = arith.constant 0 : index
    %105 = tpu.strided_load %arg5[%c104, %c0_91] {strides = array<i32: 2, 1>} : memref<141x32xf32, #tpu.memory_space<vmem>>, vector<5x32xf32>
    %c105 = arith.constant 105 : index
    %c0_92 = arith.constant 0 : index
    %106 = tpu.strided_load %arg5[%c105, %c0_92] {strides = array<i32: 2, 1>} : memref<141x32xf32, #tpu.memory_space<vmem>>, vector<5x32xf32>
    %c117 = arith.constant 117 : index
    %c0_93 = arith.constant 0 : index
    %107 = tpu.strided_load %arg5[%c117, %c0_93] {strides = array<i32: 2, 1>} : memref<141x32xf32, #tpu.memory_space<vmem>>, vector<5x32xf32>
    %c118 = arith.constant 118 : index
    %c0_94 = arith.constant 0 : index
    %108 = tpu.strided_load %arg5[%c118, %c0_94] {strides = array<i32: 2, 1>} : memref<141x32xf32, #tpu.memory_space<vmem>>, vector<5x32xf32>
    %109 = arith.maximumf %105, %106 : vector<5x32xf32>
    %110 = arith.maximumf %107, %108 : vector<5x32xf32>
    %111 = arith.maximumf %109, %110 : vector<5x32xf32>
    %112 = arith.truncf %111 : vector<5x32xf32> to vector<5x32xbf16>
    %c0_95 = arith.constant 0 : index
    %c4_96 = arith.constant 4 : index
    %c0_97 = arith.constant 0 : index
    %c0_98 = arith.constant 0 : index
    %113 = vector.load %arg4[%c0_95, %c4_96, %c0_97, %c0_98] : memref<1x5x5x32xbf16, #tpu.memory_space<vmem>>, vector<1x1x5x32xbf16>
    %114 = vector.shape_cast %113 : vector<1x1x5x32xbf16> to vector<5x32xbf16>
    %115 = vector.shape_cast %112 : vector<5x32xbf16> to vector<1x1x5x32xbf16>
    tpu.vector_store %arg4[%c0_95, %c4_96, %c0_97, %c0_98], %115 {strides = array<i32>} : memref<1x5x5x32xbf16, #tpu.memory_space<vmem>>, vector<1x1x5x32xbf16>,
    return
  }
  func.func @transform_0(%arg0: i32) -> (i32, i32, i32) {
    %c0_i32 = arith.constant 0 : i32
    %c0_i32_0 = arith.constant 0 : i32
    %c0_i32_1 = arith.constant 0 : i32
    return %arg0, %c0_i32, %c0_i32_0 : i32, i32, i32
  }
  func.func @transform_1(%arg0: i32) -> (i32, i32, i32) {
    %c0_i32 = arith.constant 0 : i32
    %c0_i32_0 = arith.constant 0 : i32
    %c0_i32_1 = arith.constant 0 : i32
    %c0_i32_2 = arith.constant 0 : i32
    return %c0_i32, %c0_i32_0, %c0_i32_1 : i32, i32, i32
  }
  func.func @transform_2(%arg0: i32) -> (i32, i32) {
    %c0_i32 = arith.constant 0 : i32
    %c0_i32_0 = arith.constant 0 : i32
    %c0_i32_1 = arith.constant 0 : i32
    return %c0_i32, %c0_i32_0 : i32, i32
  }
  func.func @transform_3(%arg0: i32) -> (i32, i32, i32, i32) {
    %c0_i32 = arith.constant 0 : i32
    %c0_i32_0 = arith.constant 0 : i32
    %c0_i32_1 = arith.constant 0 : i32
    %c0_i32_2 = arith.constant 0 : i32
    return %arg0, %c0_i32, %c0_i32_0, %c0_i32_1 : i32, i32, i32, i32
  }
}

module attributes {stable_mosaic.version = 11 : i64} {
  func.func @_conv_relu_pool_kernel(%arg0: i32, %arg1: memref<1x81x32xbf16, #tpu.memory_space<vmem>>, %arg2: memref<9x32x64xbf16, #tpu.memory_space<vmem>>, %arg3: memref<1x64xf32, #tpu.memory_space<vmem>>, %arg4: memref<1x3x3x64xbf16, #tpu.memory_space<vmem>>, %arg5: memref<61x64xf32, #tpu.memory_space<vmem>>) attributes {dimension_semantics = [#tpu.dimension_semantics<parallel>], iteration_bounds = array<i64: 2>, scalar_prefetch = 0 : i64, scratch_operands = 1 : i64, tpu.core_type = #tpu.core_type<tc>, window_params = [{transform_indices = @transform_0, window_bounds = array<i64: 1, 81, 32>}, {pipeline_mode = #tpu.pipeline_mode<synchronous>, transform_indices = @transform_1, window_bounds = array<i64: 9, 32, 64>}, {pipeline_mode = #tpu.pipeline_mode<synchronous>, transform_indices = @transform_2, window_bounds = array<i64: 1, 64>}, {transform_indices = @transform_3, window_bounds = array<i64: 1, 3, 3, 64>}]} {
    %cst = arith.constant 0.000000e+00 : f32
    %0 = vector.broadcast %cst : f32 to vector<61x64xf32>
    %c0 = arith.constant 0 : index
    %c0_0 = arith.constant 0 : index
    %c0_1 = arith.constant 0 : index
    %1 = vector.load %arg1[%c0, %c0_0, %c0_1] : memref<1x81x32xbf16, #tpu.memory_space<vmem>>, vector<1x61x32xbf16>
    %2 = vector.shape_cast %1 : vector<1x61x32xbf16> to vector<61x32xbf16>
    %c0_2 = arith.constant 0 : index
    %c0_3 = arith.constant 0 : index
    %c0_4 = arith.constant 0 : index
    %3 = vector.load %arg2[%c0_2, %c0_3, %c0_4] : memref<9x32x64xbf16, #tpu.memory_space<vmem>>, vector<1x32x64xbf16>
    %4 = vector.shape_cast %3 : vector<1x32x64xbf16> to vector<32x64xbf16>
    %cst_5 = arith.constant dense<0.000000e+00> : vector<61x64xf32>
    %5 = tpu.matmul %2, %4, %cst_5 {dimension_numbers = #tpu.dot_dimension_numbers<[1], [0], [0], [1], [0, 0, 1, 1], [], []>} : vector<61x32xbf16>, vector<32x64xbf16>, vector<61x64xf32> -> vector<61x64xf32>
    %6 = arith.addf %0, %5 : vector<61x64xf32>
    %c0_6 = arith.constant 0 : index
    %c1 = arith.constant 1 : index
    %c0_7 = arith.constant 0 : index
    %7 = vector.load %arg1[%c0_6, %c1, %c0_7] : memref<1x81x32xbf16, #tpu.memory_space<vmem>>, vector<1x61x32xbf16>
    %8 = vector.shape_cast %7 : vector<1x61x32xbf16> to vector<61x32xbf16>
    %c1_8 = arith.constant 1 : index
    %c0_9 = arith.constant 0 : index
    %c0_10 = arith.constant 0 : index
    %9 = vector.load %arg2[%c1_8, %c0_9, %c0_10] : memref<9x32x64xbf16, #tpu.memory_space<vmem>>, vector<1x32x64xbf16>
    %10 = vector.shape_cast %9 : vector<1x32x64xbf16> to vector<32x64xbf16>
    %cst_11 = arith.constant dense<0.000000e+00> : vector<61x64xf32>
    %11 = tpu.matmul %8, %10, %cst_11 {dimension_numbers = #tpu.dot_dimension_numbers<[1], [0], [0], [1], [0, 0, 1, 1], [], []>} : vector<61x32xbf16>, vector<32x64xbf16>, vector<61x64xf32> -> vector<61x64xf32>
    %12 = arith.addf %6, %11 : vector<61x64xf32>
    %c0_12 = arith.constant 0 : index
    %c2 = arith.constant 2 : index
    %c0_13 = arith.constant 0 : index
    %13 = vector.load %arg1[%c0_12, %c2, %c0_13] : memref<1x81x32xbf16, #tpu.memory_space<vmem>>, vector<1x61x32xbf16>
    %14 = vector.shape_cast %13 : vector<1x61x32xbf16> to vector<61x32xbf16>
    %c2_14 = arith.constant 2 : index
    %c0_15 = arith.constant 0 : index
    %c0_16 = arith.constant 0 : index
    %15 = vector.load %arg2[%c2_14, %c0_15, %c0_16] : memref<9x32x64xbf16, #tpu.memory_space<vmem>>, vector<1x32x64xbf16>
    %16 = vector.shape_cast %15 : vector<1x32x64xbf16> to vector<32x64xbf16>
    %cst_17 = arith.constant dense<0.000000e+00> : vector<61x64xf32>
    %17 = tpu.matmul %14, %16, %cst_17 {dimension_numbers = #tpu.dot_dimension_numbers<[1], [0], [0], [1], [0, 0, 1, 1], [], []>} : vector<61x32xbf16>, vector<32x64xbf16>, vector<61x64xf32> -> vector<61x64xf32>
    %18 = arith.addf %12, %17 : vector<61x64xf32>
    %c0_18 = arith.constant 0 : index
    %c9 = arith.constant 9 : index
    %c0_19 = arith.constant 0 : index
    %19 = vector.load %arg1[%c0_18, %c9, %c0_19] : memref<1x81x32xbf16, #tpu.memory_space<vmem>>, vector<1x61x32xbf16>
    %20 = vector.shape_cast %19 : vector<1x61x32xbf16> to vector<61x32xbf16>
    %c3 = arith.constant 3 : index
    %c0_20 = arith.constant 0 : index
    %c0_21 = arith.constant 0 : index
    %21 = vector.load %arg2[%c3, %c0_20, %c0_21] : memref<9x32x64xbf16, #tpu.memory_space<vmem>>, vector<1x32x64xbf16>
    %22 = vector.shape_cast %21 : vector<1x32x64xbf16> to vector<32x64xbf16>
    %cst_22 = arith.constant dense<0.000000e+00> : vector<61x64xf32>
    %23 = tpu.matmul %20, %22, %cst_22 {dimension_numbers = #tpu.dot_dimension_numbers<[1], [0], [0], [1], [0, 0, 1, 1], [], []>} : vector<61x32xbf16>, vector<32x64xbf16>, vector<61x64xf32> -> vector<61x64xf32>
    %24 = arith.addf %18, %23 : vector<61x64xf32>
    %c0_23 = arith.constant 0 : index
    %c10 = arith.constant 10 : index
    %c0_24 = arith.constant 0 : index
    %25 = vector.load %arg1[%c0_23, %c10, %c0_24] : memref<1x81x32xbf16, #tpu.memory_space<vmem>>, vector<1x61x32xbf16>
    %26 = vector.shape_cast %25 : vector<1x61x32xbf16> to vector<61x32xbf16>
    %c4 = arith.constant 4 : index
    %c0_25 = arith.constant 0 : index
    %c0_26 = arith.constant 0 : index
    %27 = vector.load %arg2[%c4, %c0_25, %c0_26] : memref<9x32x64xbf16, #tpu.memory_space<vmem>>, vector<1x32x64xbf16>
    %28 = vector.shape_cast %27 : vector<1x32x64xbf16> to vector<32x64xbf16>
    %cst_27 = arith.constant dense<0.000000e+00> : vector<61x64xf32>
    %29 = tpu.matmul %26, %28, %cst_27 {dimension_numbers = #tpu.dot_dimension_numbers<[1], [0], [0], [1], [0, 0, 1, 1], [], []>} : vector<61x32xbf16>, vector<32x64xbf16>, vector<61x64xf32> -> vector<61x64xf32>
    %30 = arith.addf %24, %29 : vector<61x64xf32>
    %c0_28 = arith.constant 0 : index
    %c11 = arith.constant 11 : index
    %c0_29 = arith.constant 0 : index
    %31 = vector.load %arg1[%c0_28, %c11, %c0_29] : memref<1x81x32xbf16, #tpu.memory_space<vmem>>, vector<1x61x32xbf16>
    %32 = vector.shape_cast %31 : vector<1x61x32xbf16> to vector<61x32xbf16>
    %c5 = arith.constant 5 : index
    %c0_30 = arith.constant 0 : index
    %c0_31 = arith.constant 0 : index
    %33 = vector.load %arg2[%c5, %c0_30, %c0_31] : memref<9x32x64xbf16, #tpu.memory_space<vmem>>, vector<1x32x64xbf16>
    %34 = vector.shape_cast %33 : vector<1x32x64xbf16> to vector<32x64xbf16>
    %cst_32 = arith.constant dense<0.000000e+00> : vector<61x64xf32>
    %35 = tpu.matmul %32, %34, %cst_32 {dimension_numbers = #tpu.dot_dimension_numbers<[1], [0], [0], [1], [0, 0, 1, 1], [], []>} : vector<61x32xbf16>, vector<32x64xbf16>, vector<61x64xf32> -> vector<61x64xf32>
    %36 = arith.addf %30, %35 : vector<61x64xf32>
    %c0_33 = arith.constant 0 : index
    %c18 = arith.constant 18 : index
    %c0_34 = arith.constant 0 : index
    %37 = vector.load %arg1[%c0_33, %c18, %c0_34] : memref<1x81x32xbf16, #tpu.memory_space<vmem>>, vector<1x61x32xbf16>
    %38 = vector.shape_cast %37 : vector<1x61x32xbf16> to vector<61x32xbf16>
    %c6 = arith.constant 6 : index
    %c0_35 = arith.constant 0 : index
    %c0_36 = arith.constant 0 : index
    %39 = vector.load %arg2[%c6, %c0_35, %c0_36] : memref<9x32x64xbf16, #tpu.memory_space<vmem>>, vector<1x32x64xbf16>
    %40 = vector.shape_cast %39 : vector<1x32x64xbf16> to vector<32x64xbf16>
    %cst_37 = arith.constant dense<0.000000e+00> : vector<61x64xf32>
    %41 = tpu.matmul %38, %40, %cst_37 {dimension_numbers = #tpu.dot_dimension_numbers<[1], [0], [0], [1], [0, 0, 1, 1], [], []>} : vector<61x32xbf16>, vector<32x64xbf16>, vector<61x64xf32> -> vector<61x64xf32>
    %42 = arith.addf %36, %41 : vector<61x64xf32>
    %c0_38 = arith.constant 0 : index
    %c19 = arith.constant 19 : index
    %c0_39 = arith.constant 0 : index
    %43 = vector.load %arg1[%c0_38, %c19, %c0_39] : memref<1x81x32xbf16, #tpu.memory_space<vmem>>, vector<1x61x32xbf16>
    %44 = vector.shape_cast %43 : vector<1x61x32xbf16> to vector<61x32xbf16>
    %c7 = arith.constant 7 : index
    %c0_40 = arith.constant 0 : index
    %c0_41 = arith.constant 0 : index
    %45 = vector.load %arg2[%c7, %c0_40, %c0_41] : memref<9x32x64xbf16, #tpu.memory_space<vmem>>, vector<1x32x64xbf16>
    %46 = vector.shape_cast %45 : vector<1x32x64xbf16> to vector<32x64xbf16>
    %cst_42 = arith.constant dense<0.000000e+00> : vector<61x64xf32>
    %47 = tpu.matmul %44, %46, %cst_42 {dimension_numbers = #tpu.dot_dimension_numbers<[1], [0], [0], [1], [0, 0, 1, 1], [], []>} : vector<61x32xbf16>, vector<32x64xbf16>, vector<61x64xf32> -> vector<61x64xf32>
    %48 = arith.addf %42, %47 : vector<61x64xf32>
    %c0_43 = arith.constant 0 : index
    %c20 = arith.constant 20 : index
    %c0_44 = arith.constant 0 : index
    %49 = vector.load %arg1[%c0_43, %c20, %c0_44] : memref<1x81x32xbf16, #tpu.memory_space<vmem>>, vector<1x61x32xbf16>
    %50 = vector.shape_cast %49 : vector<1x61x32xbf16> to vector<61x32xbf16>
    %c8 = arith.constant 8 : index
    %c0_45 = arith.constant 0 : index
    %c0_46 = arith.constant 0 : index
    %51 = vector.load %arg2[%c8, %c0_45, %c0_46] : memref<9x32x64xbf16, #tpu.memory_space<vmem>>, vector<1x32x64xbf16>
    %52 = vector.shape_cast %51 : vector<1x32x64xbf16> to vector<32x64xbf16>
    %cst_47 = arith.constant dense<0.000000e+00> : vector<61x64xf32>
    %53 = tpu.matmul %50, %52, %cst_47 {dimension_numbers = #tpu.dot_dimension_numbers<[1], [0], [0], [1], [0, 0, 1, 1], [], []>} : vector<61x32xbf16>, vector<32x64xbf16>, vector<61x64xf32> -> vector<61x64xf32>
    %54 = arith.addf %48, %53 : vector<61x64xf32>
    %c0_48 = arith.constant 0 : index
    %c0_49 = arith.constant 0 : index
    %55 = vector.load %arg3[%c0_48, %c0_49] : memref<1x64xf32, #tpu.memory_space<vmem>>, vector<1x64xf32>
    %56 = vector.broadcast %55 : vector<1x64xf32> to vector<61x64xf32>
    %57 = arith.addf %54, %56 : vector<61x64xf32>
    %cst_50 = arith.constant 0.000000e+00 : f32
    %58 = vector.broadcast %cst_50 : f32 to vector<61x64xf32>
    %59 = arith.maximumf %57, %58 : vector<61x64xf32>
    %c0_51 = arith.constant 0 : index
    %c0_52 = arith.constant 0 : index
    %60 = vector.load %arg5[%c0_51, %c0_52] : memref<61x64xf32, #tpu.memory_space<vmem>>, vector<61x64xf32>
    tpu.vector_store %arg5[%c0_51, %c0_52], %59 {strides = array<i32>} : memref<61x64xf32, #tpu.memory_space<vmem>>, vector<61x64xf32>,
    %c0_53 = arith.constant 0 : index
    %c0_54 = arith.constant 0 : index
    %61 = tpu.strided_load %arg5[%c0_53, %c0_54] {strides = array<i32: 2, 1>} : memref<61x64xf32, #tpu.memory_space<vmem>>, vector<3x64xf32>
    %c1_55 = arith.constant 1 : index
    %c0_56 = arith.constant 0 : index
    %62 = tpu.strided_load %arg5[%c1_55, %c0_56] {strides = array<i32: 2, 1>} : memref<61x64xf32, #tpu.memory_space<vmem>>, vector<3x64xf32>
    %c9_57 = arith.constant 9 : index
    %c0_58 = arith.constant 0 : index
    %63 = tpu.strided_load %arg5[%c9_57, %c0_58] {strides = array<i32: 2, 1>} : memref<61x64xf32, #tpu.memory_space<vmem>>, vector<3x64xf32>
    %c10_59 = arith.constant 10 : index
    %c0_60 = arith.constant 0 : index
    %64 = tpu.strided_load %arg5[%c10_59, %c0_60] {strides = array<i32: 2, 1>} : memref<61x64xf32, #tpu.memory_space<vmem>>, vector<3x64xf32>
    %65 = arith.maximumf %61, %62 : vector<3x64xf32>
    %66 = arith.maximumf %63, %64 : vector<3x64xf32>
    %67 = arith.maximumf %65, %66 : vector<3x64xf32>
    %68 = arith.truncf %67 : vector<3x64xf32> to vector<3x64xbf16>
    %c0_61 = arith.constant 0 : index
    %c0_62 = arith.constant 0 : index
    %c0_63 = arith.constant 0 : index
    %c0_64 = arith.constant 0 : index
    %69 = vector.load %arg4[%c0_61, %c0_62, %c0_63, %c0_64] : memref<1x3x3x64xbf16, #tpu.memory_space<vmem>>, vector<1x1x3x64xbf16>
    %70 = vector.shape_cast %69 : vector<1x1x3x64xbf16> to vector<3x64xbf16>
    %71 = vector.shape_cast %68 : vector<3x64xbf16> to vector<1x1x3x64xbf16>
    tpu.vector_store %arg4[%c0_61, %c0_62, %c0_63, %c0_64], %71 {strides = array<i32>} : memref<1x3x3x64xbf16, #tpu.memory_space<vmem>>, vector<1x1x3x64xbf16>,
    %c18_65 = arith.constant 18 : index
    %c0_66 = arith.constant 0 : index
    %72 = tpu.strided_load %arg5[%c18_65, %c0_66] {strides = array<i32: 2, 1>} : memref<61x64xf32, #tpu.memory_space<vmem>>, vector<3x64xf32>
    %c19_67 = arith.constant 19 : index
    %c0_68 = arith.constant 0 : index
    %73 = tpu.strided_load %arg5[%c19_67, %c0_68] {strides = array<i32: 2, 1>} : memref<61x64xf32, #tpu.memory_space<vmem>>, vector<3x64xf32>
    %c27 = arith.constant 27 : index
    %c0_69 = arith.constant 0 : index
    %74 = tpu.strided_load %arg5[%c27, %c0_69] {strides = array<i32: 2, 1>} : memref<61x64xf32, #tpu.memory_space<vmem>>, vector<3x64xf32>
    %c28 = arith.constant 28 : index
    %c0_70 = arith.constant 0 : index
    %75 = tpu.strided_load %arg5[%c28, %c0_70] {strides = array<i32: 2, 1>} : memref<61x64xf32, #tpu.memory_space<vmem>>, vector<3x64xf32>
    %76 = arith.maximumf %72, %73 : vector<3x64xf32>
    %77 = arith.maximumf %74, %75 : vector<3x64xf32>
    %78 = arith.maximumf %76, %77 : vector<3x64xf32>
    %79 = arith.truncf %78 : vector<3x64xf32> to vector<3x64xbf16>
    %c0_71 = arith.constant 0 : index
    %c1_72 = arith.constant 1 : index
    %c0_73 = arith.constant 0 : index
    %c0_74 = arith.constant 0 : index
    %80 = vector.load %arg4[%c0_71, %c1_72, %c0_73, %c0_74] : memref<1x3x3x64xbf16, #tpu.memory_space<vmem>>, vector<1x1x3x64xbf16>
    %81 = vector.shape_cast %80 : vector<1x1x3x64xbf16> to vector<3x64xbf16>
    %82 = vector.shape_cast %79 : vector<3x64xbf16> to vector<1x1x3x64xbf16>
    tpu.vector_store %arg4[%c0_71, %c1_72, %c0_73, %c0_74], %82 {strides = array<i32>} : memref<1x3x3x64xbf16, #tpu.memory_space<vmem>>, vector<1x1x3x64xbf16>,
    %c36 = arith.constant 36 : index
    %c0_75 = arith.constant 0 : index
    %83 = tpu.strided_load %arg5[%c36, %c0_75] {strides = array<i32: 2, 1>} : memref<61x64xf32, #tpu.memory_space<vmem>>, vector<3x64xf32>
    %c37 = arith.constant 37 : index
    %c0_76 = arith.constant 0 : index
    %84 = tpu.strided_load %arg5[%c37, %c0_76] {strides = array<i32: 2, 1>} : memref<61x64xf32, #tpu.memory_space<vmem>>, vector<3x64xf32>
    %c45 = arith.constant 45 : index
    %c0_77 = arith.constant 0 : index
    %85 = tpu.strided_load %arg5[%c45, %c0_77] {strides = array<i32: 2, 1>} : memref<61x64xf32, #tpu.memory_space<vmem>>, vector<3x64xf32>
    %c46 = arith.constant 46 : index
    %c0_78 = arith.constant 0 : index
    %86 = tpu.strided_load %arg5[%c46, %c0_78] {strides = array<i32: 2, 1>} : memref<61x64xf32, #tpu.memory_space<vmem>>, vector<3x64xf32>
    %87 = arith.maximumf %83, %84 : vector<3x64xf32>
    %88 = arith.maximumf %85, %86 : vector<3x64xf32>
    %89 = arith.maximumf %87, %88 : vector<3x64xf32>
    %90 = arith.truncf %89 : vector<3x64xf32> to vector<3x64xbf16>
    %c0_79 = arith.constant 0 : index
    %c2_80 = arith.constant 2 : index
    %c0_81 = arith.constant 0 : index
    %c0_82 = arith.constant 0 : index
    %91 = vector.load %arg4[%c0_79, %c2_80, %c0_81, %c0_82] : memref<1x3x3x64xbf16, #tpu.memory_space<vmem>>, vector<1x1x3x64xbf16>
    %92 = vector.shape_cast %91 : vector<1x1x3x64xbf16> to vector<3x64xbf16>
    %93 = vector.shape_cast %90 : vector<3x64xbf16> to vector<1x1x3x64xbf16>
    tpu.vector_store %arg4[%c0_79, %c2_80, %c0_81, %c0_82], %93 {strides = array<i32>} : memref<1x3x3x64xbf16, #tpu.memory_space<vmem>>, vector<1x1x3x64xbf16>,
    return
  }
  func.func @transform_0(%arg0: i32) -> (i32, i32, i32) {
    %c0_i32 = arith.constant 0 : i32
    %c0_i32_0 = arith.constant 0 : i32
    %c0_i32_1 = arith.constant 0 : i32
    return %arg0, %c0_i32, %c0_i32_0 : i32, i32, i32
  }
  func.func @transform_1(%arg0: i32) -> (i32, i32, i32) {
    %c0_i32 = arith.constant 0 : i32
    %c0_i32_0 = arith.constant 0 : i32
    %c0_i32_1 = arith.constant 0 : i32
    %c0_i32_2 = arith.constant 0 : i32
    return %c0_i32, %c0_i32_0, %c0_i32_1 : i32, i32, i32
  }
  func.func @transform_2(%arg0: i32) -> (i32, i32) {
    %c0_i32 = arith.constant 0 : i32
    %c0_i32_0 = arith.constant 0 : i32
    %c0_i32_1 = arith.constant 0 : i32
    return %c0_i32, %c0_i32_0 : i32, i32
  }
  func.func @transform_3(%arg0: i32) -> (i32, i32, i32, i32) {
    %c0_i32 = arith.constant 0 : i32
    %c0_i32_0 = arith.constant 0 : i32
    %c0_i32_1 = arith.constant 0 : i32
    %c0_i32_2 = arith.constant 0 : i32
    return %arg0, %c0_i32, %c0_i32_0, %c0_i32_1 : i32, i32, i32, i32
  }
}

module attributes {stable_mosaic.version = 11 : i64} {
  func.func @_conv_relu_pool_kernel(%arg0: i32, %arg1: memref<1x49x64xbf16, #tpu.memory_space<vmem>>, %arg2: memref<9x64x128xbf16, #tpu.memory_space<vmem>>, %arg3: memref<1x128xf32, #tpu.memory_space<vmem>>, %arg4: memref<1x2x2x128xbf16, #tpu.memory_space<vmem>>, %arg5: memref<33x128xf32, #tpu.memory_space<vmem>>) attributes {dimension_semantics = [#tpu.dimension_semantics<parallel>], iteration_bounds = array<i64: 2>, scalar_prefetch = 0 : i64, scratch_operands = 1 : i64, tpu.core_type = #tpu.core_type<tc>, window_params = [{transform_indices = @transform_0, window_bounds = array<i64: 1, 49, 64>}, {pipeline_mode = #tpu.pipeline_mode<synchronous>, transform_indices = @transform_1, window_bounds = array<i64: 9, 64, 128>}, {pipeline_mode = #tpu.pipeline_mode<synchronous>, transform_indices = @transform_2, window_bounds = array<i64: 1, 128>}, {transform_indices = @transform_3, window_bounds = array<i64: 1, 2, 2, 128>}]} {
    %cst = arith.constant 0.000000e+00 : f32
    %0 = vector.broadcast %cst : f32 to vector<33x128xf32>
    %c0 = arith.constant 0 : index
    %c0_0 = arith.constant 0 : index
    %c0_1 = arith.constant 0 : index
    %1 = vector.load %arg1[%c0, %c0_0, %c0_1] : memref<1x49x64xbf16, #tpu.memory_space<vmem>>, vector<1x33x64xbf16>
    %2 = vector.shape_cast %1 : vector<1x33x64xbf16> to vector<33x64xbf16>
    %c0_2 = arith.constant 0 : index
    %c0_3 = arith.constant 0 : index
    %c0_4 = arith.constant 0 : index
    %3 = vector.load %arg2[%c0_2, %c0_3, %c0_4] : memref<9x64x128xbf16, #tpu.memory_space<vmem>>, vector<1x64x128xbf16>
    %4 = vector.shape_cast %3 : vector<1x64x128xbf16> to vector<64x128xbf16>
    %cst_5 = arith.constant dense<0.000000e+00> : vector<33x128xf32>
    %5 = tpu.matmul %2, %4, %cst_5 {dimension_numbers = #tpu.dot_dimension_numbers<[1], [0], [0], [1], [0, 0, 1, 1], [], []>} : vector<33x64xbf16>, vector<64x128xbf16>, vector<33x128xf32> -> vector<33x128xf32>
    %6 = arith.addf %0, %5 : vector<33x128xf32>
    %c0_6 = arith.constant 0 : index
    %c1 = arith.constant 1 : index
    %c0_7 = arith.constant 0 : index
    %7 = vector.load %arg1[%c0_6, %c1, %c0_7] : memref<1x49x64xbf16, #tpu.memory_space<vmem>>, vector<1x33x64xbf16>
    %8 = vector.shape_cast %7 : vector<1x33x64xbf16> to vector<33x64xbf16>
    %c1_8 = arith.constant 1 : index
    %c0_9 = arith.constant 0 : index
    %c0_10 = arith.constant 0 : index
    %9 = vector.load %arg2[%c1_8, %c0_9, %c0_10] : memref<9x64x128xbf16, #tpu.memory_space<vmem>>, vector<1x64x128xbf16>
    %10 = vector.shape_cast %9 : vector<1x64x128xbf16> to vector<64x128xbf16>
    %cst_11 = arith.constant dense<0.000000e+00> : vector<33x128xf32>
    %11 = tpu.matmul %8, %10, %cst_11 {dimension_numbers = #tpu.dot_dimension_numbers<[1], [0], [0], [1], [0, 0, 1, 1], [], []>} : vector<33x64xbf16>, vector<64x128xbf16>, vector<33x128xf32> -> vector<33x128xf32>
    %12 = arith.addf %6, %11 : vector<33x128xf32>
    %c0_12 = arith.constant 0 : index
    %c2 = arith.constant 2 : index
    %c0_13 = arith.constant 0 : index
    %13 = vector.load %arg1[%c0_12, %c2, %c0_13] : memref<1x49x64xbf16, #tpu.memory_space<vmem>>, vector<1x33x64xbf16>
    %14 = vector.shape_cast %13 : vector<1x33x64xbf16> to vector<33x64xbf16>
    %c2_14 = arith.constant 2 : index
    %c0_15 = arith.constant 0 : index
    %c0_16 = arith.constant 0 : index
    %15 = vector.load %arg2[%c2_14, %c0_15, %c0_16] : memref<9x64x128xbf16, #tpu.memory_space<vmem>>, vector<1x64x128xbf16>
    %16 = vector.shape_cast %15 : vector<1x64x128xbf16> to vector<64x128xbf16>
    %cst_17 = arith.constant dense<0.000000e+00> : vector<33x128xf32>
    %17 = tpu.matmul %14, %16, %cst_17 {dimension_numbers = #tpu.dot_dimension_numbers<[1], [0], [0], [1], [0, 0, 1, 1], [], []>} : vector<33x64xbf16>, vector<64x128xbf16>, vector<33x128xf32> -> vector<33x128xf32>
    %18 = arith.addf %12, %17 : vector<33x128xf32>
    %c0_18 = arith.constant 0 : index
    %c7 = arith.constant 7 : index
    %c0_19 = arith.constant 0 : index
    %19 = vector.load %arg1[%c0_18, %c7, %c0_19] : memref<1x49x64xbf16, #tpu.memory_space<vmem>>, vector<1x33x64xbf16>
    %20 = vector.shape_cast %19 : vector<1x33x64xbf16> to vector<33x64xbf16>
    %c3 = arith.constant 3 : index
    %c0_20 = arith.constant 0 : index
    %c0_21 = arith.constant 0 : index
    %21 = vector.load %arg2[%c3, %c0_20, %c0_21] : memref<9x64x128xbf16, #tpu.memory_space<vmem>>, vector<1x64x128xbf16>
    %22 = vector.shape_cast %21 : vector<1x64x128xbf16> to vector<64x128xbf16>
    %cst_22 = arith.constant dense<0.000000e+00> : vector<33x128xf32>
    %23 = tpu.matmul %20, %22, %cst_22 {dimension_numbers = #tpu.dot_dimension_numbers<[1], [0], [0], [1], [0, 0, 1, 1], [], []>} : vector<33x64xbf16>, vector<64x128xbf16>, vector<33x128xf32> -> vector<33x128xf32>
    %24 = arith.addf %18, %23 : vector<33x128xf32>
    %c0_23 = arith.constant 0 : index
    %c8 = arith.constant 8 : index
    %c0_24 = arith.constant 0 : index
    %25 = vector.load %arg1[%c0_23, %c8, %c0_24] : memref<1x49x64xbf16, #tpu.memory_space<vmem>>, vector<1x33x64xbf16>
    %26 = vector.shape_cast %25 : vector<1x33x64xbf16> to vector<33x64xbf16>
    %c4 = arith.constant 4 : index
    %c0_25 = arith.constant 0 : index
    %c0_26 = arith.constant 0 : index
    %27 = vector.load %arg2[%c4, %c0_25, %c0_26] : memref<9x64x128xbf16, #tpu.memory_space<vmem>>, vector<1x64x128xbf16>
    %28 = vector.shape_cast %27 : vector<1x64x128xbf16> to vector<64x128xbf16>
    %cst_27 = arith.constant dense<0.000000e+00> : vector<33x128xf32>
    %29 = tpu.matmul %26, %28, %cst_27 {dimension_numbers = #tpu.dot_dimension_numbers<[1], [0], [0], [1], [0, 0, 1, 1], [], []>} : vector<33x64xbf16>, vector<64x128xbf16>, vector<33x128xf32> -> vector<33x128xf32>
    %30 = arith.addf %24, %29 : vector<33x128xf32>
    %c0_28 = arith.constant 0 : index
    %c9 = arith.constant 9 : index
    %c0_29 = arith.constant 0 : index
    %31 = vector.load %arg1[%c0_28, %c9, %c0_29] : memref<1x49x64xbf16, #tpu.memory_space<vmem>>, vector<1x33x64xbf16>
    %32 = vector.shape_cast %31 : vector<1x33x64xbf16> to vector<33x64xbf16>
    %c5 = arith.constant 5 : index
    %c0_30 = arith.constant 0 : index
    %c0_31 = arith.constant 0 : index
    %33 = vector.load %arg2[%c5, %c0_30, %c0_31] : memref<9x64x128xbf16, #tpu.memory_space<vmem>>, vector<1x64x128xbf16>
    %34 = vector.shape_cast %33 : vector<1x64x128xbf16> to vector<64x128xbf16>
    %cst_32 = arith.constant dense<0.000000e+00> : vector<33x128xf32>
    %35 = tpu.matmul %32, %34, %cst_32 {dimension_numbers = #tpu.dot_dimension_numbers<[1], [0], [0], [1], [0, 0, 1, 1], [], []>} : vector<33x64xbf16>, vector<64x128xbf16>, vector<33x128xf32> -> vector<33x128xf32>
    %36 = arith.addf %30, %35 : vector<33x128xf32>
    %c0_33 = arith.constant 0 : index
    %c14 = arith.constant 14 : index
    %c0_34 = arith.constant 0 : index
    %37 = vector.load %arg1[%c0_33, %c14, %c0_34] : memref<1x49x64xbf16, #tpu.memory_space<vmem>>, vector<1x33x64xbf16>
    %38 = vector.shape_cast %37 : vector<1x33x64xbf16> to vector<33x64xbf16>
    %c6 = arith.constant 6 : index
    %c0_35 = arith.constant 0 : index
    %c0_36 = arith.constant 0 : index
    %39 = vector.load %arg2[%c6, %c0_35, %c0_36] : memref<9x64x128xbf16, #tpu.memory_space<vmem>>, vector<1x64x128xbf16>
    %40 = vector.shape_cast %39 : vector<1x64x128xbf16> to vector<64x128xbf16>
    %cst_37 = arith.constant dense<0.000000e+00> : vector<33x128xf32>
    %41 = tpu.matmul %38, %40, %cst_37 {dimension_numbers = #tpu.dot_dimension_numbers<[1], [0], [0], [1], [0, 0, 1, 1], [], []>} : vector<33x64xbf16>, vector<64x128xbf16>, vector<33x128xf32> -> vector<33x128xf32>
    %42 = arith.addf %36, %41 : vector<33x128xf32>
    %c0_38 = arith.constant 0 : index
    %c15 = arith.constant 15 : index
    %c0_39 = arith.constant 0 : index
    %43 = vector.load %arg1[%c0_38, %c15, %c0_39] : memref<1x49x64xbf16, #tpu.memory_space<vmem>>, vector<1x33x64xbf16>
    %44 = vector.shape_cast %43 : vector<1x33x64xbf16> to vector<33x64xbf16>
    %c7_40 = arith.constant 7 : index
    %c0_41 = arith.constant 0 : index
    %c0_42 = arith.constant 0 : index
    %45 = vector.load %arg2[%c7_40, %c0_41, %c0_42] : memref<9x64x128xbf16, #tpu.memory_space<vmem>>, vector<1x64x128xbf16>
    %46 = vector.shape_cast %45 : vector<1x64x128xbf16> to vector<64x128xbf16>
    %cst_43 = arith.constant dense<0.000000e+00> : vector<33x128xf32>
    %47 = tpu.matmul %44, %46, %cst_43 {dimension_numbers = #tpu.dot_dimension_numbers<[1], [0], [0], [1], [0, 0, 1, 1], [], []>} : vector<33x64xbf16>, vector<64x128xbf16>, vector<33x128xf32> -> vector<33x128xf32>
    %48 = arith.addf %42, %47 : vector<33x128xf32>
    %c0_44 = arith.constant 0 : index
    %c16 = arith.constant 16 : index
    %c0_45 = arith.constant 0 : index
    %49 = vector.load %arg1[%c0_44, %c16, %c0_45] : memref<1x49x64xbf16, #tpu.memory_space<vmem>>, vector<1x33x64xbf16>
    %50 = vector.shape_cast %49 : vector<1x33x64xbf16> to vector<33x64xbf16>
    %c8_46 = arith.constant 8 : index
    %c0_47 = arith.constant 0 : index
    %c0_48 = arith.constant 0 : index
    %51 = vector.load %arg2[%c8_46, %c0_47, %c0_48] : memref<9x64x128xbf16, #tpu.memory_space<vmem>>, vector<1x64x128xbf16>
    %52 = vector.shape_cast %51 : vector<1x64x128xbf16> to vector<64x128xbf16>
    %cst_49 = arith.constant dense<0.000000e+00> : vector<33x128xf32>
    %53 = tpu.matmul %50, %52, %cst_49 {dimension_numbers = #tpu.dot_dimension_numbers<[1], [0], [0], [1], [0, 0, 1, 1], [], []>} : vector<33x64xbf16>, vector<64x128xbf16>, vector<33x128xf32> -> vector<33x128xf32>
    %54 = arith.addf %48, %53 : vector<33x128xf32>
    %c0_50 = arith.constant 0 : index
    %c0_51 = arith.constant 0 : index
    %55 = vector.load %arg3[%c0_50, %c0_51] : memref<1x128xf32, #tpu.memory_space<vmem>>, vector<1x128xf32>
    %56 = vector.broadcast %55 : vector<1x128xf32> to vector<33x128xf32>
    %57 = arith.addf %54, %56 : vector<33x128xf32>
    %cst_52 = arith.constant 0.000000e+00 : f32
    %58 = vector.broadcast %cst_52 : f32 to vector<33x128xf32>
    %59 = arith.maximumf %57, %58 : vector<33x128xf32>
    %c0_53 = arith.constant 0 : index
    %c0_54 = arith.constant 0 : index
    %60 = vector.load %arg5[%c0_53, %c0_54] : memref<33x128xf32, #tpu.memory_space<vmem>>, vector<33x128xf32>
    tpu.vector_store %arg5[%c0_53, %c0_54], %59 {strides = array<i32>} : memref<33x128xf32, #tpu.memory_space<vmem>>, vector<33x128xf32>,
    %c0_55 = arith.constant 0 : index
    %c0_56 = arith.constant 0 : index
    %61 = tpu.strided_load %arg5[%c0_55, %c0_56] {strides = array<i32: 2, 1>} : memref<33x128xf32, #tpu.memory_space<vmem>>, vector<2x128xf32>
    %c1_57 = arith.constant 1 : index
    %c0_58 = arith.constant 0 : index
    %62 = tpu.strided_load %arg5[%c1_57, %c0_58] {strides = array<i32: 2, 1>} : memref<33x128xf32, #tpu.memory_space<vmem>>, vector<2x128xf32>
    %c7_59 = arith.constant 7 : index
    %c0_60 = arith.constant 0 : index
    %63 = tpu.strided_load %arg5[%c7_59, %c0_60] {strides = array<i32: 2, 1>} : memref<33x128xf32, #tpu.memory_space<vmem>>, vector<2x128xf32>
    %c8_61 = arith.constant 8 : index
    %c0_62 = arith.constant 0 : index
    %64 = tpu.strided_load %arg5[%c8_61, %c0_62] {strides = array<i32: 2, 1>} : memref<33x128xf32, #tpu.memory_space<vmem>>, vector<2x128xf32>
    %65 = arith.maximumf %61, %62 : vector<2x128xf32>
    %66 = arith.maximumf %63, %64 : vector<2x128xf32>
    %67 = arith.maximumf %65, %66 : vector<2x128xf32>
    %68 = arith.truncf %67 : vector<2x128xf32> to vector<2x128xbf16>
    %c0_63 = arith.constant 0 : index
    %c0_64 = arith.constant 0 : index
    %c0_65 = arith.constant 0 : index
    %c0_66 = arith.constant 0 : index
    %69 = vector.load %arg4[%c0_63, %c0_64, %c0_65, %c0_66] : memref<1x2x2x128xbf16, #tpu.memory_space<vmem>>, vector<1x1x2x128xbf16>
    %70 = vector.shape_cast %69 : vector<1x1x2x128xbf16> to vector<2x128xbf16>
    %71 = vector.shape_cast %68 : vector<2x128xbf16> to vector<1x1x2x128xbf16>
    tpu.vector_store %arg4[%c0_63, %c0_64, %c0_65, %c0_66], %71 {strides = array<i32>} : memref<1x2x2x128xbf16, #tpu.memory_space<vmem>>, vector<1x1x2x128xbf16>,
    %c14_67 = arith.constant 14 : index
    %c0_68 = arith.constant 0 : index
    %72 = tpu.strided_load %arg5[%c14_67, %c0_68] {strides = array<i32: 2, 1>} : memref<33x128xf32, #tpu.memory_space<vmem>>, vector<2x128xf32>
    %c15_69 = arith.constant 15 : index
    %c0_70 = arith.constant 0 : index
    %73 = tpu.strided_load %arg5[%c15_69, %c0_70] {strides = array<i32: 2, 1>} : memref<33x128xf32, #tpu.memory_space<vmem>>, vector<2x128xf32>
    %c21 = arith.constant 21 : index
    %c0_71 = arith.constant 0 : index
    %74 = tpu.strided_load %arg5[%c21, %c0_71] {strides = array<i32: 2, 1>} : memref<33x128xf32, #tpu.memory_space<vmem>>, vector<2x128xf32>
    %c22 = arith.constant 22 : index
    %c0_72 = arith.constant 0 : index
    %75 = tpu.strided_load %arg5[%c22, %c0_72] {strides = array<i32: 2, 1>} : memref<33x128xf32, #tpu.memory_space<vmem>>, vector<2x128xf32>
    %76 = arith.maximumf %72, %73 : vector<2x128xf32>
    %77 = arith.maximumf %74, %75 : vector<2x128xf32>
    %78 = arith.maximumf %76, %77 : vector<2x128xf32>
    %79 = arith.truncf %78 : vector<2x128xf32> to vector<2x128xbf16>
    %c0_73 = arith.constant 0 : index
    %c1_74 = arith.constant 1 : index
    %c0_75 = arith.constant 0 : index
    %c0_76 = arith.constant 0 : index
    %80 = vector.load %arg4[%c0_73, %c1_74, %c0_75, %c0_76] : memref<1x2x2x128xbf16, #tpu.memory_space<vmem>>, vector<1x1x2x128xbf16>
    %81 = vector.shape_cast %80 : vector<1x1x2x128xbf16> to vector<2x128xbf16>
    %82 = vector.shape_cast %79 : vector<2x128xbf16> to vector<1x1x2x128xbf16>
    tpu.vector_store %arg4[%c0_73, %c1_74, %c0_75, %c0_76], %82 {strides = array<i32>} : memref<1x2x2x128xbf16, #tpu.memory_space<vmem>>, vector<1x1x2x128xbf16>,
    return
  }
  func.func @transform_0(%arg0: i32) -> (i32, i32, i32) {
    %c0_i32 = arith.constant 0 : i32
    %c0_i32_0 = arith.constant 0 : i32
    %c0_i32_1 = arith.constant 0 : i32
    return %arg0, %c0_i32, %c0_i32_0 : i32, i32, i32
  }
  func.func @transform_1(%arg0: i32) -> (i32, i32, i32) {
    %c0_i32 = arith.constant 0 : i32
    %c0_i32_0 = arith.constant 0 : i32
    %c0_i32_1 = arith.constant 0 : i32
    %c0_i32_2 = arith.constant 0 : i32
    return %c0_i32, %c0_i32_0, %c0_i32_1 : i32, i32, i32
  }
  func.func @transform_2(%arg0: i32) -> (i32, i32) {
    %c0_i32 = arith.constant 0 : i32
    %c0_i32_0 = arith.constant 0 : i32
    %c0_i32_1 = arith.constant 0 : i32
    return %c0_i32, %c0_i32_0 : i32, i32
  }
  func.func @transform_3(%arg0: i32) -> (i32, i32, i32, i32) {
    %c0_i32 = arith.constant 0 : i32
    %c0_i32_0 = arith.constant 0 : i32
    %c0_i32_1 = arith.constant 0 : i32
    %c0_i32_2 = arith.constant 0 : i32
    return %arg0, %c0_i32, %c0_i32_0, %c0_i32_1 : i32, i32, i32, i32
  }
}

module attributes {stable_mosaic.version = 11 : i64} {
  func.func @_conv_relu_pool_kernel(%arg0: i32, %arg1: memref<1x36x128xbf16, #tpu.memory_space<vmem>>, %arg2: memref<9x128x128xbf16, #tpu.memory_space<vmem>>, %arg3: memref<1x128xf32, #tpu.memory_space<vmem>>, %arg4: memref<1x4x4x128xbf16, #tpu.memory_space<vmem>>, %arg5: memref<22x128xf32, #tpu.memory_space<vmem>>) attributes {dimension_semantics = [#tpu.dimension_semantics<parallel>], iteration_bounds = array<i64: 2>, scalar_prefetch = 0 : i64, scratch_operands = 1 : i64, tpu.core_type = #tpu.core_type<tc>, window_params = [{transform_indices = @transform_0, window_bounds = array<i64: 1, 36, 128>}, {pipeline_mode = #tpu.pipeline_mode<synchronous>, transform_indices = @transform_1, window_bounds = array<i64: 9, 128, 128>}, {pipeline_mode = #tpu.pipeline_mode<synchronous>, transform_indices = @transform_2, window_bounds = array<i64: 1, 128>}, {transform_indices = @transform_3, window_bounds = array<i64: 1, 4, 4, 128>}]} {
    %cst = arith.constant 0.000000e+00 : f32
    %0 = vector.broadcast %cst : f32 to vector<22x128xf32>
    %c0 = arith.constant 0 : index
    %c0_0 = arith.constant 0 : index
    %c0_1 = arith.constant 0 : index
    %1 = vector.load %arg1[%c0, %c0_0, %c0_1] : memref<1x36x128xbf16, #tpu.memory_space<vmem>>, vector<1x22x128xbf16>
    %2 = vector.shape_cast %1 : vector<1x22x128xbf16> to vector<22x128xbf16>
    %c0_2 = arith.constant 0 : index
    %c0_3 = arith.constant 0 : index
    %c0_4 = arith.constant 0 : index
    %3 = vector.load %arg2[%c0_2, %c0_3, %c0_4] : memref<9x128x128xbf16, #tpu.memory_space<vmem>>, vector<1x128x128xbf16>
    %4 = vector.shape_cast %3 : vector<1x128x128xbf16> to vector<128x128xbf16>
    %cst_5 = arith.constant dense<0.000000e+00> : vector<22x128xf32>
    %5 = tpu.matmul %2, %4, %cst_5 {dimension_numbers = #tpu.dot_dimension_numbers<[1], [0], [0], [1], [0, 0, 1, 1], [], []>} : vector<22x128xbf16>, vector<128x128xbf16>, vector<22x128xf32> -> vector<22x128xf32>
    %6 = arith.addf %0, %5 : vector<22x128xf32>
    %c0_6 = arith.constant 0 : index
    %c1 = arith.constant 1 : index
    %c0_7 = arith.constant 0 : index
    %7 = vector.load %arg1[%c0_6, %c1, %c0_7] : memref<1x36x128xbf16, #tpu.memory_space<vmem>>, vector<1x22x128xbf16>
    %8 = vector.shape_cast %7 : vector<1x22x128xbf16> to vector<22x128xbf16>
    %c1_8 = arith.constant 1 : index
    %c0_9 = arith.constant 0 : index
    %c0_10 = arith.constant 0 : index
    %9 = vector.load %arg2[%c1_8, %c0_9, %c0_10] : memref<9x128x128xbf16, #tpu.memory_space<vmem>>, vector<1x128x128xbf16>
    %10 = vector.shape_cast %9 : vector<1x128x128xbf16> to vector<128x128xbf16>
    %cst_11 = arith.constant dense<0.000000e+00> : vector<22x128xf32>
    %11 = tpu.matmul %8, %10, %cst_11 {dimension_numbers = #tpu.dot_dimension_numbers<[1], [0], [0], [1], [0, 0, 1, 1], [], []>} : vector<22x128xbf16>, vector<128x128xbf16>, vector<22x128xf32> -> vector<22x128xf32>
    %12 = arith.addf %6, %11 : vector<22x128xf32>
    %c0_12 = arith.constant 0 : index
    %c2 = arith.constant 2 : index
    %c0_13 = arith.constant 0 : index
    %13 = vector.load %arg1[%c0_12, %c2, %c0_13] : memref<1x36x128xbf16, #tpu.memory_space<vmem>>, vector<1x22x128xbf16>
    %14 = vector.shape_cast %13 : vector<1x22x128xbf16> to vector<22x128xbf16>
    %c2_14 = arith.constant 2 : index
    %c0_15 = arith.constant 0 : index
    %c0_16 = arith.constant 0 : index
    %15 = vector.load %arg2[%c2_14, %c0_15, %c0_16] : memref<9x128x128xbf16, #tpu.memory_space<vmem>>, vector<1x128x128xbf16>
    %16 = vector.shape_cast %15 : vector<1x128x128xbf16> to vector<128x128xbf16>
    %cst_17 = arith.constant dense<0.000000e+00> : vector<22x128xf32>
    %17 = tpu.matmul %14, %16, %cst_17 {dimension_numbers = #tpu.dot_dimension_numbers<[1], [0], [0], [1], [0, 0, 1, 1], [], []>} : vector<22x128xbf16>, vector<128x128xbf16>, vector<22x128xf32> -> vector<22x128xf32>
    %18 = arith.addf %12, %17 : vector<22x128xf32>
    %c0_18 = arith.constant 0 : index
    %c6 = arith.constant 6 : index
    %c0_19 = arith.constant 0 : index
    %19 = vector.load %arg1[%c0_18, %c6, %c0_19] : memref<1x36x128xbf16, #tpu.memory_space<vmem>>, vector<1x22x128xbf16>
    %20 = vector.shape_cast %19 : vector<1x22x128xbf16> to vector<22x128xbf16>
    %c3 = arith.constant 3 : index
    %c0_20 = arith.constant 0 : index
    %c0_21 = arith.constant 0 : index
    %21 = vector.load %arg2[%c3, %c0_20, %c0_21] : memref<9x128x128xbf16, #tpu.memory_space<vmem>>, vector<1x128x128xbf16>
    %22 = vector.shape_cast %21 : vector<1x128x128xbf16> to vector<128x128xbf16>
    %cst_22 = arith.constant dense<0.000000e+00> : vector<22x128xf32>
    %23 = tpu.matmul %20, %22, %cst_22 {dimension_numbers = #tpu.dot_dimension_numbers<[1], [0], [0], [1], [0, 0, 1, 1], [], []>} : vector<22x128xbf16>, vector<128x128xbf16>, vector<22x128xf32> -> vector<22x128xf32>
    %24 = arith.addf %18, %23 : vector<22x128xf32>
    %c0_23 = arith.constant 0 : index
    %c7 = arith.constant 7 : index
    %c0_24 = arith.constant 0 : index
    %25 = vector.load %arg1[%c0_23, %c7, %c0_24] : memref<1x36x128xbf16, #tpu.memory_space<vmem>>, vector<1x22x128xbf16>
    %26 = vector.shape_cast %25 : vector<1x22x128xbf16> to vector<22x128xbf16>
    %c4 = arith.constant 4 : index
    %c0_25 = arith.constant 0 : index
    %c0_26 = arith.constant 0 : index
    %27 = vector.load %arg2[%c4, %c0_25, %c0_26] : memref<9x128x128xbf16, #tpu.memory_space<vmem>>, vector<1x128x128xbf16>
    %28 = vector.shape_cast %27 : vector<1x128x128xbf16> to vector<128x128xbf16>
    %cst_27 = arith.constant dense<0.000000e+00> : vector<22x128xf32>
    %29 = tpu.matmul %26, %28, %cst_27 {dimension_numbers = #tpu.dot_dimension_numbers<[1], [0], [0], [1], [0, 0, 1, 1], [], []>} : vector<22x128xbf16>, vector<128x128xbf16>, vector<22x128xf32> -> vector<22x128xf32>
    %30 = arith.addf %24, %29 : vector<22x128xf32>
    %c0_28 = arith.constant 0 : index
    %c8 = arith.constant 8 : index
    %c0_29 = arith.constant 0 : index
    %31 = vector.load %arg1[%c0_28, %c8, %c0_29] : memref<1x36x128xbf16, #tpu.memory_space<vmem>>, vector<1x22x128xbf16>
    %32 = vector.shape_cast %31 : vector<1x22x128xbf16> to vector<22x128xbf16>
    %c5 = arith.constant 5 : index
    %c0_30 = arith.constant 0 : index
    %c0_31 = arith.constant 0 : index
    %33 = vector.load %arg2[%c5, %c0_30, %c0_31] : memref<9x128x128xbf16, #tpu.memory_space<vmem>>, vector<1x128x128xbf16>
    %34 = vector.shape_cast %33 : vector<1x128x128xbf16> to vector<128x128xbf16>
    %cst_32 = arith.constant dense<0.000000e+00> : vector<22x128xf32>
    %35 = tpu.matmul %32, %34, %cst_32 {dimension_numbers = #tpu.dot_dimension_numbers<[1], [0], [0], [1], [0, 0, 1, 1], [], []>} : vector<22x128xbf16>, vector<128x128xbf16>, vector<22x128xf32> -> vector<22x128xf32>
    %36 = arith.addf %30, %35 : vector<22x128xf32>
    %c0_33 = arith.constant 0 : index
    %c12 = arith.constant 12 : index
    %c0_34 = arith.constant 0 : index
    %37 = vector.load %arg1[%c0_33, %c12, %c0_34] : memref<1x36x128xbf16, #tpu.memory_space<vmem>>, vector<1x22x128xbf16>
    %38 = vector.shape_cast %37 : vector<1x22x128xbf16> to vector<22x128xbf16>
    %c6_35 = arith.constant 6 : index
    %c0_36 = arith.constant 0 : index
    %c0_37 = arith.constant 0 : index
    %39 = vector.load %arg2[%c6_35, %c0_36, %c0_37] : memref<9x128x128xbf16, #tpu.memory_space<vmem>>, vector<1x128x128xbf16>
    %40 = vector.shape_cast %39 : vector<1x128x128xbf16> to vector<128x128xbf16>
    %cst_38 = arith.constant dense<0.000000e+00> : vector<22x128xf32>
    %41 = tpu.matmul %38, %40, %cst_38 {dimension_numbers = #tpu.dot_dimension_numbers<[1], [0], [0], [1], [0, 0, 1, 1], [], []>} : vector<22x128xbf16>, vector<128x128xbf16>, vector<22x128xf32> -> vector<22x128xf32>
    %42 = arith.addf %36, %41 : vector<22x128xf32>
    %c0_39 = arith.constant 0 : index
    %c13 = arith.constant 13 : index
    %c0_40 = arith.constant 0 : index
    %43 = vector.load %arg1[%c0_39, %c13, %c0_40] : memref<1x36x128xbf16, #tpu.memory_space<vmem>>, vector<1x22x128xbf16>
    %44 = vector.shape_cast %43 : vector<1x22x128xbf16> to vector<22x128xbf16>
    %c7_41 = arith.constant 7 : index
    %c0_42 = arith.constant 0 : index
    %c0_43 = arith.constant 0 : index
    %45 = vector.load %arg2[%c7_41, %c0_42, %c0_43] : memref<9x128x128xbf16, #tpu.memory_space<vmem>>, vector<1x128x128xbf16>
    %46 = vector.shape_cast %45 : vector<1x128x128xbf16> to vector<128x128xbf16>
    %cst_44 = arith.constant dense<0.000000e+00> : vector<22x128xf32>
    %47 = tpu.matmul %44, %46, %cst_44 {dimension_numbers = #tpu.dot_dimension_numbers<[1], [0], [0], [1], [0, 0, 1, 1], [], []>} : vector<22x128xbf16>, vector<128x128xbf16>, vector<22x128xf32> -> vector<22x128xf32>
    %48 = arith.addf %42, %47 : vector<22x128xf32>
    %c0_45 = arith.constant 0 : index
    %c14 = arith.constant 14 : index
    %c0_46 = arith.constant 0 : index
    %49 = vector.load %arg1[%c0_45, %c14, %c0_46] : memref<1x36x128xbf16, #tpu.memory_space<vmem>>, vector<1x22x128xbf16>
    %50 = vector.shape_cast %49 : vector<1x22x128xbf16> to vector<22x128xbf16>
    %c8_47 = arith.constant 8 : index
    %c0_48 = arith.constant 0 : index
    %c0_49 = arith.constant 0 : index
    %51 = vector.load %arg2[%c8_47, %c0_48, %c0_49] : memref<9x128x128xbf16, #tpu.memory_space<vmem>>, vector<1x128x128xbf16>
    %52 = vector.shape_cast %51 : vector<1x128x128xbf16> to vector<128x128xbf16>
    %cst_50 = arith.constant dense<0.000000e+00> : vector<22x128xf32>
    %53 = tpu.matmul %50, %52, %cst_50 {dimension_numbers = #tpu.dot_dimension_numbers<[1], [0], [0], [1], [0, 0, 1, 1], [], []>} : vector<22x128xbf16>, vector<128x128xbf16>, vector<22x128xf32> -> vector<22x128xf32>
    %54 = arith.addf %48, %53 : vector<22x128xf32>
    %c0_51 = arith.constant 0 : index
    %c0_52 = arith.constant 0 : index
    %55 = vector.load %arg3[%c0_51, %c0_52] : memref<1x128xf32, #tpu.memory_space<vmem>>, vector<1x128xf32>
    %56 = vector.broadcast %55 : vector<1x128xf32> to vector<22x128xf32>
    %57 = arith.addf %54, %56 : vector<22x128xf32>
    %cst_53 = arith.constant 0.000000e+00 : f32
    %58 = vector.broadcast %cst_53 : f32 to vector<22x128xf32>
    %59 = arith.maximumf %57, %58 : vector<22x128xf32>
    %c0_54 = arith.constant 0 : index
    %c0_55 = arith.constant 0 : index
    %60 = vector.load %arg5[%c0_54, %c0_55] : memref<22x128xf32, #tpu.memory_space<vmem>>, vector<22x128xf32>
    tpu.vector_store %arg5[%c0_54, %c0_55], %59 {strides = array<i32>} : memref<22x128xf32, #tpu.memory_space<vmem>>, vector<22x128xf32>,
    %c0_56 = arith.constant 0 : index
    %c0_57 = arith.constant 0 : index
    %61 = vector.load %arg5[%c0_56, %c0_57] : memref<22x128xf32, #tpu.memory_space<vmem>>, vector<4x128xf32>
    %62 = arith.truncf %61 : vector<4x128xf32> to vector<4x128xbf16>
    %c0_58 = arith.constant 0 : index
    %c0_59 = arith.constant 0 : index
    %c0_60 = arith.constant 0 : index
    %c0_61 = arith.constant 0 : index
    %63 = vector.load %arg4[%c0_58, %c0_59, %c0_60, %c0_61] : memref<1x4x4x128xbf16, #tpu.memory_space<vmem>>, vector<1x1x4x128xbf16>
    %64 = vector.shape_cast %63 : vector<1x1x4x128xbf16> to vector<4x128xbf16>
    %65 = vector.shape_cast %62 : vector<4x128xbf16> to vector<1x1x4x128xbf16>
    tpu.vector_store %arg4[%c0_58, %c0_59, %c0_60, %c0_61], %65 {strides = array<i32>} : memref<1x4x4x128xbf16, #tpu.memory_space<vmem>>, vector<1x1x4x128xbf16>,
    %c6_62 = arith.constant 6 : index
    %c0_63 = arith.constant 0 : index
    %66 = vector.load %arg5[%c6_62, %c0_63] : memref<22x128xf32, #tpu.memory_space<vmem>>, vector<4x128xf32>
    %67 = arith.truncf %66 : vector<4x128xf32> to vector<4x128xbf16>
    %c0_64 = arith.constant 0 : index
    %c1_65 = arith.constant 1 : index
    %c0_66 = arith.constant 0 : index
    %c0_67 = arith.constant 0 : index
    %68 = vector.load %arg4[%c0_64, %c1_65, %c0_66, %c0_67] : memref<1x4x4x128xbf16, #tpu.memory_space<vmem>>, vector<1x1x4x128xbf16>
    %69 = vector.shape_cast %68 : vector<1x1x4x128xbf16> to vector<4x128xbf16>
    %70 = vector.shape_cast %67 : vector<4x128xbf16> to vector<1x1x4x128xbf16>
    tpu.vector_store %arg4[%c0_64, %c1_65, %c0_66, %c0_67], %70 {strides = array<i32>} : memref<1x4x4x128xbf16, #tpu.memory_space<vmem>>, vector<1x1x4x128xbf16>,
    %c12_68 = arith.constant 12 : index
    %c0_69 = arith.constant 0 : index
    %71 = vector.load %arg5[%c12_68, %c0_69] : memref<22x128xf32, #tpu.memory_space<vmem>>, vector<4x128xf32>
    %72 = arith.truncf %71 : vector<4x128xf32> to vector<4x128xbf16>
    %c0_70 = arith.constant 0 : index
    %c2_71 = arith.constant 2 : index
    %c0_72 = arith.constant 0 : index
    %c0_73 = arith.constant 0 : index
    %73 = vector.load %arg4[%c0_70, %c2_71, %c0_72, %c0_73] : memref<1x4x4x128xbf16, #tpu.memory_space<vmem>>, vector<1x1x4x128xbf16>
    %74 = vector.shape_cast %73 : vector<1x1x4x128xbf16> to vector<4x128xbf16>
    %75 = vector.shape_cast %72 : vector<4x128xbf16> to vector<1x1x4x128xbf16>
    tpu.vector_store %arg4[%c0_70, %c2_71, %c0_72, %c0_73], %75 {strides = array<i32>} : memref<1x4x4x128xbf16, #tpu.memory_space<vmem>>, vector<1x1x4x128xbf16>,
    %c18 = arith.constant 18 : index
    %c0_74 = arith.constant 0 : index
    %76 = vector.load %arg5[%c18, %c0_74] : memref<22x128xf32, #tpu.memory_space<vmem>>, vector<4x128xf32>
    %77 = arith.truncf %76 : vector<4x128xf32> to vector<4x128xbf16>
    %c0_75 = arith.constant 0 : index
    %c3_76 = arith.constant 3 : index
    %c0_77 = arith.constant 0 : index
    %c0_78 = arith.constant 0 : index
    %78 = vector.load %arg4[%c0_75, %c3_76, %c0_77, %c0_78] : memref<1x4x4x128xbf16, #tpu.memory_space<vmem>>, vector<1x1x4x128xbf16>
    %79 = vector.shape_cast %78 : vector<1x1x4x128xbf16> to vector<4x128xbf16>
    %80 = vector.shape_cast %77 : vector<4x128xbf16> to vector<1x1x4x128xbf16>
    tpu.vector_store %arg4[%c0_75, %c3_76, %c0_77, %c0_78], %80 {strides = array<i32>} : memref<1x4x4x128xbf16, #tpu.memory_space<vmem>>, vector<1x1x4x128xbf16>,
    return
  }
  func.func @transform_0(%arg0: i32) -> (i32, i32, i32) {
    %c0_i32 = arith.constant 0 : i32
    %c0_i32_0 = arith.constant 0 : i32
    %c0_i32_1 = arith.constant 0 : i32
    return %arg0, %c0_i32, %c0_i32_0 : i32, i32, i32
  }
  func.func @transform_1(%arg0: i32) -> (i32, i32, i32) {
    %c0_i32 = arith.constant 0 : i32
    %c0_i32_0 = arith.constant 0 : i32
    %c0_i32_1 = arith.constant 0 : i32
    %c0_i32_2 = arith.constant 0 : i32
    return %c0_i32, %c0_i32_0, %c0_i32_1 : i32, i32, i32
  }
  func.func @transform_2(%arg0: i32) -> (i32, i32) {
    %c0_i32 = arith.constant 0 : i32
    %c0_i32_0 = arith.constant 0 : i32
    %c0_i32_1 = arith.constant 0 : i32
    return %c0_i32, %c0_i32_0 : i32, i32
  }
  func.func @transform_3(%arg0: i32) -> (i32, i32, i32, i32) {
    %c0_i32 = arith.constant 0 : i32
    %c0_i32_0 = arith.constant 0 : i32
    %c0_i32_1 = arith.constant 0 : i32
    %c0_i32_2 = arith.constant 0 : i32
    return %arg0, %c0_i32, %c0_i32_0, %c0_i32_1 : i32, i32, i32, i32
  }
}

module attributes {stable_mosaic.version = 11 : i64} {
  func.func @_conv_relu_pool_kernel(%arg0: i32, %arg1: memref<1x64x128xbf16, #tpu.memory_space<vmem>>, %arg2: memref<9x128x128xbf16, #tpu.memory_space<vmem>>, %arg3: memref<1x128xf32, #tpu.memory_space<vmem>>, %arg4: memref<1x6x6x128xbf16, #tpu.memory_space<vmem>>, %arg5: memref<46x128xf32, #tpu.memory_space<vmem>>) attributes {dimension_semantics = [#tpu.dimension_semantics<parallel>], iteration_bounds = array<i64: 2>, scalar_prefetch = 0 : i64, scratch_operands = 1 : i64, tpu.core_type = #tpu.core_type<tc>, window_params = [{transform_indices = @transform_0, window_bounds = array<i64: 1, 64, 128>}, {pipeline_mode = #tpu.pipeline_mode<synchronous>, transform_indices = @transform_1, window_bounds = array<i64: 9, 128, 128>}, {pipeline_mode = #tpu.pipeline_mode<synchronous>, transform_indices = @transform_2, window_bounds = array<i64: 1, 128>}, {transform_indices = @transform_3, window_bounds = array<i64: 1, 6, 6, 128>}]} {
    %cst = arith.constant 0.000000e+00 : f32
    %0 = vector.broadcast %cst : f32 to vector<46x128xf32>
    %c0 = arith.constant 0 : index
    %c0_0 = arith.constant 0 : index
    %c0_1 = arith.constant 0 : index
    %1 = vector.load %arg1[%c0, %c0_0, %c0_1] : memref<1x64x128xbf16, #tpu.memory_space<vmem>>, vector<1x46x128xbf16>
    %2 = vector.shape_cast %1 : vector<1x46x128xbf16> to vector<46x128xbf16>
    %c0_2 = arith.constant 0 : index
    %c0_3 = arith.constant 0 : index
    %c0_4 = arith.constant 0 : index
    %3 = vector.load %arg2[%c0_2, %c0_3, %c0_4] : memref<9x128x128xbf16, #tpu.memory_space<vmem>>, vector<1x128x128xbf16>
    %4 = vector.shape_cast %3 : vector<1x128x128xbf16> to vector<128x128xbf16>
    %cst_5 = arith.constant dense<0.000000e+00> : vector<46x128xf32>
    %5 = tpu.matmul %2, %4, %cst_5 {dimension_numbers = #tpu.dot_dimension_numbers<[1], [0], [0], [1], [0, 0, 1, 1], [], []>} : vector<46x128xbf16>, vector<128x128xbf16>, vector<46x128xf32> -> vector<46x128xf32>
    %6 = arith.addf %0, %5 : vector<46x128xf32>
    %c0_6 = arith.constant 0 : index
    %c1 = arith.constant 1 : index
    %c0_7 = arith.constant 0 : index
    %7 = vector.load %arg1[%c0_6, %c1, %c0_7] : memref<1x64x128xbf16, #tpu.memory_space<vmem>>, vector<1x46x128xbf16>
    %8 = vector.shape_cast %7 : vector<1x46x128xbf16> to vector<46x128xbf16>
    %c1_8 = arith.constant 1 : index
    %c0_9 = arith.constant 0 : index
    %c0_10 = arith.constant 0 : index
    %9 = vector.load %arg2[%c1_8, %c0_9, %c0_10] : memref<9x128x128xbf16, #tpu.memory_space<vmem>>, vector<1x128x128xbf16>
    %10 = vector.shape_cast %9 : vector<1x128x128xbf16> to vector<128x128xbf16>
    %cst_11 = arith.constant dense<0.000000e+00> : vector<46x128xf32>
    %11 = tpu.matmul %8, %10, %cst_11 {dimension_numbers = #tpu.dot_dimension_numbers<[1], [0], [0], [1], [0, 0, 1, 1], [], []>} : vector<46x128xbf16>, vector<128x128xbf16>, vector<46x128xf32> -> vector<46x128xf32>
    %12 = arith.addf %6, %11 : vector<46x128xf32>
    %c0_12 = arith.constant 0 : index
    %c2 = arith.constant 2 : index
    %c0_13 = arith.constant 0 : index
    %13 = vector.load %arg1[%c0_12, %c2, %c0_13] : memref<1x64x128xbf16, #tpu.memory_space<vmem>>, vector<1x46x128xbf16>
    %14 = vector.shape_cast %13 : vector<1x46x128xbf16> to vector<46x128xbf16>
    %c2_14 = arith.constant 2 : index
    %c0_15 = arith.constant 0 : index
    %c0_16 = arith.constant 0 : index
    %15 = vector.load %arg2[%c2_14, %c0_15, %c0_16] : memref<9x128x128xbf16, #tpu.memory_space<vmem>>, vector<1x128x128xbf16>
    %16 = vector.shape_cast %15 : vector<1x128x128xbf16> to vector<128x128xbf16>
    %cst_17 = arith.constant dense<0.000000e+00> : vector<46x128xf32>
    %17 = tpu.matmul %14, %16, %cst_17 {dimension_numbers = #tpu.dot_dimension_numbers<[1], [0], [0], [1], [0, 0, 1, 1], [], []>} : vector<46x128xbf16>, vector<128x128xbf16>, vector<46x128xf32> -> vector<46x128xf32>
    %18 = arith.addf %12, %17 : vector<46x128xf32>
    %c0_18 = arith.constant 0 : index
    %c8 = arith.constant 8 : index
    %c0_19 = arith.constant 0 : index
    %19 = vector.load %arg1[%c0_18, %c8, %c0_19] : memref<1x64x128xbf16, #tpu.memory_space<vmem>>, vector<1x46x128xbf16>
    %20 = vector.shape_cast %19 : vector<1x46x128xbf16> to vector<46x128xbf16>
    %c3 = arith.constant 3 : index
    %c0_20 = arith.constant 0 : index
    %c0_21 = arith.constant 0 : index
    %21 = vector.load %arg2[%c3, %c0_20, %c0_21] : memref<9x128x128xbf16, #tpu.memory_space<vmem>>, vector<1x128x128xbf16>
    %22 = vector.shape_cast %21 : vector<1x128x128xbf16> to vector<128x128xbf16>
    %cst_22 = arith.constant dense<0.000000e+00> : vector<46x128xf32>
    %23 = tpu.matmul %20, %22, %cst_22 {dimension_numbers = #tpu.dot_dimension_numbers<[1], [0], [0], [1], [0, 0, 1, 1], [], []>} : vector<46x128xbf16>, vector<128x128xbf16>, vector<46x128xf32> -> vector<46x128xf32>
    %24 = arith.addf %18, %23 : vector<46x128xf32>
    %c0_23 = arith.constant 0 : index
    %c9 = arith.constant 9 : index
    %c0_24 = arith.constant 0 : index
    %25 = vector.load %arg1[%c0_23, %c9, %c0_24] : memref<1x64x128xbf16, #tpu.memory_space<vmem>>, vector<1x46x128xbf16>
    %26 = vector.shape_cast %25 : vector<1x46x128xbf16> to vector<46x128xbf16>
    %c4 = arith.constant 4 : index
    %c0_25 = arith.constant 0 : index
    %c0_26 = arith.constant 0 : index
    %27 = vector.load %arg2[%c4, %c0_25, %c0_26] : memref<9x128x128xbf16, #tpu.memory_space<vmem>>, vector<1x128x128xbf16>
    %28 = vector.shape_cast %27 : vector<1x128x128xbf16> to vector<128x128xbf16>
    %cst_27 = arith.constant dense<0.000000e+00> : vector<46x128xf32>
    %29 = tpu.matmul %26, %28, %cst_27 {dimension_numbers = #tpu.dot_dimension_numbers<[1], [0], [0], [1], [0, 0, 1, 1], [], []>} : vector<46x128xbf16>, vector<128x128xbf16>, vector<46x128xf32> -> vector<46x128xf32>
    %30 = arith.addf %24, %29 : vector<46x128xf32>
    %c0_28 = arith.constant 0 : index
    %c10 = arith.constant 10 : index
    %c0_29 = arith.constant 0 : index
    %31 = vector.load %arg1[%c0_28, %c10, %c0_29] : memref<1x64x128xbf16, #tpu.memory_space<vmem>>, vector<1x46x128xbf16>
    %32 = vector.shape_cast %31 : vector<1x46x128xbf16> to vector<46x128xbf16>
    %c5 = arith.constant 5 : index
    %c0_30 = arith.constant 0 : index
    %c0_31 = arith.constant 0 : index
    %33 = vector.load %arg2[%c5, %c0_30, %c0_31] : memref<9x128x128xbf16, #tpu.memory_space<vmem>>, vector<1x128x128xbf16>
    %34 = vector.shape_cast %33 : vector<1x128x128xbf16> to vector<128x128xbf16>
    %cst_32 = arith.constant dense<0.000000e+00> : vector<46x128xf32>
    %35 = tpu.matmul %32, %34, %cst_32 {dimension_numbers = #tpu.dot_dimension_numbers<[1], [0], [0], [1], [0, 0, 1, 1], [], []>} : vector<46x128xbf16>, vector<128x128xbf16>, vector<46x128xf32> -> vector<46x128xf32>
    %36 = arith.addf %30, %35 : vector<46x128xf32>
    %c0_33 = arith.constant 0 : index
    %c16 = arith.constant 16 : index
    %c0_34 = arith.constant 0 : index
    %37 = vector.load %arg1[%c0_33, %c16, %c0_34] : memref<1x64x128xbf16, #tpu.memory_space<vmem>>, vector<1x46x128xbf16>
    %38 = vector.shape_cast %37 : vector<1x46x128xbf16> to vector<46x128xbf16>
    %c6 = arith.constant 6 : index
    %c0_35 = arith.constant 0 : index
    %c0_36 = arith.constant 0 : index
    %39 = vector.load %arg2[%c6, %c0_35, %c0_36] : memref<9x128x128xbf16, #tpu.memory_space<vmem>>, vector<1x128x128xbf16>
    %40 = vector.shape_cast %39 : vector<1x128x128xbf16> to vector<128x128xbf16>
    %cst_37 = arith.constant dense<0.000000e+00> : vector<46x128xf32>
    %41 = tpu.matmul %38, %40, %cst_37 {dimension_numbers = #tpu.dot_dimension_numbers<[1], [0], [0], [1], [0, 0, 1, 1], [], []>} : vector<46x128xbf16>, vector<128x128xbf16>, vector<46x128xf32> -> vector<46x128xf32>
    %42 = arith.addf %36, %41 : vector<46x128xf32>
    %c0_38 = arith.constant 0 : index
    %c17 = arith.constant 17 : index
    %c0_39 = arith.constant 0 : index
    %43 = vector.load %arg1[%c0_38, %c17, %c0_39] : memref<1x64x128xbf16, #tpu.memory_space<vmem>>, vector<1x46x128xbf16>
    %44 = vector.shape_cast %43 : vector<1x46x128xbf16> to vector<46x128xbf16>
    %c7 = arith.constant 7 : index
    %c0_40 = arith.constant 0 : index
    %c0_41 = arith.constant 0 : index
    %45 = vector.load %arg2[%c7, %c0_40, %c0_41] : memref<9x128x128xbf16, #tpu.memory_space<vmem>>, vector<1x128x128xbf16>
    %46 = vector.shape_cast %45 : vector<1x128x128xbf16> to vector<128x128xbf16>
    %cst_42 = arith.constant dense<0.000000e+00> : vector<46x128xf32>
    %47 = tpu.matmul %44, %46, %cst_42 {dimension_numbers = #tpu.dot_dimension_numbers<[1], [0], [0], [1], [0, 0, 1, 1], [], []>} : vector<46x128xbf16>, vector<128x128xbf16>, vector<46x128xf32> -> vector<46x128xf32>
    %48 = arith.addf %42, %47 : vector<46x128xf32>
    %c0_43 = arith.constant 0 : index
    %c18 = arith.constant 18 : index
    %c0_44 = arith.constant 0 : index
    %49 = vector.load %arg1[%c0_43, %c18, %c0_44] : memref<1x64x128xbf16, #tpu.memory_space<vmem>>, vector<1x46x128xbf16>
    %50 = vector.shape_cast %49 : vector<1x46x128xbf16> to vector<46x128xbf16>
    %c8_45 = arith.constant 8 : index
    %c0_46 = arith.constant 0 : index
    %c0_47 = arith.constant 0 : index
    %51 = vector.load %arg2[%c8_45, %c0_46, %c0_47] : memref<9x128x128xbf16, #tpu.memory_space<vmem>>, vector<1x128x128xbf16>
    %52 = vector.shape_cast %51 : vector<1x128x128xbf16> to vector<128x128xbf16>
    %cst_48 = arith.constant dense<0.000000e+00> : vector<46x128xf32>
    %53 = tpu.matmul %50, %52, %cst_48 {dimension_numbers = #tpu.dot_dimension_numbers<[1], [0], [0], [1], [0, 0, 1, 1], [], []>} : vector<46x128xbf16>, vector<128x128xbf16>, vector<46x128xf32> -> vector<46x128xf32>
    %54 = arith.addf %48, %53 : vector<46x128xf32>
    %c0_49 = arith.constant 0 : index
    %c0_50 = arith.constant 0 : index
    %55 = vector.load %arg3[%c0_49, %c0_50] : memref<1x128xf32, #tpu.memory_space<vmem>>, vector<1x128xf32>
    %56 = vector.broadcast %55 : vector<1x128xf32> to vector<46x128xf32>
    %57 = arith.addf %54, %56 : vector<46x128xf32>
    %cst_51 = arith.constant 0.000000e+00 : f32
    %58 = vector.broadcast %cst_51 : f32 to vector<46x128xf32>
    %59 = arith.maximumf %57, %58 : vector<46x128xf32>
    %c0_52 = arith.constant 0 : index
    %c0_53 = arith.constant 0 : index
    %60 = vector.load %arg5[%c0_52, %c0_53] : memref<46x128xf32, #tpu.memory_space<vmem>>, vector<46x128xf32>
    tpu.vector_store %arg5[%c0_52, %c0_53], %59 {strides = array<i32>} : memref<46x128xf32, #tpu.memory_space<vmem>>, vector<46x128xf32>,
    %c0_54 = arith.constant 0 : index
    %c0_55 = arith.constant 0 : index
    %61 = vector.load %arg5[%c0_54, %c0_55] : memref<46x128xf32, #tpu.memory_space<vmem>>, vector<6x128xf32>
    %62 = arith.truncf %61 : vector<6x128xf32> to vector<6x128xbf16>
    %c0_56 = arith.constant 0 : index
    %c0_57 = arith.constant 0 : index
    %c0_58 = arith.constant 0 : index
    %c0_59 = arith.constant 0 : index
    %63 = vector.load %arg4[%c0_56, %c0_57, %c0_58, %c0_59] : memref<1x6x6x128xbf16, #tpu.memory_space<vmem>>, vector<1x1x6x128xbf16>
    %64 = vector.shape_cast %63 : vector<1x1x6x128xbf16> to vector<6x128xbf16>
    %65 = vector.shape_cast %62 : vector<6x128xbf16> to vector<1x1x6x128xbf16>
    tpu.vector_store %arg4[%c0_56, %c0_57, %c0_58, %c0_59], %65 {strides = array<i32>} : memref<1x6x6x128xbf16, #tpu.memory_space<vmem>>, vector<1x1x6x128xbf16>,
    %c8_60 = arith.constant 8 : index
    %c0_61 = arith.constant 0 : index
    %66 = vector.load %arg5[%c8_60, %c0_61] : memref<46x128xf32, #tpu.memory_space<vmem>>, vector<6x128xf32>
    %67 = arith.truncf %66 : vector<6x128xf32> to vector<6x128xbf16>
    %c0_62 = arith.constant 0 : index
    %c1_63 = arith.constant 1 : index
    %c0_64 = arith.constant 0 : index
    %c0_65 = arith.constant 0 : index
    %68 = vector.load %arg4[%c0_62, %c1_63, %c0_64, %c0_65] : memref<1x6x6x128xbf16, #tpu.memory_space<vmem>>, vector<1x1x6x128xbf16>
    %69 = vector.shape_cast %68 : vector<1x1x6x128xbf16> to vector<6x128xbf16>
    %70 = vector.shape_cast %67 : vector<6x128xbf16> to vector<1x1x6x128xbf16>
    tpu.vector_store %arg4[%c0_62, %c1_63, %c0_64, %c0_65], %70 {strides = array<i32>} : memref<1x6x6x128xbf16, #tpu.memory_space<vmem>>, vector<1x1x6x128xbf16>,
    %c16_66 = arith.constant 16 : index
    %c0_67 = arith.constant 0 : index
    %71 = vector.load %arg5[%c16_66, %c0_67] : memref<46x128xf32, #tpu.memory_space<vmem>>, vector<6x128xf32>
    %72 = arith.truncf %71 : vector<6x128xf32> to vector<6x128xbf16>
    %c0_68 = arith.constant 0 : index
    %c2_69 = arith.constant 2 : index
    %c0_70 = arith.constant 0 : index
    %c0_71 = arith.constant 0 : index
    %73 = vector.load %arg4[%c0_68, %c2_69, %c0_70, %c0_71] : memref<1x6x6x128xbf16, #tpu.memory_space<vmem>>, vector<1x1x6x128xbf16>
    %74 = vector.shape_cast %73 : vector<1x1x6x128xbf16> to vector<6x128xbf16>
    %75 = vector.shape_cast %72 : vector<6x128xbf16> to vector<1x1x6x128xbf16>
    tpu.vector_store %arg4[%c0_68, %c2_69, %c0_70, %c0_71], %75 {strides = array<i32>} : memref<1x6x6x128xbf16, #tpu.memory_space<vmem>>, vector<1x1x6x128xbf16>,
    %c24 = arith.constant 24 : index
    %c0_72 = arith.constant 0 : index
    %76 = vector.load %arg5[%c24, %c0_72] : memref<46x128xf32, #tpu.memory_space<vmem>>, vector<6x128xf32>
    %77 = arith.truncf %76 : vector<6x128xf32> to vector<6x128xbf16>
    %c0_73 = arith.constant 0 : index
    %c3_74 = arith.constant 3 : index
    %c0_75 = arith.constant 0 : index
    %c0_76 = arith.constant 0 : index
    %78 = vector.load %arg4[%c0_73, %c3_74, %c0_75, %c0_76] : memref<1x6x6x128xbf16, #tpu.memory_space<vmem>>, vector<1x1x6x128xbf16>
    %79 = vector.shape_cast %78 : vector<1x1x6x128xbf16> to vector<6x128xbf16>
    %80 = vector.shape_cast %77 : vector<6x128xbf16> to vector<1x1x6x128xbf16>
    tpu.vector_store %arg4[%c0_73, %c3_74, %c0_75, %c0_76], %80 {strides = array<i32>} : memref<1x6x6x128xbf16, #tpu.memory_space<vmem>>, vector<1x1x6x128xbf16>,
    %c32 = arith.constant 32 : index
    %c0_77 = arith.constant 0 : index
    %81 = vector.load %arg5[%c32, %c0_77] : memref<46x128xf32, #tpu.memory_space<vmem>>, vector<6x128xf32>
    %82 = arith.truncf %81 : vector<6x128xf32> to vector<6x128xbf16>
    %c0_78 = arith.constant 0 : index
    %c4_79 = arith.constant 4 : index
    %c0_80 = arith.constant 0 : index
    %c0_81 = arith.constant 0 : index
    %83 = vector.load %arg4[%c0_78, %c4_79, %c0_80, %c0_81] : memref<1x6x6x128xbf16, #tpu.memory_space<vmem>>, vector<1x1x6x128xbf16>
    %84 = vector.shape_cast %83 : vector<1x1x6x128xbf16> to vector<6x128xbf16>
    %85 = vector.shape_cast %82 : vector<6x128xbf16> to vector<1x1x6x128xbf16>
    tpu.vector_store %arg4[%c0_78, %c4_79, %c0_80, %c0_81], %85 {strides = array<i32>} : memref<1x6x6x128xbf16, #tpu.memory_space<vmem>>, vector<1x1x6x128xbf16>,
    %c40 = arith.constant 40 : index
    %c0_82 = arith.constant 0 : index
    %86 = vector.load %arg5[%c40, %c0_82] : memref<46x128xf32, #tpu.memory_space<vmem>>, vector<6x128xf32>
    %87 = arith.truncf %86 : vector<6x128xf32> to vector<6x128xbf16>
    %c0_83 = arith.constant 0 : index
    %c5_84 = arith.constant 5 : index
    %c0_85 = arith.constant 0 : index
    %c0_86 = arith.constant 0 : index
    %88 = vector.load %arg4[%c0_83, %c5_84, %c0_85, %c0_86] : memref<1x6x6x128xbf16, #tpu.memory_space<vmem>>, vector<1x1x6x128xbf16>
    %89 = vector.shape_cast %88 : vector<1x1x6x128xbf16> to vector<6x128xbf16>
    %90 = vector.shape_cast %87 : vector<6x128xbf16> to vector<1x1x6x128xbf16>
    tpu.vector_store %arg4[%c0_83, %c5_84, %c0_85, %c0_86], %90 {strides = array<i32>} : memref<1x6x6x128xbf16, #tpu.memory_space<vmem>>, vector<1x1x6x128xbf16>,
    return
  }
  func.func @transform_0(%arg0: i32) -> (i32, i32, i32) {
    %c0_i32 = arith.constant 0 : i32
    %c0_i32_0 = arith.constant 0 : i32
    %c0_i32_1 = arith.constant 0 : i32
    return %arg0, %c0_i32, %c0_i32_0 : i32, i32, i32
  }
  func.func @transform_1(%arg0: i32) -> (i32, i32, i32) {
    %c0_i32 = arith.constant 0 : i32
    %c0_i32_0 = arith.constant 0 : i32
    %c0_i32_1 = arith.constant 0 : i32
    %c0_i32_2 = arith.constant 0 : i32
    return %c0_i32, %c0_i32_0, %c0_i32_1 : i32, i32, i32
  }
  func.func @transform_2(%arg0: i32) -> (i32, i32) {
    %c0_i32 = arith.constant 0 : i32
    %c0_i32_0 = arith.constant 0 : i32
    %c0_i32_1 = arith.constant 0 : i32
    return %c0_i32, %c0_i32_0 : i32, i32
  }
  func.func @transform_3(%arg0: i32) -> (i32, i32, i32, i32) {
    %c0_i32 = arith.constant 0 : i32
    %c0_i32_0 = arith.constant 0 : i32
    %c0_i32_1 = arith.constant 0 : i32
    %c0_i32_2 = arith.constant 0 : i32
    return %arg0, %c0_i32, %c0_i32_0, %c0_i32_1 : i32, i32, i32, i32
  }
}

module attributes {stable_mosaic.version = 11 : i64} {
  func.func @_linear_kernel(%arg0: i32, %arg1: memref<2x512xbf16, #tpu.memory_space<vmem>>, %arg2: memref<512x128xbf16, #tpu.memory_space<vmem>>, %arg3: memref<1x128xf32, #tpu.memory_space<vmem>>, %arg4: memref<2x128xf32, #tpu.memory_space<vmem>>, %arg5: memref<2x128xf32, #tpu.memory_space<vmem>>) attributes {dimension_semantics = [#tpu.dimension_semantics<arbitrary>], iteration_bounds = array<i64: 9>, scalar_prefetch = 0 : i64, scratch_operands = 1 : i64, tpu.core_type = #tpu.core_type<tc>, window_params = [{transform_indices = @transform_0, window_bounds = array<i64: 2, 512>}, {transform_indices = @transform_1, window_bounds = array<i64: 512, 128>}, {pipeline_mode = #tpu.pipeline_mode<synchronous>, transform_indices = @transform_2, window_bounds = array<i64: 1, 128>}, {pipeline_mode = #tpu.pipeline_mode<synchronous>, transform_indices = @transform_3, window_bounds = array<i64: 2, 128>}]} {
    %c0_i32 = arith.constant 0 : i32
    %0 = arith.cmpi eq, %arg0, %c0_i32 : i32
    %1 = arith.extui %0 : i1 to i32
    %c0_i32_0 = arith.constant 0 : i32
    %2 = arith.cmpi ne, %1, %c0_i32_0 : i32
    scf.if %2 {
      %cst_9 = arith.constant 0.000000e+00 : f32
      %12 = vector.broadcast %cst_9 : f32 to vector<2x128xf32>
      %c0_10 = arith.constant 0 : index
      %c0_11 = arith.constant 0 : index
      %13 = vector.load %arg5[%c0_10, %c0_11] : memref<2x128xf32, #tpu.memory_space<vmem>>, vector<2x128xf32>
      tpu.vector_store %arg5[%c0_10, %c0_11], %12 {strides = array<i32>} : memref<2x128xf32, #tpu.memory_space<vmem>>, vector<2x128xf32>,
    } else {
    }
    %c0 = arith.constant 0 : index
    %c0_1 = arith.constant 0 : index
    %3 = vector.load %arg5[%c0, %c0_1] : memref<2x128xf32, #tpu.memory_space<vmem>>, vector<2x128xf32>
    %c0_2 = arith.constant 0 : index
    %c0_3 = arith.constant 0 : index
    %4 = vector.load %arg1[%c0_2, %c0_3] : memref<2x512xbf16, #tpu.memory_space<vmem>>, vector<2x512xbf16>
    %c0_4 = arith.constant 0 : index
    %c0_5 = arith.constant 0 : index
    %5 = vector.load %arg2[%c0_4, %c0_5] : memref<512x128xbf16, #tpu.memory_space<vmem>>, vector<512x128xbf16>
    %cst = arith.constant dense<0.000000e+00> : vector<2x128xf32>
    %6 = tpu.matmul %4, %5, %cst {dimension_numbers = #tpu.dot_dimension_numbers<[1], [0], [0], [1], [0, 0, 1, 1], [], []>} : vector<2x512xbf16>, vector<512x128xbf16>, vector<2x128xf32> -> vector<2x128xf32>
    %7 = arith.addf %3, %6 : vector<2x128xf32>
    %c0_6 = arith.constant 0 : index
    %c0_7 = arith.constant 0 : index
    %8 = vector.load %arg5[%c0_6, %c0_7] : memref<2x128xf32, #tpu.memory_space<vmem>>, vector<2x128xf32>
    tpu.vector_store %arg5[%c0_6, %c0_7], %7 {strides = array<i32>} : memref<2x128xf32, #tpu.memory_space<vmem>>, vector<2x128xf32>,
    %c8_i32 = arith.constant 8 : i32
    %9 = arith.cmpi eq, %arg0, %c8_i32 : i32
    %10 = arith.extui %9 : i1 to i32
    %c0_i32_8 = arith.constant 0 : i32
    %11 = arith.cmpi ne, %10, %c0_i32_8 : i32
    scf.if %11 {
      %c0_9 = arith.constant 0 : index
      %c0_10 = arith.constant 0 : index
      %12 = vector.load %arg5[%c0_9, %c0_10] : memref<2x128xf32, #tpu.memory_space<vmem>>, vector<2x128xf32>
      %c0_11 = arith.constant 0 : index
      %c0_12 = arith.constant 0 : index
      %13 = vector.load %arg3[%c0_11, %c0_12] : memref<1x128xf32, #tpu.memory_space<vmem>>, vector<1x128xf32>
      %14 = vector.broadcast %13 : vector<1x128xf32> to vector<2x128xf32>
      %15 = arith.addf %12, %14 : vector<2x128xf32>
      %c0_13 = arith.constant 0 : index
      %c0_14 = arith.constant 0 : index
      %16 = vector.load %arg4[%c0_13, %c0_14] : memref<2x128xf32, #tpu.memory_space<vmem>>, vector<2x128xf32>
      tpu.vector_store %arg4[%c0_13, %c0_14], %15 {strides = array<i32>} : memref<2x128xf32, #tpu.memory_space<vmem>>, vector<2x128xf32>,
    } else {
    }
    return
  }
  func.func @transform_0(%arg0: i32) -> (i32, i32) {
    %c0_i32 = arith.constant 0 : i32
    %c0_i32_0 = arith.constant 0 : i32
    return %c0_i32, %arg0 : i32, i32
  }
  func.func @transform_1(%arg0: i32) -> (i32, i32) {
    %c0_i32 = arith.constant 0 : i32
    %c0_i32_0 = arith.constant 0 : i32
    return %arg0, %c0_i32 : i32, i32
  }
  func.func @transform_2(%arg0: i32) -> (i32, i32) {
    %c0_i32 = arith.constant 0 : i32
    %c0_i32_0 = arith.constant 0 : i32
    %c0_i32_1 = arith.constant 0 : i32
    return %c0_i32, %c0_i32_0 : i32, i32
  }
  func.func @transform_3(%arg0: i32) -> (i32, i32) {
    %c0_i32 = arith.constant 0 : i32
    %c0_i32_0 = arith.constant 0 : i32
    %c0_i32_1 = arith.constant 0 : i32
    return %c0_i32, %c0_i32_0 : i32, i32
  }
}

</mosaic_0001>

<bundles_post_ra>
// kernel: bird_classifier_forward.9
= control target key start
LH: loop header
LB: loop body
LE: loop exit
PB: predicated region body
PF: predicated region fallthrough
CT: control target
= control target key end

     0   :  { %8 = vsyncpa [#allocation4], 0  ;;  %s1851_s0 = inlined_call_operand.vmem [shape: bf16[2,81,32], index: 0, kind: input, shape index: {}]   ;;  %s1852_s1 = inlined_call_operand.hbm [shape: bf16[9,32,64], index: 1, kind: input, shape index: {}]   ;;  %s1853_s2 = inlined_call_operand.hbm [shape: f32[1,64], index: 2, kind: input, shape index: {}]   ;;  %s1854_s3 = inlined_call_operand.vmem [shape: bf16[2,3,3,64], index: 3, kind: output, shape index: {}]  }
   0x1   :  { %9 = vsyncpa [#allocation6], 0  ;;  %s1585_s12 = smov 0  }
   0x2 LB: > { %s125_s15 = sshll.u32 %s1852_s1, 4  ;;  %s1222_s16 = sadd.s32 4294967295, %s1559_s12   ;;  %s1559_s12 = sphi %s1585_s12, %s15_s12   ;;  %s126_s15 = int_to_ptr.hbm [resolvable:$true] %s125_s15 }
   0x3   : > { %p1224_p0 = scmp.ge.s32.totalorder %s1559_s12, 1  ;;  %p114_p1 = scmp.lt.s32.totalorder %s1559_s12, 3 }
   0x4   : > { %p1455_p2 = scmp.eq.s32.totalorder %s1222_s16, 0  ;;  %s1561_s18 = smov [#allocation3]  }
   0x5   : > { %p1596_p3 = pnand %p1224_p0, %p114_p1  ;;  %s127_s19 = sshll.u32 %s1561_s18, 4  ;;  %s128_s19 = int_to_ptr.vmem [resolvable:$true] %s127_s19 }
   0x6   : > { %s140_s22 = sshll.u32 %s1853_s2, 4  ;;  %s1562_s23 = smov [#allocation5]   ;;  %s141_s22 = int_to_ptr.hbm [resolvable:$true] %s140_s22 }
   0x7   : > { %p1448_p4 = pneg %p1596_p3  ;;  %s142_s24 = sshll.u32 %s1562_s23, 4  ;;  %s143_s24 = int_to_ptr.vmem [resolvable:$true] %s142_s24 }
   0x8   : > { %s1563_s25 = smov 64   ;;  %s1564_s26 = smov 4  }
   0x9   : > { %p1449_p5 = pnand %p1455_p2, %p1448_p4  ;;  %163 = sbr.rel (%p1596_p3) target bundleno = 318 (0x13e), region = 32 }
   0xb   : > { %1451 = dma.hbm_to_vmem [thread:$0]  (!%p1449_p5), %s126_s15, 2304, %s128_s19, [#allocation4], %s1563_s25, %s1563_s25, %s1564_s26  }
   0xc   : > { %1454 = dma.hbm_to_vmem [thread:$0]  (!%p1449_p5), %s141_s22, 16, %s143_s24, [#allocation6]  }
   0xe   : > { %1540 = dma.done.wait (%p1455_p2), [#allocation4], 2304  }
   0xf   : > { %1542 = vsyncadd (%p1455_p2), [#allocation4], 4294964992 }
  0x10   : > { %1544 = dma.done.wait (%p1455_p2), [#allocation6], 16  }
  0x11   : > { %1546 = vsyncadd (%p1455_p2), [#allocation6], 4294967280  ;;  %p193_p6 = scmp.lt.s32.totalorder %s1222_s16, 1  ;;  %v1400_v0 = vld [vmem:[#allocation3 + $0x18] sm:$0xff]  ;;  %v1399_v6 = vld [vmem:[#allocation3 + $0x10] sm:$0xff]  ;;  %vm285_vm1 = vcmask 261120  }
  0x12   : > { %1432 = vmatpush.bf16.msra.mxu1 %v1400_v0  ;;  %1433 = vmatpush.bf16.msra.mxu2 %v1400_v0  ;;  %v1402_v16 = vld [vmem:[#allocation3 + $0x28] sm:$0xff]  ;;  %v1406_v17 = vld [vmem:[#allocation3 + $0x38] sm:$0xff]  ;;  %vm241_vm0 = vsmask.f32 7424  ;;  %v1401_v31 = vld [vmem:[#allocation3 + $0x20] sm:$0xff]  ;;  %vm389_vm2 = vcmask 1046528  }
  0x13   : > { %s1859_s16 = smov (!%p193_p6, %s1222_s16), 1  ;;  %1434 = vmatpush.bf16.msra.mxu3 %v1400_v0  ;;  %304 = vmatpush.bf16.msra.mxu0 %v1400_v0  ;;  %v1408_v20 = vld [vmem:[#allocation3 + $0x48] sm:$0xff]  ;;  %v1405_v34 = vld [vmem:[#allocation3 + $0x30] sm:$0xff]  ;;  %v1407_v35 = vld [vmem:[#allocation3 + $0x40] sm:$0xff]  ;;  %vm669_vm3 = vsmask.f32 6400 }
  0x14   : > { %s1438_s27 = smul.u32 44, %s1859_s16  ;;  %v1398_v24 = vld [vmem:[#allocation3 + $0x8] sm:$0xff]  ;;  %v1397_v38 = vld [vmem:[#allocation3] sm:$0xff]  ;;  %v1418_v40 = vld [vmem:[#allocation3 + $0x78] sm:$0xff]  ;;  %vm995_vm4 = vcmask 1045504   ;;  %vm1086_vm5 = vcmask 523264  }
  0x15   : > { %v1416_v39 = vld [vmem:[#allocation3 + $0x68] sm:$0xff]  ;;  %v1410_v41 = vld [vmem:[#allocation3 + $0x58] sm:$0xff]  ;;  %v1415_v61 = vld [vmem:[#allocation3 + $0x60] sm:$0xff]  ;;  %s1439_s4 = smul.u32 6, %s1859_s16  ;;  %vm1107_vm6 = vcmask 517120  }
  0x16   : > { %s1618_s30 = scalar_lea.vmem %s1851_s0, %s1438_s27  ;;  %1435 = vmatpush.bf16.msra.mxu1 %v1399_v6  ;;  %1436 = vmatpush.bf16.msra.mxu2 %v1399_v6  ;;  %v1424_v42 = vld [vmem:[#allocation3 + $0x88] sm:$0xff]  ;;  %v1417_v62 = vld [vmem:[#allocation3 + $0x70] sm:$0xff]  ;;  %v1423_v0 = vld [vmem:[#allocation3 + $0x80] sm:$0xff]  ;;  %vm1108_vm7 = vsmask.f32 1280 }
  0x17   : > { %v1621_v1 = vld [vmem:[%s1618_s30 + $0x8] sm:$0xff]  ;;  %v1624_v2 = vld [vmem:[%s1618_s30 + $0x10] sm:$0xff]  ;;  %v1627_v3 = vld [vmem:[%s1618_s30 + $0x18] sm:$0xff]   ;;  %1437 = vmatpush.bf16.msra.mxu3 %v1399_v6  ;;  %305 = vmatpush.bf16.msra.mxu0 %v1399_v6  ;;  %s1811_s7 = scalar_lea.vmem %s1854_s3, %s1439_s4 }
  0x18   : > { %v1549_v4 = vld [vmem:[%s1618_s30 + $0x18] sm:$0xf]   ;;  %v1555_v5 = vld [vmem:[%s1618_s30 + $0x18] sm:$0x70]  ;;  %v250_v7 = vshll.u32 %v1621_v1, 16  ;;  %v254_v8 = vshrl.u32 %v1621_v1, 16  ;;  %vm1817_vm8 = vmand %vm1107_vm6, %vm1108_vm7 }
  0x19   : > { %v1634_v9 = vld [vmem:[%s1618_s30] sm:$0xff]   ;;  %v258_v10 = vshll.u32 %v1624_v2, 16  ;;  %v262_v11 = vshrl.u32 %v1624_v2, 16  ;;  %v1640_v15 = vor.u32 %v1555_v5, %v1549_v4  ;;  %v1472_v26 = vld [vmem:[%s1618_s30 + $0x4] sm:$0xf0]  ;;  %v1657_v45 = vld [vmem:[%s1618_s30 + $0xc] sm:$0xff] }
  0x1a   : > { %v243_v12 = vshrl.u32 %v1634_v9, 16  ;;  %v245_v13 = vshll.u32 %v1634_v9, 16  ;;  %v252_v14 = vrot.slane %v250_v7, 1  ;;  %v458_v25 = vld [vmem:[%s1618_s30 + $0x4] sm:$0xff]   ;;  %427 = vmatpush.bf16.msrb.mxu2 %v1402_v16  ;;  %353 = vmatpush.bf16.msrb.mxu1 %v1398_v24  ;;  %v1430_v44 = vld [vmem:[%s1618_s30] sm:$0xe] }
  0x1b   : > { %v260_v18 = vrot.slane %v258_v10, 1  ;;  %v266_v22 = vshll.u32 %v1640_v15, 16  ;;  %v270_v23 = vshrl.u32 %v1640_v15, 16  ;;  %552 = vmatpush.bf16.msrb.mxu3 %v1406_v17  ;;  %v1473_v32 = vld [vmem:[%s1618_s30 + $0x4] sm:$0xe]  ;;  %633 = vmatpush.bf16.msrb.mxu0 %v1408_v20  ;;  %v494_v46 = vshll.u32 %v458_v25, 16 }
  0x1c   : > { %v247_v19 = vrot.slane %v245_v13, 1  ;;  %v256_v21 = vor.u32 %v254_v8, %v252_v14  ;;  %v1429_v43 = vld [vmem:[%s1618_s30] sm:$0xf0]  ;;  %v1659_v47 = vor.u32 %v1473_v32, %v1472_v26  ;;  %v492_v49 = vshrl.u32 %v458_v25, 16  ;;  %v1409_v63 = vld [vmem:[#allocation3 + $0x50] sm:$0xff] }
  0x1d   : > { %v264_v27 = vor.u32 %v262_v11, %v260_v18  ;;  %v268_v30 = vrot.slane %v266_v22, 1  ;;  %v1431_v48 = vor.u32 %v1430_v44, %v1429_v43  ;;  %v496_v50 = vrot.slane %v494_v46, 1  ;;  %v1676_v4 = vld [vmem:[%s1618_s30 + $0x14] sm:$0xff]  ;;  %v1685_v11 = vld [vmem:[%s1618_s30 + $0x1c] sm:$0xff]  }
  0x1e   : > { %v248_v28 = vor.u32 %v247_v19, %v243_v12  ;;  %v261_v29 = vsel %vm241_vm0, %v256_v21, %v260_v18  ;;  %428 = vmatpush.bf16.msrb.mxu2 %v1401_v31  ;;  %354 = vmatpush.bf16.msrb.mxu1 %v1397_v38  ;;  %v499_v51 = vshll.u32 %v1657_v45, 16  ;;  %v596_v52 = vrot.slane %v1659_v47, 1  ;;  %v1553_v12 = vld [vmem:[%s1618_s30 + $0x1c] sm:$0xf]   ;;  %v1556_v13 = vld [vmem:[%s1618_s30 + $0x1c] sm:$0x70] }
  0x1f   : > { %1250 = vmatmul.msk.bf16.vlgmr.msra.gmra.mxu1 %vm285_vm1, %v261_v29  ;;  %v269_v36 = vsel %vm241_vm0, %v264_v27, %v268_v30  ;;  %v272_v37 = vor.u32 %v270_v23, %v268_v30  ;;  %553 = vmatpush.bf16.msrb.mxu3 %v1405_v34  ;;  %v597_v53 = vrot.slane %v1657_v45, 1  ;;  %v390_v54 = vrot.slane %v1431_v48, 1  ;;  %v1323_v27 = vld [vmem:[%s1618_s30 + $0x8] sm:$0xe]  ;;  %v1412_v30 = vld [vmem:[%s1618_s30 + $0x10] sm:$0xff] }
  0x20   : > { %v253_v33 = vsel %vm241_vm0, %v248_v28, %v252_v14  ;;  %1251 = vmatmul.msk.bf16.vlgmr.msra.gmra.mxu2 %vm285_vm1, %v269_v36  ;;  %634 = vmatpush.bf16.msrb.mxu0 %v1407_v35  ;;  %v391_v55 = vrot.slane %v1621_v1, 1  ;;  %v497_v56 = vor.u32 %v496_v50, %v492_v49  ;;  %v501_v57 = vrot.slane %v499_v51, 1  ;;  %v1411_v28 = vld [vmem:[%s1618_s30 + $0x8] sm:$0xf0] }
  0x21   : > { %1249 = vmatmul.msk.bf16.vlgmr.msra.gmra.mxu0 %vm285_vm1, %v253_v33  ;;  %1252 = vmatmul.msk.bf16.vlgmr.msra.gmra.mxu3 %vm285_vm1, %v272_v37  ;;  %v598_v58 = vsel %vm389_vm2, %v596_v52, %v597_v53  ;;  %v503_v5 = vshrl.u32 %v1657_v45, 16  ;;  %v507_v6 = vshll.u32 %v1676_v4, 16  ;;  %v599_v7 = vrot.slane %v1676_v4, 1  ;;  %v1363_v33 = vld [vmem:[%s1618_s30 + $0x8] sm:$0xc] }
  0x22   : > { %826 = vmatpush.bf16.msra.mxu2 %v1416_v39  ;;  %725 = vmatpush.bf16.msra.mxu1 %v1410_v41  ;;  %v392_v59 = vsel %vm389_vm2, %v390_v54, %v391_v55  ;;  %v502_v60 = vsel %vm241_vm0, %v497_v56, %v501_v57  ;;  %v393_v8 = vrot.slane %v1624_v2, 1  ;;  %v1554_v18 = vor.u32 %v1556_v13, %v1553_v12  ;;  %v1419_v34 = vld [vmem:[%s1618_s30 + $0x8] sm:$0xf0] }
  0x23   : > { %927 = vmatpush.bf16.msra.mxu3 %v1418_v40  ;;  %v509_v10 = vrot.slane %v507_v6, 1  ;;  %v600_v14 = vsel %vm389_vm2, %v597_v53, %v599_v7  ;;  %v511_v19 = vshrl.u32 %v1676_v4, 16  ;;  %v601_v21 = vrot.slane %v1685_v11, 1  ;;  %v1414_v4 = vld [vmem:[%s1618_s30 + $0x20] sm:$0xff] }
  0x24   : > { %1035 = vmatpush.bf16.msra.mxu0 %v1424_v42  ;;  %v394_v16 = vsel %vm389_vm2, %v391_v55, %v393_v8  ;;  %v515_v20 = vshll.u32 %v1554_v18, 16  ;;  %v395_v22 = vrot.slane %v1627_v3, 1  ;;  %v519_v3 = vshrl.u32 %v1554_v18, 16  ;;  %v1420_v42 = vld [vmem:[%s1618_s30 + $0x10] sm:$0xff] }
  0x25   : > { %v602_v24 = vsel %vm389_vm2, %v599_v7, %v601_v21  ;;  %v1324_v31 = vor.u32 %v1411_v28, %v1323_v27  ;;  %v674_v32 = vshll.u32 %v1659_v47, 16  ;;  %v871_v37 = vshrl.u32 %v1412_v30, 16 }
  0x26   : > { %827 = vmatpush.bf16.msra.mxu2 %v1415_v61  ;;  %726 = vmatpush.bf16.msra.mxu1 %v1409_v63  ;;  %v517_v23 = vrot.slane %v515_v20, 1  ;;  %v396_v25 = vsel %vm389_vm2, %v393_v8, %v395_v22  ;;  %v874_v38 = vshll.u32 %v1412_v30, 16  ;;  %v678_v39 = vrot.slane %v503_v5, 1 }
  0x27   : > { %928 = vmatpush.bf16.msra.mxu3 %v1417_v62  ;;  %v863_v35 = vshrl.u32 %v1324_v31, 16  ;;  %v866_v36 = vshll.u32 %v1324_v31, 16  ;;  %v676_v41 = vrot.slane %v674_v32, 2  ;;  %v1364_v43 = vor.u32 %v1419_v34, %v1363_v33 }
  0x28   : > { %1036 = vmatpush.bf16.msra.mxu0 %v1423_v0  ;;  %v521_v29 = vor.u32 %v519_v3, %v517_v23  ;;  %v876_v48 = vrot.slane %v874_v38, 2  ;;  %v997_v53 = vrot.slane %v1420_v42, 2  ;;  %v789_v54 = vrot.slane %v1324_v31, 1  ;;  %v966_v31 = vld [vmem:[%s1618_s30 + $0x28] sm:$0x1] }
  0x29   : > { %v865_v44 = vrot.slane %v863_v35, 1  ;;  %v868_v46 = vrot.slane %v866_v36, 2  ;;  %v996_v52 = vrot.slane %v1364_v43, 2  ;;  %v790_v55 = vrot.slane %v1412_v30, 1 }
  0x2a   : > { %v682_v63 = vrot.slane %v511_v19, 1  ;;  %v683_v0 = vrot.slane %v507_v6, 2  ;;  %v687_v6 = vshrl.u32 %v1685_v11, 16  ;;  %v889_v20 = vshrl.u32 %v1414_v4, 16 }
  0x2b   : > { %v869_v45 = vor.u32 %v868_v46, %v865_v44  ;;  %v794_v27 = vrot.slane %v1414_v4, 1  ;;  %v989_v32 = vunpack.c.l.b16 %v966_v31 }
  0x2d   : > { %v994_v33 = vpack.c.b16 %v989_v32, %v989_v32 }
  0x2f   : > { %1261 = vmatmul.msk.bf16.vlgmr.msrb.gmra.mxu1 %vm285_vm1, %v1634_v9  ;;  %v505_v9 = vor.u32 %v503_v5, %v501_v57  ;;  %v998_v57 = vsel %vm995_vm4, %v996_v52, %v997_v53  ;;  %v1421_v5 = vld [vmem:[%s1618_s30 + $0x18] sm:$0xff]  ;;  %v1003_v34 = vrot.slane %v994_v33, 2 }
  0x30   : > { %1273 = vmatmul.msk.bf16.vlgmr.msrb.gmra.mxu2 %vm285_vm1, %v392_v59 }
  0x31   : > { %1305 = vmatmul.msk.bf16.vlgmr.msrb.gmra.mxu0 %vm285_vm1, %v598_v58  ;;  %1293 = vmatmul.msk.bf16.vlgmr.msrb.gmra.mxu3 %vm285_vm1, %v502_v60  ;;  %v510_v17 = vsel %vm241_vm0, %v505_v9, %v509_v10  ;;  %v791_v58 = vsel %vm389_vm2, %v789_v54, %v790_v55  ;;  %v1413_v60 = vld [vmem:[%s1618_s30 + $0x18] sm:$0xff]  ;;  %v684_v9 = vor.u32 %v683_v0, %v682_v63 }
  0x32   : > { %v880_v61 = vshrl.u32 %v1413_v60, 16  ;;  %v883_v62 = vshll.u32 %v1413_v60, 16  ;;  %v792_v12 = vrot.slane %v1413_v60, 1 }
  0x34   : > { %v882_v7 = vrot.slane %v880_v61, 1  ;;  %v885_v8 = vrot.slane %v883_v62, 2  ;;  %v795_v30 = vsel %vm389_vm2, %v792_v12, %v794_v27 }
  0x36   : > { %v886_v13 = vor.u32 %v885_v8, %v882_v7 }
  0x3f   : > { %1262 = vmatmul.msk.bf16.gmra.mxu1 %vm285_vm1, %v1621_v1  ;;  %v513_v1 = vor.u32 %v511_v19, %v509_v10  ;;  %v999_v10 = vrot.slane %v1421_v5, 2  ;;  %v690_v19 = vshll.u32 %v1685_v11, 16 }
  0x40   : > { %1274 = vmatmul.msk.bf16.gmra.mxu2 %vm285_vm1, %v394_v16 }
  0x41   : > { %1306 = vmatmul.msk.bf16.gmra.mxu0 %vm285_vm1, %v600_v14  ;;  %1294 = vmatmul.msk.bf16.gmra.mxu3 %vm285_vm1, %v510_v17  ;;  %v518_v26 = vsel %vm241_vm0, %v513_v1, %v517_v23  ;;  %v1000_v16 = vsel %vm995_vm4, %v997_v53, %v999_v10  ;;  %v793_v17 = vsel %vm389_vm2, %v790_v55, %v792_v12  ;;  %v692_v1 = vrot.slane %v690_v19, 2  ;;  %v1422_v23 = vld [vmem:[%s1618_s30 + $0x20] sm:$0xff] }
  0x42   : > { %v1001_v3 = vrot.slane %v1422_v23, 2 }
  0x44   : > { %v1002_v11 = vsel %vm995_vm4, %v999_v10, %v1001_v3 }
  0x4f   : > { %1263 = vmatmul.msk.bf16.gmra.mxu1 %vm285_vm1, %v1624_v2  ;;  %v671_v2 = vshrl.u32 %v1659_v47, 16  ;;  %v873_v47 = vrot.slane %v871_v37, 1  ;;  %v1004_v37 = vsel %vm995_vm4, %v1001_v3, %v1003_v34 }
  0x50   : > { %1275 = vmatmul.msk.bf16.gmra.mxu2 %vm285_vm1, %v396_v25 }
  0x51   : > { %1307 = vmatmul.msk.bf16.gmra.mxu0 %vm285_vm1, %v602_v24  ;;  %1295 = vmatmul.msk.bf16.gmra.mxu3 %vm285_vm1, %v518_v26  ;;  %v673_v40 = vrot.slane %v671_v2, 1  ;;  %v891_v24 = vrot.slane %v889_v20, 1 }
  0x53   : > { %v677_v49 = vor.u32 %v676_v41, %v673_v40 }
  0x5f   : > { %1264 = vmatmul.msk.bf16.gmra.mxu1 %vm285_vm1, %v1640_v15  ;;  %v679_v15 = vrot.slane %v499_v51, 2  ;;  %v877_v51 = vor.u32 %v876_v48, %v873_v47 }
  0x60   : > { %1276 = vmatmul.msk.bf16.gmra.mxu2 %vm285_vm1, %v395_v22  ;;  %v689_v22 = vrot.slane %v687_v6, 1 }
  0x61   : > { %1308 = vmatmul.msk.bf16.gmra.mxu0 %vm285_vm1, %v601_v21  ;;  %1296 = vmatmul.msk.bf16.gmra.mxu3 %vm285_vm1, %v521_v29  ;;  %v680_v50 = vor.u32 %v679_v15, %v678_v39  ;;  %v878_v59 = vsel %vm669_vm3, %v869_v45, %v877_v51  ;;  %v887_v18 = vsel %vm669_vm3, %v877_v51, %v886_v13  ;;  %v892_v21 = vshll.u32 %v1414_v4, 16 }
  0x62   : > { %v693_v26 = vor.u32 %v692_v1, %v689_v22 }
  0x63   : > { %v681_v56 = vsel %vm669_vm3, %v677_v49, %v680_v50  ;;  %v685_v14 = vsel %vm669_vm3, %v680_v50, %v684_v9  ;;  %v894_v25 = vrot.slane %v892_v21, 2 }
  0x64   : > { %v694_v29 = vsel %vm669_vm3, %v684_v9, %v693_v26 }
  0x65   : > { %v895_v28 = vor.u32 %v894_v25, %v891_v24 }
  0x67   : > { %v896_v2 = vsel %vm669_vm3, %v886_v13, %v895_v28 }
  0x6f   : > { %1317 = vmatmul.msk.bf16.vlgmr.msra.gmra.mxu1 %vm285_vm1, %v681_v56 }
  0x70   : > { %1345 = vmatmul.msk.bf16.vlgmr.msra.gmra.mxu2 %vm285_vm1, %v791_v58 }
  0x71   : > { %1385 = vmatmul.msk.bf16.vlgmr.msra.gmra.mxu0 %vm285_vm1, %v998_v57  ;;  %1357 = vmatmul.msk.bf16.vlgmr.msra.gmra.mxu3 %vm285_vm1, %v878_v59 }
  0x7f   : > { %1318 = vmatmul.msk.bf16.gmra.mxu1 %vm285_vm1, %v685_v14 }
  0x80   : > { %1346 = vmatmul.msk.bf16.gmra.mxu2 %vm285_vm1, %v793_v17 }
  0x81   : > { %1386 = vmatmul.msk.bf16.gmra.mxu0 %vm285_vm1, %v1000_v16  ;;  %1358 = vmatmul.msk.bf16.gmra.mxu3 %vm285_vm1, %v887_v18 }
  0x8f   : > { %1319 = vmatmul.msk.bf16.gmra.mxu1 %vm285_vm1, %v694_v29 }
  0x90   : > { %1347 = vmatmul.msk.bf16.gmra.mxu2 %vm285_vm1, %v795_v30  ;;  %v1793_v30 = vld [vmem:[#allocation5] ss:$0 sm:$0xff] }
  0x91   : > { %1387 = vmatmul.msk.bf16.gmra.mxu0 %vm285_vm1, %v1002_v11  ;;  %1359 = vmatmul.msk.bf16.gmra.mxu3 %vm285_vm1, %v896_v2 }
  0x9c   : > { %v312_v35 = vpop.f32.mrf.mxu1 }
  0x9e   : > { %v307_v36 = vpop.f32.mrf.mxu0 }
  0x9f   : > { %1320 = vmatmul.msk.bf16.gmra.mxu1 %vm285_vm1, %v693_v26 }
  0xa0   : > { %1348 = vmatmul.msk.bf16.gmra.mxu2 %vm285_vm1, %v794_v27 }
  0xa1   : > { %1388 = vmatmul.msk.bf16.gmra.mxu0 %vm285_vm1, %v1004_v37  ;;  %1360 = vmatmul.msk.bf16.gmra.mxu3 %vm285_vm1, %v895_v28 }
  0xa3   : > { %v1761_v38 = vpop.f32.mrf.mxu2 }
  0xa4   : > { %v1763_v15 = vpop.f32.mrf.mxu1  ;;  %v1765_v39 = vpop.f32.mrf.mxu3 }
  0xa6   : > { %v309_v40 = vpop.f32.mrf.mxu0 }
  0xab   : > { %v1767_v41 = vpop.f32.mrf.mxu2 }
  0xac   : > { %v356_v42 = vpop.f32.mrf.mxu1  ;;  %v324_v43 = vpop.f32.mrf.mxu3 }
  0xad   : > { %v357_v16 = vadd.f32 %v356_v42, %v307_v36 }
  0xae   : > { %v636_v44 = vpop.f32.mrf.mxu0 }
  0xb3   : > { %v430_v46 = vpop.f32.mrf.mxu2 }
  0xb4   : > { %v358_v47 = vpop.f32.mrf.mxu1  ;;  %v555_v48 = vpop.f32.mrf.mxu3  ;;  %v450_v17 = vadd.f32 %v430_v46, %v357_v16 }
  0xb5   : > { %v359_v21 = vadd.f32 %v358_v47, %v309_v40 }
  0xb6   : > { %v638_v49 = vpop.f32.mrf.mxu0  ;;  %v575_v6 = vadd.f32 %v555_v48, %v450_v17 }
  0xb8   : > { %v656_v1 = vadd.f32 %v636_v44, %v575_v6 }
  0xbb   : > { %v432_v50 = vpop.f32.mrf.mxu2 }
  0xbc   : > { %v361_v52 = vpop.f32.mrf.mxu1  ;;  %v557_v53 = vpop.f32.mrf.mxu3  ;;  %v451_v22 = vadd.f32 %v432_v50, %v359_v21 }
  0xbd   : > { %v362_v29 = vadd.f32 %v361_v52, %v312_v35 }
  0xbe   : > { %v641_v54 = vpop.f32.mrf.mxu0  ;;  %v576_v26 = vadd.f32 %v557_v53, %v451_v22 }
  0xc0   : > { %v657_v32 = vadd.f32 %v638_v49, %v576_v26 }
  0xc3   : > { %v435_v55 = vpop.f32.mrf.mxu2 }
  0xc4   : > { %v363_v45 = vpop.f32.mrf.mxu1  ;;  %v560_v51 = vpop.f32.mrf.mxu3  ;;  %v452_v31 = vadd.f32 %v435_v55, %v362_v29  ;;  %v1110_v29 = vld [vmem:[%s1811_s7] sm:$0x3] }
  0xc5   : > { %v364_v47 = vadd.f32 %v363_v45, %v1763_v15 }
  0xc6   : > { %v1769_v56 = vpop.f32.mrf.mxu0  ;;  %v577_v40 = vadd.f32 %v560_v51, %v452_v31 }
  0xc8   : > { %v658_v52 = vadd.f32 %v641_v54, %v577_v40 }
  0xcb   : > { %v437_v57 = vpop.f32.mrf.mxu2 }
  0xcc   : > { %v366_v58 = vpop.f32.mrf.mxu1  ;;  %v562_v59 = vpop.f32.mrf.mxu3  ;;  %v453_v48 = vadd.f32 %v437_v57, %v364_v47 }
  0xce   : > { %v1771_v60 = vpop.f32.mrf.mxu0 }
  0xd3   : > { %v1773_v61 = vpop.f32.mrf.mxu2 }
  0xd4   : > { %v1775_v62 = vpop.f32.mrf.mxu1  ;;  %v1777_v63 = vpop.f32.mrf.mxu3 }
  0xd6   : > { %v1779_v0 = vpop.f32.mrf.mxu0 }
  0xdb   : > { %v1781_v5 = vpop.f32.mrf.mxu2 }
  0xdc   : > { %v1783_v7 = vpop.f32.mrf.mxu1  ;;  %v1785_v8 = vpop.f32.mrf.mxu3 }
  0xde   : > { %v1787_v9 = vpop.f32.mrf.mxu0 }
  0xe3   : > { %v1789_v10 = vpop.f32.mrf.mxu2 }
  0xe4   : > { %v373_v12 = vpop.f32.mrf.mxu1  ;;  %v1791_v13 = vpop.f32.mrf.mxu3 }
  0xe6   : > { %v653_v14 = vpop.f32.mrf.mxu0 }
  0xe7   : > { %v578_v14 = vadd.f32 %v562_v59, %v453_v48 }
  0xe9   : > { %v659_v54 = vadd.f32 %v1769_v56, %v578_v14 }
  0xeb   : > { %v447_v18 = vpop.f32.mrf.mxu2 }
  0xec   : > { %v728_v4 = vpop.f32.mrf.mxu1  ;;  %v572_v19 = vpop.f32.mrf.mxu3  ;;  %v367_v18 = vadd.f32 %v366_v58, %v1761_v38 }
  0xed   : > { %v748_v23 = vadd.f32 %v728_v4, %v656_v1 }
  0xee   : > { %v1038_v20 = vpop.f32.mrf.mxu0  ;;  %v454_v57 = vadd.f32 %v1773_v61, %v367_v18  ;;  %v369_v61 = vadd.f32 %v1775_v62, %v1767_v41 }
  0xf0   : > { %v579_v1 = vadd.f32 %v1777_v63, %v454_v57 }
  0xf2   : > { %v660_v41 = vadd.f32 %v1771_v60, %v579_v1 }
  0xf3   : > { %v829_v24 = vpop.f32.mrf.mxu2 }
  0xf4   : > { %v730_v25 = vpop.f32.mrf.mxu1  ;;  %v849_v3 = vadd.f32 %v829_v24, %v748_v23  ;;  %v930_v27 = vpop.f32.mrf.mxu3 }
  0xf5   : > { %v749_v34 = vadd.f32 %v730_v25, %v657_v32 }
  0xf6   : > { %v1040_v28 = vpop.f32.mrf.mxu0  ;;  %v950_v11 = vadd.f32 %v930_v27, %v849_v3  ;;  %v455_v3 = vadd.f32 %v1781_v5, %v369_v61 }
  0xf8   : > { %v1058_v2 = vadd.f32 %v1038_v20, %v950_v11  ;;  %v580_v5 = vadd.f32 %v1785_v8, %v455_v3 }
  0xfa   : > { %v1070_v33 = vadd.f32 %v1793_v30, %v1058_v2  ;;  %v661_v47 = vadd.f32 %v1779_v0, %v580_v5 }
  0xfb   : > { %v831_v36 = vpop.f32.mrf.mxu2 }
  0xfc   : > { %v733_v37 = vpop.f32.mrf.mxu1  ;;  %v1078_v42 = vmax.f32 %v1070_v33, 0.0  ;;  %v850_v43 = vadd.f32 %v831_v36, %v749_v34  ;;  %v932_v44 = vpop.f32.mrf.mxu3 }
  0xfd   : > { %v750_v53 = vadd.f32 %v733_v37, %v658_v52 }
  0xfe   : > { %v1043_v46 = vpop.f32.mrf.mxu0  ;;  %1087 = vst.msk [vmem:[#allocation2] sm:$0xff] %vm1086_vm5, %v1078_v42  ;;  %v951_v35 = vadd.f32 %v932_v44, %v850_v43  ;;  %v372_v42 = vadd.f32 %v1783_v7, %v1765_v39 }
 0x100   : > { %v1059_v50 = vadd.f32 %v1040_v28, %v951_v35  ;;  %v456_v44 = vadd.f32 %v1789_v10, %v372_v42 }
 0x102   : > { %v1071_v49 = vadd.f32 %v1793_v30, %v1059_v50  ;;  %v581_v52 = vadd.f32 %v1791_v13, %v456_v44 }
 0x103   : > { %v834_v55 = vpop.f32.mrf.mxu2 }
 0x104   : > { %v735_v12 = vpop.f32.mrf.mxu1  ;;  %v1079_v51 = vmax.f32 %v1071_v49, 0.0  ;;  %v851_v16 = vadd.f32 %v834_v55, %v750_v53  ;;  %v935_v17 = vpop.f32.mrf.mxu3  ;;  %v662_v10 = vadd.f32 %v1787_v9, %v581_v52 }
 0x105   : > { %v751_v19 = vadd.f32 %v735_v12, %v659_v54  ;;  %v1096_v20 = vld [vmem:[#allocation2] ss:$2 sm:$0x7]  ;;  %v1098_v59 = vld [vmem:[#allocation2 + $0x1] ss:$2 sm:$0x7] }
 0x106   : > { %1088 = vst.msk [vmem:[#allocation2 + $0x8] sm:$0xff] %vm1086_vm5, %v1079_v51  ;;  %v952_v15 = vadd.f32 %v935_v17, %v851_v16  ;;  %v1045_v45 = vpop.f32.mrf.mxu0  ;;  %v1103_v56 = vmax.f32 %v1096_v20, %v1098_v59 }
 0x108   : > { %v1060_v4 = vadd.f32 %v1043_v46, %v952_v15 }
 0x10a   : > { %v1072_v6 = vadd.f32 %v1793_v30, %v1060_v4 }
 0x10b   : > { %v836_v21 = vpop.f32.mrf.mxu2 }
 0x10c   : > { %v738_v22 = vpop.f32.mrf.mxu1  ;;  %v1080_v38 = vmax.f32 %v1072_v6, 0.0  ;;  %v852_v58 = vadd.f32 %v836_v21, %v751_v19  ;;  %v937_v23 = vpop.f32.mrf.mxu3  ;;  %v1389_v21 = vld [vmem:[%s1811_s7 + $0x2] sm:$0x3] }
 0x10d   : > { %v1100_v24 = vld [vmem:[#allocation2 + $0x9] ss:$2 sm:$0x7]  ;;  %v1102_v25 = vld [vmem:[#allocation2 + $0xa] ss:$2 sm:$0x7]  ;;  %v752_v32 = vadd.f32 %v738_v22, %v660_v41 }
 0x10e   : > { %v1104_v26 = vmax.f32 %v1100_v24, %v1102_v25  ;;  %1089 = vst.msk [vmem:[#allocation2 + $0x10] sm:$0xff] %vm1086_vm5, %v1080_v38  ;;  %v953_v63 = vadd.f32 %v937_v23, %v852_v58  ;;  %v1048_v11 = vpop.f32.mrf.mxu0  ;;  %v1391_v41 = vld [vmem:[%s1811_s7 + $0x4] sm:$0x3] }
 0x110   : > { %v1105_v27 = vmax.f32 %v1103_v56, %v1104_v26  ;;  %v1061_v28 = vadd.f32 %v1045_v45, %v953_v63 }
 0x112   : > { %v1106_v31 = vpack.c.bf16 %v1105_v27, %v1105_v27  ;;  %v1073_v2 = vadd.f32 %v1793_v30, %v1061_v28 }
 0x113   : > { %v839_v33 = vpop.f32.mrf.mxu2 }
 0x114   : > { %v740_v34 = vpop.f32.mrf.mxu1  ;;  %v1111_v36 = vsel %vm1817_vm8, %v1106_v31, %v1110_v29  ;;  %v1081_v37 = vmax.f32 %v1073_v2, 0.0  ;;  %v853_v60 = vadd.f32 %v839_v33, %v752_v32  ;;  %v940_v40 = vpop.f32.mrf.mxu3 }
 0x115   : > { %1112 = vst [vmem:[%s1811_s7] sm:$0x3] %v1111_v36  ;;  %v753_v35 = vadd.f32 %v740_v34, %v661_v47  ;;  %v1114_v51 = vld [vmem:[#allocation2 + $0x12] ss:$2 sm:$0x7] }
 0x116   : > { %1090 = vst.msk [vmem:[#allocation2 + $0x18] sm:$0xff] %vm1086_vm5, %v1081_v37  ;;  %v954_v43 = vadd.f32 %v940_v40, %v853_v60  ;;  %v1050_v48 = vpop.f32.mrf.mxu0  ;;  %v1116_v16 = vld [vmem:[#allocation2 + $0x13] ss:$2 sm:$0x7] }
 0x117   : > { %v1121_v54 = vmax.f32 %v1114_v51, %v1116_v16 }
 0x118   : > { %v1062_v46 = vadd.f32 %v1048_v11, %v954_v43 }
 0x11a   : > { %v1074_v8 = vadd.f32 %v1793_v30, %v1062_v46 }
 0x11b   : > { %v841_v50 = vpop.f32.mrf.mxu2 }
 0x11c   : > { %v1082_v49 = vmax.f32 %v1074_v8, 0.0  ;;  %v854_v53 = vadd.f32 %v841_v50, %v753_v35  ;;  %v942_v55 = vpop.f32.mrf.mxu3  ;;  %v743_v12 = vpop.f32.mrf.mxu1 }
 0x11d   : > { %v754_v0 = vadd.f32 %v743_v12, %v662_v10  ;;  %v1118_v45 = vld [vmem:[#allocation2 + $0x1b] ss:$2 sm:$0x7] }
 0x11e   : > { %1091 = vst.msk [vmem:[#allocation2 + $0x20] sm:$0xff] %vm1086_vm5, %v1082_v49  ;;  %v955_v39 = vadd.f32 %v942_v55, %v854_v53  ;;  %v1053_v4 = vpop.f32.mrf.mxu0 }
 0x120   : > { %v1063_v7 = vadd.f32 %v1050_v48, %v955_v39 }
 0x122   : > { %v1075_v14 = vadd.f32 %v1793_v30, %v1063_v7 }
 0x123   : > { %v844_v17 = vpop.f32.mrf.mxu2 }
 0x124   : > { %v1083_v18 = vmax.f32 %v1075_v14, 0.0  ;;  %v855_v15 = vadd.f32 %v844_v17, %v754_v0  ;;  %v945_v13 = vpop.f32.mrf.mxu3  ;;  %v745_v9 = vpop.f32.mrf.mxu1 }
 0x125   : > { %v1120_v57 = vld [vmem:[#allocation2 + $0x1c] ss:$2 sm:$0x7] }
 0x126   : > { %v1122_v6 = vmax.f32 %v1118_v45, %v1120_v57  ;;  %1092 = vst.msk [vmem:[#allocation2 + $0x28] sm:$0xff] %vm1086_vm5, %v1083_v18  ;;  %v956_v19 = vadd.f32 %v945_v13, %v855_v15  ;;  %v1055_v24 = vpop.f32.mrf.mxu0 }
 0x128   : > { %v1123_v20 = vmax.f32 %v1121_v54, %v1122_v6  ;;  %v1064_v59 = vadd.f32 %v1053_v4, %v956_v19 }
 0x12a   : > { %v1124_v22 = vpack.c.bf16 %v1123_v20, %v1123_v20  ;;  %v1076_v1 = vadd.f32 %v1793_v30, %v1064_v59 }
 0x12b   : > { %v846_v38 = vpop.f32.mrf.mxu2 }
 0x12c   : > { %v1127_v58 = vsel %vm1817_vm8, %v1124_v22, %v1389_v21  ;;  %v1084_v23 = vmax.f32 %v1076_v1, 0.0  ;;  %v947_v61 = vpop.f32.mrf.mxu3 }
 0x12d   : > { %1390 = vst [vmem:[%s1811_s7 + $0x2] sm:$0x3] %v1127_v58  ;;  %v1130_v25 = vld [vmem:[#allocation2 + $0x24] ss:$2 sm:$0x7] }
 0x12e   : > { %1093 = vst.msk [vmem:[#allocation2 + $0x30] sm:$0xff] %vm1086_vm5, %v1084_v23  ;;  %v1132_v56 = vld [vmem:[#allocation2 + $0x25] ss:$2 sm:$0x7] }
 0x12f   : > { %v1137_v3 = vmax.f32 %v1130_v25, %v1132_v56 }
 0x135   : > { %v1134_v26 = vld [vmem:[#allocation2 + $0x2d] ss:$2 sm:$0x7]  ;;  %v1136_v63 = vld [vmem:[#allocation2 + $0x2e] ss:$2 sm:$0x7] }
 0x136   : > { %v1138_v27 = vmax.f32 %v1134_v26, %v1136_v63 }
 0x138   : > { %v1139_v28 = vmax.f32 %v1137_v3, %v1138_v27 }
 0x13a   : > { %v1140_v30 = vpack.c.bf16 %v1139_v28, %v1139_v28 }
 0x13c   : > { %v1143_v29 = vsel %vm1817_vm8, %v1140_v30, %v1391_v41 }
 0x13d   : > { %1392 = vst [vmem:[%s1811_s7 + $0x4] sm:$0x3] %v1143_v29 }
 0x13e PF: > { %s15_s12 = sadd.s32 1, %s1559_s12  }
 0x13f   : > { %p12_p7 = scmp.ge.s32.totalorder %s15_s12, 4  }
 0x141   :  { %14 = sbr.rel (!%p12_p7) target bundleno = 2 (0x2), region = 92 }
 0x146   :  { %1166 = vsyncpa [#allocation4], 1 }
 0x147   :  { %1168 = vsyncpa [#allocation4 + $0x1], 1 }
 0x148   :  { %1169 = vsyncpa [#allocation6], 1 }

// kernel: bird_classifier_forward.8
= control target key start
LH: loop header
LB: loop body
LE: loop exit
PB: predicated region body
PF: predicated region fallthrough
CT: control target
= control target key end

     0   :  { %8 = vsyncpa [#allocation4], 0  ;;  %s3123_s0 = inlined_call_operand.vmem [shape: bf16[2,169,16], index: 0, kind: input, shape index: {}]   ;;  %s3124_s1 = inlined_call_operand.hbm [shape: bf16[9,16,32], index: 1, kind: input, shape index: {}]   ;;  %s3125_s2 = inlined_call_operand.hbm [shape: f32[1,32], index: 2, kind: input, shape index: {}]   ;;  %s3126_s3 = inlined_call_operand.vmem [shape: bf16[2,5,5,32], index: 3, kind: output, shape index: {}]  }
   0x1   :  { %9 = vsyncpa [#allocation6], 0  ;;  %s2454_s12 = smov 0  }
   0x2 LB: > { %s125_s15 = sshll.u32 %s3124_s1, 4  ;;  %s1993_s16 = sadd.s32 4294967295, %s2428_s12   ;;  %s2428_s12 = sphi %s2454_s12, %s15_s12   ;;  %s126_s15 = int_to_ptr.hbm [resolvable:$true] %s125_s15 }
   0x3   : > { %p1995_p0 = scmp.ge.s32.totalorder %s2428_s12, 1  ;;  %p114_p1 = scmp.lt.s32.totalorder %s2428_s12, 3 }
   0x4   : > { %p2332_p2 = scmp.eq.s32.totalorder %s1993_s16, 0  ;;  %s2430_s18 = smov [#allocation3]  }
   0x5   : > { %p2465_p3 = pnand %p1995_p0, %p114_p1  ;;  %s127_s19 = sshll.u32 %s2430_s18, 4  ;;  %s128_s19 = int_to_ptr.vmem [resolvable:$true] %s127_s19 }
   0x6   : > { %s140_s22 = sshll.u32 %s3125_s2, 4  ;;  %s2431_s23 = smov [#allocation5]   ;;  %s141_s22 = int_to_ptr.hbm [resolvable:$true] %s140_s22 }
   0x7   : > { %p2325_p4 = pneg %p2465_p3  ;;  %s142_s24 = sshll.u32 %s2431_s23, 4  ;;  %s143_s24 = int_to_ptr.vmem [resolvable:$true] %s142_s24 }
   0x8   : > { %s2432_s25 = smov 64   ;;  %s2433_s26 = smov 4  }
   0x9   : > { %p2326_p5 = pnand %p2332_p2, %p2325_p4  ;;  %163 = sbr.rel (%p2465_p3) target bundleno = 502 (0x1f6), region = 32 }
   0xb   : > { %2328 = dma.hbm_to_vmem [thread:$0]  (!%p2326_p5), %s126_s15, 1152, %s128_s19, [#allocation4], %s2432_s25, %s2432_s25, %s2433_s26  }
   0xc   : > { %2331 = dma.hbm_to_vmem [thread:$0]  (!%p2326_p5), %s141_s22, 16, %s143_s24, [#allocation6]  }
   0xe   : > { %2414 = dma.done.wait (%p2332_p2), [#allocation4], 1152  }
   0xf   : > { %2416 = vsyncadd (%p2332_p2), [#allocation4], 4294966144 }
  0x10   : > { %2418 = dma.done.wait (%p2332_p2), [#allocation6], 16  }
  0x11   : > { %2420 = vsyncadd (%p2332_p2), [#allocation6], 4294967280  ;;  %p193_p6 = scmp.lt.s32.totalorder %s1993_s16, 1  ;;  %v2271_v0 = vld [vmem:[#allocation3 + $0x8] sm:$0xff]  ;;  %vm272_vm0 = vsmask.f32 7424 }
  0x12   : > { %v2272_v5 = vld [vmem:[#allocation3 + $0x10] sm:$0xff]  ;;  %2312 = vmatpush.bf16.msra.mxu1 %v2271_v0  ;;  %2313 = vmatpush.bf16.msra.mxu2 %v2271_v0  ;;  %v2270_v9 = vld [vmem:[#allocation3] sm:$0xff]  ;;  %v2281_v20 = vld [vmem:[#allocation3 + $0x18] sm:$0xff]  ;;  %vm350_vm1 = vcmask 130048   ;;  %vm920_vm2 = vcmask 1044480   ;;  %vm521_vm4 = vcmask 1046528  }
  0x13   : > { %s3139_s16 = smov (!%p193_p6, %s1993_s16), 1  ;;  %2314 = vmatpush.bf16.msra.mxu3 %v2271_v0  ;;  %385 = vmatpush.bf16.msra.mxu0 %v2271_v0  ;;  %v2282_v40 = vld [vmem:[#allocation3 + $0x20] sm:$0xff]  ;;  %v2293_v0 = vld [vmem:[#allocation3 + $0x30] sm:$0xff]  ;;  %vm714_vm3 = vsmask.f32 5376  ;;  %vm1650_vm5 = vcmask 1045504  }
  0x14   : > { %s2315_s27 = smul.u32 88, %s3139_s16  ;;  %vm1394_vm6 = vsmask.f32 6400  ;;  %vm1048_vm7 = vsmask.f32 4352  ;;  %vm1815_vm8 = vcmask 261120  }
  0x15   : > { %s2316_s4 = smul.u32 20, %s3139_s16  ;;  %vm1846_vm9 = vcmask 256000   ;;  %vm1847_vm10 = vsmask.f32 2304 }
  0x16   : > { %s2487_s30 = scalar_lea.vmem %s3123_s0, %s2315_s27  ;;  %579 = vmatpush.bf16.msrb.mxu2 %v2272_v5  ;;  %463 = vmatpush.bf16.msrb.mxu1 %v2270_v9  ;;  %v2294_v5 = vld [vmem:[#allocation3 + $0x38] sm:$0xff]  ;;  %vm3061_vm11 = vmand %vm1846_vm9, %vm1847_vm10 }
  0x17   : > { %v2490_v1 = vld [vmem:[%s2487_s30 + $0x8] sm:$0xff]  ;;  %v2493_v2 = vld [vmem:[%s2487_s30 + $0x10] sm:$0xff]  ;;  %v2496_v3 = vld [vmem:[%s2487_s30 + $0x20] sm:$0xff]  ;;  %844 = vmatpush.bf16.msrb.mxu3 %v2281_v20  ;;  %980 = vmatpush.bf16.msrb.mxu0 %v2282_v40  ;;  %s3057_s7 = scalar_lea.vmem %s3126_s3, %s2316_s4 }
  0x18   : > { %v2499_v4 = vld [vmem:[%s2487_s30 + $0x28] sm:$0xff]  ;;  %v281_v6 = vshll.u32 %v2490_v1, 16  ;;  %v285_v7 = vshrl.u32 %v2490_v1, 16  ;;  %v289_v8 = vshll.u32 %v2493_v2, 16  ;;  %v2505_v10 = vld [vmem:[%s2487_s30 + $0x38] sm:$0xff]  ;;  %v2508_v11 = vld [vmem:[%s2487_s30 + $0x40] sm:$0xff]  }
  0x19   : > { %v2423_v12 = vld [vmem:[%s2487_s30 + $0x40] sm:$0xf]   ;;  %v305_v13 = vshll.u32 %v2496_v3, 16  ;;  %v309_v14 = vshrl.u32 %v2496_v3, 16  ;;  %v313_v15 = vshll.u32 %v2499_v4, 16  ;;  %v329_v19 = vshll.u32 %v2505_v10, 16 }
  0x1a   : > { %v2425_v16 = vld [vmem:[%s2487_s30 + $0x40] sm:$0x70]  ;;  %v283_v17 = vrot.slane %v281_v6, 1  ;;  %v291_v18 = vrot.slane %v289_v8, 1  ;;  %v333_v23 = vshrl.u32 %v2505_v10, 16  ;;  %v2534_v34 = vld [vmem:[%s2487_s30 + $0x18] sm:$0xff] }
  0x1b   : > { %v2516_v21 = vrot.slane %v305_v13, 1  ;;  %v315_v22 = vrot.slane %v313_v15, 1  ;;  %v2519_v25 = vor.u32 %v2425_v16, %v2423_v12  ;;  %v2521_v26 = vrot.slane %v329_v19, 1  ;;  %v2528_v31 = vld [vmem:[%s2487_s30] sm:$0xff]   ;;  %v2537_v35 = vld [vmem:[%s2487_s30 + $0x30] sm:$0xff]  ;;  %v2283_v6 = vld [vmem:[#allocation3 + $0x28] sm:$0xff] }
  0x1c   : > { %v287_v24 = vor.u32 %v285_v7, %v283_v17  ;;  %v274_v36 = vshrl.u32 %v2528_v31, 16  ;;  %v276_v37 = vshll.u32 %v2528_v31, 16  ;;  %v293_v41 = vshrl.u32 %v2493_v2, 16  ;;  %v645_v49 = vld [vmem:[%s2487_s30 + $0x8] sm:$0xf]  ;;  %v2559_v62 = vld [vmem:[%s2487_s30 + $0xc] sm:$0xff] }
  0x1d   : > { %v311_v27 = vor.u32 %v309_v14, %v2516_v21  ;;  %v335_v29 = vor.u32 %v333_v23, %v2521_v26  ;;  %v337_v30 = vshll.u32 %v2519_v25, 16  ;;  %v297_v42 = vshll.u32 %v2534_v34, 16  ;;  %v644_v52 = vld [vmem:[%s2487_s30 + $0x4] sm:$0xc]  ;;  %v2304_v12 = vld [vmem:[#allocation3 + $0x40] sm:$0xff] }
  0x1e   : > { %v292_v28 = vsel %vm272_vm0, %v287_v24, %v291_v18  ;;  %v278_v39 = vrot.slane %v276_v37, 1  ;;  %v317_v43 = vshrl.u32 %v2499_v4, 16  ;;  %v321_v44 = vshll.u32 %v2537_v35, 16  ;;  %v909_v53 = vld [vmem:[%s2487_s30 + $0x4] sm:$0x8] }
  0x1f   : > { %2037 = vmatmul.msk.bf16.vlgmr.msra.gmra.mxu1 %vm350_vm1, %v292_v28  ;;  %v316_v32 = vsel %vm272_vm0, %v311_v27, %v315_v22  ;;  %v339_v33 = vrot.slane %v337_v30, 1  ;;  %v295_v47 = vor.u32 %v293_v41, %v291_v18  ;;  %v299_v48 = vrot.slane %v297_v42, 1 }
  0x20   : > { %2040 = vmatmul.msk.bf16.vlgmr.msra.gmra.mxu2 %vm350_vm1, %v316_v32  ;;  %v279_v45 = vor.u32 %v278_v39, %v274_v36  ;;  %v319_v50 = vor.u32 %v317_v43, %v315_v22  ;;  %v323_v51 = vrot.slane %v321_v44, 1  ;;  %v341_v54 = vshrl.u32 %v2519_v25, 16  ;;  %1138 = vmatpush.bf16.msra.mxu1 %v2283_v6  ;;  %v2310_v39 = vld [vmem:[%s2487_s30] sm:$0xe] }
  0x21   : > { %v340_v38 = vsel %vm272_vm0, %v335_v29, %v339_v33  ;;  %v686_v55 = vunpack.c.l.b16 %v645_v49  ;;  %v916_v56 = vunpack.c.l.b16 %v909_v53  ;;  %v300_v57 = vsel %vm272_vm0, %v295_v47, %v299_v48  ;;  %1326 = vmatpush.bf16.msra.mxu2 %v2293_v0 }
  0x22   : > { %2043 = vmatmul.msk.bf16.vlgmr.msra.gmra.mxu3 %vm350_vm1, %v340_v38  ;;  %v284_v46 = vsel %vm272_vm0, %v279_v45, %v283_v17  ;;  %v685_v58 = vunpack.c.l.b16 %v644_v52  ;;  %v324_v59 = vsel %vm272_vm0, %v319_v50, %v323_v51  ;;  %v343_v61 = vor.u32 %v341_v54, %v339_v33  ;;  %v2581_v33 = vld [vmem:[%s2487_s30 + $0x14] sm:$0xff]  ;;  %v2309_v38 = vld [vmem:[%s2487_s30] sm:$0xf0] }
  0x23   : > { %2036 = vmatmul.msk.bf16.vlgmr.msra.gmra.mxu0 %vm350_vm1, %v284_v46  ;;  %v2555_v60 = vpack.c.b16 %v686_v55, %v916_v56  ;;  %v922_v8 = vrot.slane %v2559_v62, 3  ;;  %1515 = vmatpush.bf16.msra.mxu3 %v2294_v5  ;;  %v301_v9 = vshrl.u32 %v2534_v34, 16  ;;  %v724_v15 = vshrl.u32 %v2559_v62, 16 }
  0x24   : > { %v704_v63 = vpack.c.b16 %v686_v55, %v685_v58  ;;  %v727_v16 = vshll.u32 %v2559_v62, 16  ;;  %v325_v17 = vshrl.u32 %v2537_v35, 16  ;;  %1710 = vmatpush.bf16.msra.mxu0 %v2304_v12  ;;  %v924_v37 = vrot.slane %v2581_v33, 3  ;;  %v2621_v58 = vld [vmem:[%s2487_s30 + $0x24] sm:$0xff]  ;;  %v2640_v12 = vld [vmem:[%s2487_s30 + $0x2c] sm:$0xff]  ;;  %v2296_v62 = vld [vmem:[%s2487_s30 + $0x14] sm:$0xff] }
  0x25   : > { %v921_v7 = vrot.slane %v2555_v60, 3  ;;  %v303_v19 = vor.u32 %v301_v9, %v299_v48  ;;  %v726_v23 = vrot.slane %v724_v15, 2  ;;  %v2311_v40 = vor.u32 %v2310_v39, %v2309_v38  ;;  %v2602_v48 = vld [vmem:[%s2487_s30 + $0x1c] sm:$0xff] }
  0x26   : > { %v716_v13 = vshrl.u32 %v704_v63, 16  ;;  %v719_v14 = vshll.u32 %v704_v63, 16  ;;  %v729_v24 = vrot.slane %v727_v16, 3  ;;  %v327_v27 = vor.u32 %v325_v17, %v323_v51 }
  0x27   : > { %v923_v18 = vsel %vm920_vm2, %v921_v7, %v922_v8  ;;  %v308_v28 = vsel %vm272_vm0, %v303_v19, %v2516_v21  ;;  %v733_v21 = vshrl.u32 %v2581_v33, 16  ;;  %v925_v41 = vsel %vm920_vm2, %v922_v8, %v924_v37 }
  0x28   : > { %v718_v20 = vrot.slane %v716_v13, 2  ;;  %v721_v22 = vrot.slane %v719_v14, 3  ;;  %v730_v30 = vor.u32 %v729_v24, %v726_v23  ;;  %v332_v32 = vsel %vm272_vm0, %v327_v27, %v2521_v26  ;;  %v2659_v27 = vld [vmem:[%s2487_s30 + $0x34] sm:$0xff] }
  0x29   : > { %v736_v26 = vshll.u32 %v2581_v33, 16  ;;  %v735_v42 = vrot.slane %v733_v21, 2  ;;  %v522_v44 = vrot.slane %v2311_v40, 1  ;;  %v523_v45 = vrot.slane %v2490_v1, 1 }
  0x2a   : > { %v722_v29 = vor.u32 %v721_v22, %v718_v20  ;;  %v926_v50 = vrot.slane %v2602_v48, 3  ;;  %v742_v51 = vshrl.u32 %v2602_v48, 16  ;;  %v745_v52 = vshll.u32 %v2602_v48, 16 }
  0x2b   : > { %v738_v43 = vrot.slane %v736_v26, 3  ;;  %v524_v47 = vsel %vm521_vm4, %v522_v44, %v523_v45  ;;  %v525_v55 = vrot.slane %v2493_v2, 1  ;;  %v751_v63 = vshrl.u32 %v2621_v58, 16 }
  0x2c   : > { %v731_v36 = vsel %vm714_vm3, %v722_v29, %v730_v30  ;;  %v927_v53 = vsel %vm920_vm2, %v924_v37, %v926_v50  ;;  %v747_v54 = vrot.slane %v745_v52, 3  ;;  %v754_v0 = vshll.u32 %v2621_v58, 16 }
  0x2d   : > { %v739_v46 = vor.u32 %v738_v43, %v735_v42  ;;  %v527_v7 = vrot.slane %v2534_v34, 1  ;;  %v930_v14 = vrot.slane %v2640_v12, 3  ;;  %v760_v17 = vshrl.u32 %v2640_v12, 16 }
  0x2e   : > { %v756_v6 = vrot.slane %v754_v0, 3  ;;  %v529_v22 = vrot.slane %v2496_v3, 1  ;;  %v932_v29 = vrot.slane %v2659_v27, 3  ;;  %v531_v38 = vrot.slane %v2499_v4, 1 }
  0x2f   : > { %2038 = vmatmul.msk.bf16.gmra.mxu1 %vm350_vm1, %v300_v57  ;;  %v740_v49 = vsel %vm714_vm3, %v730_v30, %v739_v46  ;;  %v526_v57 = vsel %vm521_vm4, %v523_v45, %v525_v55  ;;  %v528_v9 = vsel %vm521_vm4, %v525_v55, %v527_v7  ;;  %v769_v30 = vshrl.u32 %v2659_v27, 16 }
  0x30   : > { %2041 = vmatmul.msk.bf16.gmra.mxu2 %vm350_vm1, %v324_v59  ;;  %v530_v24 = vsel %vm521_vm4, %v527_v7, %v529_v22  ;;  %v532_v40 = vsel %vm521_vm4, %v529_v22, %v531_v38 }
  0x32   : > { %2044 = vmatmul.msk.bf16.gmra.mxu3 %vm350_vm1, %v343_v61  ;;  %v928_v61 = vrot.slane %v2621_v58, 3 }
  0x33   : > { %2120 = vmatmul.msk.bf16.vlgmr.msrb.gmra.mxu0 %vm350_vm1, %v923_v18  ;;  %v763_v18 = vshll.u32 %v2640_v12, 16 }
  0x34   : > { %v929_v5 = vsel %vm920_vm2, %v926_v50, %v928_v61  ;;  %v931_v19 = vsel %vm920_vm2, %v928_v61, %v930_v14 }
  0x35   : > { %v765_v20 = vrot.slane %v763_v18, 3 }
  0x3f   : > { %2039 = vmatmul.msk.bf16.gmra.mxu1 %vm350_vm1, %v308_v28 }
  0x40   : > { %2042 = vmatmul.msk.bf16.gmra.mxu2 %vm350_vm1, %v332_v32  ;;  %v772_v32 = vshll.u32 %v2659_v27, 16 }
  0x42   : > { %2107 = vmatmul.msk.bf16.vlgmr.msrb.gmra.mxu3 %vm350_vm1, %v731_v36  ;;  %v933_v36 = vsel %vm920_vm2, %v930_v14, %v932_v29  ;;  %v774_v37 = vrot.slane %v772_v32, 3  ;;  %v910_v14 = vld [vmem:[%s2487_s30 + $0x4c] sm:$0x3] }
  0x43   : > { %2121 = vmatmul.msk.bf16.gmra.mxu0 %vm350_vm1, %v925_v41  ;;  %v2678_v41 = vld [vmem:[%s2487_s30 + $0x3c] sm:$0xff] }
  0x44   : > { %v934_v43 = vrot.slane %v2678_v41, 3  ;;  %v3130_v44 = vshrl.u32 %v2678_v41, 16  ;;  %v3129_v45 = vshll.u32 %v2678_v41, 16 }
  0x4f   : > { %2049 = vmatmul.msk.bf16.vlgmr.msrb.gmra.mxu1 %vm350_vm1, %v2528_v31  ;;  %v744_v31 = vrot.slane %v742_v51, 2 }
  0x50   : > { %2062 = vmatmul.msk.bf16.vlgmr.msrb.gmra.mxu2 %vm350_vm1, %v524_v47  ;;  %v783_v47 = vrot.slane %v3129_v45, 3 }
  0x51   : > { %v748_v56 = vor.u32 %v747_v54, %v744_v31  ;;  %v2699_v54 = vld [vmem:[%s2487_s30 + $0x44] sm:$0xff] }
  0x52   : > { %2108 = vmatmul.msk.bf16.gmra.mxu3 %vm350_vm1, %v740_v49  ;;  %v533_v49 = vrot.slane %v2537_v35, 1  ;;  %v3128_v61 = vshrl.u32 %v2699_v54, 16 }
  0x53   : > { %2122 = vmatmul.msk.bf16.gmra.mxu0 %vm350_vm1, %v927_v53  ;;  %v749_v59 = vsel %vm714_vm3, %v739_v46, %v748_v56  ;;  %v935_v46 = vsel %vm920_vm2, %v932_v29, %v934_v43 }
  0x54   : > { %v534_v31 = vsel %vm521_vm4, %v531_v38, %v533_v49  ;;  %v789_v7 = vrot.slane %v3128_v61, 2 }
  0x5f   : > { %2050 = vmatmul.msk.bf16.gmra.mxu1 %vm350_vm1, %v2490_v1  ;;  %v753_v1 = vrot.slane %v751_v63, 2 }
  0x60   : > { %2063 = vmatmul.msk.bf16.gmra.mxu2 %vm350_vm1, %v526_v57 }
  0x61   : > { %v757_v8 = vor.u32 %v756_v6, %v753_v1 }
  0x62   : > { %2109 = vmatmul.msk.bf16.gmra.mxu3 %vm350_vm1, %v749_v59 }
  0x63   : > { %2123 = vmatmul.msk.bf16.gmra.mxu0 %vm350_vm1, %v929_v5  ;;  %v758_v13 = vsel %vm714_vm3, %v748_v56, %v757_v8  ;;  %v936_v56 = vrot.slane %v2699_v54, 3 }
  0x65   : > { %v937_v1 = vsel %vm920_vm2, %v934_v43, %v936_v56 }
  0x6f   : > { %2051 = vmatmul.msk.bf16.gmra.mxu1 %vm350_vm1, %v2493_v2  ;;  %v762_v2 = vrot.slane %v760_v17, 2 }
  0x70   : > { %2064 = vmatmul.msk.bf16.gmra.mxu2 %vm350_vm1, %v528_v9  ;;  %v535_v9 = vrot.slane %v2505_v10, 1 }
  0x71   : > { %v766_v23 = vor.u32 %v765_v20, %v762_v2  ;;  %v917_v2 = vunpack.c.l.b16 %v910_v14 }
  0x72   : > { %2110 = vmatmul.msk.bf16.gmra.mxu3 %vm350_vm1, %v758_v13  ;;  %v662_v13 = vld [vmem:[%s2487_s30 + $0x4c] sm:$0x1] }
  0x73   : > { %2124 = vmatmul.msk.bf16.gmra.mxu0 %vm350_vm1, %v931_v19  ;;  %v767_v28 = vsel %vm714_vm3, %v757_v8, %v766_v23  ;;  %v2731_v29 = vpack.c.b16 %v917_v2, %v917_v2 }
  0x75   : > { %v938_v38 = vrot.slane %v2731_v29, 3 }
  0x7f   : > { %2052 = vmatmul.msk.bf16.gmra.mxu1 %vm350_vm1, %v2534_v34  ;;  %v771_v34 = vrot.slane %v769_v30, 2 }
  0x80   : > { %2065 = vmatmul.msk.bf16.gmra.mxu2 %vm350_vm1, %v530_v24  ;;  %v536_v24 = vsel %vm521_vm4, %v533_v49, %v535_v9 }
  0x81   : > { %v775_v39 = vor.u32 %v774_v37, %v771_v34 }
  0x82   : > { %2111 = vmatmul.msk.bf16.gmra.mxu3 %vm350_vm1, %v767_v28 }
  0x83   : > { %2125 = vmatmul.msk.bf16.gmra.mxu0 %vm350_vm1, %v933_v36  ;;  %v776_v42 = vsel %vm714_vm3, %v766_v23, %v775_v39  ;;  %v703_v23 = vunpack.c.l.b16 %v662_v13  ;;  %v2295_v13 = vld [vmem:[%s2487_s30 + $0xc] sm:$0xf0] }
  0x85   : > { %v713_v37 = vpack.c.b16 %v703_v23, %v703_v23  ;;  %v2144_v23 = vld [vmem:[%s2487_s30 + $0xc] sm:$0xe] }
  0x87   : > { %v799_v43 = vshll.u32 %v713_v37, 16 }
  0x89   : > { %v801_v49 = vrot.slane %v799_v43, 3 }
  0x8f   : > { %2053 = vmatmul.msk.bf16.gmra.mxu1 %vm350_vm1, %v2496_v3  ;;  %v780_v3 = vrot.slane %v3130_v44, 2 }
  0x90   : > { %2066 = vmatmul.msk.bf16.gmra.mxu2 %vm350_vm1, %v532_v40 }
  0x91   : > { %v784_v53 = vor.u32 %v783_v47, %v780_v3 }
  0x92   : > { %2112 = vmatmul.msk.bf16.gmra.mxu3 %vm350_vm1, %v776_v42  ;;  %v796_v42 = vshrl.u32 %v713_v37, 16  ;;  %v2773_v37 = vld [vmem:[%s2487_s30 + $0x14] sm:$0xff] }
  0x93   : > { %2126 = vmatmul.msk.bf16.gmra.mxu0 %vm350_vm1, %v935_v46  ;;  %v785_v55 = vsel %vm714_vm3, %v775_v39, %v784_v53 }
  0x94   : > { %v798_v47 = vrot.slane %v796_v42, 2  ;;  %v1652_v42 = vrot.slane %v2296_v62, 2 }
  0x9c   : > { %v2693_v50 = vpop.f32.mrf.mxu1 }
  0x9f   : > { %2054 = vmatmul.msk.bf16.gmra.mxu1 %vm350_vm1, %v2499_v4  ;;  %v3127_v4 = vshll.u32 %v2699_v54, 16 }
  0xa0   : > { %2067 = vmatmul.msk.bf16.gmra.mxu2 %vm350_vm1, %v534_v31  ;;  %v2711_v5 = vpop.f32.mrf.mxu0  ;;  %v1058_v31 = vrot.slane %v727_v16, 4 }
  0xa1   : > { %v792_v8 = vrot.slane %v3127_v4, 3  ;;  %v2297_v4 = vld [vmem:[%s2487_s30 + $0x1c] sm:$0xff] }
  0xa2   : > { %2113 = vmatmul.msk.bf16.gmra.mxu3 %vm350_vm1, %v785_v55  ;;  %v537_v55 = vrot.slane %v2508_v11, 1 }
  0xa3   : > { %v2704_v57 = vpop.f32.mrf.mxu2  ;;  %2127 = vmatmul.msk.bf16.gmra.mxu0 %vm350_vm1, %v937_v1  ;;  %v793_v22 = vor.u32 %v792_v8, %v789_v7  ;;  %v2206_v8 = vld [vmem:[%s2487_s30 + $0xc] sm:$0xc] }
  0xa4   : > { %v2707_v59 = vpop.f32.mrf.mxu1  ;;  %v538_v14 = vsel %vm521_vm4, %v535_v9, %v537_v55 }
  0xa5   : > { %v2714_v6 = vpop.f32.mrf.mxu3  ;;  %v794_v34 = vsel %vm714_vm3, %v784_v53, %v793_v22  ;;  %v1057_v53 = vrot.slane %v724_v15, 3 }
  0xa7   : > { %v2765_v15 = vor.u32 %v1058_v31, %v1057_v53 }
  0xa8   : > { %v2729_v28 = vpop.f32.mrf.mxu0 }
  0xab   : > { %v2724_v19 = vpop.f32.mrf.mxu2 }
  0xac   : > { %v2726_v20 = vpop.f32.mrf.mxu1 }
  0xad   : > { %v2733_v36 = vpop.f32.mrf.mxu3 }
  0xaf   : > { %2055 = vmatmul.msk.bf16.gmra.mxu1 %vm350_vm1, %v2537_v35  ;;  %v939_v35 = vsel %vm920_vm2, %v936_v56, %v938_v38  ;;  %v802_v56 = vor.u32 %v801_v49, %v798_v47  ;;  %v1404_v47 = vshrl.u32 %v2773_v37, 16 }
  0xb0   : > { %2068 = vmatmul.msk.bf16.gmra.mxu2 %vm350_vm1, %v536_v24  ;;  %v2745_v46 = vpop.f32.mrf.mxu0  ;;  %v2284_v24 = vld [vmem:[%s2487_s30 + $0xc] sm:$0xf0] }
  0xb1   : > { %v803_v11 = vsel %vm714_vm3, %v793_v22, %v802_v56  ;;  %v2775_v38 = vor.u32 %v2284_v24, %v2144_v23  ;;  %v1407_v22 = vshll.u32 %v2773_v37, 16 }
  0xb2   : > { %2114 = vmatmul.msk.bf16.gmra.mxu3 %vm350_vm1, %v794_v34  ;;  %v2207_v34 = vor.u32 %v2295_v13, %v2206_v8  ;;  %v1406_v13 = vrot.slane %v1404_v47, 1  ;;  %v1053_v47 = vshll.u32 %v2555_v60, 16 }
  0xb3   : > { %v2740_v39 = vpop.f32.mrf.mxu2  ;;  %2128 = vmatmul.msk.bf16.gmra.mxu0 %vm350_vm1, %v939_v35 }
  0xb4   : > { %v2743_v40 = vpop.f32.mrf.mxu1  ;;  %v1651_v9 = vrot.slane %v2207_v34, 2 }
  0xb5   : > { %v427_v3 = vpop.f32.mrf.mxu3 }
  0xb6   : > { %v1396_v3 = vshrl.u32 %v2775_v38, 16  ;;  %v1653_v53 = vsel %vm1650_vm5, %v1651_v9, %v1652_v42 }
  0xb8   : > { %v2761_v2 = vpop.f32.mrf.mxu0  ;;  %v1398_v56 = vrot.slane %v1396_v3, 1  ;;  %v1050_v3 = vshrl.u32 %v2555_v60, 16 }
  0xbb   : > { %v2754_v1 = vpop.f32.mrf.mxu2 }
  0xbc   : > { %v2756_v7 = vpop.f32.mrf.mxu1 }
  0xbd   : > { %v429_v16 = vpop.f32.mrf.mxu3 }
  0xbf   : > { %2056 = vmatmul.msk.bf16.gmra.mxu1 %vm350_vm1, %v2505_v10  ;;  %v1399_v10 = vshll.u32 %v2775_v38, 16 }
  0xc0   : > { %2069 = vmatmul.msk.bf16.gmra.mxu2 %vm350_vm1, %v538_v14  ;;  %v2786_v49 = vpop.f32.mrf.mxu0  ;;  %v1409_v14 = vrot.slane %v1407_v22, 2  ;;  %v2803_v22 = vld [vmem:[%s2487_s30 + $0x1c] sm:$0xff] }
  0xc1   : > { %v1401_v8 = vrot.slane %v1399_v10, 2 }
  0xc2   : > { %2115 = vmatmul.msk.bf16.gmra.mxu3 %vm350_vm1, %v803_v11  ;;  %v1410_v16 = vor.u32 %v1409_v14, %v1406_v13  ;;  %v1055_v14 = vrot.slane %v1053_v47, 4 }
  0xc3   : > { %v2777_v43 = vpop.f32.mrf.mxu2  ;;  %2244 = vmatmul.msk.bf16.vlgmr.msra.gmra.mxu0 %vm350_vm1, %v1653_v53  ;;  %v1402_v62 = vor.u32 %v1401_v8, %v1398_v56  ;;  %v1654_v53 = vrot.slane %v2297_v4, 2  ;;  %v1052_v56 = vrot.slane %v1050_v3, 3  ;;  %v1269_v3 = vrot.slane %v2775_v38, 1  ;;  %v2829_v38 = vld [vmem:[%s2487_s30 + $0x24] sm:$0xff] }
  0xc4   : > { %v2780_v35 = vpop.f32.mrf.mxu1 }
  0xc5   : > { %v846_v31 = vpop.f32.mrf.mxu3  ;;  %v1411_v10 = vsel %vm1394_vm6, %v1402_v62, %v1410_v16  ;;  %v1655_v60 = vsel %vm1650_vm5, %v1652_v42, %v1654_v53  ;;  %v1056_v4 = vor.u32 %v1055_v14, %v1052_v56 }
  0xc8   : > { %v2793_v11 = vpop.f32.mrf.mxu0 }
  0xcb   : > { %v2790_v23 = vpop.f32.mrf.mxu2 }
  0xcc   : > { %v465_v24 = vpop.f32.mrf.mxu1 }
  0xcd   : > { %v466_v34 = vadd.f32 %v465_v24, %v2711_v5  ;;  %v848_v9 = vpop.f32.mrf.mxu3  ;;  %v1416_v24 = vshll.u32 %v2803_v22, 16 }
  0xcf   : > { %2057 = vmatmul.msk.bf16.gmra.mxu1 %vm350_vm1, %v2519_v25  ;;  %v1413_v25 = vshrl.u32 %v2803_v22, 16 }
  0xd0   : > { %2070 = vmatmul.msk.bf16.gmra.mxu2 %vm350_vm1, %v537_v55  ;;  %v2809_v61 = vpop.f32.mrf.mxu0 }
  0xd1   : > { %v1415_v44 = vrot.slane %v1413_v25, 1 }
  0xd2   : > { %2195 = vmatmul.msk.bf16.vlgmr.msra.gmra.mxu3 %vm350_vm1, %v1411_v10  ;;  %v1418_v10 = vrot.slane %v1416_v24, 2 }
  0xd3   : > { %v581_v5 = vpop.f32.mrf.mxu2  ;;  %2245 = vmatmul.msk.bf16.gmra.mxu0 %vm350_vm1, %v1655_v60  ;;  %v1061_v60 = vrot.slane %v733_v21, 3 }
  0xd4   : > { %v626_v8 = vadd.f32 %v581_v5, %v466_v34  ;;  %v467_v13 = vpop.f32.mrf.mxu1  ;;  %v1419_v56 = vor.u32 %v1418_v10, %v1415_v44  ;;  %v1422_v10 = vshrl.u32 %v2829_v38, 16 }
  0xd5   : > { %v468_v55 = vadd.f32 %v467_v13, %v2729_v28  ;;  %v851_v45 = vpop.f32.mrf.mxu3  ;;  %v1270_v28 = vrot.slane %v2773_v37, 1 }
  0xd6   : > { %v891_v62 = vadd.f32 %v846_v31, %v626_v8  ;;  %v1060_v31 = vsel %vm1048_vm7, %v1056_v4, %v2765_v15  ;;  %v1420_v37 = vsel %vm1394_vm6, %v1410_v16, %v1419_v56  ;;  %v1062_v4 = vrot.slane %v736_v26, 4 }
  0xd7   : > { %v1271_v13 = vsel %vm521_vm4, %v1269_v3, %v1270_v28  ;;  %v1425_v16 = vshll.u32 %v2829_v38, 16  ;;  %v1424_v21 = vrot.slane %v1422_v10, 1  ;;  %v1272_v26 = vrot.slane %v2803_v22, 1 }
  0xd8   : > { %v2814_v34 = vadd.f32 %v2745_v46, %v891_v62  ;;  %v2822_v14 = vpop.f32.mrf.mxu0  ;;  %v2298_v46 = vld [vmem:[%s2487_s30 + $0x24] sm:$0xff] }
  0xd9   : > { %v1656_v44 = vrot.slane %v2298_v46, 2 }
  0xdb   : > { %v583_v47 = vpop.f32.mrf.mxu2 }
  0xdc   : > { %v627_v5 = vadd.f32 %v583_v47, %v468_v55  ;;  %v470_v42 = vpop.f32.mrf.mxu1  ;;  %v1657_v47 = vsel %vm1650_vm5, %v1654_v53, %v1656_v44 }
  0xdd   : > { %v471_v8 = vadd.f32 %v470_v42, %v2693_v50  ;;  %v853_v24 = vpop.f32.mrf.mxu3 }
  0xde   : > { %v892_v25 = vadd.f32 %v848_v9, %v627_v5 }
  0xdf   : > { %2133 = vmatmul.msk.bf16.vlgmr.msra.gmra.mxu1 %vm350_vm1, %v1060_v31  ;;  %v1063_v31 = vor.u32 %v1062_v4, %v1061_v60  ;;  %v2299_v60 = vld [vmem:[%s2487_s30 + $0x2c] sm:$0xff] }
  0xe0   : > { %2182 = vmatmul.msk.bf16.vlgmr.msra.gmra.mxu2 %vm350_vm1, %v1271_v13  ;;  %v2832_v55 = vadd.f32 %v2761_v2, %v892_v25  ;;  %v2842_v2 = vpop.f32.mrf.mxu0  ;;  %v1658_v4 = vrot.slane %v2299_v60, 2 }
  0xe1   : > { %v1064_v53 = vsel %vm1048_vm7, %v2765_v15, %v1063_v31 }
  0xe2   : > { %2196 = vmatmul.msk.bf16.gmra.mxu3 %vm350_vm1, %v1420_v37  ;;  %v1273_v37 = vsel %vm521_vm4, %v1270_v28, %v1272_v26  ;;  %v1065_v28 = vrot.slane %v742_v51, 3 }
  0xe3   : > { %v586_v50 = vpop.f32.mrf.mxu2  ;;  %2246 = vmatmul.msk.bf16.gmra.mxu0 %vm350_vm1, %v1657_v47 }
  0xe4   : > { %v628_v9 = vadd.f32 %v586_v50, %v471_v8  ;;  %v472_v62 = vpop.f32.mrf.mxu1  ;;  %v1427_v8 = vrot.slane %v1425_v16, 2  ;;  %v1066_v16 = vrot.slane %v745_v52, 4  ;;  %v1274_v52 = vrot.slane %v2829_v38, 1  ;;  %v2892_v38 = vld [vmem:[%s2487_s30 + $0x34] sm:$0xff] }
  0xe5   : > { %v473_v3 = vadd.f32 %v472_v62, %v2707_v59  ;;  %v856_v42 = vpop.f32.mrf.mxu3  ;;  %v2861_v62 = vld [vmem:[%s2487_s30 + $0x2c] sm:$0xff]  ;;  %v1278_v12 = vrot.slane %v2892_v38, 1 }
  0xe6   : > { %v893_v5 = vadd.f32 %v851_v45, %v628_v9  ;;  %v1428_v45 = vor.u32 %v1427_v8, %v1424_v21 }
  0xe8   : > { %v2847_v33 = vadd.f32 %v2786_v49, %v893_v5  ;;  %v2854_v50 = vpop.f32.mrf.mxu0  ;;  %v1429_v22 = vsel %vm1394_vm6, %v1419_v56, %v1428_v45  ;;  %v1434_v56 = vshll.u32 %v2861_v62, 16  ;;  %v1659_v5 = vsel %vm1650_vm5, %v1656_v44, %v1658_v4 }
  0xeb   : > { %v588_v13 = vpop.f32.mrf.mxu2 }
  0xec   : > { %v629_v59 = vadd.f32 %v588_v13, %v473_v3  ;;  %v475_v46 = vpop.f32.mrf.mxu1  ;;  %v1431_v3 = vshrl.u32 %v2861_v62, 16  ;;  %v1067_v13 = vor.u32 %v1066_v16, %v1065_v28  ;;  %v1440_v16 = vshrl.u32 %v2892_v38, 16 }
  0xed   : > { %v476_v25 = vadd.f32 %v475_v46, %v2726_v20  ;;  %v858_v49 = vpop.f32.mrf.mxu3 }
  0xee   : > { %v894_v9 = vadd.f32 %v853_v24, %v629_v59  ;;  %v1433_v51 = vrot.slane %v1431_v3, 1  ;;  %v1436_v59 = vrot.slane %v1434_v56, 2 }
  0xef   : > { %2134 = vmatmul.msk.bf16.gmra.mxu1 %vm350_vm1, %v1064_v53 }
  0xf0   : > { %2183 = vmatmul.msk.bf16.gmra.mxu2 %vm350_vm1, %v1273_v37  ;;  %v2864_v15 = vadd.f32 %v2793_v11, %v894_v9  ;;  %v2874_v11 = vpop.f32.mrf.mxu0  ;;  %v1437_v44 = vor.u32 %v1436_v59, %v1433_v51  ;;  %v1275_v37 = vsel %vm521_vm4, %v1272_v26, %v1274_v52  ;;  %v2300_v9 = vld [vmem:[%s2487_s30 + $0x34] sm:$0xff]  ;;  %v1069_v26 = vrot.slane %v751_v63, 3 }
  0xf1   : > { %v1660_v28 = vrot.slane %v2300_v9, 2  ;;  %v1442_v63 = vrot.slane %v1440_v16, 1 }
  0xf2   : > { %2197 = vmatmul.msk.bf16.gmra.mxu3 %vm350_vm1, %v1429_v22 }
  0xf3   : > { %v591_v20 = vpop.f32.mrf.mxu2  ;;  %2247 = vmatmul.msk.bf16.gmra.mxu0 %vm350_vm1, %v1659_v5  ;;  %v1661_v56 = vsel %vm1650_vm5, %v1658_v4, %v1660_v28 }
  0xf4   : > { %v630_v24 = vadd.f32 %v591_v20, %v476_v25  ;;  %v477_v10 = vpop.f32.mrf.mxu1  ;;  %v1068_v25 = vsel %vm1048_vm7, %v1063_v31, %v1067_v13 }
  0xf5   : > { %v478_v47 = vadd.f32 %v477_v10, %v2743_v40  ;;  %v861_v8 = vpop.f32.mrf.mxu3  ;;  %v1070_v10 = vrot.slane %v754_v0, 4  ;;  %v1276_v0 = vrot.slane %v2861_v62, 1  ;;  %v2922_v62 = vld [vmem:[%s2487_s30 + $0x3c] sm:$0xff] }
  0xf6   : > { %v895_v21 = vadd.f32 %v856_v42, %v630_v24  ;;  %v1280_v27 = vrot.slane %v2922_v62, 1 }
  0xf8   : > { %v2879_v48 = vadd.f32 %v2809_v61, %v895_v21  ;;  %v2885_v60 = vpop.f32.mrf.mxu0  ;;  %v1438_v61 = vsel %vm1394_vm6, %v1428_v45, %v1437_v44  ;;  %v1443_v45 = vshll.u32 %v2892_v38, 16  ;;  %v1071_v21 = vor.u32 %v1070_v10, %v1069_v26 }
  0xf9   : > { %v1074_v26 = vrot.slane %v763_v18, 4 }
  0xfa   : > { %v1445_v51 = vrot.slane %v1443_v45, 2 }
  0xfb   : > { %v593_v46 = vpop.f32.mrf.mxu2 }
  0xfc   : > { %v631_v40 = vadd.f32 %v593_v46, %v478_v47  ;;  %v480_v53 = vpop.f32.mrf.mxu1  ;;  %v1446_v4 = vor.u32 %v1445_v51, %v1442_v63  ;;  %v1279_v51 = vsel %vm521_vm4, %v1276_v0, %v1278_v12 }
  0xfd   : > { %v481_v42 = vadd.f32 %v480_v53, %v2756_v7  ;;  %v863_v20 = vpop.f32.mrf.mxu3 }
  0xfe   : > { %v896_v22 = vadd.f32 %v858_v49, %v631_v40  ;;  %v1072_v40 = vsel %vm1048_vm7, %v1067_v13, %v1071_v21 }
  0xff   : > { %2135 = vmatmul.msk.bf16.gmra.mxu1 %vm350_vm1, %v1068_v25  ;;  %v2301_v25 = vld [vmem:[%s2487_s30 + $0x3c] sm:$0xff] }
 0x100   : > { %2184 = vmatmul.msk.bf16.gmra.mxu2 %vm350_vm1, %v1275_v37  ;;  %v2895_v31 = vadd.f32 %v2822_v14, %v896_v22  ;;  %v2905_v14 = vpop.f32.mrf.mxu0  ;;  %v1662_v13 = vrot.slane %v2301_v25, 2  ;;  %v1077_v25 = vrot.slane %v769_v30, 3 }
 0x102   : > { %2198 = vmatmul.msk.bf16.gmra.mxu3 %vm350_vm1, %v1438_v61 }
 0x103   : > { %v596_v7 = vpop.f32.mrf.mxu2  ;;  %2248 = vmatmul.msk.bf16.gmra.mxu0 %vm350_vm1, %v1661_v56 }
 0x104   : > { %v632_v49 = vadd.f32 %v596_v7, %v481_v42  ;;  %v482_v24 = vpop.f32.mrf.mxu1 }
 0x105   : > { %v483_v3 = vadd.f32 %v482_v24, %v2780_v35  ;;  %v866_v5 = vpop.f32.mrf.mxu3  ;;  %v1663_v24 = vsel %vm1650_vm5, %v1660_v28, %v1662_v13 }
 0x106   : > { %v897_v47 = vadd.f32 %v861_v8, %v632_v49  ;;  %v1277_v8 = vsel %vm521_vm4, %v1274_v52, %v1276_v0  ;;  %v1452_v49 = vshll.u32 %v2922_v62, 16 }
 0x108   : > { %v2910_v58 = vadd.f32 %v2842_v2, %v897_v47  ;;  %v2915_v53 = vpop.f32.mrf.mxu0  ;;  %v1447_v2 = vsel %vm1394_vm6, %v1437_v44, %v1446_v4  ;;  %v1449_v44 = vshrl.u32 %v2922_v62, 16 }
 0x10a   : > { %v1451_v45 = vrot.slane %v1449_v44, 1 }
 0x10b   : > { %v598_v59 = vpop.f32.mrf.mxu2 }
 0x10c   : > { %v633_v35 = vadd.f32 %v598_v59, %v483_v3  ;;  %v485_v46 = vpop.f32.mrf.mxu1  ;;  %v1454_v3 = vrot.slane %v1452_v49, 2 }
 0x10d   : > { %v868_v37 = vpop.f32.mrf.mxu3  ;;  %v486_v22 = vadd.f32 %v485_v46, %v2704_v57 }
 0x10e   : > { %v898_v42 = vadd.f32 %v863_v20, %v633_v35  ;;  %v1073_v20 = vrot.slane %v760_v17, 3  ;;  %v2302_v35 = vld [vmem:[%s2487_s30 + $0x44] sm:$0xff] }
 0x10f   : > { %2136 = vmatmul.msk.bf16.gmra.mxu1 %vm350_vm1, %v1072_v40 }
 0x110   : > { %2185 = vmatmul.msk.bf16.gmra.mxu2 %vm350_vm1, %v1277_v8  ;;  %v2925_v9 = vadd.f32 %v2854_v50, %v898_v42  ;;  %v2935_v50 = vpop.f32.mrf.mxu0  ;;  %v1075_v16 = vor.u32 %v1074_v26, %v1073_v20 }
 0x112   : > { %2199 = vmatmul.msk.bf16.gmra.mxu3 %vm350_vm1, %v1447_v2  ;;  %v1076_v28 = vsel %vm1048_vm7, %v1071_v21, %v1075_v16  ;;  %v1664_v21 = vrot.slane %v2302_v35, 2  ;;  %v1078_v2 = vrot.slane %v772_v32, 4 }
 0x113   : > { %v601_v52 = vpop.f32.mrf.mxu2  ;;  %2249 = vmatmul.msk.bf16.gmra.mxu0 %vm350_vm1, %v1663_v24 }
 0x114   : > { %v634_v61 = vadd.f32 %v601_v52, %v486_v22  ;;  %v487_v7 = vpop.f32.mrf.mxu1  ;;  %v1665_v52 = vsel %vm1650_vm5, %v1662_v13, %v1664_v21 }
 0x115   : > { %v871_v10 = vpop.f32.mrf.mxu3  ;;  %v488_v18 = vadd.f32 %v487_v7, %v2724_v19  ;;  %v2953_v19 = vld [vmem:[%s2487_s30 + $0x44] sm:$0xff] }
 0x116   : > { %v899_v57 = vadd.f32 %v866_v5, %v634_v61  ;;  %v1455_v5 = vor.u32 %v1454_v3, %v1451_v45  ;;  %v1461_v22 = vshll.u32 %v2953_v19, 16  ;;  %v1079_v61 = vor.u32 %v1078_v2, %v1077_v25  ;;  %v2303_v3 = vld [vmem:[%s2487_s30 + $0x4c] sm:$0xff] }
 0x118   : > { %v2940_v17 = vadd.f32 %v2874_v11, %v899_v57  ;;  %v2946_v59 = vpop.f32.mrf.mxu0  ;;  %v1456_v11 = vsel %vm1394_vm6, %v1446_v4, %v1455_v5  ;;  %v1458_v4 = vshrl.u32 %v2953_v19, 16  ;;  %v1463_v26 = vrot.slane %v1461_v22, 2  ;;  %v1598_v22 = vld [vmem:[%s2487_s30 + $0x54] sm:$0x1] }
 0x119   : > { %v1080_v13 = vsel %vm1048_vm7, %v1075_v16, %v1079_v61  ;;  %v1666_v16 = vrot.slane %v2303_v3, 2 }
 0x11a   : > { %v1460_v7 = vrot.slane %v1458_v4, 1 }
 0x11b   : > { %v603_v56 = vpop.f32.mrf.mxu2 }
 0x11c   : > { %v635_v47 = vadd.f32 %v603_v56, %v488_v18  ;;  %v490_v63 = vpop.f32.mrf.mxu1  ;;  %v1464_v57 = vor.u32 %v1463_v26, %v1460_v7 }
 0x11d   : > { %v873_v40 = vpop.f32.mrf.mxu3  ;;  %v491_v8 = vadd.f32 %v490_v63, %v2740_v39  ;;  %v3132_v63 = vshrl.u32 %v2678_v41, 16 }
 0x11e   : > { %v900_v46 = vadd.f32 %v868_v37, %v635_v47 }
 0x11f   : > { %2137 = vmatmul.msk.bf16.gmra.mxu1 %vm350_vm1, %v1076_v28  ;;  %v1081_v28 = vrot.slane %v3132_v63, 3 }
 0x120   : > { %2186 = vmatmul.msk.bf16.gmra.mxu2 %vm350_vm1, %v1279_v51  ;;  %v2956_v38 = vadd.f32 %v2885_v60, %v900_v46  ;;  %v2966_v60 = vpop.f32.mrf.mxu0  ;;  %v3133_v46 = vshll.u32 %v2678_v41, 16  ;;  %v1282_v41 = vrot.slane %v2953_v19, 1 }
 0x122   : > { %2200 = vmatmul.msk.bf16.gmra.mxu3 %vm350_vm1, %v1456_v11 }
 0x123   : > { %v606_v0 = vpop.f32.mrf.mxu2  ;;  %2250 = vmatmul.msk.bf16.gmra.mxu0 %vm350_vm1, %v1665_v52 }
 0x124   : > { %v636_v42 = vadd.f32 %v606_v0, %v491_v8  ;;  %v492_v37 = vpop.f32.mrf.mxu1  ;;  %v1667_v8 = vsel %vm1650_vm5, %v1664_v21, %v1666_v16 }
 0x125   : > { %v876_v20 = vpop.f32.mrf.mxu3  ;;  %v493_v32 = vadd.f32 %v492_v37, %v2754_v1  ;;  %v2984_v1 = vld [vmem:[%s2487_s30 + $0x4c] sm:$0xff] }
 0x126   : > { %v901_v39 = vadd.f32 %v871_v10, %v636_v42  ;;  %v1281_v10 = vsel %vm521_vm4, %v1278_v12, %v1280_v27 }
 0x128   : > { %v2971_v30 = vadd.f32 %v2905_v14, %v901_v39  ;;  %v2977_v45 = vpop.f32.mrf.mxu0  ;;  %v1465_v14 = vsel %vm1394_vm6, %v1455_v5, %v1464_v57  ;;  %v1082_v5 = vrot.slane %v3133_v46, 4  ;;  %v1639_v39 = vunpack.c.l.b16 %v1598_v22 }
 0x12a   : > { %v1083_v25 = vor.u32 %v1082_v5, %v1081_v28 }
 0x12b   : > { %v608_v44 = vpop.f32.mrf.mxu2 }
 0x12c   : > { %v637_v49 = vadd.f32 %v608_v44, %v493_v32  ;;  %v495_v24 = vpop.f32.mrf.mxu1  ;;  %v1084_v21 = vsel %vm1048_vm7, %v1079_v61, %v1083_v25  ;;  %v1283_v32 = vsel %vm521_vm4, %v1280_v27, %v1282_v41 }
 0x12d   : > { %v878_v56 = vpop.f32.mrf.mxu3  ;;  %v496_v47 = vadd.f32 %v495_v24, %v2777_v43 }
 0x12e   : > { %v902_v18 = vadd.f32 %v873_v40, %v637_v49  ;;  %v1467_v40 = vshrl.u32 %v2984_v1, 16  ;;  %v1649_v49 = vpack.c.b16 %v1639_v39, %v1639_v39 }
 0x12f   : > { %2138 = vmatmul.msk.bf16.gmra.mxu1 %vm350_vm1, %v1080_v13 }
 0x130   : > { %2187 = vmatmul.msk.bf16.gmra.mxu2 %vm350_vm1, %v1281_v10  ;;  %v2987_v62 = vadd.f32 %v2915_v53, %v902_v18  ;;  %v1470_v53 = vshll.u32 %v2984_v1, 16  ;;  %v1022_v11 = vpop.f32.mrf.mxu0  ;;  %v1469_v42 = vrot.slane %v1467_v40, 1  ;;  %v1668_v19 = vrot.slane %v1649_v49, 2 }
 0x131   : > { %v3134_v18 = vshrl.u32 %v2699_v54, 16 }
 0x132   : > { %2201 = vmatmul.msk.bf16.gmra.mxu3 %vm350_vm1, %v1465_v14  ;;  %v1472_v37 = vrot.slane %v1470_v53, 2  ;;  %v3135_v14 = vshll.u32 %v2699_v54, 16 }
 0x133   : > { %v611_v12 = vpop.f32.mrf.mxu2  ;;  %2251 = vmatmul.msk.bf16.gmra.mxu0 %vm350_vm1, %v1667_v8 }
 0x134   : > { %v638_v51 = vadd.f32 %v611_v12, %v496_v47  ;;  %v497_v35 = vpop.f32.mrf.mxu1  ;;  %v1086_v47 = vrot.slane %v3135_v14, 4 }
 0x135   : > { %v881_v0 = vpop.f32.mrf.mxu3  ;;  %v498_v4 = vadd.f32 %v497_v35, %v2790_v23 }
 0x136   : > { %v903_v43 = vadd.f32 %v876_v20, %v638_v51  ;;  %v1473_v20 = vor.u32 %v1472_v37, %v1469_v42  ;;  %v1284_v51 = vrot.slane %v2984_v1, 1  ;;  %v1093_v1 = vshll.u32 %v2731_v29, 16 }
 0x138   : > { %v3000_v2 = vadd.f32 %v2935_v50, %v903_v43  ;;  %v1024_v44 = vpop.f32.mrf.mxu0  ;;  %v1474_v23 = vsel %vm1394_vm6, %v1464_v57, %v1473_v20  ;;  %v1669_v57 = vsel %vm1650_vm5, %v1666_v16, %v1668_v19  ;;  %v1285_v53 = vsel %vm521_vm4, %v1282_v41, %v1284_v51 }
 0x139   : > { %v1095_v42 = vrot.slane %v1093_v1, 4  ;;  %v3040_v44 = vld [vmem:[#allocation5] ss:$0 sm:$0xff] }
 0x13b   : > { %v613_v52 = vpop.f32.mrf.mxu2 }
 0x13c   : > { %v639_v7 = vadd.f32 %v613_v52, %v498_v4  ;;  %v500_v26 = vpop.f32.mrf.mxu1 }
 0x13d   : > { %v883_v13 = vpop.f32.mrf.mxu3  ;;  %v501_v10 = vadd.f32 %v500_v26, %v2714_v6 }
 0x13e   : > { %v904_v24 = vadd.f32 %v878_v56, %v639_v7  ;;  %v1085_v56 = vrot.slane %v3134_v18, 3 }
 0x13f   : > { %2139 = vmatmul.msk.bf16.gmra.mxu1 %vm350_vm1, %v1084_v21 }
 0x140   : > { %2188 = vmatmul.msk.bf16.gmra.mxu2 %vm350_vm1, %v1283_v32  ;;  %v3011_v50 = vadd.f32 %v2946_v59, %v904_v24  ;;  %v1712_v12 = vpop.f32.mrf.mxu0  ;;  %v1087_v28 = vor.u32 %v1086_v47, %v1085_v56 }
 0x142   : > { %2202 = vmatmul.msk.bf16.gmra.mxu3 %vm350_vm1, %v1474_v23  ;;  %v1088_v54 = vsel %vm1048_vm7, %v1083_v25, %v1087_v28 }
 0x143   : > { %v616_v61 = vpop.f32.mrf.mxu2  ;;  %2252 = vmatmul.msk.bf16.gmra.mxu0 %vm350_vm1, %v1669_v57 }
 0x144   : > { %v640_v27 = vadd.f32 %v616_v61, %v501_v10  ;;  %v502_v3 = vpop.f32.mrf.mxu1 }
 0x145   : > { %v886_v59 = vpop.f32.mrf.mxu3  ;;  %v503_v35 = vadd.f32 %v502_v3, %v2733_v36 }
 0x146   : > { %v905_v63 = vadd.f32 %v881_v0, %v640_v27 }
 0x148   : > { %v3022_v6 = vadd.f32 %v2966_v60, %v905_v63  ;;  %v1714_v8 = vpop.f32.mrf.mxu0  ;;  %v1090_v60 = vshrl.u32 %v2731_v29, 16 }
 0x14a   : > { %v1092_v25 = vrot.slane %v1090_v60, 3 }
 0x14b   : > { %v618_v46 = vpop.f32.mrf.mxu2 }
 0x14c   : > { %v641_v5 = vadd.f32 %v618_v46, %v503_v35  ;;  %v505_v40 = vpop.f32.mrf.mxu1  ;;  %v1096_v41 = vor.u32 %v1095_v42, %v1092_v25 }
 0x14d   : > { %v888_v11 = vpop.f32.mrf.mxu3 }
 0x14e   : > { %v906_v16 = vadd.f32 %v883_v13, %v641_v5  ;;  %v1097_v39 = vsel %vm1048_vm7, %v1087_v28, %v1096_v41 }
 0x14f   : > { %2140 = vmatmul.msk.bf16.gmra.mxu1 %vm350_vm1, %v1088_v54 }
 0x150   : > { %2189 = vmatmul.msk.bf16.gmra.mxu2 %vm350_vm1, %v1285_v53  ;;  %v3033_v36 = vadd.f32 %v2977_v45, %v906_v16  ;;  %v1717_v4 = vpop.f32.mrf.mxu0 }
 0x152   : > { %2203 = vmatmul.msk.bf16.gmra.mxu3 %vm350_vm1, %v1473_v20 }
 0x153   : > { %v621_v43 = vpop.f32.mrf.mxu2 }
 0x154   : > { %v507_v0 = vpop.f32.mrf.mxu1 }
 0x155   : > { %v1517_v37 = vpop.f32.mrf.mxu3 }
 0x158   : > { %v1719_v26 = vpop.f32.mrf.mxu0 }
 0x15b   : > { %v623_v22 = vpop.f32.mrf.mxu2 }
 0x15c   : > { %v1140_v52 = vpop.f32.mrf.mxu1 }
 0x15d   : > { %v1519_v7 = vpop.f32.mrf.mxu3  ;;  %v1185_v29 = vadd.f32 %v1140_v52, %v2814_v34 }
 0x15f   : > { %2141 = vmatmul.msk.bf16.gmra.mxu1 %vm350_vm1, %v1097_v39 }
 0x160   : > { %2190 = vmatmul.msk.bf16.gmra.mxu2 %vm350_vm1, %v1284_v51  ;;  %v1722_v3 = vpop.f32.mrf.mxu0 }
 0x163   : > { %v1328_v45 = vpop.f32.mrf.mxu2 }
 0x164   : > { %v1373_v21 = vadd.f32 %v1328_v45, %v1185_v29  ;;  %v1142_v20 = vpop.f32.mrf.mxu1 }
 0x165   : > { %v1522_v49 = vpop.f32.mrf.mxu3  ;;  %v1186_v23 = vadd.f32 %v1142_v20, %v2832_v55 }
 0x166   : > { %v1562_v32 = vadd.f32 %v1517_v37, %v1373_v21  ;;  %v1849_v21 = vld [vmem:[%s3057_s7] sm:$0x7] }
 0x168   : > { %v1757_v24 = vadd.f32 %v1712_v12, %v1562_v32  ;;  %v1724_v51 = vpop.f32.mrf.mxu0 }
 0x16a   : > { %v1779_v13 = vadd.f32 %v3040_v44, %v1757_v24 }
 0x16b   : > { %v1330_v19 = vpop.f32.mrf.mxu2 }
 0x16c   : > { %v1797_v10 = vmax.f32 %v1779_v13, 0.0  ;;  %v1374_v61 = vadd.f32 %v1330_v19, %v1186_v23  ;;  %v1145_v27 = vpop.f32.mrf.mxu1 }
 0x16d   : > { %v1524_v18 = vpop.f32.mrf.mxu3  ;;  %v1187_v47 = vadd.f32 %v1145_v27, %v2847_v33 }
 0x16e   : > { %1816 = vst.msk [vmem:[#allocation2] sm:$0xff] %vm1815_vm8, %v1797_v10  ;;  %v1563_v34 = vadd.f32 %v1519_v7, %v1374_v61 }
 0x170   : > { %v1758_v56 = vadd.f32 %v1714_v8, %v1563_v34  ;;  %v1727_v60 = vpop.f32.mrf.mxu0 }
 0x172   : > { %v1780_v14 = vadd.f32 %v3040_v44, %v1758_v56 }
 0x173   : > { %v1333_v12 = vpop.f32.mrf.mxu2 }
 0x174   : > { %v1798_v57 = vmax.f32 %v1780_v14, 0.0  ;;  %v1375_v63 = vadd.f32 %v1333_v12, %v1187_v47  ;;  %v1147_v59 = vpop.f32.mrf.mxu1 }
 0x175   : > { %v1527_v28 = vpop.f32.mrf.mxu3  ;;  %v1188_v5 = vadd.f32 %v1147_v59, %v2864_v15 }
 0x176   : > { %1817 = vst.msk [vmem:[#allocation2 + $0x8] sm:$0xff] %vm1815_vm8, %v1798_v57  ;;  %v1564_v55 = vadd.f32 %v1522_v49, %v1375_v63 }
 0x178   : > { %v1759_v35 = vadd.f32 %v1717_v4, %v1564_v55  ;;  %v1729_v13 = vpop.f32.mrf.mxu0 }
 0x17a   : > { %v1781_v46 = vadd.f32 %v3040_v44, %v1759_v35 }
 0x17b   : > { %v1335_v40 = vpop.f32.mrf.mxu2 }
 0x17c   : > { %v1799_v54 = vmax.f32 %v1781_v46, 0.0  ;;  %v1376_v53 = vadd.f32 %v1335_v40, %v1188_v5  ;;  %v1150_v16 = vpop.f32.mrf.mxu1 }
 0x17d   : > { %v1529_v11 = vpop.f32.mrf.mxu3  ;;  %v1189_v43 = vadd.f32 %v1150_v16, %v2879_v48  ;;  %v1835_v0 = vld [vmem:[#allocation2] ss:$2 sm:$0x1f]  ;;  %v1837_v25 = vld [vmem:[#allocation2 + $0x1] ss:$2 sm:$0x1f] }
 0x17e   : > { %1818 = vst.msk [vmem:[#allocation2 + $0x10] sm:$0xff] %vm1815_vm8, %v1799_v54  ;;  %v1565_v33 = vadd.f32 %v1524_v18, %v1376_v53  ;;  %v1842_v52 = vmax.f32 %v1835_v0, %v1837_v25 }
 0x180   : > { %v1760_v8 = vadd.f32 %v1719_v26, %v1565_v33  ;;  %v1732_v57 = vpop.f32.mrf.mxu0 }
 0x182   : > { %v1782_v1 = vadd.f32 %v3040_v44, %v1760_v8 }
 0x183   : > { %v1338_v42 = vpop.f32.mrf.mxu2 }
 0x184   : > { %v1800_v15 = vmax.f32 %v1782_v1, 0.0  ;;  %v1377_v37 = vadd.f32 %v1338_v42, %v1189_v43  ;;  %v1152_v41 = vpop.f32.mrf.mxu1 }
 0x185   : > { %v1839_v4 = vld [vmem:[#allocation2 + $0xd] ss:$2 sm:$0x1f]  ;;  %v1841_v22 = vld [vmem:[#allocation2 + $0xe] ss:$2 sm:$0x1f]  ;;  %v1532_v7 = vpop.f32.mrf.mxu3  ;;  %v1190_v49 = vadd.f32 %v1152_v41, %v2895_v31 }
 0x186   : > { %v1843_v39 = vmax.f32 %v1839_v4, %v1841_v22  ;;  %1819 = vst.msk [vmem:[#allocation2 + $0x18] sm:$0xff] %vm1815_vm8, %v1800_v15  ;;  %v1566_v48 = vadd.f32 %v1527_v28, %v1377_v37 }
 0x188   : > { %v1844_v29 = vmax.f32 %v1842_v52, %v1843_v39  ;;  %v1761_v45 = vadd.f32 %v1722_v3, %v1566_v48  ;;  %v1734_v53 = vpop.f32.mrf.mxu0  ;;  %v2253_v39 = vld [vmem:[%s3057_s7 + $0x4] sm:$0x7] }
 0x18a   : > { %v1845_v20 = vpack.c.bf16 %v1844_v29, %v1844_v29  ;;  %v1783_v32 = vadd.f32 %v3040_v44, %v1761_v45 }
 0x18b   : > { %v1340_v24 = vpop.f32.mrf.mxu2 }
 0x18c   : > { %v1850_v23 = vsel %vm3061_vm11, %v1845_v20, %v1849_v21  ;;  %v1801_v19 = vmax.f32 %v1783_v32, 0.0  ;;  %v1378_v10 = vadd.f32 %v1340_v24, %v1190_v49  ;;  %v1155_v61 = vpop.f32.mrf.mxu1 }
 0x18d   : > { %1851 = vst [vmem:[%s3057_s7] sm:$0x7] %v1850_v23  ;;  %v1534_v3 = vpop.f32.mrf.mxu3  ;;  %v1191_v56 = vadd.f32 %v1155_v61, %v2910_v58 }
 0x18e   : > { %1820 = vst.msk [vmem:[#allocation2 + $0x20] sm:$0xff] %vm1815_vm8, %v1801_v19  ;;  %v1567_v27 = vadd.f32 %v1529_v11, %v1378_v10 }
 0x190   : > { %v1762_v34 = vadd.f32 %v1724_v51, %v1567_v27 }
 0x192   : > { %v1784_v18 = vadd.f32 %v3040_v44, %v1762_v34 }
 0x193   : > { %v1343_v14 = vpop.f32.mrf.mxu2 }
 0x194   : > { %v1802_v31 = vmax.f32 %v1784_v18, 0.0  ;;  %v1379_v47 = vadd.f32 %v1343_v14, %v1191_v56  ;;  %v1157_v12 = vpop.f32.mrf.mxu1 }
 0x195   : > { %v1537_v59 = vpop.f32.mrf.mxu3  ;;  %v1192_v35 = vadd.f32 %v1157_v12, %v2925_v9  ;;  %v1853_v8 = vld [vmem:[#allocation2 + $0x1a] ss:$2 sm:$0x1f] }
 0x196   : > { %1821 = vst.msk [vmem:[#allocation2 + $0x28] sm:$0xff] %vm1815_vm8, %v1802_v31  ;;  %v1568_v63 = vadd.f32 %v1532_v7, %v1379_v47 }
 0x198   : > { %v1763_v55 = vadd.f32 %v1727_v60, %v1568_v63  ;;  %v1855_v60 = vld [vmem:[#allocation2 + $0x1b] ss:$2 sm:$0x1f] }
 0x199   : > { %v1860_v15 = vmax.f32 %v1853_v8, %v1855_v60 }
 0x19a   : > { %v1785_v28 = vadd.f32 %v3040_v44, %v1763_v55 }
 0x19b   : > { %v1345_v46 = vpop.f32.mrf.mxu2 }
 0x19c   : > { %v1803_v51 = vmax.f32 %v1785_v28, 0.0  ;;  %v1380_v5 = vadd.f32 %v1345_v46, %v1192_v35  ;;  %v1160_v40 = vpop.f32.mrf.mxu1 }
 0x19d   : > { %v1539_v54 = vpop.f32.mrf.mxu3  ;;  %v1193_v11 = vadd.f32 %v1160_v40, %v2940_v17  ;;  %v1857_v25 = vld [vmem:[#allocation2 + $0x27] ss:$2 sm:$0x1f]  ;;  %v1737_v17 = vpop.f32.mrf.mxu0 }
 0x19e   : > { %1822 = vst.msk [vmem:[#allocation2 + $0x30] sm:$0xff] %vm1815_vm8, %v1803_v51  ;;  %v1569_v58 = vadd.f32 %v1534_v3, %v1380_v5 }
 0x1a0   : > { %v1764_v16 = vadd.f32 %v1729_v13, %v1569_v58 }
 0x1a2   : > { %v1786_v33 = vadd.f32 %v3040_v44, %v1764_v16 }
 0x1a3   : > { %v1348_v1 = vpop.f32.mrf.mxu2 }
 0x1a4   : > { %v1804_v43 = vmax.f32 %v1786_v33, 0.0  ;;  %v1381_v9 = vadd.f32 %v1348_v1, %v1193_v11  ;;  %v1162_v0 = vpop.f32.mrf.mxu1 }
 0x1a5   : > { %v1859_v42 = vld [vmem:[#allocation2 + $0x28] ss:$2 sm:$0x1f]  ;;  %v1542_v4 = vpop.f32.mrf.mxu3  ;;  %v1194_v29 = vadd.f32 %v1162_v0, %v2956_v38  ;;  %v1739_v27 = vpop.f32.mrf.mxu0 }
 0x1a6   : > { %v1861_v37 = vmax.f32 %v1857_v25, %v1859_v42  ;;  %1823 = vst.msk [vmem:[#allocation2 + $0x38] sm:$0xff] %vm1815_vm8, %v1804_v43  ;;  %v1570_v41 = vadd.f32 %v1537_v59, %v1381_v9 }
 0x1a8   : > { %v1862_v22 = vmax.f32 %v1860_v15, %v1861_v37  ;;  %v1765_v52 = vadd.f32 %v1732_v57, %v1570_v41 }
 0x1aa   : > { %v1863_v48 = vpack.c.bf16 %v1862_v22, %v1862_v22  ;;  %v1787_v7 = vadd.f32 %v3040_v44, %v1765_v52 }
 0x1ab   : > { %v1350_v45 = vpop.f32.mrf.mxu2 }
 0x1ac   : > { %v1866_v21 = vsel %vm3061_vm11, %v1863_v48, %v2253_v39  ;;  %v1805_v20 = vmax.f32 %v1787_v7, 0.0  ;;  %v1382_v32 = vadd.f32 %v1350_v45, %v1194_v29  ;;  %v1165_v49 = vpop.f32.mrf.mxu1 }
 0x1ad   : > { %2254 = vst [vmem:[%s3057_s7 + $0x4] sm:$0x7] %v1866_v21  ;;  %v1544_v23 = vpop.f32.mrf.mxu3  ;;  %v1195_v10 = vadd.f32 %v1165_v49, %v2971_v30  ;;  %v1869_v47 = vld [vmem:[#allocation2 + $0x34] ss:$2 sm:$0x1f]  ;;  %v1742_v46 = vpop.f32.mrf.mxu0 }
 0x1ae   : > { %1824 = vst.msk [vmem:[#allocation2 + $0x40] sm:$0xff] %vm1815_vm8, %v1805_v20  ;;  %v1571_v24 = vadd.f32 %v1539_v54, %v1382_v32  ;;  %v1871_v12 = vld [vmem:[#allocation2 + $0x35] ss:$2 sm:$0x1f] }
 0x1af   : > { %v1876_v51 = vmax.f32 %v1869_v47, %v1871_v12 }
 0x1b0   : > { %v1766_v13 = vadd.f32 %v1734_v53, %v1571_v24 }
 0x1b2   : > { %v1788_v19 = vadd.f32 %v3040_v44, %v1766_v13 }
 0x1b3   : > { %v1353_v61 = vpop.f32.mrf.mxu2 }
 0x1b4   : > { %v1806_v38 = vmax.f32 %v1788_v19, 0.0  ;;  %v1383_v3 = vadd.f32 %v1353_v61, %v1195_v10  ;;  %v1167_v34 = vpop.f32.mrf.mxu1 }
 0x1b5   : > { %v1196_v31 = vadd.f32 %v1167_v34, %v2987_v62  ;;  %v1547_v63 = vpop.f32.mrf.mxu3  ;;  %v2255_v62 = vld [vmem:[%s3057_s7 + $0x8] sm:$0x7]  ;;  %v1744_v25 = vpop.f32.mrf.mxu0 }
 0x1b6   : > { %1825 = vst.msk [vmem:[#allocation2 + $0x48] sm:$0xff] %vm1815_vm8, %v1806_v38  ;;  %v1572_v18 = vadd.f32 %v1542_v4, %v1383_v3  ;;  %v2257_v38 = vld [vmem:[%s3057_s7 + $0xc] sm:$0x7] }
 0x1b8   : > { %v1767_v56 = vadd.f32 %v1737_v17, %v1572_v18 }
 0x1ba   : > { %v1789_v14 = vadd.f32 %v3040_v44, %v1767_v56 }
 0x1bb   : > { %v1355_v57 = vpop.f32.mrf.mxu2 }
 0x1bc   : > { %v1807_v59 = vmax.f32 %v1789_v14, 0.0  ;;  %v1384_v30 = vadd.f32 %v1355_v57, %v1196_v31  ;;  %v1170_v55 = vpop.f32.mrf.mxu1 }
 0x1bd   : > { %v1873_v28 = vld [vmem:[#allocation2 + $0x41] ss:$2 sm:$0x1f]  ;;  %v1875_v35 = vld [vmem:[#allocation2 + $0x42] ss:$2 sm:$0x1f]  ;;  %v1197_v33 = vadd.f32 %v1170_v55, %v3000_v2  ;;  %v1549_v9 = vpop.f32.mrf.mxu3  ;;  %v1747_v48 = vpop.f32.mrf.mxu0 }
 0x1be   : > { %v1877_v5 = vmax.f32 %v1873_v28, %v1875_v35  ;;  %1826 = vst.msk [vmem:[#allocation2 + $0x50] sm:$0xff] %vm1815_vm8, %v1807_v59  ;;  %v1573_v40 = vadd.f32 %v1544_v23, %v1384_v30 }
 0x1c0   : > { %v1878_v58 = vmax.f32 %v1876_v51, %v1877_v5  ;;  %v1768_v54 = vadd.f32 %v1739_v27, %v1573_v40 }
 0x1c2   : > { %v1879_v53 = vpack.c.bf16 %v1878_v58, %v1878_v58  ;;  %v1790_v16 = vadd.f32 %v3040_v44, %v1768_v54 }
 0x1c3   : > { %v1358_v11 = vpop.f32.mrf.mxu2 }
 0x1c4   : > { %v1882_v8 = vsel %vm3061_vm11, %v1879_v53, %v2255_v62  ;;  %v1808_v60 = vmax.f32 %v1790_v16, 0.0  ;;  %v1385_v1 = vadd.f32 %v1358_v11, %v1197_v33  ;;  %v1172_v43 = vpop.f32.mrf.mxu1 }
 0x1c5   : > { %2256 = vst [vmem:[%s3057_s7 + $0x8] sm:$0x7] %v1882_v8  ;;  %v1198_v37 = vadd.f32 %v1172_v43, %v3011_v50  ;;  %v1552_v39 = vpop.f32.mrf.mxu3  ;;  %v1885_v45 = vld [vmem:[#allocation2 + $0x4e] ss:$2 sm:$0x1f]  ;;  %v1749_v56 = vpop.f32.mrf.mxu0 }
 0x1c6   : > { %1827 = vst.msk [vmem:[#allocation2 + $0x58] sm:$0xff] %vm1815_vm8, %v1808_v60  ;;  %v1574_v0 = vadd.f32 %v1547_v63, %v1385_v1  ;;  %v1887_v21 = vld [vmem:[#allocation2 + $0x4f] ss:$2 sm:$0x1f] }
 0x1c7   : > { %v1892_v23 = vmax.f32 %v1885_v45, %v1887_v21 }
 0x1c8   : > { %v1769_v42 = vadd.f32 %v1742_v46, %v1574_v0 }
 0x1ca   : > { %v1791_v15 = vadd.f32 %v3040_v44, %v1769_v42 }
 0x1cb   : > { %v1360_v41 = vpop.f32.mrf.mxu2 }
 0x1cc   : > { %v1809_v2 = vmax.f32 %v1791_v15, 0.0  ;;  %v1386_v4 = vadd.f32 %v1360_v41, %v1198_v37  ;;  %v1175_v22 = vpop.f32.mrf.mxu1 }
 0x1cd   : > { %v1199_v29 = vadd.f32 %v1175_v22, %v3022_v6  ;;  %v1554_v3 = vpop.f32.mrf.mxu3 }
 0x1ce   : > { %1828 = vst.msk [vmem:[#allocation2 + $0x60] sm:$0xff] %vm1815_vm8, %v1809_v2  ;;  %v1575_v52 = vadd.f32 %v1549_v9, %v1386_v4 }
 0x1d0   : > { %v1770_v17 = vadd.f32 %v1744_v25, %v1575_v52 }
 0x1d2   : > { %v1792_v7 = vadd.f32 %v3040_v44, %v1770_v17 }
 0x1d3   : > { %v1363_v20 = vpop.f32.mrf.mxu2 }
 0x1d4   : > { %v1810_v32 = vmax.f32 %v1792_v7, 0.0  ;;  %v1387_v50 = vadd.f32 %v1363_v20, %v1199_v29  ;;  %v1177_v49 = vpop.f32.mrf.mxu1 }
 0x1d5   : > { %v1889_v24 = vld [vmem:[#allocation2 + $0x5b] ss:$2 sm:$0x1f]  ;;  %v1891_v13 = vld [vmem:[#allocation2 + $0x5c] ss:$2 sm:$0x1f]  ;;  %v1200_v18 = vadd.f32 %v1177_v49, %v3033_v36  ;;  %v1557_v55 = vpop.f32.mrf.mxu3  ;;  %v1752_v36 = vpop.f32.mrf.mxu0 }
 0x1d6   : > { %v1893_v19 = vmax.f32 %v1889_v24, %v1891_v13  ;;  %1829 = vst.msk [vmem:[#allocation2 + $0x68] sm:$0xff] %vm1815_vm8, %v1810_v32  ;;  %v1576_v10 = vadd.f32 %v1552_v39, %v1387_v50 }
 0x1d8   : > { %v1894_v61 = vmax.f32 %v1892_v23, %v1893_v19  ;;  %v1771_v27 = vadd.f32 %v1747_v48, %v1576_v10 }
 0x1da   : > { %v1895_v34 = vpack.c.bf16 %v1894_v61, %v1894_v61  ;;  %v1793_v6 = vadd.f32 %v3040_v44, %v1771_v27 }
 0x1db   : > { %v1365_v14 = vpop.f32.mrf.mxu2 }
 0x1dc   : > { %v1898_v31 = vsel %vm3061_vm11, %v1895_v34, %v2257_v38  ;;  %v1811_v47 = vmax.f32 %v1793_v6, 0.0  ;;  %v1388_v12 = vadd.f32 %v1365_v14, %v1200_v18  ;;  %v1180_v57 = vpop.f32.mrf.mxu1 }
 0x1dd   : > { %2258 = vst [vmem:[%s3057_s7 + $0xc] sm:$0x7] %v1898_v31  ;;  %v1559_v62 = vpop.f32.mrf.mxu3  ;;  %v1754_v33 = vpop.f32.mrf.mxu0 }
 0x1de   : > { %1830 = vst.msk [vmem:[#allocation2 + $0x70] sm:$0xff] %vm1815_vm8, %v1811_v47  ;;  %v1577_v63 = vadd.f32 %v1554_v3, %v1388_v12 }
 0x1e0   : > { %v1772_v59 = vadd.f32 %v1749_v56, %v1577_v63 }
 0x1e2   : > { %v1794_v30 = vadd.f32 %v3040_v44, %v1772_v59  ;;  %v2259_v44 = vld [vmem:[%s3057_s7 + $0x10] sm:$0x7] }
 0x1e3   : > { %v1368_v28 = vpop.f32.mrf.mxu2 }
 0x1e4   : > { %v1812_v35 = vmax.f32 %v1794_v30, 0.0  ;;  %v1182_v46 = vpop.f32.mrf.mxu1 }
 0x1e5   : > { %v1901_v51 = vld [vmem:[#allocation2 + $0x68] ss:$2 sm:$0x1f]  ;;  %v1903_v5 = vld [vmem:[#allocation2 + $0x69] ss:$2 sm:$0x1f] }
 0x1e6   : > { %1831 = vst.msk [vmem:[#allocation2 + $0x78] sm:$0xff] %vm1815_vm8, %v1812_v35  ;;  %v1908_v53 = vmax.f32 %v1901_v51, %v1903_v5 }
 0x1eb   : > { %v1370_v40 = vpop.f32.mrf.mxu2 }
 0x1ed   : > { %v1905_v58 = vld [vmem:[#allocation2 + $0x75] ss:$2 sm:$0x1f]  ;;  %v1907_v54 = vld [vmem:[#allocation2 + $0x76] ss:$2 sm:$0x1f] }
 0x1ee   : > { %v1909_v16 = vmax.f32 %v1905_v58, %v1907_v54 }
 0x1f0   : > { %v1910_v11 = vmax.f32 %v1908_v53, %v1909_v16 }
 0x1f2   : > { %v1911_v8 = vpack.c.bf16 %v1910_v11, %v1910_v11 }
 0x1f4   : > { %v1914_v60 = vsel %vm3061_vm11, %v1911_v8, %v2259_v44 }
 0x1f5   : > { %2260 = vst [vmem:[%s3057_s7 + $0x10] sm:$0x7] %v1914_v60 }
 0x1f6 PF: > { %s15_s12 = sadd.s32 1, %s2428_s12  }
 0x1f7   : > { %p12_p7 = scmp.ge.s32.totalorder %s15_s12, 4  }
 0x1f9   :  { %14 = sbr.rel (!%p12_p7) target bundleno = 2 (0x2), region = 102 }
 0x1fe   :  { %1937 = vsyncpa [#allocation4], 1 }
 0x1ff   :  { %1939 = vsyncpa [#allocation4 + $0x1], 1 }
 0x200   :  { %1940 = vsyncpa [#allocation6], 1 }

// kernel: bird_classifier_forward.10
= control target key start
LH: loop header
LB: loop body
LE: loop exit
PB: predicated region body
PF: predicated region fallthrough
CT: control target
= control target key end

     0   :  { %8 = vsyncpa [#allocation4], 0  ;;  %s1631_s0 = inlined_call_operand.vmem [shape: bf16[2,49,64], index: 0, kind: input, shape index: {}]   ;;  %s1632_s1 = inlined_call_operand.hbm [shape: bf16[9,64,128], index: 1, kind: input, shape index: {}]   ;;  %s1633_s2 = inlined_call_operand.hbm [shape: f32[1,128], index: 2, kind: input, shape index: {}]   ;;  %s1634_s3 = inlined_call_operand.vmem [shape: bf16[2,2,2,128], index: 3, kind: output, shape index: {}]  }
   0x1   :  { %9 = vsyncpa [#allocation6], 0  ;;  %s1503_s12 = smov 0  }
   0x2 LB: > { %s125_s15 = sshll.u32 %s1632_s1, 4  ;;  %s1114_s16 = sadd.s32 4294967295, %s1477_s12   ;;  %s1477_s12 = sphi %s1503_s12, %s15_s12   ;;  %s126_s15 = int_to_ptr.hbm [resolvable:$true] %s125_s15 }
   0x3   : > { %p1116_p0 = scmp.ge.s32.totalorder %s1477_s12, 1  ;;  %p114_p1 = scmp.lt.s32.totalorder %s1477_s12, 3 }
   0x4   : > { %p1383_p2 = scmp.eq.s32.totalorder %s1114_s16, 0  ;;  %s1479_s18 = smov [#allocation3]  }
   0x5   : > { %p1514_p3 = pnand %p1116_p0, %p114_p1  ;;  %s127_s19 = sshll.u32 %s1479_s18, 4  ;;  %s128_s19 = int_to_ptr.vmem [resolvable:$true] %s127_s19 }
   0x6   : > { %s140_s22 = sshll.u32 %s1633_s2, 4  ;;  %s1480_s23 = smov [#allocation5]   ;;  %s141_s22 = int_to_ptr.hbm [resolvable:$true] %s140_s22 }
   0x7   : > { %p1376_p4 = pneg %p1514_p3  ;;  %s142_s24 = sshll.u32 %s1480_s23, 4  ;;  %s143_s24 = int_to_ptr.vmem [resolvable:$true] %s142_s24 }
   0x8   : > { %s1481_s25 = smov 64   ;;  %s1482_s26 = smov 4  }
   0x9   : > { %p1377_p5 = pnand %p1383_p2, %p1376_p4  ;;  %163 = sbr.rel (%p1514_p3) target bundleno = 278 (0x116), region = 32 }
   0xb   : > { %1379 = dma.hbm_to_vmem [thread:$0]  (!%p1377_p5), %s126_s15, 4608, %s128_s19, [#allocation4], %s1481_s25, %s1481_s25, %s1482_s26  }
   0xc   : > { %1382 = dma.hbm_to_vmem [thread:$0]  (!%p1377_p5), %s141_s22, 16, %s143_s24, [#allocation6]  }
   0xe   : > { %1468 = dma.done.wait (%p1383_p2), [#allocation4], 4608  }
   0xf   : > { %1470 = vsyncadd (%p1383_p2), [#allocation4], 4294962688 }
  0x10   : > { %1472 = dma.done.wait (%p1383_p2), [#allocation6], 16  }
  0x11   : > { %1474 = vsyncadd (%p1383_p2), [#allocation6], 4294967280  ;;  %p192_p6 = scmp.lt.s32.totalorder %s1114_s16, 1  ;;  %v1323_v0 = vld [vmem:[#allocation3 + $0x38] sm:$0xff]  ;;  %v1322_v2 = vld [vmem:[#allocation3 + $0x30] sm:$0xff]  ;;  %vm284_vm1 = vcmask 523264  }
  0x12   : > { %v1331_v1 = vld [vmem:[#allocation3 + $0x78] sm:$0xff]  ;;  %1359 = vmatpush.bf16.msra.mxu1 %v1323_v0  ;;  %1360 = vmatpush.bf16.msra.mxu2 %v1323_v0  ;;  %v1330_v5 = vld [vmem:[#allocation3 + $0x70] sm:$0xff]  ;;  %v1321_v12 = vld [vmem:[#allocation3 + $0x28] sm:$0xff]  ;;  %vm237_vm0 = vsmask.f32 7424  ;;  %vm387_vm3 = vcmask 1046528  }
  0x13   : > { %s1637_s16 = smov (!%p192_p6, %s1114_s16), 1  ;;  %298 = vmatpush.bf16.msra.mxu0 %v1323_v0  ;;  %530 = vmatpush.bf16.msra.mxu3 %v1331_v1  ;;  %v1329_v19 = vld [vmem:[#allocation3 + $0x68] sm:$0xff]  ;;  %v1320_v22 = vld [vmem:[#allocation3 + $0x20] sm:$0xff]  ;;  %v1327_v27 = vld [vmem:[#allocation3 + $0x58] sm:$0xff]  ;;  %vm471_vm2 = vsmask.f32 4352 }
  0x14   : > { %s1367_s27 = smul.u32 28, %s1637_s16  ;;  %v1319_v32 = vld [vmem:[#allocation3 + $0x18] sm:$0xff]  ;;  %v1328_v38 = vld [vmem:[#allocation3 + $0x60] sm:$0xff]  ;;  %v1326_v42 = vld [vmem:[#allocation3 + $0x50] sm:$0xff]  ;;  %vm748_vm4 = vcmask 1044480   ;;  %s1124_s4 = sshll.u32 %s1637_s16, 1 }
  0x15   : > { %v1336_v33 = vld [vmem:[#allocation3 + $0x98] sm:$0xff]  ;;  %v1318_v46 = vld [vmem:[#allocation3 + $0x10] sm:$0xff]  ;;  %v1325_v51 = vld [vmem:[#allocation3 + $0x48] sm:$0xff]  ;;  %s200_s7 = scalar_lea.vmem %s1634_s3, %s1124_s4 }
  0x16   : > { %s1536_s30 = scalar_lea.vmem %s1631_s0, %s1367_s27  ;;  %1361 = vmatpush.bf16.msra.mxu1 %v1322_v2  ;;  %1362 = vmatpush.bf16.msra.mxu2 %v1322_v2  ;;  %v1348_v45 = vld [vmem:[#allocation3 + $0xf8] sm:$0xff]  ;;  %v1335_v47 = vld [vmem:[#allocation3 + $0x90] sm:$0xff]  ;;  %v1317_v53 = vld [vmem:[#allocation3 + $0x8] sm:$0xff] }
  0x17   : > { %v1539_v3 = vld [vmem:[%s1536_s30 + $0x8] sm:$0xff]  ;;  %v206_v4 = vld [vmem:[%s1536_s30 + $0x10] sm:$0x1]  ;;  %v1543_v7 = vld [vmem:[%s1536_s30] sm:$0xff]   ;;  %299 = vmatpush.bf16.msra.mxu0 %v1322_v2  ;;  %531 = vmatpush.bf16.msra.mxu3 %v1330_v5 }
  0x18   : > { %v233_v6 = vunpack.c.l.b16 %v206_v4  ;;  %v246_v8 = vshll.u32 %v1539_v3, 16  ;;  %v241_v9 = vshll.u32 %v1543_v7, 16  ;;  %v1358_v11 = vunpack.c.h.b16 %v1543_v7  ;;  %v454_v15 = vld [vmem:[%s1536_s30] sm:$0x8]  ;;  %v1557_v31 = vld [vmem:[%s1536_s30 + $0x10] sm:$0xff]   ;;  %v1347_v52 = vld [vmem:[#allocation3 + $0xf0] sm:$0xff] }
  0x19   : > { %v250_v14 = vshrl.u32 %v1539_v3, 16  ;;  %v239_v17 = vshrl.u32 %v1543_v7, 16  ;;  %v467_v20 = vunpack.c.l.b16 %v454_v15  ;;  %v468_v40 = vunpack.c.l.b16 %v1557_v31  ;;  %v370_v44 = vld [vmem:[%s1536_s30] sm:$0xe]  ;;  %v1334_v54 = vld [vmem:[#allocation3 + $0x88] sm:$0xff]  ;;  %v1575_v56 = vld [vmem:[%s1536_s30 + $0x4] sm:$0xff]  }
  0x1a   : > { %v1547_v10 = vpack.c.b16 %v233_v6, %v233_v6  ;;  %v248_v13 = vrot.slane %v246_v8, 1  ;;  %v243_v18 = vrot.slane %v241_v9, 1  ;;  %1363 = vmatpush.bf16.msra.mxu1 %v1321_v12  ;;  %1364 = vmatpush.bf16.msra.mxu2 %v1321_v12  ;;  %v481_v26 = vrot.slane %v246_v8, 4  ;;  %v1400_v57 = vld [vmem:[%s1536_s30 + $0x4] sm:$0xf0]  ;;  %v1346_v61 = vld [vmem:[#allocation3 + $0xe8] sm:$0xff] }
  0x1b   : > { %v469_v21 = vpack.c.b16 %v1358_v11, %v467_v20  ;;  %v480_v25 = vrot.slane %v250_v14, 3  ;;  %300 = vmatpush.bf16.msra.mxu0 %v1321_v12  ;;  %532 = vmatpush.bf16.msra.mxu3 %v1329_v19  ;;  %v383_v49 = vunpack.c.l.b16 %v370_v44  ;;  %v470_v50 = vpack.c.b16 %v468_v40, %v468_v40  ;;  %v1324_v60 = vld [vmem:[#allocation3 + $0x40] sm:$0xff]  ;;  %v1344_v1 = vld [vmem:[#allocation3 + $0xd8] sm:$0xff]  ;;  %v1343_v12 = vld [vmem:[#allocation3 + $0xd0] sm:$0xff] }
  0x1c   : > { %v254_v16 = vshll.u32 %v1547_v10, 16  ;;  %v252_v23 = vor.u32 %v250_v14, %v248_v13  ;;  %v244_v28 = vor.u32 %v243_v18, %v239_v17  ;;  %v258_v34 = vshrl.u32 %v1547_v10, 16  ;;  %v1316_v62 = vld [vmem:[#allocation3] sm:$0xff]  ;;  %v1340_v2 = vld [vmem:[#allocation3 + $0xb8] sm:$0xff]  ;;  %v1339_v14 = vld [vmem:[#allocation3 + $0xb0] sm:$0xff] }
  0x1d   : > { %v473_v29 = vshrl.u32 %v469_v21, 16  ;;  %v476_v30 = vshll.u32 %v469_v21, 16  ;;  %v1561_v39 = vor.u32 %v481_v26, %v480_v25  ;;  %v385_v55 = vpack.c.b16 %v1358_v11, %v383_v49  ;;  %v1333_v63 = vld [vmem:[#allocation3 + $0x80] sm:$0xff]  ;;  %v1354_v8 = vld [vmem:[#allocation3 + $0x118] sm:$0xff]  ;;  %v1353_v15 = vld [vmem:[#allocation3 + $0x110] sm:$0xff] }
  0x1e   : > { %v256_v24 = vrot.slane %v254_v16, 1  ;;  %1365 = vmatpush.bf16.msra.mxu1 %v1320_v22  ;;  %1366 = vmatpush.bf16.msra.mxu2 %v1320_v22  ;;  %v249_v41 = vsel %vm237_vm0, %v244_v28, %v248_v13  ;;  %v485_v58 = vshrl.u32 %v470_v50, 16  ;;  %v488_v59 = vshll.u32 %v470_v50, 16  ;;  %v371_v13 = vld [vmem:[%s1536_s30 + $0x10] sm:$0x3]  ;;  %v1345_v19 = vld [vmem:[#allocation3 + $0xe0] sm:$0xff] }
  0x1f   : > { %v475_v35 = vrot.slane %v473_v29, 3  ;;  %v478_v36 = vrot.slane %v476_v30, 4  ;;  %301 = vmatpush.bf16.msra.mxu0 %v1320_v22  ;;  %533 = vmatpush.bf16.msra.mxu3 %v1328_v38  ;;  %v389_v0 = vrot.slane %v1539_v3, 1  ;;  %v388_v4 = vrot.slane %v385_v55, 1  ;;  %v1342_v18 = vld [vmem:[#allocation3 + $0xc8] sm:$0xff]  ;;  %v1341_v22 = vld [vmem:[#allocation3 + $0xc0] sm:$0xff] }
  0x20   : > { %v257_v37 = vsel %vm237_vm0, %v252_v23, %v256_v24  ;;  %v487_v5 = vrot.slane %v485_v58, 3  ;;  %v490_v6 = vrot.slane %v488_v59, 4  ;;  %v384_v17 = vunpack.c.l.b16 %v371_v13  ;;  %v1338_v20 = vld [vmem:[#allocation3 + $0xa8] sm:$0xff]  ;;  %v1337_v23 = vld [vmem:[#allocation3 + $0xa0] sm:$0xff]  ;;  %v1401_v26 = vld [vmem:[%s1536_s30 + $0x4] sm:$0x8] }
  0x21   : > { %v479_v43 = vor.u32 %v478_v36, %v475_v35  ;;  %1146 = vmatmul.msk.bf16.vlgmr.msra.gmra.mxu1 %vm284_vm1, %v257_v37  ;;  %1147 = vmatmul.msk.bf16.vlgmr.msra.gmra.mxu2 %vm284_vm1, %v258_v34  ;;  %v390_v9 = vsel %vm387_vm3, %v388_v4, %v389_v0  ;;  %v1352_v21 = vld [vmem:[#allocation3 + $0x108] sm:$0xff]  ;;  %v1351_v24 = vld [vmem:[#allocation3 + $0x100] sm:$0xff]  ;;  %v1402_v29 = vor.u32 %v1401_v26, %v1400_v57  ;;  %v653_v44 = vshll.u32 %v1575_v56, 16  ;;  %v910_v4 = vld [vmem:[%s1536_s30 + $0x18] sm:$0x1] }
  0x22   : > { %430 = vmatpush.bf16.msrb.mxu2 %v1327_v27  ;;  %351 = vmatpush.bf16.msrb.mxu1 %v1319_v32  ;;  %v491_v11 = vor.u32 %v490_v6, %v487_v5  ;;  %v1332_v28 = vld [vmem:[%s1536_s30 + $0xc] sm:$0xff]  ;;  %v558_v30 = vld [vmem:[%s1536_s30 + $0x14] sm:$0x1] }
  0x23   : > { %618 = vmatpush.bf16.msrb.mxu0 %v1336_v33  ;;  %v483_v48 = vsel %vm471_vm2, %v479_v43, %v1561_v39  ;;  %882 = vmatpush.bf16.msrb.mxu3 %v1348_v45  ;;  %v657_v32 = vshll.u32 %v1332_v28, 16  ;;  %v661_v33 = vshrl.u32 %v1332_v28, 16  ;;  %v825_v34 = vshrl.u32 %v1402_v29, 16  ;;  %v1349_v58 = vld [vmem:[%s1536_s30 + $0x8] sm:$0xff] }
  0x24   : > { %1145 = vmatmul.msk.bf16.vlgmr.msra.gmra.mxu0 %vm284_vm1, %v249_v41  ;;  %1202 = vmatmul.msk.bf16.vlgmr.msra.gmra.mxu3 %vm284_vm1, %v483_v48  ;;  %v492_v16 = vsel %vm471_vm2, %v1561_v39, %v491_v11  ;;  %v828_v35 = vshll.u32 %v1402_v29, 16  ;;  %v577_v36 = vunpack.c.l.b16 %v558_v30  ;;  %v745_v43 = vunpack.c.h.b16 %v1557_v31 }
  0x25   : > { %v827_v37 = vrot.slane %v825_v34, 3  ;;  %v832_v39 = vrot.slane %v661_v33, 3  ;;  %v833_v40 = vrot.slane %v657_v32, 4  ;;  %v655_v48 = vrot.slane %v653_v44, 1 }
  0x26   : > { %431 = vmatpush.bf16.msrb.mxu2 %v1326_v42  ;;  %352 = vmatpush.bf16.msrb.mxu1 %v1318_v46  ;;  %v830_v38 = vrot.slane %v828_v35, 4  ;;  %v580_v41 = vpack.c.b16 %v577_v36, %v577_v36  ;;  %v747_v46 = vpack.c.b16 %v745_v43, %v745_v43 }
  0x27   : > { %619 = vmatpush.bf16.msrb.mxu0 %v1335_v47  ;;  %883 = vmatpush.bf16.msrb.mxu3 %v1347_v52  ;;  %v651_v47 = vshrl.u32 %v1575_v56, 16  ;;  %v749_v52 = vrot.slane %v1402_v29, 3 }
  0x28   : > { %v831_v42 = vor.u32 %v830_v38, %v827_v37  ;;  %v837_v49 = vshrl.u32 %v747_v46, 16  ;;  %v840_v31 = vshll.u32 %v747_v46, 16  ;;  %v668_v6 = vshrl.u32 %v580_v41, 16 }
  0x29   : > { %v656_v50 = vor.u32 %v655_v48, %v651_v47 }
  0x2a   : > { %432 = vmatpush.bf16.msrb.mxu2 %v1325_v51  ;;  %353 = vmatpush.bf16.msrb.mxu1 %v1317_v53  ;;  %v659_v51 = vrot.slane %v657_v32, 1  ;;  %v750_v53 = vrot.slane %v1332_v28, 3 }
  0x2b   : > { %620 = vmatpush.bf16.msrb.mxu0 %v1334_v54  ;;  %884 = vmatpush.bf16.msrb.mxu3 %v1346_v61  ;;  %v842_v54 = vrot.slane %v840_v31, 4 }
  0x2c   : > { %v660_v55 = vsel %vm237_vm0, %v656_v50, %v659_v51  ;;  %v751_v57 = vsel %vm748_vm4, %v749_v52, %v750_v53  ;;  %v663_v61 = vor.u32 %v661_v33, %v659_v51 }
  0x2e   : > { %433 = vmatpush.bf16.msrb.mxu2 %v1324_v60  ;;  %354 = vmatpush.bf16.msrb.mxu1 %v1316_v62  ;;  %v664_v60 = vshll.u32 %v580_v41, 16 }
  0x2f   : > { %621 = vmatpush.bf16.msrb.mxu0 %v1333_v63  ;;  %885 = vmatpush.bf16.msrb.mxu3 %v1345_v19  ;;  %v752_v63 = vrot.slane %v747_v46, 3 }
  0x30   : > { %v666_v62 = vrot.slane %v664_v60, 1 }
  0x31   : > { %1164 = vmatmul.msk.bf16.vlgmr.msrb.gmra.mxu1 %vm284_vm1, %v1543_v7  ;;  %1183 = vmatmul.msk.bf16.vlgmr.msrb.gmra.mxu2 %vm284_vm1, %v390_v9  ;;  %v386_v7 = vpack.c.b16 %v384_v17, %v384_v17 }
  0x32   : > { %791 = vmatpush.bf16.msra.mxu2 %v1344_v1  ;;  %707 = vmatpush.bf16.msra.mxu1 %v1340_v2  ;;  %v753_v1 = vsel %vm748_vm4, %v750_v53, %v752_v63  ;;  %v1350_v2 = vld [vmem:[%s1536_s30 + $0x10] sm:$0xff] }
  0x33   : > { %970 = vmatpush.bf16.msra.mxu0 %v1354_v8  ;;  %v391_v25 = vrot.slane %v386_v7, 1 }
  0x34   : > { %1225 = vmatmul.msk.bf16.vlgmr.msrb.gmra.mxu0 %vm284_vm1, %v1575_v56  ;;  %1203 = vmatmul.msk.bf16.gmra.mxu3 %vm284_vm1, %v492_v16 }
  0x35   : > { %v392_v27 = vsel %vm387_vm3, %v389_v0, %v391_v25  ;;  %v667_v0 = vsel %vm237_vm0, %v663_v61, %v666_v62 }
  0x36   : > { %792 = vmatpush.bf16.msra.mxu2 %v1343_v12  ;;  %708 = vmatpush.bf16.msra.mxu1 %v1339_v14 }
  0x37   : > { %971 = vmatpush.bf16.msra.mxu0 %v1353_v15 }
  0x3a   : > { %793 = vmatpush.bf16.msra.mxu2 %v1342_v18  ;;  %709 = vmatpush.bf16.msra.mxu1 %v1338_v20 }
  0x3b   : > { %972 = vmatpush.bf16.msra.mxu0 %v1352_v21 }
  0x3e   : > { %794 = vmatpush.bf16.msra.mxu2 %v1341_v22  ;;  %710 = vmatpush.bf16.msra.mxu1 %v1337_v23 }
  0x3f   : > { %973 = vmatpush.bf16.msra.mxu0 %v1351_v24 }
  0x41   : > { %1165 = vmatmul.msk.bf16.gmra.mxu1 %vm284_vm1, %v1539_v3  ;;  %1184 = vmatmul.msk.bf16.gmra.mxu2 %vm284_vm1, %v392_v27  ;;  %v834_v3 = vor.u32 %v833_v40, %v832_v39 }
  0x43   : > { %v835_v45 = vsel %vm471_vm2, %v831_v42, %v834_v3 }
  0x44   : > { %1226 = vmatmul.msk.bf16.gmra.mxu0 %vm284_vm1, %v1332_v28  ;;  %1204 = vmatmul.msk.bf16.gmra.mxu3 %vm284_vm1, %v487_v5  ;;  %v929_v5 = vunpack.c.l.b16 %v910_v4 }
  0x46   : > { %v932_v8 = vpack.c.b16 %v929_v5, %v929_v5 }
  0x51   : > { %1166 = vmatmul.msk.bf16.gmra.mxu1 %vm284_vm1, %v1547_v10  ;;  %1185 = vmatmul.msk.bf16.gmra.mxu2 %vm284_vm1, %v391_v25  ;;  %v839_v10 = vrot.slane %v837_v49, 3 }
  0x53   : > { %v843_v59 = vor.u32 %v842_v54, %v839_v10  ;;  %v1399_v54 = vld [vmem:[#allocation5] ss:$0 sm:$0xff] }
  0x54   : > { %1227 = vmatmul.msk.bf16.gmra.mxu0 %vm284_vm1, %v580_v41  ;;  %1282 = vmatmul.msk.bf16.vlgmr.msrb.gmra.mxu3 %vm284_vm1, %v835_v45 }
  0x55   : > { %v844_v56 = vsel %vm471_vm2, %v834_v3, %v843_v59 }
  0x61   : > { %1244 = vmatmul.msk.bf16.vlgmr.msra.gmra.mxu1 %vm284_vm1, %v660_v55  ;;  %1263 = vmatmul.msk.bf16.vlgmr.msra.gmra.mxu2 %vm284_vm1, %v751_v57 }
  0x64   : > { %1309 = vmatmul.msk.bf16.vlgmr.msra.gmra.mxu0 %vm284_vm1, %v1349_v58  ;;  %1283 = vmatmul.msk.bf16.gmra.mxu3 %vm284_vm1, %v844_v56 }
  0x71   : > { %1245 = vmatmul.msk.bf16.gmra.mxu1 %vm284_vm1, %v667_v0  ;;  %1264 = vmatmul.msk.bf16.gmra.mxu2 %vm284_vm1, %v753_v1 }
  0x74   : > { %1310 = vmatmul.msk.bf16.gmra.mxu0 %vm284_vm1, %v1350_v2  ;;  %1284 = vmatmul.msk.bf16.gmra.mxu3 %vm284_vm1, %v839_v10 }
  0x81   : > { %1246 = vmatmul.msk.bf16.gmra.mxu1 %vm284_vm1, %v668_v6  ;;  %1265 = vmatmul.msk.bf16.gmra.mxu2 %vm284_vm1, %v752_v63 }
  0x84   : > { %1311 = vmatmul.msk.bf16.gmra.mxu0 %vm284_vm1, %v932_v8 }
  0x9e   : > { %v308_v9 = vpop.f32.mrf.mxu1 }
  0xa1   : > { %v303_v11 = vpop.f32.mrf.mxu0 }
  0xa4   : > { %v313_v12 = vpop.f32.mrf.mxu2 }
  0xa6   : > { %v310_v13 = vpop.f32.mrf.mxu1 }
  0xa7   : > { %v535_v15 = vpop.f32.mrf.mxu3 }
  0xa9   : > { %v305_v14 = vpop.f32.mrf.mxu0 }
  0xac   : > { %v315_v16 = vpop.f32.mrf.mxu2 }
  0xae   : > { %v356_v17 = vpop.f32.mrf.mxu1 }
  0xaf   : > { %v537_v19 = vpop.f32.mrf.mxu3  ;;  %v357_v38 = vadd.f32 %v356_v17, %v303_v11 }
  0xb1   : > { %v623_v18 = vpop.f32.mrf.mxu0 }
  0xb4   : > { %v435_v20 = vpop.f32.mrf.mxu2 }
  0xb5   : > { %v449_v41 = vadd.f32 %v435_v20, %v357_v38 }
  0xb6   : > { %v358_v21 = vpop.f32.mrf.mxu1 }
  0xb7   : > { %v540_v22 = vpop.f32.mrf.mxu3  ;;  %v549_v3 = vadd.f32 %v535_v15, %v449_v41  ;;  %v359_v44 = vadd.f32 %v358_v21, %v305_v14 }
  0xb9   : > { %v625_v7 = vpop.f32.mrf.mxu0  ;;  %v637_v48 = vadd.f32 %v623_v18, %v549_v3 }
  0xbc   : > { %v437_v23 = vpop.f32.mrf.mxu2 }
  0xbd   : > { %v450_v47 = vadd.f32 %v437_v23, %v359_v44 }
  0xbe   : > { %v361_v24 = vpop.f32.mrf.mxu1 }
  0xbf   : > { %v542_v26 = vpop.f32.mrf.mxu3  ;;  %v550_v50 = vadd.f32 %v537_v19, %v450_v47  ;;  %v362_v53 = vadd.f32 %v361_v24, %v308_v9 }
  0xc1   : > { %v628_v25 = vpop.f32.mrf.mxu0  ;;  %v638_v56 = vadd.f32 %v625_v7, %v550_v50 }
  0xc4   : > { %v440_v27 = vpop.f32.mrf.mxu2 }
  0xc5   : > { %v451_v58 = vadd.f32 %v440_v27, %v362_v53 }
  0xc6   : > { %v363_v28 = vpop.f32.mrf.mxu1 }
  0xc7   : > { %v545_v30 = vpop.f32.mrf.mxu3  ;;  %v551_v63 = vadd.f32 %v540_v22, %v451_v58  ;;  %v364_v4 = vadd.f32 %v363_v28, %v310_v13 }
  0xc9   : > { %v630_v29 = vpop.f32.mrf.mxu0  ;;  %v639_v12 = vadd.f32 %v628_v25, %v551_v63 }
  0xcc   : > { %v442_v32 = vpop.f32.mrf.mxu2 }
  0xcd   : > { %v452_v9 = vadd.f32 %v442_v32, %v364_v4 }
  0xce   : > { %v366_v33 = vpop.f32.mrf.mxu1 }
  0xcf   : > { %v547_v35 = vpop.f32.mrf.mxu3  ;;  %v552_v17 = vadd.f32 %v542_v26, %v452_v9 }
  0xd1   : > { %v633_v34 = vpop.f32.mrf.mxu0  ;;  %v640_v23 = vadd.f32 %v630_v29, %v552_v17 }
  0xd4   : > { %v445_v36 = vpop.f32.mrf.mxu2 }
  0xd6   : > { %v368_v37 = vpop.f32.mrf.mxu1 }
  0xd7   : > { %v887_v40 = vpop.f32.mrf.mxu3 }
  0xd9   : > { %v635_v39 = vpop.f32.mrf.mxu0 }
  0xdc   : > { %v447_v42 = vpop.f32.mrf.mxu2 }
  0xde   : > { %v712_v43 = vpop.f32.mrf.mxu1 }
  0xdf   : > { %v889_v46 = vpop.f32.mrf.mxu3  ;;  %v726_v49 = vadd.f32 %v712_v43, %v637_v48 }
  0xe1   : > { %v975_v45 = vpop.f32.mrf.mxu0 }
  0xe4   : > { %v796_v31 = vpop.f32.mrf.mxu2 }
  0xe5   : > { %v810_v51 = vadd.f32 %v796_v31, %v726_v49 }
  0xe6   : > { %v714_v52 = vpop.f32.mrf.mxu1 }
  0xe7   : > { %v901_v10 = vadd.f32 %v887_v40, %v810_v51  ;;  %v892_v57 = vpop.f32.mrf.mxu3  ;;  %v727_v61 = vadd.f32 %v714_v52, %v638_v56 }
  0xe9   : > { %v977_v55 = vpop.f32.mrf.mxu0  ;;  %v989_v59 = vadd.f32 %v975_v45, %v901_v10 }
  0xeb   : > { %v998_v60 = vadd.f32 %v1399_v54, %v989_v59 }
  0xec   : > { %v798_v62 = vpop.f32.mrf.mxu2 }
  0xed   : > { %v1003_v0 = vmax.f32 %v998_v60, 0.0  ;;  %v811_v1 = vadd.f32 %v798_v62, %v727_v61 }
  0xee   : > { %v717_v2 = vpop.f32.mrf.mxu1 }
  0xef   : > { %1008 = vst [vmem:[#allocation2] sm:$0xff] %v1003_v0  ;;  %v902_v5 = vadd.f32 %v889_v46, %v811_v1  ;;  %v894_v8 = vpop.f32.mrf.mxu3  ;;  %v728_v15 = vadd.f32 %v717_v2, %v639_v12 }
  0xf1   : > { %v980_v6 = vpop.f32.mrf.mxu0  ;;  %v990_v11 = vadd.f32 %v977_v55, %v902_v5 }
  0xf3   : > { %v999_v14 = vadd.f32 %v1399_v54, %v990_v11 }
  0xf4   : > { %v801_v16 = vpop.f32.mrf.mxu2 }
  0xf5   : > { %v1004_v18 = vmax.f32 %v999_v14, 0.0  ;;  %v812_v19 = vadd.f32 %v801_v16, %v728_v15 }
  0xf6   : > { %v719_v20 = vpop.f32.mrf.mxu1  ;;  %v1013_v28 = vld [vmem:[#allocation2] ss:$2 sm:$0x3]  ;;  %v1015_v30 = vld [vmem:[#allocation2 + $0x1] ss:$2 sm:$0x3] }
  0xf7   : > { %1009 = vst [vmem:[#allocation2 + $0x8] sm:$0xff] %v1004_v18  ;;  %v903_v21 = vadd.f32 %v892_v57, %v812_v19  ;;  %v897_v22 = vpop.f32.mrf.mxu3  ;;  %v729_v27 = vadd.f32 %v719_v20, %v640_v23  ;;  %v1020_v36 = vmax.f32 %v1013_v28, %v1015_v30 }
  0xf9   : > { %v982_v7 = vpop.f32.mrf.mxu0  ;;  %v991_v13 = vadd.f32 %v980_v6, %v903_v21 }
  0xfb   : > { %v1000_v24 = vadd.f32 %v1399_v54, %v991_v13 }
  0xfc   : > { %v803_v32 = vpop.f32.mrf.mxu2 }
  0xfd   : > { %v1005_v25 = vmax.f32 %v1000_v24, 0.0  ;;  %v813_v33 = vadd.f32 %v803_v32, %v729_v27 }
  0xfe   : > { %v1017_v34 = vld [vmem:[#allocation2 + $0x7] ss:$2 sm:$0x3]  ;;  %v1019_v35 = vld [vmem:[#allocation2 + $0x8] ss:$2 sm:$0x3]  ;;  %v722_v26 = vpop.f32.mrf.mxu1 }
  0xff   : > { %v1021_v37 = vmax.f32 %v1017_v34, %v1019_v35  ;;  %1010 = vst [vmem:[#allocation2 + $0x10] sm:$0xff] %v1005_v25  ;;  %v904_v38 = vadd.f32 %v894_v8, %v813_v33  ;;  %v899_v40 = vpop.f32.mrf.mxu3 }
 0x101   : > { %v985_v39 = vpop.f32.mrf.mxu0  ;;  %v1022_v41 = vmax.f32 %v1020_v36, %v1021_v37  ;;  %v992_v42 = vadd.f32 %v982_v7, %v904_v38 }
 0x103   : > { %v1023_v29 = vpack.c.bf16 %v1022_v41, %v1022_v41  ;;  %v1001_v3 = vadd.f32 %v1399_v54, %v992_v42 }
 0x104   : > { %v806_v43 = vpop.f32.mrf.mxu2 }
 0x105   : > { %1024 = vst [vmem:[%s200_s7] sm:$0x1] %v1023_v29  ;;  %v1006_v44 = vmax.f32 %v1001_v3, 0.0 }
 0x106   : > { %v724_v45 = vpop.f32.mrf.mxu1  ;;  %v1026_v47 = vld [vmem:[#allocation2 + $0xe] ss:$2 sm:$0x3]  ;;  %v1028_v48 = vld [vmem:[#allocation2 + $0xf] ss:$2 sm:$0x3] }
 0x107   : > { %1011 = vst [vmem:[#allocation2 + $0x18] sm:$0xff] %v1006_v44  ;;  %v1030_v31 = vld [vmem:[#allocation2 + $0x15] ss:$2 sm:$0x3]  ;;  %v1033_v51 = vmax.f32 %v1026_v47, %v1028_v48 }
 0x109   : > { %v987_v46 = vpop.f32.mrf.mxu0 }
 0x10c   : > { %v808_v49 = vpop.f32.mrf.mxu2 }
 0x10e   : > { %v1032_v50 = vld [vmem:[#allocation2 + $0x16] ss:$2 sm:$0x3] }
 0x10f   : > { %v1034_v52 = vmax.f32 %v1030_v31, %v1032_v50 }
 0x111   : > { %v1035_v53 = vmax.f32 %v1033_v51, %v1034_v52 }
 0x113   : > { %v1036_v10 = vpack.c.bf16 %v1035_v53, %v1035_v53 }
 0x115   : > { %1312 = vst [vmem:[%s200_s7 + $0x1] sm:$0x1] %v1036_v10 }
 0x116 PF: > { %s15_s12 = sadd.s32 1, %s1477_s12  }
 0x117   : > { %p12_p7 = scmp.ge.s32.totalorder %s15_s12, 4  }
 0x119   :  { %14 = sbr.rel (!%p12_p7) target bundleno = 2 (0x2), region = 87 }
 0x11e   :  { %1058 = vsyncpa [#allocation4], 1 }
 0x11f   :  { %1060 = vsyncpa [#allocation4 + $0x1], 1 }
 0x120   :  { %1061 = vsyncpa [#allocation6], 1 }

// kernel: bird_classifier_forward.7
= control target key start
LH: loop header
LB: loop body
LE: loop exit
PB: predicated region body
PF: predicated region fallthrough
CT: control target
= control target key end

     0   :  { %8 = vsyncpa [#allocation4], 0  ;;  %s4575_s12 = smov 0   ;;  %s7511_s0 = inlined_call_operand.vmem [shape: bf16[2,400,1], index: 0, kind: input, shape index: {}]   ;;  %s7512_s1 = inlined_call_operand.vmem [shape: bf16[9,1,16], index: 1, kind: input, shape index: {}]   ;;  %s7513_s2 = inlined_call_operand.hbm [shape: f32[1,16], index: 2, kind: input, shape index: {}]   ;;  %s7514_s3 = inlined_call_operand.vmem [shape: bf16[2,9,9,16], index: 3, kind: output, shape index: {}]  }
   0x1 LB: > { %s3766_s13 = sadd.s32 4294967295, %s4551_s12   ;;  %p3768_p0 = scmp.ge.s32.totalorder %s4551_s12, 1  ;;  %s4551_s12 = sphi %s4575_s12, %s14_s12  }
   0x2   : > { %p113_p1 = scmp.lt.s32.totalorder %s4551_s12, 3  ;;  %s128_s16 = sshll.u32 %s7513_s2, 4  ;;  %s129_s16 = int_to_ptr.hbm [resolvable:$true] %s128_s16 }
   0x3   : > { %p4138_p3 = scmp.eq.s32.totalorder %s3766_s13, 0  ;;  %s4553_s17 = smov [#allocation3]  }
   0x4   : > { %p114_p2 = pnand %p3768_p0, %p113_p1  ;;  %s130_s18 = sshll.u32 %s4553_s17, 4  ;;  %s131_s18 = int_to_ptr.vmem [resolvable:$true] %s130_s18 }
   0x6   : > { %p4134_p4 = pneg %p114_p2  ;;  %151 = sbr.rel (%p114_p2) target bundleno = 631 (0x277), region = 32 }
   0x8   : > { %p4135_p5 = pnand %p4138_p3, %p4134_p4 }
   0xa   : > { %4137 = dma.hbm_to_vmem [thread:$0]  (!%p4135_p5), %s129_s16, 16, %s131_s18, [#allocation4]  }
   0xb   : > { %4546 = dma.done.wait (%p4138_p3), [#allocation4], 16  }
   0xc   : > { %4548 = vsyncadd (%p4138_p3), [#allocation4], 4294967280  ;;  %p176_p6 = scmp.lt.s32.totalorder %s3766_s13, 1  ;;  %v4554_v0 = vmov 0   ;;  %vm695_vm0 = vcmask 1046528   ;;  %vm976_vm1 = vcmask 1045504  }
   0xd   : > { %4172 = vset.pattern.permute.xlu2 %v4554_v0  ;;  %4161 = vset.pattern.permute.xlu1 %v4554_v0  ;;  %vm1574_vm2 = vcmask 1043456   ;;  %vm1859_vm3 = vcmask 1042432   ;;  %vm2144_vm4 = vcmask 1041408   ;;  %vm3389_vm5 = vcmask 130048  }
   0xe   : > { %4150 = vset.pattern.permute.xlu0 %v4554_v0  ;;  %s8227_s13 = smov (!%p176_p6, %s3766_s13), 1  ;;  %vm3461_vm6 = vcmask 122880   ;;  %vm3462_vm7 = vsmask.f32 256  ;;  %vm3459_vm9 = vcmask 125952   ;;  %vm3434_vm10 = vcmask 128000  }
   0xf   : > { %s4128_s19 = smul.u32 200, %s8227_s13  ;;  %vm6834_vm8 = vmand %vm3461_vm6, %vm3462_vm7 }
  0x10   : > { %s4129_s16 = smul.u32 72, %s8227_s13 }
  0x11   : > { %s4592_s22 = scalar_lea.vmem %s7511_s0, %s4128_s19 }
  0x12   : > { %v4595_v1 = vld [vmem:[%s4592_s22 + $0x20] sm:$0xff]   ;;  %v4598_v2 = vld [vmem:[%s4592_s22 + $0x10] sm:$0xff]   ;;  %v4606_v10 = vld [vmem:[%s4592_s22 + $0x28] sm:$0xff]   ;;  %s6824_s18 = scalar_lea.vmem %s7514_s3, %s4129_s16 }
  0x13   : > { %v3810_v3 = vld [vmem:[%s4592_s22] sm:$0xff]   ;;  %v3827_v4 = vunpack.c.l.bf16 %v4595_v1  ;;  %v3828_v5 = vunpack.c.h.bf16 %v4595_v1  ;;  %v3819_v6 = vunpack.c.l.bf16 %v4598_v2  ;;  %v3820_v7 = vunpack.c.h.bf16 %v4598_v2  ;;  %v4609_v11 = vld [vmem:[%s4592_s22 + $0x18] sm:$0xff]   ;;  %v4065_v14 = vld [vmem:[%s4592_s22 + $0x8] sm:$0xff]  }
  0x14   : > { %v3811_v8 = vunpack.c.l.bf16 %v3810_v3  ;;  %v3812_v9 = vunpack.c.h.bf16 %v3810_v3  ;;  %v3831_v16 = vunpack.c.l.bf16 %v4606_v10  ;;  %v3832_v17 = vunpack.c.h.bf16 %v4606_v10  ;;  %v4640_v25 = vld [vmem:[%s4592_s22 + $0x40] sm:$0xff]   ;;  %v4643_v26 = vld [vmem:[%s4592_s22 + $0x38] sm:$0xff]   ;;  %v4646_v27 = vld [vmem:[%s4592_s22 + $0x30] sm:$0xff]  }
  0x15   : > { %v4615_v12 = vpack.i.bf16 %v3828_v5, %v3827_v4  ;;  %v4162_v13 = vpack.i.bf16 %v3820_v7, %v3819_v6  ;;  %v3823_v18 = vunpack.c.l.bf16 %v4609_v11  ;;  %v3824_v19 = vunpack.c.h.bf16 %v4609_v11  ;;  %v4675_v37 = vld [vmem:[%s4592_s22 + $0x58] sm:$0xff]   ;;  %v4678_v38 = vld [vmem:[%s4592_s22 + $0x50] sm:$0xff]   ;;  %v4681_v39 = vld [vmem:[%s4592_s22 + $0x48] sm:$0xff]  }
  0x16   : > { %v4151_v15 = vpack.i.bf16 %v3812_v9, %v3811_v8  ;;  %v3815_v20 = vunpack.c.l.bf16 %v4065_v14  ;;  %v3816_v21 = vunpack.c.h.bf16 %v4065_v14  ;;  %v4631_v22 = vpack.i.bf16 %v3832_v17, %v3831_v16  ;;  %v4705_v49 = vld [vmem:[%s4592_s22 + $0x70] sm:$0xff]   ;;  %v4708_v50 = vld [vmem:[%s4592_s22 + $0x68] sm:$0xff]   ;;  %v4711_v51 = vld [vmem:[%s4592_s22 + $0x60] sm:$0xff]  }
  0x17   : > { %4174 = vperm.xlu2 %4172, %v4615_v12   ;;  %4163 = vperm.xlu1 %4161, %v4162_v13   ;;  %v4637_v23 = vpack.i.bf16 %v3824_v19, %v3823_v18  ;;  %v3843_v28 = vunpack.c.l.bf16 %v4640_v25  ;;  %v7531_v29 = vunpack.c.h.bf16 %v4640_v25  ;;  %v3839_v30 = vunpack.c.l.bf16 %v4643_v26  ;;  %v4732_v61 = vld [vmem:[%s4592_s22 + $0x88] sm:$0xff]   ;;  %v4735_v62 = vld [vmem:[%s4592_s22 + $0x80] sm:$0xff]   ;;  %v4738_v63 = vld [vmem:[%s4592_s22 + $0x78] sm:$0xff]  }
  0x18   : > { %4152 = vperm.xlu0 %4150, %v4151_v15   ;;  %v4156_v24 = vpack.i.bf16 %v3816_v21, %v3815_v20  ;;  %v3840_v31 = vunpack.c.h.bf16 %v4643_v26  ;;  %v3835_v32 = vunpack.c.l.bf16 %v4646_v27  ;;  %v3836_v33 = vunpack.c.h.bf16 %v4646_v27 }
  0x19   : > { %v4660_v34 = vpack.i.bf16 %v7531_v29, %v3843_v28  ;;  %v3855_v40 = vunpack.c.l.bf16 %v4675_v37  ;;  %v7525_v41 = vunpack.c.h.bf16 %v4675_v37  ;;  %v3851_v42 = vunpack.c.l.bf16 %v4678_v38  ;;  %v1157_v29 = vld [vmem:[%s4592_s22 + $0xc] sm:$0xf] }
  0x1a   : > { %v4666_v35 = vpack.i.bf16 %v3840_v31, %v3839_v30  ;;  %v4672_v36 = vpack.i.bf16 %v3836_v33, %v3835_v32  ;;  %v3852_v43 = vunpack.c.h.bf16 %v4678_v38  ;;  %v7530_v44 = vunpack.c.l.bf16 %v4681_v39 }
  0x1b   : > { %v3848_v45 = vunpack.c.h.bf16 %v4681_v39  ;;  %v4208_v46 = vpack.i.bf16 %v7525_v41, %v3855_v40  ;;  %v3867_v52 = vunpack.c.l.bf16 %v4705_v49  ;;  %v7517_v53 = vunpack.c.h.bf16 %v4705_v49 }
  0x1c   : > { %v4203_v47 = vpack.i.bf16 %v3852_v43, %v3851_v42  ;;  %v7528_v54 = vunpack.c.l.bf16 %v4708_v50  ;;  %v3864_v55 = vunpack.c.h.bf16 %v4708_v50  ;;  %v7520_v56 = vunpack.c.l.bf16 %v4711_v51 }
  0x1d   : > { %v4198_v48 = vpack.i.bf16 %v3848_v45, %v7530_v44  ;;  %v7529_v57 = vunpack.c.h.bf16 %v4711_v51  ;;  %v4223_v58 = vpack.i.bf16 %v7517_v53, %v3867_v52  ;;  %v3879_v0 = vunpack.c.l.bf16 %v4732_v61 }
  0x1e   : > { %v4218_v59 = vpack.i.bf16 %v3864_v55, %v7528_v54  ;;  %v7515_v3 = vunpack.c.h.bf16 %v4732_v61  ;;  %v7518_v8 = vunpack.c.l.bf16 %v4735_v62  ;;  %v3876_v9 = vunpack.c.h.bf16 %v4735_v62 }
  0x1f   : > { %4179 = vperm.xlu2 %4172, %v4631_v22   ;;  %4168 = vperm.xlu1 %4161, %v4637_v23   ;;  %v4213_v60 = vpack.i.bf16 %v7529_v57, %v7520_v56  ;;  %v7516_v13 = vunpack.c.l.bf16 %v4738_v63  ;;  %v7519_v14 = vunpack.c.h.bf16 %v4738_v63  ;;  %v4790_v56 = vld [vmem:[%s4592_s22 + $0xa8] sm:$0xff]   ;;  %v4298_v1 = vpack.i.bf16 %v3839_v30, %v3836_v33  ;;  %v3776_v30 = vld [vmem:[%s7512_s1 + $0x2] sm:$0x1] }
  0x20   : > { %4157 = vperm.xlu0 %4150, %v4156_v24   ;;  %v4238_v15 = vpack.i.bf16 %v7515_v3, %v3879_v0  ;;  %v4233_v20 = vpack.i.bf16 %v3876_v9, %v7518_v8  ;;  %v4755_v24 = vld [vmem:[%s4592_s22 + $0xa0] sm:$0xff]   ;;  %v230_v8 = vld [vmem:[%s4592_s22 + $0xb0] sm:$0x7]  ;;  %v4348_v2 = vpack.i.bf16 %v3879_v0, %v3876_v9  ;;  %v7668_v11 = vunpack.c.l.bf16 %v4681_v39 }
  0x21   : > { %v4228_v21 = vpack.i.bf16 %v7519_v14, %v7516_v13  ;;  %v594_v14 = vld [vmem:[%s4592_s22 + $0xb0] sm:$0xf]  ;;  %v7669_v10 = vunpack.c.h.bf16 %v4711_v51  ;;  %v7671_v26 = vunpack.c.h.bf16 %v4675_v37  ;;  %v7672_v27 = vunpack.c.l.bf16 %v4711_v51 }
  0x22   : > { %v597_v41 = vunpack.c.l.bf16 %v594_v14  ;;  %v879_v38 = vunpack.c.l.bf16 %v3776_v30  ;;  %v7673_v37 = vunpack.c.h.bf16 %v4738_v63  ;;  %v7674_v39 = vunpack.c.l.bf16 %v4735_v62  ;;  %v4871_v0 = vld [vmem:[%s4592_s22 + $0xb0] sm:$0xff]  }
  0x27   : > { %4194 = vperm.xlu2 %4172, %v4660_v34   ;;  %4189 = vperm.xlu1 %4161, %v4666_v35  }
  0x28   : > { %4184 = vperm.xlu0 %4150, %v4672_v36  }
  0x2f   : > { %4209 = vperm.xlu2 %4172, %v4208_v46   ;;  %4204 = vperm.xlu1 %4161, %v4203_v47   ;;  %v4758_v46 = vld [vmem:[%s4592_s22 + $0x98] sm:$0xff]   ;;  %v4761_v47 = vld [vmem:[%s4592_s22 + $0x90] sm:$0xff]  }
  0x30   : > { %4199 = vperm.xlu0 %4150, %v4198_v48   ;;  %v4288_v48 = vpack.i.bf16 %v3831_v16, %v3828_v5  ;;  %v7522_v3 = vunpack.c.h.bf16 %v4758_v46  ;;  %v7526_v13 = vunpack.c.l.bf16 %v4761_v47  ;;  %v7527_v53 = vunpack.c.h.bf16 %v4761_v47 }
  0x31   : > { %v7677_v14 = vunpack.c.h.bf16 %v4761_v47 }
  0x37   : > { %4224 = vperm.xlu2 %4172, %v4223_v58   ;;  %4219 = vperm.xlu1 %4161, %v4218_v59   ;;  %v7521_v58 = vunpack.c.l.bf16 %v4755_v24  ;;  %v7523_v59 = vunpack.c.h.bf16 %v4755_v24 }
  0x38   : > { %4214 = vperm.xlu0 %4150, %v4213_v60   ;;  %v7524_v60 = vunpack.c.l.bf16 %v4758_v46 }
  0x39   : > { %v4253_v5 = vpack.i.bf16 %v7523_v59, %v7521_v58  ;;  %v4303_v58 = vpack.i.bf16 %v3843_v28, %v3840_v31  ;;  %v4318_v28 = vpack.i.bf16 %v3855_v40, %v3852_v43  ;;  %v1205_v31 = vunpack.c.l.bf16 %v1157_v29 }
  0x3a   : > { %v4248_v16 = vpack.i.bf16 %v7522_v3, %v7524_v60  ;;  %v276_v60 = vunpack.c.l.bf16 %v230_v8  ;;  %v4333_v40 = vpack.i.bf16 %v3867_v52, %v3864_v55  ;;  %v4323_v29 = vpack.i.bf16 %v7672_v27, %v7671_v26 }
  0x3b   : > { %v4273_v8 = vpack.i.bf16 %v3819_v6, %v1205_v31  ;;  %v4313_v6 = vpack.i.bf16 %v3851_v42, %v3848_v45  ;;  %v4343_v42 = vpack.i.bf16 %v7674_v39, %v7673_v37  ;;  %v7675_v43 = vunpack.c.h.bf16 %v4705_v49 }
  0x3c   : > { %v4263_v57 = vpack.i.bf16 %v597_v41, %v276_v60  ;;  %v4283_v41 = vpack.i.bf16 %v3827_v4, %v3824_v19  ;;  %v4293_v4 = vpack.i.bf16 %v3835_v32, %v3832_v17  ;;  %v7670_v17 = vunpack.c.l.bf16 %v4708_v50  ;;  %v231_v50 = vld [vmem:[%s7512_s1] sm:$0x1] }
  0x3d   : > { %v277_v55 = vunpack.c.l.bf16 %v231_v50  ;;  %v7680_v60 = vunpack.c.l.bf16 %v4761_v47 }
  0x3e   : > { %v4328_v19 = vpack.i.bf16 %v7670_v17, %v7669_v10  ;;  %v1201_v10 = vld [vmem:[%s4592_s22 + $0xbc] sm:$0x1] }
  0x3f   : > { %4239 = vperm.xlu2 %4172, %v4238_v15   ;;  %4234 = vperm.xlu1 %4161, %v4233_v20   ;;  %v875_v15 = vld [vmem:[%s4592_s22] sm:$0xe]  ;;  %v4243_v20 = vpack.i.bf16 %v7527_v53, %v7526_v13  ;;  %v3895_v13 = vunpack.c.l.bf16 %v4790_v56  ;;  %v3896_v53 = vunpack.c.h.bf16 %v4790_v56  ;;  %v1756_v17 = vld [vmem:[%s4592_s22 + $0xbc] sm:$0x3]  ;;  %v1249_v37 = vunpack.c.l.bf16 %v1201_v10 }
  0x40   : > { %4229 = vperm.xlu0 %4150, %v4228_v21   ;;  %v1156_v21 = vld [vmem:[%s4592_s22 + $0x8] sm:$0xc]  ;;  %v878_v3 = vunpack.c.l.bf16 %v875_v15  ;;  %v1759_v39 = vunpack.c.l.bf16 %v1756_v17 }
  0x41   : > { %v1204_v59 = vunpack.c.l.bf16 %v1156_v21  ;;  %v4258_v44 = vpack.i.bf16 %v3896_v53, %v3895_v13 }
  0x43   : > { %v4268_v54 = vpack.i.bf16 %v1204_v59, %v878_v3  ;;  %v4278_v3 = vpack.i.bf16 %v3823_v18, %v3820_v7  ;;  %v7667_v7 = vunpack.c.h.bf16 %v4640_v25  ;;  %v3775_v25 = vld [vmem:[%s7512_s1 + $0x1] sm:$0x1]  ;;  %v7679_v59 = vunpack.c.h.bf16 %v4732_v61 }
  0x44   : > { %v598_v33 = vunpack.c.l.bf16 %v3775_v25 }
  0x45   : > { %v4308_v18 = vpack.i.bf16 %v7668_v11, %v7667_v7  ;;  %v7681_v11 = vunpack.c.h.bf16 %v4755_v24 }
  0x46   : > { %v4862_v52 = vperm.slane %v598_v33, 0 }
  0x47   : > { %4254 = vperm.xlu2 %4172, %v4253_v5   ;;  %4249 = vperm.xlu1 %4161, %v4248_v16   ;;  %v4353_v5 = vpack.i.bf16 %v7680_v60, %v7679_v59  ;;  %v4883_v16 = vperm.slane %v277_v55, 0 }
  0x48   : > { %4244 = vperm.xlu0 %4150, %v4243_v20   ;;  %v3979_v20 = vunpack.c.l.bf16 %v4871_v0 }
  0x4a   : > { %v4373_v7 = vpack.i.bf16 %v3979_v20, %v3896_v53 }
  0x4f   : > { %4269 = vperm.xlu2 %4172, %v4268_v54   ;;  %4264 = vperm.xlu1 %4161, %v4263_v57   ;;  %v4864_v54 = vperm.slane %v879_v38, 0 }
  0x50   : > { %4259 = vperm.xlu0 %4150, %v4258_v44   ;;  %v7676_v44 = vunpack.c.l.bf16 %v4738_v63 }
  0x52   : > { %v4338_v45 = vpack.i.bf16 %v7676_v44, %v7675_v43 }
  0x57   : > { %4284 = vperm.xlu2 %4172, %v4283_v41   ;;  %4279 = vperm.xlu1 %4161, %v4278_v3   ;;  %v2041_v41 = vld [vmem:[%s4592_s22 + $0x8] sm:$0x8] }
  0x58   : > { %4274 = vperm.xlu0 %4150, %v4273_v8   ;;  %v2044_v25 = vunpack.c.l.bf16 %v2041_v41 }
  0x5f   : > { %4299 = vperm.xlu2 %4172, %v4298_v1   ;;  %4294 = vperm.xlu1 %4161, %v4293_v4   ;;  %v2326_v1 = vld [vmem:[%s4592_s22 + $0x14] sm:$0xf] }
  0x60   : > { %4289 = vperm.xlu0 %4150, %v4288_v48   ;;  %v7678_v48 = vunpack.c.l.bf16 %v4758_v46 }
  0x67   : > { %4314 = vperm.xlu2 %4172, %v4313_v6   ;;  %4309 = vperm.xlu1 %4161, %v4308_v18   ;;  %v4368_v18 = vpack.i.bf16 %v3895_v13, %v7681_v11  ;;  %v2373_v13 = vunpack.c.l.bf16 %v2326_v1 }
  0x68   : > { %4304 = vperm.xlu0 %4150, %v4303_v58   ;;  %v4358_v58 = vpack.i.bf16 %v7678_v48, %v7677_v14 }
  0x69   : > { %v4388_v20 = vpack.i.bf16 %v2373_v13, %v2044_v25 }
  0x6f   : > { %4329 = vperm.xlu2 %4172, %v4328_v19   ;;  %4324 = vperm.xlu1 %4161, %v4323_v29   ;;  %v7683_v29 = vunpack.c.l.bf16 %v4755_v24 }
  0x70   : > { %4319 = vperm.xlu0 %4150, %v4318_v28  }
  0x71   : > { %v4175_v32 = vpop.permute.xlu2 %4174 }
  0x72   : > { %v4177_v51 = vunpack.i.h.bf16 %v4175_v32  ;;  %v4176_v57 = vunpack.i.l.bf16 %v4175_v32 }
  0x74   : > { %v614_v62 = vmul.f32 %v4177_v51, %v4862_v52  ;;  %v4868_v49 = vmul.f32 %v4177_v51, %v4864_v54  ;;  %v4886_v15 = vmul.f32 %v4176_v57, %v4862_v52  ;;  %v513_v47 = vmul.f32 %v4177_v51, %v4883_v16 }
  0x75   : > { %v4907_v6 = vmul.f32 %v4176_v57, %v4864_v54  ;;  %v512_v33 = vmul.f32 %v4176_v57, %v4883_v16 }
  0x76   : > { %v713_v21 = vrot.slane %v614_v62, 1  ;;  %v994_v28 = vrot.slane %v4868_v49, 2  ;;  %v711_v4 = vrot.slane %v4886_v15, 1  ;;  %v3980_v49 = vunpack.c.h.bf16 %v4871_v0 }
  0x77   : > { %4344 = vperm.xlu2 %4172, %v4343_v42   ;;  %4339 = vperm.xlu1 %4161, %v4338_v45   ;;  %v1200_v42 = vld [vmem:[%s4592_s22 + $0xb8] sm:$0xf] }
  0x78   : > { %4334 = vperm.xlu0 %4150, %v4333_v40   ;;  %v714_v24 = vsel %vm695_vm0, %v711_v4, %v713_v21 }
  0x79   : > { %v4180_v63 = vpop.permute.xlu2 %4179  ;;  %v838_v60 = vadd.f32 %v714_v24, %v512_v33 }
  0x7a   : > { %v4873_v9 = vunpack.i.l.bf16 %v4180_v63  ;;  %v4900_v3 = vunpack.i.h.bf16 %v4180_v63  ;;  %v1248_v63 = vunpack.c.l.bf16 %v1200_v42 }
  0x7c   : > { %v4892_v31 = vmul.f32 %v4873_v9, %v4862_v52  ;;  %v4896_v61 = vmul.f32 %v4873_v9, %v4864_v54  ;;  %v4930_v38 = vmul.f32 %v4900_v3, %v4862_v52  ;;  %v4945_v45 = vmul.f32 %v4900_v3, %v4864_v54 }
  0x7d   : > { %v4995_v25 = vmul.f32 %v4900_v3, %v4883_v16 }
  0x7e   : > { %v715_v8 = vrot.slane %v4892_v31, 1  ;;  %v996_v40 = vrot.slane %v4896_v61, 2  ;;  %v7539_v14 = vrot.slane %v4930_v38, 1  ;;  %v7538_v0 = vrot.slane %v4945_v45, 2 }
  0x7f   : > { %4359 = vperm.xlu2 %4172, %v4358_v58   ;;  %4354 = vperm.xlu1 %4161, %v4353_v5  }
  0x80   : > { %4349 = vperm.xlu0 %4150, %v4348_v2   ;;  %v716_v19 = vsel %vm695_vm0, %v713_v21, %v715_v8  ;;  %v997_v26 = vsel %vm976_vm1, %v994_v28, %v996_v40  ;;  %v7682_v2 = vunpack.c.h.bf16 %v4758_v46  ;;  %v992_v46 = vrot.slane %v4907_v6, 2 }
  0x81   : > { %v4195_v27 = vpop.permute.xlu2 %4194  ;;  %v839_v30 = vadd.f32 %v716_v19, %v513_v47  ;;  %v514_v21 = vmul.f32 %v4873_v9, %v4883_v16  ;;  %v718_v9 = vsel %vm695_vm0, %v715_v8, %v7539_v14  ;;  %v4383_v19 = vpack.i.bf16 %v1759_v39, %v1249_v37 }
  0x82   : > { %v4363_v53 = vpack.i.bf16 %v7683_v29, %v7682_v2  ;;  %v4925_v32 = vunpack.i.h.bf16 %v4195_v27  ;;  %v4196_v56 = vunpack.i.l.bf16 %v4195_v27  ;;  %v995_v5 = vsel %vm976_vm1, %v992_v46, %v994_v28 }
  0x83   : > { %v4937_v43 = vadd.f32 %v997_v26, %v839_v30  ;;  %v4378_v26 = vpack.i.bf16 %v1248_v63, %v3980_v49  ;;  %v4983_v27 = vadd.f32 %v995_v5, %v838_v60  ;;  %v840_v13 = vadd.f32 %v718_v9, %v514_v21 }
  0x84   : > { %v4941_v44 = vmul.f32 %v4925_v32, %v4862_v52  ;;  %v4949_v50 = vmul.f32 %v4925_v32, %v4864_v54  ;;  %v4952_v51 = vmul.f32 %v4196_v56, %v4862_v52  ;;  %v4955_v55 = vmul.f32 %v4196_v56, %v4864_v54 }
  0x85   : > { %7684 = vst [vmem:[#allocation6_spill] sm:$0xff] %v4937_v43  ;;  %v520_v62 = vmul.f32 %v4196_v56, %v4883_v16  ;;  %v999_v33 = vsel %vm976_vm1, %v996_v40, %v7538_v0  ;;  %v3777_v43 = vld [vmem:[%s7512_s1 + $0x3] sm:$0x1] }
  0x86   : > { %v7535_v57 = vrot.slane %v4941_v44, 1  ;;  %v7533_v48 = vrot.slane %v4949_v50, 2  ;;  %v7541_v58 = vrot.slane %v4952_v51, 1  ;;  %v7540_v59 = vrot.slane %v4955_v55, 2  ;;  %7685 = vst [vmem:[#allocation7_spill] sm:$0xff] %v4983_v27 }
  0x87   : > { %4374 = vperm.xlu2 %4172, %v4373_v7   ;;  %4369 = vperm.xlu1 %4161, %v4368_v18  }
  0x88   : > { %4364 = vperm.xlu0 %4150, %v4363_v53   ;;  %v730_v31 = vsel %vm695_vm0, %v7541_v58, %v7535_v57  ;;  %v1011_v47 = vsel %vm976_vm1, %v7540_v59, %v7533_v48 }
  0x89   : > { %v4210_v28 = vpop.permute.xlu2 %4209  ;;  %v4164_v41 = vpop.permute.xlu1 %4163  ;;  %v846_v1 = vadd.f32 %v730_v31, %v520_v62 }
  0x8a   : > { %v4212_v7 = vunpack.i.h.bf16 %v4210_v28  ;;  %v4211_v11 = vunpack.i.l.bf16 %v4210_v28  ;;  %v4166_v18 = vunpack.i.h.bf16 %v4164_v41  ;;  %v4153_v10 = vpop.permute.xlu0 %4152  ;;  %v4165_v17 = vunpack.i.l.bf16 %v4164_v41 }
  0x8b   : > { %v4985_v2 = vadd.f32 %v1011_v47, %v846_v1  ;;  %v4155_v56 = vunpack.i.h.bf16 %v4153_v10  ;;  %v4154_v62 = vunpack.i.l.bf16 %v4153_v10  ;;  %v5035_v47 = vadd.f32 %v999_v33, %v840_v13 }
  0x8c   : > { %v4988_v29 = vmul.f32 %v4212_v7, %v4862_v52  ;;  %v4991_v53 = vmul.f32 %v4212_v7, %v4864_v54  ;;  %v4998_v30 = vmul.f32 %v4211_v11, %v4862_v52  ;;  %v5001_v8 = vmul.f32 %v4211_v11, %v4864_v54 }
  0x8d   : > { %7686 = vst [vmem:[#allocation8_spill] sm:$0xff] %v4985_v2  ;;  %v5010_v39 = vmul.f32 %v4166_v18, %v4862_v52  ;;  %v526_v3 = vmul.f32 %v4211_v11, %v4883_v16  ;;  %v5015_v24 = vmul.f32 %v4165_v17, %v4862_v52  ;;  %v5020_v40 = vmul.f32 %v4166_v18, %v4864_v54 }
  0x8e   : > { %v7532_v37 = vrot.slane %v4988_v29, 1  ;;  %v7537_v42 = vrot.slane %v4998_v30, 1  ;;  %v7534_v49 = vrot.slane %v4991_v53, 2  ;;  %v7536_v61 = vrot.slane %v5001_v8, 2  ;;  %7687 = vst [vmem:[#allocation9_spill] sm:$0xff] %v5035_v47 }
  0x8f   : > { %4389 = vperm.xlu2 %4172, %v4388_v20   ;;  %4384 = vperm.xlu1 %4161, %v4383_v19   ;;  %v5023_v63 = vmul.f32 %v4165_v17, %v4864_v54  ;;  %v7545_v5 = vrot.slane %v5010_v39, 1  ;;  %v7546_v20 = vrot.slane %v5015_v24, 1  ;;  %v5033_v21 = vmul.f32 %v4155_v56, %v4862_v52 }
  0x90   : > { %4379 = vperm.xlu0 %4150, %v4378_v26   ;;  %v742_v60 = vsel %vm695_vm0, %v7537_v42, %v7532_v37  ;;  %v5039_v28 = vmul.f32 %v4925_v32, %v4883_v16  ;;  %v5042_v41 = vmul.f32 %v4212_v7, %v4883_v16  ;;  %v5045_v1 = vmul.f32 %v4166_v18, %v4883_v16 }
  0x91   : > { %v4225_v31 = vpop.permute.xlu2 %4224  ;;  %v852_v11 = vadd.f32 %v742_v60, %v526_v3  ;;  %v7542_v10 = vrot.slane %v5033_v21, 1  ;;  %v605_v9 = vmul.f32 %v4154_v62, %v4862_v52  ;;  %v4169_v26 = vpop.permute.xlu1 %4168  ;;  %v1023_v32 = vsel %vm976_vm1, %v7536_v61, %v7534_v49 }
  0x92   : > { %v4227_v19 = vunpack.i.h.bf16 %v4225_v31  ;;  %v7543_v13 = vrot.slane %v5020_v40, 2  ;;  %v508_v7 = vmul.f32 %v4165_v17, %v4883_v16  ;;  %v7544_v18 = vrot.slane %v5023_v63, 2  ;;  %v4158_v33 = vpop.permute.xlu0 %4157 }
  0x93   : > { %v706_v3 = vsel %vm695_vm0, %v7546_v20, %v7545_v5  ;;  %v5063_v60 = vmul.f32 %v4155_v56, %v4864_v54  ;;  %v504_v37 = vmul.f32 %v4154_v62, %v4883_v16  ;;  %v696_v48 = vrot.slane %v605_v9, 1 }
  0x94   : > { %v5067_v49 = vmul.f32 %v4227_v19, %v4862_v52  ;;  %v4226_v57 = vunpack.i.l.bf16 %v4225_v31  ;;  %v4171_v17 = vunpack.i.h.bf16 %v4169_v26  ;;  %v4170_v61 = vunpack.i.l.bf16 %v4169_v26 }
  0x95   : > { %v5069_v42 = vadd.f32 %v1023_v32, %v852_v11  ;;  %v5072_v0 = vmul.f32 %v4155_v56, %v4883_v16  ;;  %v698_v14 = vsel %vm695_vm0, %v696_v48, %v7542_v10  ;;  %v4160_v59 = vunpack.i.h.bf16 %v4158_v33 }
  0x96   : > { %v834_v62 = vadd.f32 %v706_v3, %v508_v7  ;;  %v987_v31 = vsel %vm976_vm1, %v7544_v18, %v7543_v13  ;;  %v5084_v11 = vadd.f32 %v698_v14, %v504_v37  ;;  %v5087_v56 = vmul.f32 %v4226_v57, %v4862_v52 }
  0x97   : > { %7688 = vst [vmem:[#allocation10_spill] sm:$0xff] %v5069_v42  ;;  %4404 = vperm.xlu2 %4172, %v4631_v22   ;;  %4399 = vperm.xlu1 %4161, %v4615_v12   ;;  %v5092_v22 = vmul.f32 %v4227_v19, %v4883_v16  ;;  %v612_v12 = vmul.f32 %v4171_v17, %v4862_v52  ;;  %v7689_v15 = vrot.slane %v5067_v49, 1 }
  0x98   : > { %4394 = vperm.xlu0 %4150, %v4637_v23   ;;  %v893_v9 = vmul.f32 %v4171_v17, %v4864_v54  ;;  %v5098_v32 = vmul.f32 %v4227_v19, %v4864_v54  ;;  %v611_v14 = vmul.f32 %v4170_v61, %v4862_v52  ;;  %v892_v37 = vmul.f32 %v4170_v61, %v4864_v54 }
  0x99   : > { %v709_v7 = vrot.slane %v612_v12, 1  ;;  %v5104_v58 = vmul.f32 %v4160_v59, %v4862_v52  ;;  %v5107_v48 = vmul.f32 %v4226_v57, %v4864_v54  ;;  %v511_v10 = vmul.f32 %v4171_v17, %v4883_v16 }
  0x9a   : > { %v990_v3 = vrot.slane %v893_v9, 2  ;;  %v707_v13 = vrot.slane %v611_v14, 1  ;;  %v988_v18 = vrot.slane %v892_v37, 2  ;;  %v510_v12 = vmul.f32 %v4170_v61, %v4883_v16  ;;  %v4240_v14 = vpop.permute.xlu2 %4239 }
  0x9b   : > { %v712_v19 = vsel %vm695_vm0, %v709_v7, %v711_v4  ;;  %v701_v9 = vrot.slane %v5104_v58, 1  ;;  %v7547_v20 = vrot.slane %v5098_v32, 2  ;;  %v532_v23 = vmul.f32 %v4226_v57, %v4883_v16 }
  0x9c   : > { %v993_v5 = vsel %vm976_vm1, %v990_v3, %v992_v46  ;;  %v837_v26 = vadd.f32 %v712_v19, %v511_v10  ;;  %v710_v17 = vsel %vm695_vm0, %v707_v13, %v709_v7  ;;  %v7690_v4 = vrot.slane %v5087_v56, 1 }
  0x9d   : > { %v836_v37 = vadd.f32 %v710_v17, %v510_v12  ;;  %v991_v46 = vsel %vm976_vm1, %v988_v18, %v990_v3  ;;  %v507_v61 = vmul.f32 %v4160_v59, %v4883_v16  ;;  %v7692_v57 = vrot.slane %v5015_v24, 1 }
  0x9e   : > { %v754_v6 = vsel %vm695_vm0, %v7690_v4, %v7689_v15  ;;  %v5129_v58 = vadd.f32 %v993_v5, %v837_v26  ;;  %v889_v7 = vmul.f32 %v4160_v59, %v4864_v54  ;;  %v4159_v19 = vunpack.i.l.bf16 %v4158_v33 }
  0x9f   : > { %4419 = vperm.xlu2 %4172, %v4660_v34   ;;  %v704_v10 = vsel %vm695_vm0, %v701_v9, %v7692_v57  ;;  %4414 = vperm.xlu1 %4161, %v4666_v35   ;;  %v7548_v12 = vrot.slane %v5107_v48, 2  ;;  %v5138_v3 = vadd.f32 %v991_v46, %v836_v37  ;;  %v5140_v15 = vunpack.i.h.bf16 %v4240_v14  ;;  %v4190_v34 = vpop.permute.xlu1 %4189 }
  0xa0   : > { %7691 = vst [vmem:[#allocation11_spill] sm:$0xff] %v5129_v58  ;;  %4409 = vperm.xlu0 %4150, %v4672_v36   ;;  %v833_v17 = vadd.f32 %v704_v10, %v507_v61  ;;  %v858_v5 = vadd.f32 %v754_v6, %v532_v23  ;;  %v982_v26 = vrot.slane %v889_v7, 2  ;;  %v607_v24 = vmul.f32 %v4159_v19, %v4862_v52 }
  0xa1   : > { %7693 = vst [vmem:[#allocation12_spill] sm:$0xff] %v5138_v3  ;;  %v888_v4 = vmul.f32 %v4159_v19, %v4864_v54  ;;  %v7694_v59 = vrot.slane %v5010_v39, 1  ;;  %v5149_v36 = vmul.f32 %v5140_v15, %v4862_v52  ;;  %v5153_v33 = vmul.f32 %v5140_v15, %v4864_v54 }
  0xa2   : > { %v4241_v37 = vunpack.i.l.bf16 %v4240_v14  ;;  %v7695_v23 = vrot.slane %v5023_v63, 2  ;;  %v699_v46 = vrot.slane %v607_v24, 1  ;;  %v4192_v57 = vunpack.i.h.bf16 %v4190_v34 }
  0xa3   : > { %v708_v35 = vsel %vm695_vm0, %v7694_v59, %v707_v13  ;;  %v980_v61 = vrot.slane %v888_v4, 2  ;;  %v5158_v10 = vadd.f32 %v987_v31, %v834_v62  ;;  %v1035_v39 = vsel %vm976_vm1, %v7548_v12, %v7547_v20 }
  0xa4   : > { %v985_v6 = vsel %vm976_vm1, %v982_v26, %v7695_v23  ;;  %v7696_v13 = vrot.slane %v5020_v40, 2  ;;  %v5170_v63 = vadd.f32 %v1035_v39, %v858_v5  ;;  %v835_v24 = vadd.f32 %v708_v35, %v5045_v1 }
  0xa5   : > { %v5168_v14 = vadd.f32 %v985_v6, %v833_v17  ;;  %v7699_v4 = vrot.slane %v5033_v21, 1  ;;  %v7700_v31 = vrot.slane %v5063_v60, 2  ;;  %v506_v23 = vmul.f32 %v4159_v19, %v4883_v16  ;;  %v4185_v6 = vpop.permute.xlu0 %4184 }
  0xa6   : > { %v989_v7 = vsel %vm976_vm1, %v7696_v13, %v988_v18  ;;  %7698 = vst [vmem:[#allocation14_spill] sm:$0xff] %v5170_v63  ;;  %v7549_v18 = vrot.slane %v5149_v36, 1  ;;  %v5183_v17 = vmul.f32 %v4241_v37, %v4862_v52  ;;  %v620_v1 = vmul.f32 %v4192_v57, %v4862_v52 }
  0xa7   : > { %7697 = vst [vmem:[#allocation13_spill] sm:$0xff] %v5168_v14  ;;  %v700_v62 = vsel %vm695_vm0, %v7699_v4, %v699_v46  ;;  %v981_v59 = vsel %vm976_vm1, %v7700_v31, %v980_v61  ;;  %v901_v21 = vmul.f32 %v4192_v57, %v4864_v54  ;;  %v4191_v35 = vunpack.i.l.bf16 %v4190_v34 }
  0xa8   : > { %v831_v40 = vadd.f32 %v700_v62, %v5072_v0  ;;  %v538_v13 = vmul.f32 %v4241_v37, %v4883_v16  ;;  %v7550_v19 = vrot.slane %v5183_v17, 1  ;;  %v5193_v0 = vmul.f32 %v4241_v37, %v4864_v54 }
  0xa9   : > { %v702_v4 = vsel %vm695_vm0, %v699_v46, %v701_v9  ;;  %v725_v62 = vrot.slane %v620_v1, 1  ;;  %v1006_v31 = vrot.slane %v901_v21, 2  ;;  %v619_v20 = vmul.f32 %v4191_v35, %v4862_v52 }
  0xaa   : > { %v5188_v39 = vadd.f32 %v981_v59, %v831_v40  ;;  %v983_v12 = vsel %vm976_vm1, %v980_v61, %v982_v26  ;;  %v519_v34 = vmul.f32 %v4192_v57, %v4883_v16  ;;  %v900_v59 = vmul.f32 %v4191_v35, %v4864_v54 }
  0xab   : > { %v4187_v40 = vunpack.i.h.bf16 %v4185_v6  ;;  %v766_v37 = vsel %vm695_vm0, %v7550_v19, %v7549_v18  ;;  %v7702_v5 = vrot.slane %v4952_v51, 1  ;;  %v7703_v46 = vrot.slane %v4955_v55, 2  ;;  %v4255_v51 = vpop.permute.xlu2 %4254 }
  0xac   : > { %7701 = vst [vmem:[#allocation15_spill] sm:$0xff] %v5188_v39  ;;  %v723_v26 = vrot.slane %v619_v20, 1  ;;  %v832_v61 = vadd.f32 %v702_v4, %v506_v23  ;;  %v1004_v2 = vrot.slane %v900_v59, 2  ;;  %v4186_v19 = vunpack.i.l.bf16 %v4185_v6 }
  0xad   : > { %v728_v9 = vsel %vm695_vm0, %v725_v62, %v7702_v5  ;;  %v1009_v1 = vsel %vm976_vm1, %v1006_v31, %v7703_v46  ;;  %v618_v63 = vmul.f32 %v4187_v40, %v4862_v52  ;;  %v899_v18 = vmul.f32 %v4187_v40, %v4864_v54 }
  0xae   : > { %v845_v21 = vadd.f32 %v728_v9, %v519_v34  ;;  %v726_v42 = vsel %vm695_vm0, %v723_v26, %v725_v62  ;;  %v864_v58 = vadd.f32 %v766_v37, %v538_v13  ;;  %v518_v55 = vmul.f32 %v4191_v35, %v4883_v16 }
  0xaf   : > { %v721_v46 = vrot.slane %v618_v63, 1  ;;  %v517_v20 = vmul.f32 %v4187_v40, %v4883_v16  ;;  %v1002_v23 = vrot.slane %v899_v18, 2  ;;  %v617_v4 = vmul.f32 %v4186_v19, %v4862_v52 }
  0xb0   : > { %v5215_v5 = vadd.f32 %v1009_v1, %v845_v21  ;;  %v898_v34 = vmul.f32 %v4186_v19, %v4864_v54  ;;  %v844_v9 = vadd.f32 %v726_v42, %v518_v55  ;;  %v4257_v59 = vunpack.i.h.bf16 %v4255_v51  ;;  %v4205_v42 = vpop.permute.xlu1 %4204 }
  0xb1   : > { %v724_v62 = vsel %vm695_vm0, %v721_v46, %v723_v26  ;;  %v4256_v57 = vunpack.i.l.bf16 %v4255_v51  ;;  %v1005_v13 = vsel %vm976_vm1, %v1002_v23, %v1004_v2  ;;  %v719_v37 = vrot.slane %v617_v4, 1 }
  0xb2   : > { %7704 = vst [vmem:[#allocation16_spill] sm:$0xff] %v5215_v5  ;;  %v843_v6 = vadd.f32 %v724_v62, %v517_v20  ;;  %v1000_v1 = vrot.slane %v898_v34, 2  ;;  %v5223_v21 = vadd.f32 %v989_v7, %v835_v24  ;;  %v5225_v63 = vadd.f32 %v983_v12, %v832_v61  ;;  %v4200_v61 = vpop.permute.xlu0 %4199 }
  0xb3   : > { %v5229_v18 = vmul.f32 %v5140_v15, %v4883_v16  ;;  %v516_v35 = vmul.f32 %v4186_v19, %v4883_v16  ;;  %v7706_v40 = vrot.slane %v5153_v33, 2  ;;  %v7707_v26 = vrot.slane %v5193_v0, 2 }
  0xb4   : > { %7705 = vst [vmem:[#allocation17_spill] sm:$0xff] %v5225_v63  ;;  %v1007_v55 = vsel %vm976_vm1, %v1004_v2, %v1006_v31  ;;  %v5238_v20 = vadd.f32 %v1005_v13, %v843_v6  ;;  %v722_v12 = vsel %vm695_vm0, %v719_v37, %v721_v46  ;;  %v1003_v19 = vsel %vm976_vm1, %v1000_v1, %v1002_v23 }
  0xb5   : > { %v1047_v51 = vsel %vm976_vm1, %v7707_v26, %v7706_v40  ;;  %v5243_v24 = vadd.f32 %v1007_v55, %v844_v9  ;;  %v842_v15 = vadd.f32 %v722_v12, %v516_v35  ;;  %v5247_v4 = vmul.f32 %v4257_v59, %v4883_v16 }
  0xb6   : > { %7708 = vst [vmem:[#allocation18_spill] sm:$0xff] %v5238_v20  ;;  %v5241_v7 = vadd.f32 %v1047_v51, %v864_v58  ;;  %v5250_v34 = vmul.f32 %v4257_v59, %v4862_v52  ;;  %v5253_v2 = vmul.f32 %v4256_v57, %v4862_v52  ;;  %v4207_v31 = vunpack.i.h.bf16 %v4205_v42 }
  0xb7   : > { %7710 = vst [vmem:[#allocation20_spill] sm:$0xff] %v5243_v24  ;;  %v7711_v46 = vrot.slane %v4930_v38, 1  ;;  %v5258_v9 = vadd.f32 %v1003_v19, %v842_v15  ;;  %v5261_v62 = vmul.f32 %v4257_v59, %v4864_v54  ;;  %v4206_v23 = vunpack.i.l.bf16 %v4205_v42  ;;  %v4115_v19 = vld [vmem:[%s4592_s22 + $0x58] sm:$0xff]  }
  0xb8   : > { %7709 = vst [vmem:[#allocation19_spill] sm:$0xff] %v5241_v7  ;;  %v7713_v6 = vrot.slane %v4945_v45, 2  ;;  %v5269_v35 = vmul.f32 %v4256_v57, %v4883_v16  ;;  %v626_v40 = vmul.f32 %v4207_v31, %v4862_v52  ;;  %v4202_v26 = vunpack.i.h.bf16 %v4200_v61 }
  0xb9   : > { %v720_v58 = vsel %vm695_vm0, %v7711_v46, %v719_v37  ;;  %7712 = vst [vmem:[#allocation21_spill] sm:$0xff] %v5258_v9  ;;  %v5273_v38 = vmul.f32 %v4256_v57, %v4864_v54  ;;  %v5276_v37 = vmul.f32 %v4207_v31, %v4864_v54  ;;  %v625_v59 = vmul.f32 %v4206_v23, %v4862_v52 }
  0xba   : > { %v5266_v13 = vsel %vm976_vm1, %v7713_v6, %v1000_v1  ;;  %v5280_v42 = vmul.f32 %v4206_v23, %v4864_v54  ;;  %v841_v45 = vadd.f32 %v720_v58, %v4995_v25  ;;  %v7552_v1 = vrot.slane %v5250_v34, 1  ;;  %v4215_v14 = vpop.permute.xlu0 %4214 }
  0xbb   : > { %v737_v55 = vrot.slane %v626_v40, 1  ;;  %v525_v12 = vmul.f32 %v4207_v31, %v4883_v16  ;;  %v7551_v57 = vrot.slane %v5276_v37, 2  ;;  %v735_v15 = vrot.slane %v625_v59, 1 }
  0xbc   : > { %v7714_v46 = vrot.slane %v4998_v30, 1  ;;  %v624_v7 = vmul.f32 %v4202_v26, %v4862_v52  ;;  %v905_v25 = vmul.f32 %v4202_v26, %v4864_v54  ;;  %v4201_v58 = vunpack.i.l.bf16 %v4200_v61 }
  0xbd   : > { %v7715_v59 = vrot.slane %v5001_v8, 2  ;;  %v524_v61 = vmul.f32 %v4206_v23, %v4883_v16  ;;  %v7718_v5 = vrot.slane %v5280_v42, 2  ;;  %v7720_v39 = vrot.slane %v4941_v44, 1  ;;  %v4220_v44 = vpop.permute.xlu1 %4219 }
  0xbe   : > { %v740_v6 = vsel %vm695_vm0, %v737_v55, %v7714_v46  ;;  %v7716_v46 = vrot.slane %v5253_v2, 1  ;;  %v733_v9 = vrot.slane %v624_v7, 1  ;;  %v1014_v40 = vrot.slane %v905_v25, 2 }
  0xbf   : > { %v851_v51 = vadd.f32 %v740_v6, %v525_v12  ;;  %v1021_v30 = vsel %vm976_vm1, %v7551_v57, %v7715_v59  ;;  %v523_v12 = vmul.f32 %v4202_v26, %v4883_v16  ;;  %v623_v8 = vmul.f32 %v4201_v58, %v4862_v52  ;;  %v4114_v59 = vld [vmem:[%s4592_s22 + $0x50] sm:$0xff]   ;;  %v4113_v57 = vld [vmem:[%s4592_s22 + $0x48] sm:$0xff]  }
  0xc0   : > { %v778_v20 = vsel %vm695_vm0, %v7716_v46, %v7552_v1  ;;  %v904_v6 = vmul.f32 %v4201_v58, %v4864_v54  ;;  %v736_v31 = vsel %vm695_vm0, %v733_v9, %v735_v15  ;;  %v1017_v46 = vsel %vm976_vm1, %v1014_v40, %v7718_v5 }
  0xc1   : > { %v5307_v24 = vadd.f32 %v1021_v30, %v851_v51  ;;  %v522_v23 = vmul.f32 %v4201_v58, %v4883_v16  ;;  %v4015_v7 = vunpack.c.l.bf16 %v4115_v19  ;;  %v849_v25 = vadd.f32 %v736_v31, %v523_v12  ;;  %v4270_v12 = vpop.permute.xlu2 %4269 }
  0xc2   : > { %v731_v51 = vrot.slane %v623_v8, 1  ;;  %v1012_v30 = vrot.slane %v904_v6, 2  ;;  %v4016_v1 = vunpack.c.h.bf16 %v4115_v19  ;;  %v4011_v26 = vunpack.c.l.bf16 %v4114_v59 }
  0xc3   : > { %7717 = vst [vmem:[#allocation22_spill] sm:$0xff] %v5307_v24  ;;  %v4012_v24 = vunpack.c.h.bf16 %v4114_v59  ;;  %v4007_v3 = vunpack.c.l.bf16 %v4113_v57  ;;  %v4008_v27 = vunpack.c.h.bf16 %v4113_v57  ;;  %v5322_v47 = vadd.f32 %v1017_v46, %v849_v25  ;;  %v3778_v57 = vld [vmem:[%s7512_s1 + $0x4] sm:$0x1] }
  0xc4   : > { %v732_v5 = vsel %vm695_vm0, %v7720_v39, %v731_v51  ;;  %v734_v58 = vsel %vm695_vm0, %v731_v51, %v733_v9  ;;  %v7721_v31 = vrot.slane %v4949_v50, 2  ;;  %v1015_v59 = vsel %vm976_vm1, %v1012_v30, %v1014_v40 }
  0xc5   : > { %7719 = vst [vmem:[#allocation23_spill] sm:$0xff] %v5322_v47  ;;  %v847_v8 = vadd.f32 %v732_v5, %v5039_v28  ;;  %v848_v6 = vadd.f32 %v734_v58, %v522_v23  ;;  %v4433_v46 = vpack.i.bf16 %v4016_v1, %v4015_v7  ;;  %v738_v39 = vsel %vm695_vm0, %v735_v15, %v737_v55  ;;  %v4118_v7 = vld [vmem:[%s4592_s22 + $0x70] sm:$0xff]  }
  0xc6   : > { %v1013_v19 = vsel %vm976_vm1, %v7721_v31, %v1012_v30  ;;  %v4428_v25 = vpack.i.bf16 %v4012_v24, %v4011_v26  ;;  %v4423_v9 = vpack.i.bf16 %v4008_v27, %v4007_v3  ;;  %v1250_v51 = vunpack.c.l.bf16 %v3777_v43 }
  0xc7   : > { %v5337_v50 = vadd.f32 %v1013_v19, %v847_v8  ;;  %v5339_v31 = vadd.f32 %v1015_v59, %v848_v6  ;;  %4434 = vperm.xlu2 %4172, %v4433_v46   ;;  %v1760_v47 = vunpack.c.l.bf16 %v3778_v57  ;;  %v4271_v63 = vunpack.i.l.bf16 %v4270_v12 }
  0xc8   : > { %v5342_v28 = vadd.f32 %v5266_v13, %v841_v45  ;;  %v7722_v1 = vrot.slane %v5261_v62, 2  ;;  %v7723_v40 = vrot.slane %v5273_v38, 2  ;;  %4429 = vperm.xlu1 %4161, %v4428_v25   ;;  %4424 = vperm.xlu0 %4150, %v4423_v9   ;;  %v4222_v43 = vunpack.i.h.bf16 %v4220_v44 }
  0xc9   : > { %v4221_v27 = vunpack.i.l.bf16 %v4220_v44  ;;  %v5352_v3 = vadd.f32 %v778_v20, %v5269_v35  ;;  %v5354_v55 = vadd.f32 %v738_v39, %v524_v61  ;;  %v7724_v15 = vrot.slane %v5276_v37, 2 }
  0xca   : > { %v5349_v24 = vsel %vm976_vm1, %v7723_v40, %v7722_v1  ;;  %v7725_v13 = vrot.slane %v5280_v42, 2  ;;  %v886_v23 = vmul.f32 %v4271_v63, %v4864_v54  ;;  %v5365_v30 = vperm.slane %v1250_v51, 0 }
  0xcb   : > { %v4272_v26 = vunpack.i.h.bf16 %v4270_v12  ;;  %v632_v5 = vmul.f32 %v4222_v43, %v4862_v52  ;;  %v4217_v58 = vunpack.i.h.bf16 %v4215_v14  ;;  %v5368_v20 = vperm.slane %v1760_v47, 0 }
  0xcc   : > { %v5361_v45 = vsel %vm976_vm1, %v7725_v13, %v7724_v15  ;;  %v977_v35 = vrot.slane %v886_v23, 2  ;;  %v5371_v61 = vmul.f32 %v4222_v43, %v4864_v54  ;;  %v631_v37 = vmul.f32 %v4221_v27, %v4862_v52 }
  0xcd   : > { %v749_v42 = vrot.slane %v632_v5, 1  ;;  %v5375_v19 = vmul.f32 %v4221_v27, %v4864_v54  ;;  %v4216_v63 = vunpack.i.l.bf16 %v4215_v14  ;;  %v4027_v57 = vunpack.c.l.bf16 %v4118_v7 }
  0xce   : > { %v7726_v12 = vrot.slane %v5063_v60, 2  ;;  %v531_v47 = vmul.f32 %v4222_v43, %v4883_v16  ;;  %v7553_v6 = vrot.slane %v5371_v61, 2  ;;  %v747_v59 = vrot.slane %v631_v37, 1  ;;  %v4116_v37 = vld [vmem:[%s4592_s22 + $0x60] sm:$0xff]  }
  0xcf   : > { %v5383_v46 = vmul.f32 %v4272_v26, %v5365_v30  ;;  %v7728_v39 = vrot.slane %v5087_v56, 1  ;;  %v630_v60 = vmul.f32 %v4217_v58, %v4862_v52  ;;  %v7729_v9 = vrot.slane %v5107_v48, 2 }
  0xd0   : > { %v979_v8 = vsel %vm976_vm1, %v977_v35, %v7726_v12  ;;  %v1028_v1 = vrot.slane %v5375_v19, 2  ;;  %v911_v40 = vmul.f32 %v4217_v58, %v4864_v54  ;;  %v5401_v43 = vmul.f32 %v4272_v26, %v5368_v20 }
  0xd1   : > { %v5386_v44 = vadd.f32 %v979_v8, %v5084_v11  ;;  %v752_v14 = vsel %vm695_vm0, %v749_v42, %v7728_v39  ;;  %v1033_v51 = vsel %vm976_vm1, %v7553_v6, %v7729_v9  ;;  %v4117_v11 = vld [vmem:[%s4592_s22 + $0x68] sm:$0xff]   ;;  %v750_v56 = vsel %vm695_vm0, %v747_v59, %v749_v42 }
  0xd2   : > { %v857_v25 = vadd.f32 %v752_v14, %v531_v47  ;;  %7730 = vst [vmem:[#allocation25_spill] sm:$0xff] %v5401_v43  ;;  %v529_v15 = vmul.f32 %v4217_v58, %v4883_v16  ;;  %v745_v13 = vrot.slane %v630_v60, 1  ;;  %v1026_v48 = vrot.slane %v911_v40, 2 }
  0xd3   : > { %7727 = vst [vmem:[#allocation24_spill] sm:$0xff] %v5386_v44  ;;  %v629_v5 = vmul.f32 %v4216_v63, %v4862_v52  ;;  %v910_v35 = vmul.f32 %v4216_v63, %v4864_v54  ;;  %v528_v12 = vmul.f32 %v4216_v63, %v4883_v16  ;;  %v4028_v8 = vunpack.c.h.bf16 %v4118_v7 }
  0xd4   : > { %v5405_v23 = vadd.f32 %v1033_v51, %v857_v25  ;;  %v748_v19 = vsel %vm695_vm0, %v745_v13, %v747_v59  ;;  %v4023_v26 = vunpack.c.l.bf16 %v4117_v11  ;;  %v1029_v42 = vsel %vm976_vm1, %v1026_v48, %v1028_v1  ;;  %v3779_v51 = vld [vmem:[%s7512_s1 + $0x5] sm:$0x1] }
  0xd5   : > { %v855_v47 = vadd.f32 %v748_v19, %v529_v15  ;;  %v743_v39 = vrot.slane %v629_v5, 1  ;;  %v1024_v58 = vrot.slane %v910_v35, 2  ;;  %v4448_v14 = vpack.i.bf16 %v4028_v8, %v4027_v57  ;;  %v4285_v5 = vpop.permute.xlu2 %4284  ;;  %v4235_v19 = vpop.permute.xlu1 %4234 }
  0xd6   : > { %7731 = vst [vmem:[#allocation26_spill] sm:$0xff] %v5405_v23  ;;  %v4024_v60 = vunpack.c.h.bf16 %v4117_v11  ;;  %v4019_v25 = vunpack.c.l.bf16 %v4116_v37  ;;  %v4020_v9 = vunpack.c.h.bf16 %v4116_v37  ;;  %v530_v40 = vmul.f32 %v4221_v27, %v4883_v16 }
  0xd7   : > { %v5417_v59 = vadd.f32 %v1029_v42, %v855_v47  ;;  %v7733_v7 = vrot.slane %v4988_v29, 1  ;;  %v746_v15 = vsel %vm695_vm0, %v743_v39, %v745_v13  ;;  %v1027_v35 = vsel %vm976_vm1, %v1024_v58, %v1026_v48  ;;  %4449 = vperm.xlu2 %4172, %v4448_v14  }
  0xd8   : > { %v854_v11 = vadd.f32 %v746_v15, %v528_v12  ;;  %v4443_v37 = vpack.i.bf16 %v4024_v60, %v4023_v26  ;;  %v856_v8 = vadd.f32 %v750_v56, %v530_v40  ;;  %v7734_v27 = vrot.slane %v4991_v53, 2  ;;  %v4230_v26 = vpop.permute.xlu0 %4229 }
  0xd9   : > { %7732 = vst [vmem:[#allocation27_spill] sm:$0xff] %v5417_v59  ;;  %v744_v63 = vsel %vm695_vm0, %v7733_v7, %v743_v39  ;;  %v4438_v42 = vpack.i.bf16 %v4020_v9, %v4019_v25  ;;  %v2045_v29 = vunpack.c.l.bf16 %v3779_v51  ;;  %v4287_v13 = vunpack.i.h.bf16 %v4285_v5 }
  0xda   : > { %v853_v57 = vadd.f32 %v744_v63, %v5042_v41  ;;  %v1025_v47 = vsel %vm976_vm1, %v7734_v27, %v1024_v58  ;;  %v5430_v7 = vadd.f32 %v1027_v35, %v854_v11  ;;  %4444 = vperm.xlu1 %4161, %v4443_v37   ;;  %v4286_v41 = vunpack.i.l.bf16 %v4285_v5 }
  0xdb   : > { %v5434_v48 = vadd.f32 %v5349_v24, %v5352_v3  ;;  %v5438_v56 = vadd.f32 %v5361_v45, %v5354_v55  ;;  %4439 = vperm.xlu0 %4150, %v4438_v42   ;;  %v5440_v53 = vperm.slane %v2045_v29, 0  ;;  %v4237_v12 = vunpack.i.h.bf16 %v4235_v19  ;;  %v4121_v42 = vld [vmem:[%s4592_s22 + $0x88] sm:$0xff]  }
  0xdc   : > { %v5428_v6 = vadd.f32 %v1025_v47, %v853_v57  ;;  %7735 = vst [vmem:[#allocation28_spill] sm:$0xff] %v5430_v7  ;;  %v5444_v58 = vmul.f32 %v4287_v13, %v5365_v30  ;;  %v5447_v14 = vmul.f32 %v4287_v13, %v5368_v20  ;;  %v4236_v60 = vunpack.i.l.bf16 %v4235_v19 }
  0xdd   : > { %7736 = vst [vmem:[#allocation29_spill] sm:$0xff] %v5434_v48  ;;  %v7737_v3 = vrot.slane %v5371_v61, 2  ;;  %v5454_v45 = vmul.f32 %v4286_v41, %v5365_v30  ;;  %v5457_v25 = vmul.f32 %v4237_v12, %v4862_v52  ;;  %v5462_v51 = vmul.f32 %v4286_v41, %v5368_v20  ;;  %v4300_v29 = vpop.permute.xlu2 %4299 }
  0xde   : > { %v4232_v40 = vunpack.i.h.bf16 %v4230_v26  ;;  %v5465_v63 = vmul.f32 %v4287_v13, %v5440_v53  ;;  %v5468_v61 = vmul.f32 %v4286_v41, %v5440_v53  ;;  %v5472_v15 = vmul.f32 %v4237_v12, %v4864_v54 }
  0xdf   : > { %v1031_v55 = vsel %vm976_vm1, %v1028_v1, %v7737_v3  ;;  %v761_v1 = vrot.slane %v5457_v25, 1  ;;  %v7555_v5 = vrot.slane %v5444_v58, 4  ;;  %v537_v11 = vmul.f32 %v4237_v12, %v4883_v16 }
  0xe0   : > { %v5459_v9 = vadd.f32 %v1031_v55, %v856_v8  ;;  %7739 = vst [vmem:[#allocation31_spill] sm:$0xff] %v5465_v63  ;;  %v637_v35 = vmul.f32 %v4236_v60, %v4862_v52  ;;  %v7556_v37 = vrot.slane %v5454_v45, 4  ;;  %v7741_v19 = vrot.slane %v5183_v17, 1 }
  0xe1   : > { %7740 = vst [vmem:[#allocation32_spill] sm:$0xff] %v5468_v61  ;;  %v7554_v27 = vrot.slane %v5472_v15, 2  ;;  %v5484_v47 = vmul.f32 %v4236_v60, %v4864_v54  ;;  %v636_v12 = vmul.f32 %v4232_v40, %v4862_v52  ;;  %v7742_v3 = vrot.slane %v5193_v0, 2 }
  0xe2   : > { %7738 = vst [vmem:[#allocation30_spill] sm:$0xff] %v5459_v9  ;;  %v764_v8 = vsel %vm695_vm0, %v761_v1, %v7741_v19  ;;  %v759_v41 = vrot.slane %v637_v35, 1  ;;  %v917_v25 = vmul.f32 %v4232_v40, %v4864_v54  ;;  %v4231_v19 = vunpack.i.l.bf16 %v4230_v26 }
  0xe3   : > { %v863_v13 = vadd.f32 %v764_v8, %v537_v11  ;;  %v1045_v17 = vsel %vm976_vm1, %v7554_v27, %v7742_v3  ;;  %v1040_v55 = vrot.slane %v5484_v47, 2  ;;  %v757_v11 = vrot.slane %v636_v12, 1  ;;  %v4120_v8 = vld [vmem:[%s4592_s22 + $0x80] sm:$0xff]  }
  0xe4   : > { %v4039_v35 = vunpack.c.l.bf16 %v4121_v42  ;;  %v1587_v0 = vsel %vm1574_vm2, %v7556_v37, %v7555_v5  ;;  %v535_v47 = vmul.f32 %v4232_v40, %v4883_v16  ;;  %v1038_v27 = vrot.slane %v917_v25, 2 }
  0xe5   : > { %v5497_v39 = vadd.f32 %v1045_v17, %v863_v13  ;;  %v760_v26 = vsel %vm695_vm0, %v757_v11, %v759_v41  ;;  %v635_v24 = vmul.f32 %v4231_v19, %v4862_v52  ;;  %v916_v13 = vmul.f32 %v4231_v19, %v4864_v54  ;;  %v4119_v17 = vld [vmem:[%s4592_s22 + $0x78] sm:$0xff]  }
  0xe6   : > { %v4040_v12 = vunpack.c.h.bf16 %v4121_v42  ;;  %v861_v57 = vadd.f32 %v760_v26, %v535_v47  ;;  %v1041_v48 = vsel %vm976_vm1, %v1038_v27, %v1040_v55  ;;  %v4035_v5 = vunpack.c.l.bf16 %v4120_v8 }
  0xe7   : > { %7743 = vst [vmem:[#allocation33_spill] sm:$0xff] %v5497_v39  ;;  %v534_v39 = vmul.f32 %v4231_v19, %v4883_v16  ;;  %v755_v37 = vrot.slane %v635_v24, 1  ;;  %v1036_v3 = vrot.slane %v916_v13, 2  ;;  %v4036_v40 = vunpack.c.h.bf16 %v4120_v8  ;;  %v4250_v24 = vpop.permute.xlu1 %4249 }
  0xe8   : > { %v4463_v61 = vpack.i.bf16 %v4040_v12, %v4039_v35  ;;  %v5513_v25 = vadd.f32 %v1041_v48, %v861_v57  ;;  %v4031_v63 = vunpack.c.l.bf16 %v4119_v17  ;;  %v4032_v59 = vunpack.c.h.bf16 %v4119_v17 }
  0xe9   : > { %v4302_v7 = vunpack.i.h.bf16 %v4300_v29  ;;  %v536_v9 = vmul.f32 %v4236_v60, %v4883_v16  ;;  %v7745_v42 = vrot.slane %v5067_v49, 1  ;;  %v758_v26 = vsel %vm695_vm0, %v755_v37, %v757_v11 }
  0xea   : > { %7744 = vst [vmem:[#allocation34_spill] sm:$0xff] %v5513_v25  ;;  %v1039_v19 = vsel %vm976_vm1, %v1036_v3, %v1038_v27  ;;  %4464 = vperm.xlu2 %4172, %v4463_v61   ;;  %v860_v8 = vadd.f32 %v758_v26, %v534_v39  ;;  %v4458_v48 = vpack.i.bf16 %v4036_v40, %v4035_v5  ;;  %v7746_v12 = vrot.slane %v5098_v32, 2 }
  0xeb   : > { %v756_v47 = vsel %vm695_vm0, %v7745_v42, %v755_v37  ;;  %v4453_v57 = vpack.i.bf16 %v4032_v59, %v4031_v63  ;;  %v762_v13 = vsel %vm695_vm0, %v759_v41, %v761_v1  ;;  %v5527_v49 = vmul.f32 %v4302_v7, %v5365_v30 }
  0xec   : > { %v859_v35 = vadd.f32 %v756_v47, %v5092_v22  ;;  %v1037_v60 = vsel %vm976_vm1, %v7746_v12, %v1036_v3  ;;  %v4301_v17 = vunpack.i.l.bf16 %v4300_v29  ;;  %v5531_v27 = vadd.f32 %v1039_v19, %v860_v8  ;;  %4459 = vperm.xlu1 %4161, %v4458_v48   ;;  %v4245_v3 = vpop.permute.xlu0 %4244 }
  0xed   : > { %4454 = vperm.xlu0 %4150, %v4453_v57   ;;  %v4252_v22 = vunpack.i.h.bf16 %v4250_v24  ;;  %v4251_v39 = vunpack.i.l.bf16 %v4250_v24  ;;  %v5534_v59 = vadd.f32 %v1587_v0, %v5223_v21  ;;  %v7749_v63 = vrot.slane %v5447_v14, 5 }
  0xee   : > { %v5529_v37 = vadd.f32 %v1037_v60, %v859_v35  ;;  %7747 = vst [vmem:[#allocation35_spill] sm:$0xff] %v5531_v27  ;;  %v7750_v32 = vrot.slane %v5462_v51, 5  ;;  %v7561_v1 = vrot.slane %v5527_v49, 4  ;;  %v5545_v5 = vmul.f32 %v4301_v17, %v5365_v30 }
  0xef   : > { %7748 = vst [vmem:[#allocation36_spill] sm:$0xff] %v5534_v59  ;;  %v5547_v29 = vadd.f32 %v762_v13, %v536_v9  ;;  %v7752_v41 = vrot.slane %v5472_v15, 2  ;;  %v5555_v21 = vmul.f32 %v4302_v7, %v5368_v20  ;;  %v644_v0 = vmul.f32 %v4252_v22, %v4862_v52 }
  0xf0   : > { %v5541_v61 = vsel %vm1859_vm3, %v7750_v32, %v7749_v63  ;;  %v7562_v40 = vrot.slane %v5545_v5, 4  ;;  %v5560_v42 = vmul.f32 %v4301_v17, %v5368_v20  ;;  %v5563_v9 = vmul.f32 %v4252_v22, %v4864_v54  ;;  %v5593_v63 = vld [vmem:[%s4592_s22 + $0xa8] sm:$0xff]  }
  0xf1   : > { %7751 = vst [vmem:[#allocation37_spill] sm:$0xff] %v5541_v61  ;;  %v5552_v11 = vsel %vm976_vm1, %v1040_v55, %v7752_v41  ;;  %v643_v15 = vmul.f32 %v4251_v39, %v4862_v52  ;;  %v5567_v55 = vmul.f32 %v4302_v7, %v5440_v53  ;;  %v543_v47 = vmul.f32 %v4252_v22, %v4883_v16  ;;  %v5590_v22 = vld [vmem:[%s4592_s22 + $0xa0] sm:$0xff]  }
  0xf2   : > { %v773_v26 = vrot.slane %v644_v0, 1  ;;  %v5571_v19 = vmul.f32 %v4251_v39, %v4864_v54  ;;  %v1599_v24 = vsel %vm1574_vm2, %v7562_v40, %v7561_v1  ;;  %v1054_v35 = vrot.slane %v5563_v9, 2 }
  0xf3   : > { %v771_v8 = vrot.slane %v643_v15, 1  ;;  %v4247_v48 = vunpack.i.h.bf16 %v4245_v3  ;;  %v5581_v57 = vadd.f32 %v1599_v24, %v5342_v28  ;;  %v5584_v13 = vmul.f32 %v4301_v17, %v5440_v53  ;;  %v4123_v17 = vld [vmem:[%s4592_s22 + $0x98] sm:$0xff]  }
  0xf4   : > { %v7754_v12 = vrot.slane %v5253_v2, 1  ;;  %v7755_v0 = vrot.slane %v5273_v38, 2  ;;  %v542_v9 = vmul.f32 %v4251_v39, %v4883_v16  ;;  %v1052_v2 = vrot.slane %v5571_v19, 2 }
  0xf5   : > { %7753 = vst [vmem:[#allocation38_spill] sm:$0xff] %v5581_v57  ;;  %v774_v15 = vsel %vm695_vm0, %v771_v8, %v773_v26  ;;  %v642_v24 = vmul.f32 %v4247_v48, %v4862_v52  ;;  %v4246_v40 = vunpack.i.l.bf16 %v4245_v3  ;;  %v4055_v38 = vunpack.c.l.bf16 %v5593_v63  ;;  %v4315_v57 = vpop.permute.xlu2 %4314 }
  0xf6   : > { %v776_v60 = vsel %vm695_vm0, %v773_v26, %v7754_v12  ;;  %v1057_v28 = vsel %vm976_vm1, %v1054_v35, %v7755_v0  ;;  %v923_v12 = vmul.f32 %v4247_v48, %v4864_v54  ;;  %v541_v0 = vmul.f32 %v4247_v48, %v4883_v16 }
  0xf7   : > { %v869_v41 = vadd.f32 %v776_v60, %v543_v47  ;;  %v4051_v47 = vunpack.c.l.bf16 %v5590_v22  ;;  %v4122_v60 = vld [vmem:[%s4592_s22 + $0x90] sm:$0xff]   ;;  %v769_v39 = vrot.slane %v642_v24, 1  ;;  %v4047_v7 = vunpack.c.l.bf16 %v4123_v17  ;;  %v4265_v24 = vpop.permute.xlu1 %4264 }
  0xf8   : > { %v1050_v32 = vrot.slane %v923_v12, 2  ;;  %v868_v26 = vadd.f32 %v774_v15, %v542_v9  ;;  %v641_v19 = vmul.f32 %v4246_v40, %v4862_v52  ;;  %v922_v25 = vmul.f32 %v4246_v40, %v4864_v54 }
  0xf9   : > { %v5605_v1 = vadd.f32 %v1057_v28, %v869_v41  ;;  %v4478_v27 = vpack.i.bf16 %v4055_v38, %v4051_v47  ;;  %v772_v41 = vsel %vm695_vm0, %v769_v39, %v771_v8  ;;  %v4048_v28 = vunpack.c.h.bf16 %v4123_v17 }
  0xfa   : > { %v1053_v3 = vsel %vm976_vm1, %v1050_v32, %v1052_v2  ;;  %v867_v61 = vadd.f32 %v772_v41, %v541_v0  ;;  %v767_v59 = vrot.slane %v641_v19, 1  ;;  %v1048_v23 = vrot.slane %v922_v25, 2 }
  0xfb   : > { %7756 = vst [vmem:[#allocation39_spill] sm:$0xff] %v5605_v1  ;;  %v4043_v1 = vunpack.c.l.bf16 %v4122_v60  ;;  %4479 = vperm.xlu2 %4172, %v4478_v27   ;;  %v4044_v48 = vunpack.c.h.bf16 %v4122_v60  ;;  %v540_v9 = vmul.f32 %v4246_v40, %v4883_v16  ;;  %v4473_v15 = vpack.i.bf16 %v4048_v28, %v4047_v7 }
  0xfc   : > { %v4317_v12 = vunpack.i.h.bf16 %v4315_v57  ;;  %v4316_v43 = vunpack.i.l.bf16 %v4315_v57  ;;  %v5616_v44 = vadd.f32 %v1053_v3, %v867_v61  ;;  %v7758_v47 = vrot.slane %v5149_v36, 1 }
  0xfd   : > { %v770_v17 = vsel %vm695_vm0, %v767_v59, %v769_v39  ;;  %v7759_v38 = vrot.slane %v5153_v33, 2  ;;  %v5627_v27 = vadd.f32 %v5552_v11, %v5547_v29  ;;  %4474 = vperm.xlu1 %4161, %v4473_v15   ;;  %v4468_v7 = vpack.i.bf16 %v4044_v48, %v4043_v1  ;;  %v4260_v39 = vpop.permute.xlu0 %4259 }
  0xfe   : > { %7757 = vst [vmem:[#allocation40_spill] sm:$0xff] %v5616_v44  ;;  %v768_v8 = vsel %vm695_vm0, %v7758_v47, %v767_v59  ;;  %v4267_v61 = vunpack.i.h.bf16 %v4265_v24  ;;  %v866_v36 = vadd.f32 %v770_v17, %v540_v9  ;;  %v5632_v60 = vmul.f32 %v4317_v12, %v5365_v30 }
  0xff   : > { %v1049_v25 = vsel %vm976_vm1, %v7759_v38, %v1048_v23  ;;  %v865_v40 = vadd.f32 %v768_v8, %v5229_v18  ;;  %v5635_v59 = vmul.f32 %v4316_v43, %v5365_v30  ;;  %v7760_v33 = vrot.slane %v5555_v21, 5  ;;  %4469 = vperm.xlu0 %4150, %v4468_v7   ;;  %v5680_v38 = vld [vmem:[%s4592_s22 + $0xc0] sm:$0xff]  }
 0x100   : > { %v7761_v0 = vrot.slane %v5560_v42, 5  ;;  %v1055_v1 = vsel %vm976_vm1, %v1052_v2, %v1054_v35  ;;  %v1051_v41 = vsel %vm976_vm1, %v1048_v23, %v1050_v32  ;;  %v7564_v3 = vrot.slane %v5632_v60, 4 }
 0x101   : > { %v5646_v11 = vadd.f32 %v1049_v25, %v865_v40  ;;  %v5648_v19 = vadd.f32 %v1055_v1, %v868_v26  ;;  %v7565_v28 = vrot.slane %v5635_v59, 4  ;;  %v5654_v48 = vmul.f32 %v4317_v12, %v5368_v20 }
 0x102   : > { %v5642_v29 = vsel %vm1859_vm3, %v7761_v0, %v7760_v33  ;;  %v5657_v9 = vmul.f32 %v4317_v12, %v5440_v53  ;;  %v649_v35 = vmul.f32 %v4267_v61, %v4862_v52  ;;  %v5661_v2 = vmul.f32 %v4267_v61, %v4864_v54  ;;  %v5687_v33 = vld [vmem:[%s4592_s22 + $0xb8] sm:$0xff]  }
 0x103   : > { %v5663_v26 = vadd.f32 %v1051_v41, %v866_v36  ;;  %v1611_v23 = vsel %vm1574_vm2, %v7565_v28, %v7564_v3  ;;  %v4262_v32 = vunpack.i.h.bf16 %v4260_v39  ;;  %v4261_v15 = vunpack.i.l.bf16 %v4260_v39  ;;  %v4126_v36 = vld [vmem:[%s4592_s22 + $0xb0] sm:$0xff]  }
 0x104   : > { %v5671_v12 = vadd.f32 %v1611_v23, %v5337_v50  ;;  %v5674_v47 = vmul.f32 %v4316_v43, %v5368_v20  ;;  %v5677_v8 = vmul.f32 %v4316_v43, %v5440_v53  ;;  %v4266_v17 = vunpack.i.l.bf16 %v4265_v24  ;;  %v4330_v50 = vpop.permute.xlu2 %4329 }
 0x105   : > { %7762 = vst [vmem:[#allocation41_spill] sm:$0xff] %v5663_v26  ;;  %v783_v25 = vrot.slane %v649_v35, 1  ;;  %v1064_v40 = vrot.slane %v5661_v2, 2  ;;  %v648_v7 = vmul.f32 %v4262_v32, %v4862_v52  ;;  %v929_v61 = vmul.f32 %v4262_v32, %v4864_v54 }
 0x106   : > { %7763 = vst [vmem:[#allocation42_spill] sm:$0xff] %v5671_v12  ;;  %v647_v0 = vmul.f32 %v4261_v15, %v4862_v52  ;;  %v928_v43 = vmul.f32 %v4261_v15, %v4864_v54  ;;  %v4052_v24 = vunpack.c.h.bf16 %v5590_v22  ;;  %v547_v1 = vmul.f32 %v4262_v32, %v4883_v16  ;;  %v4280_v12 = vpop.permute.xlu1 %4279 }
 0x107   : > { %v781_v39 = vrot.slane %v648_v7, 1  ;;  %v1062_v41 = vrot.slane %v929_v61, 2  ;;  %v2416_v35 = vunpack.c.l.bf16 %v5680_v38  ;;  %v4060_v18 = vunpack.c.h.bf16 %v4126_v36 }
 0x108   : > { %v779_v2 = vrot.slane %v647_v0, 1  ;;  %v1060_v23 = vrot.slane %v928_v43, 2  ;;  %v4064_v57 = vunpack.c.h.bf16 %v5687_v33  ;;  %v548_v3 = vmul.f32 %v4266_v17, %v4883_v16 }
 0x109   : > { %v784_v28 = vsel %vm695_vm0, %v781_v39, %v783_v25  ;;  %v1065_v52 = vsel %vm976_vm1, %v1062_v41, %v1064_v40  ;;  %v4493_v54 = vpack.i.bf16 %v4052_v24, %v2416_v35  ;;  %v7764_v7 = vrot.slane %v5250_v34, 1 }
 0x10a   : > { %v873_v32 = vadd.f32 %v784_v28, %v547_v1  ;;  %v7765_v0 = vrot.slane %v5261_v62, 2  ;;  %v874_v44 = vadd.f32 %v783_v25, %v548_v3  ;;  %v4488_v24 = vpack.i.bf16 %v4064_v57, %v4060_v18 }
 0x10b   : > { %v780_v61 = vsel %vm695_vm0, %v7764_v7, %v779_v2  ;;  %4494 = vperm.xlu2 %4172, %v4493_v54   ;;  %v4056_v28 = vunpack.c.h.bf16 %v5593_v63  ;;  %v4059_v1 = vunpack.c.l.bf16 %v4126_v36  ;;  %v4332_v34 = vunpack.i.h.bf16 %v4330_v50  ;;  %v4275_v36 = vpop.permute.xlu0 %4274 }
 0x10c   : > { %v1061_v43 = vsel %vm976_vm1, %v7765_v0, %v1060_v23  ;;  %v871_v26 = vadd.f32 %v780_v61, %v5247_v4  ;;  %v5708_v35 = vadd.f32 %v1065_v52, %v873_v32  ;;  %4489 = vperm.xlu1 %4161, %v4488_v24   ;;  %v4331_v62 = vunpack.i.l.bf16 %v4330_v50 }
 0x10d   : > { %v4282_v0 = vunpack.i.h.bf16 %v4280_v12  ;;  %v546_v17 = vmul.f32 %v4261_v15, %v4883_v16  ;;  %v782_v3 = vsel %vm695_vm0, %v779_v2, %v781_v39  ;;  %v4483_v4 = vpack.i.bf16 %v4059_v1, %v4056_v28 }
 0x10e   : > { %7766 = vst [vmem:[#allocation43_spill] sm:$0xff] %v5708_v35  ;;  %v5712_v22 = vadd.f32 %v1061_v43, %v871_v26  ;;  %v5717_v57 = vmul.f32 %v4332_v34, %v5365_v30  ;;  %v5720_v18 = vmul.f32 %v4332_v34, %v5368_v20  ;;  %v5723_v63 = vmul.f32 %v4331_v62, %v5365_v30 }
 0x10f   : > { %v5726_v26 = vmul.f32 %v4331_v62, %v5368_v20  ;;  %v1486_v25 = vmul.f32 %v4282_v0, %v5365_v30  ;;  %v7767_v16 = vrot.slane %v5654_v48, 5  ;;  %v7768_v15 = vrot.slane %v5674_v47, 5  ;;  %4484 = vperm.xlu0 %4150, %v4483_v4  }
 0x110   : > { %v5736_v39 = vadd.f32 %v1064_v40, %v874_v44  ;;  %v7566_v2 = vrot.slane %v5717_v57, 4  ;;  %v1771_v52 = vmul.f32 %v4282_v0, %v5368_v20  ;;  %v872_v54 = vadd.f32 %v782_v3, %v546_v17 }
 0x111   : > { %v5734_v50 = vsel %vm1859_vm3, %v7768_v15, %v7767_v16  ;;  %v1063_v32 = vsel %vm976_vm1, %v1060_v23, %v1062_v41  ;;  %v7567_v61 = vrot.slane %v5723_v63, 4  ;;  %v1582_v43 = vrot.slane %v1486_v25, 4 }
 0x112   : > { %7769 = vst [vmem:[#allocation44_spill] sm:$0xff] %v5736_v39  ;;  %v5743_v24 = vmul.f32 %v4332_v34, %v5440_v53  ;;  %v5746_v28 = vmul.f32 %v4331_v62, %v5440_v53  ;;  %v4281_v1 = vunpack.i.l.bf16 %v4280_v12  ;;  %v4277_v44 = vunpack.i.h.bf16 %v4275_v36 }
 0x113   : > { %v7568_v40 = vrot.slane %v5720_v18, 5  ;;  %v1623_v17 = vsel %vm1574_vm2, %v7567_v61, %v7566_v2  ;;  %v7569_v41 = vrot.slane %v5726_v26, 5  ;;  %v4276_v23 = vunpack.i.l.bf16 %v4275_v36 }
 0x114   : > { %7770 = vst [vmem:[#allocation45_spill] sm:$0xff] %v5743_v24  ;;  %v5756_v3 = vadd.f32 %v1623_v17, %v5428_v6  ;;  %v1867_v34 = vrot.slane %v1771_v52, 5  ;;  %v5759_v62 = vmul.f32 %v4282_v0, %v5440_v53  ;;  %v1485_v12 = vmul.f32 %v4281_v1, %v5365_v30  ;;  %v3015_v17 = vld [vmem:[%s4592_s22 + $0x14] sm:$0xe] }
 0x115   : > { %7771 = vst [vmem:[#allocation46_spill] sm:$0xff] %v5746_v28  ;;  %v7773_v4 = vrot.slane %v5454_v45, 4  ;;  %v1770_v16 = vmul.f32 %v4281_v1, %v5368_v20  ;;  %v5767_v15 = vmul.f32 %v4281_v1, %v5440_v53  ;;  %v1484_v36 = vmul.f32 %v4277_v44, %v5365_v30 }
 0x116   : > { %7772 = vst [vmem:[#allocation47_spill] sm:$0xff] %v5759_v62  ;;  %v1580_v7 = vrot.slane %v1485_v12, 4  ;;  %v1769_v6 = vmul.f32 %v4277_v44, %v5368_v20  ;;  %v5772_v0 = vmul.f32 %v4277_v44, %v5440_v53  ;;  %v1483_v52 = vmul.f32 %v4276_v23, %v5365_v30  ;;  %v7782_v62 = vld [vmem:[#allocation13_spill] sm:$0xff] }
 0x117   : > { %v1585_v25 = vsel %vm1574_vm2, %v1582_v43, %v7773_v4  ;;  %7774 = vst [vmem:[#allocation48_spill] sm:$0xff] %v5767_v15  ;;  %v5775_v45 = vadd.f32 %v1063_v32, %v872_v54  ;;  %v1865_v4 = vrot.slane %v1770_v16, 5  ;;  %v1578_v2 = vrot.slane %v1484_v36, 4  ;;  %v4295_v32 = vpop.permute.xlu1 %4294 }
 0x118   : > { %7775 = vst [vmem:[#allocation49_spill] sm:$0xff] %v5772_v0  ;;  %v5783_v1 = vsel %vm1859_vm3, %v7569_v41, %v7568_v40  ;;  %v1583_v44 = vsel %vm1574_vm2, %v1580_v7, %v1582_v43  ;;  %v1576_v61 = vrot.slane %v1483_v52, 4  ;;  %v7778_v39 = vrot.slane %v5462_v51, 5  ;;  %v2370_v40 = vld [vmem:[%s4592_s22 + $0xc4] sm:$0x7]  ;;  %v4345_v41 = vpop.permute.xlu2 %4344 }
 0x119   : > { %7776 = vst [vmem:[#allocation50_spill] sm:$0xff] %v5775_v45  ;;  %v5794_v16 = vadd.f32 %v1585_v25, %v5158_v10  ;;  %v5797_v36 = vmul.f32 %v4276_v23, %v5368_v20  ;;  %v1863_v43 = vrot.slane %v1769_v6, 5  ;;  %v7781_v51 = vrot.slane %v5383_v46, 4 }
 0x11a   : > { %7777 = vst [vmem:[#allocation51_spill] sm:$0xff] %v5783_v1  ;;  %v5790_v54 = vsel %vm1859_vm3, %v1867_v34, %v7778_v39  ;;  %v5809_v10 = vadd.f32 %v1583_v44, %v7782_v62  ;;  %v5812_v25 = vsel %vm1859_vm3, %v1865_v4, %v1867_v34  ;;  %v3018_v12 = vunpack.c.l.bf16 %v3015_v17 }
 0x11b   : > { %7779 = vst [vmem:[#allocation52_spill] sm:$0xff] %v5790_v54  ;;  %v5806_v39 = vsel %vm1574_vm2, %v7781_v51, %v1576_v61  ;;  %v1581_v54 = vsel %vm1574_vm2, %v1578_v2, %v1580_v7  ;;  %v4063_v6 = vunpack.c.l.bf16 %v5687_v33  ;;  %v2417_v52 = vunpack.c.l.bf16 %v2370_v40 }
 0x11c   : > { %7780 = vst [vmem:[#allocation53_spill] sm:$0xff] %v5794_v16  ;;  %v2738_v16 = vunpack.c.h.bf16 %v5680_v38  ;;  %v4347_v0 = vunpack.i.h.bf16 %v4345_v41  ;;  %v1579_v46 = vsel %vm1574_vm2, %v1576_v61, %v1578_v2  ;;  %v7578_v51 = vrot.slane %v5797_v36, 5  ;;  %v7786_v38 = vld [vmem:[#allocation17_spill] sm:$0xff] }
 0x11d   : > { %7783 = vst [vmem:[#allocation13_spill] sm:$0xff] %v5809_v10  ;;  %v4346_v15 = vunpack.i.l.bf16 %v4345_v41  ;;  %v4297_v28 = vunpack.i.h.bf16 %v4295_v32  ;;  %v4498_v44 = vpack.i.bf16 %v2417_v52, %v4063_v6  ;;  %v5823_v7 = vsel %vm1859_vm3, %v1863_v43, %v1865_v4 }
 0x11e   : > { %7784 = vst [vmem:[#allocation54_spill] sm:$0xff] %v5812_v25  ;;  %v4503_v62 = vpack.i.bf16 %v3018_v12, %v2738_v16  ;;  %v5820_v34 = vmul.f32 %v4347_v0, %v5365_v30  ;;  %v4296_v25 = vunpack.i.l.bf16 %v4295_v32  ;;  %v5826_v17 = vadd.f32 %v1581_v54, %v7786_v38  ;;  %v7788_v12 = vld [vmem:[#allocation15_spill] sm:$0xff] }
 0x11f   : > { %7785 = vst [vmem:[#allocation55_spill] sm:$0xff] %v5823_v7  ;;  %v5829_v33 = vmul.f32 %v4347_v0, %v5368_v20  ;;  %v5832_v2 = vmul.f32 %v4346_v15, %v5365_v30  ;;  %4499 = vperm.xlu0 %4150, %v4498_v44   ;;  %v5836_v40 = vmul.f32 %v4346_v15, %v5368_v20  ;;  %v7796_v7 = vrot.slane %v5560_v42, 5 }
 0x120   : > { %7787 = vst [vmem:[#allocation17_spill] sm:$0xff] %v5826_v17  ;;  %4504 = vperm.xlu1 %4161, %v4503_v62   ;;  %v7579_v61 = vrot.slane %v5820_v34, 4  ;;  %v1492_v41 = vmul.f32 %v4297_v28, %v5365_v30  ;;  %v1777_v4 = vmul.f32 %v4297_v28, %v5368_v20  ;;  %v5841_v54 = vadd.f32 %v1579_v46, %v7788_v12 }
 0x121   : > { %v5846_v32 = vsel %vm1859_vm3, %v7578_v51, %v1863_v43  ;;  %v5849_v16 = vmul.f32 %v4276_v23, %v5440_v53  ;;  %v7580_v52 = vrot.slane %v5832_v2, 4  ;;  %v5853_v6 = vmul.f32 %v4347_v0, %v5440_v53  ;;  %v4290_v51 = vpop.permute.xlu0 %4289 }
 0x122   : > { %7789 = vst [vmem:[#allocation15_spill] sm:$0xff] %v5841_v54  ;;  %v1594_v62 = vrot.slane %v1492_v41, 4  ;;  %v1879_v44 = vrot.slane %v1777_v4, 5  ;;  %v1491_v38 = vmul.f32 %v4296_v25, %v5365_v30  ;;  %v5863_v23 = vmul.f32 %v4346_v15, %v5440_v53  ;;  %v7798_v15 = vld [vmem:[#allocation9_spill] sm:$0xff] }
 0x123   : > { %7790 = vst [vmem:[#allocation56_spill] sm:$0xff] %v5846_v32  ;;  %v1635_v43 = vsel %vm1574_vm2, %v7580_v52, %v7579_v61  ;;  %v1776_v12 = vmul.f32 %v4296_v25, %v5368_v20  ;;  %v7795_v4 = vrot.slane %v5545_v5, 4  ;;  %v4360_v61 = vpop.permute.xlu2 %4359  ;;  %v5882_v32 = vmul.f32 %v4297_v28, %v5440_v53  ;;  %v4310_v5 = vpop.permute.xlu1 %4309 }
 0x124   : > { %7791 = vst [vmem:[#allocation57_spill] sm:$0xff] %v5849_v16  ;;  %v5867_v0 = vadd.f32 %v1635_v43, %v5529_v37  ;;  %v5876_v17 = vsel %vm1859_vm3, %v1879_v44, %v7796_v7  ;;  %v1592_v37 = vrot.slane %v1491_v38, 4  ;;  %v5885_v43 = vmul.f32 %v4296_v25, %v5440_v53  ;;  %v7805_v25 = vld [vmem:[#allocation6_spill] sm:$0xff] }
 0x125   : > { %7792 = vst [vmem:[#allocation58_spill] sm:$0xff] %v5853_v6  ;;  %v1597_v46 = vsel %vm1574_vm2, %v1594_v62, %v7795_v4  ;;  %v4292_v41 = vunpack.i.h.bf16 %v4290_v51  ;;  %v4291_v42 = vunpack.i.l.bf16 %v4290_v51  ;;  %v7803_v28 = vrot.slane %v5836_v40, 5 }
 0x126   : > { %7793 = vst [vmem:[#allocation59_spill] sm:$0xff] %v5863_v23  ;;  %v5879_v52 = vadd.f32 %v1597_v46, %v7798_v15  ;;  %v4362_v46 = vunpack.i.h.bf16 %v4360_v61  ;;  %v7802_v15 = vrot.slane %v5829_v33, 5  ;;  %v4361_v23 = vunpack.i.l.bf16 %v4360_v61 }
 0x127   : > { %7794 = vst [vmem:[#allocation60_spill] sm:$0xff] %v5867_v0  ;;  %v1877_v0 = vrot.slane %v1776_v12, 5  ;;  %v1490_v4 = vmul.f32 %v4292_v41, %v5365_v30  ;;  %v1775_v51 = vmul.f32 %v4292_v41, %v5368_v20  ;;  %v1489_v12 = vmul.f32 %v4291_v42, %v5365_v30 }
 0x128   : > { %7797 = vst [vmem:[#allocation61_spill] sm:$0xff] %v5876_v17  ;;  %v1595_v17 = vsel %vm1574_vm2, %v1592_v37, %v1594_v62  ;;  %v5896_v38 = vsel %vm1859_vm3, %v7803_v28, %v7802_v15  ;;  %v5907_v15 = vmul.f32 %v4292_v41, %v5440_v53  ;;  %v4312_v7 = vunpack.i.h.bf16 %v4310_v5 }
 0x129   : > { %7799 = vst [vmem:[#allocation9_spill] sm:$0xff] %v5879_v52  ;;  %v5899_v52 = vadd.f32 %v1595_v17, %v7805_v25  ;;  %v1590_v6 = vrot.slane %v1490_v4, 4  ;;  %v1875_v54 = vrot.slane %v1775_v51, 5  ;;  %v1774_v17 = vmul.f32 %v4291_v42, %v5368_v20  ;;  %v7810_v4 = vld [vmem:[#allocation7_spill] sm:$0xff] }
 0x12a   : > { %7800 = vst [vmem:[#allocation62_spill] sm:$0xff] %v5882_v32  ;;  %v5911_v28 = vsel %vm1859_vm3, %v1877_v0, %v1879_v44  ;;  %v1588_v25 = vrot.slane %v1489_v12, 4  ;;  %v5921_v61 = vmul.f32 %v4362_v46, %v5368_v20  ;;  %v4311_v41 = vunpack.i.l.bf16 %v4310_v5 }
 0x12b   : > { %7801 = vst [vmem:[#allocation63_spill] sm:$0xff] %v5885_v43  ;;  %v1593_v62 = vsel %vm1574_vm2, %v1590_v6, %v1592_v37  ;;  %v5918_v43 = vsel %vm1859_vm3, %v1875_v54, %v1877_v0  ;;  %v7812_v44 = vrot.slane %v5444_v58, 4  ;;  %v7813_v0 = vld [vmem:[#allocation12_spill] sm:$0xff]  ;;  %v1873_v5 = vrot.slane %v1774_v17, 5 }
 0x12c   : > { %7804 = vst [vmem:[#allocation64_spill] sm:$0xff] %v5896_v38  ;;  %v5924_v51 = vadd.f32 %v1593_v62, %v7810_v4  ;;  %v1591_v32 = vsel %vm1574_vm2, %v1588_v25, %v1590_v6  ;;  %v7814_v38 = vld [vmem:[#allocation11_spill] sm:$0xff]  ;;  %v5942_v58 = vmul.f32 %v4361_v23, %v5365_v30  ;;  %v5945_v4 = vmul.f32 %v4361_v23, %v5368_v20 }
 0x12d   : > { %7806 = vst [vmem:[#allocation6_spill] sm:$0xff] %v5899_v52  ;;  %v5914_v52 = vmul.f32 %v4362_v46, %v5365_v30  ;;  %v1589_v12 = vsel %vm1574_vm2, %v7812_v44, %v1588_v25  ;;  %v5938_v10 = vadd.f32 %v1591_v32, %v7814_v38  ;;  %v1498_v6 = vmul.f32 %v4312_v7, %v5365_v30 }
 0x12e   : > { %7807 = vst [vmem:[#allocation65_spill] sm:$0xff] %v5907_v15  ;;  %v1783_v25 = vmul.f32 %v4312_v7, %v5368_v20  ;;  %v1497_v44 = vmul.f32 %v4311_v41, %v5365_v30  ;;  %v1782_v32 = vmul.f32 %v4311_v41, %v5368_v20  ;;  %v5953_v38 = vmul.f32 %v4362_v46, %v5440_v53 }
 0x12f   : > { %7808 = vst [vmem:[#allocation66_spill] sm:$0xff] %v5911_v28  ;;  %v5931_v28 = vmul.f32 %v4291_v42, %v5440_v53  ;;  %v7593_v17 = vrot.slane %v5942_v58, 4  ;;  %v5961_v42 = vmul.f32 %v4312_v7, %v5440_v53  ;;  %v7820_v24 = vrot.slane %v5635_v59, 4 }
 0x130   : > { %7809 = vst [vmem:[#allocation67_spill] sm:$0xff] %v5918_v43  ;;  %v5935_v43 = vadd.f32 %v1589_v12, %v7813_v0  ;;  %v5957_v12 = vmul.f32 %v4361_v23, %v5440_v53  ;;  %v1606_v0 = vrot.slane %v1498_v6, 4  ;;  %v1891_v62 = vrot.slane %v1783_v25, 5  ;;  %v4375_v25 = vpop.permute.xlu2 %4374 }
 0x131   : > { %7811 = vst [vmem:[#allocation7_spill] sm:$0xff] %v5924_v51  ;;  %v1604_v15 = vrot.slane %v1497_v44, 4  ;;  %v4305_v51 = vpop.permute.xlu0 %4304  ;;  %v1889_v35 = vrot.slane %v1782_v32, 5  ;;  %v5972_v6 = vmul.f32 %v4311_v41, %v5440_v53  ;;  %v7823_v44 = vld [vmem:[#allocation8_spill] sm:$0xff]  ;;  %v7825_v45 = vrot.slane %v5674_v47, 5  ;;  %v4325_v41 = vpop.permute.xlu1 %4324 }
 0x132   : > { %7815 = vst [vmem:[#allocation12_spill] sm:$0xff] %v5938_v10  ;;  %v7819_v10 = vrot.slane %v5914_v52, 4  ;;  %v1609_v23 = vsel %vm1574_vm2, %v1606_v0, %v7820_v24  ;;  %v7827_v24 = vrot.slane %v5447_v14, 5  ;;  %v7828_v32 = vld [vmem:[#allocation16_spill] sm:$0xff] }
 0x133   : > { %7816 = vst [vmem:[#allocation11_spill] sm:$0xff] %v5953_v38  ;;  %v5978_v37 = vadd.f32 %v1609_v23, %v7823_v44  ;;  %v5983_v1 = vsel %vm1859_vm3, %v1891_v62, %v7825_v45  ;;  %v1607_v59 = vsel %vm1574_vm2, %v1604_v15, %v1606_v0  ;;  %v5996_v23 = vsel %vm1859_vm3, %v1873_v5, %v1875_v54  ;;  %v7842_v38 = vld [vmem:[#allocation18_spill] sm:$0xff] }
 0x134   : > { %7817 = vst [vmem:[#allocation68_spill] sm:$0xff] %v5957_v12  ;;  %v1647_v46 = vsel %vm1574_vm2, %v7593_v17, %v7819_v10  ;;  %v5989_v10 = vsel %vm1859_vm3, %v7827_v24, %v1873_v5  ;;  %v4306_v45 = vunpack.i.l.bf16 %v4305_v51  ;;  %v4377_v44 = vunpack.i.h.bf16 %v4375_v25 }
 0x135   : > { %7818 = vst [vmem:[#allocation69_spill] sm:$0xff] %v5961_v42  ;;  %v5975_v7 = vadd.f32 %v1647_v46, %v5646_v11  ;;  %v5993_v11 = vadd.f32 %v1607_v59, %v7828_v32  ;;  %v4307_v46 = vunpack.i.h.bf16 %v4305_v51  ;;  %v7831_v59 = vrot.slane %v5921_v61, 5 }
 0x136   : > { %7821 = vst [vmem:[#allocation70_spill] sm:$0xff] %v5972_v6  ;;  %v7832_v32 = vrot.slane %v5945_v4, 5  ;;  %v6011_v5 = vsel %vm1859_vm3, %v1889_v35, %v1891_v62  ;;  %v1495_v0 = vmul.f32 %v4306_v45, %v5365_v30  ;;  %v6027_v51 = vmul.f32 %v4377_v44, %v5368_v20 }
 0x137   : > { %7822 = vst [vmem:[#allocation71_spill] sm:$0xff] %v5975_v7  ;;  %v1496_v24 = vmul.f32 %v4307_v46, %v5365_v30  ;;  %v1781_v17 = vmul.f32 %v4307_v46, %v5368_v20  ;;  %v6016_v42 = vmul.f32 %v4307_v46, %v5440_v53  ;;  %v7840_v6 = vrot.slane %v5527_v49, 4 }
 0x138   : > { %7824 = vst [vmem:[#allocation8_spill] sm:$0xff] %v5978_v37  ;;  %v6008_v54 = vsel %vm1859_vm3, %v7832_v32, %v7831_v59  ;;  %v1600_v37 = vrot.slane %v1495_v0, 4  ;;  %v4376_v59 = vunpack.i.l.bf16 %v4375_v25  ;;  %v4327_v32 = vunpack.i.h.bf16 %v4325_v41 }
 0x139   : > { %7826 = vst [vmem:[#allocation72_spill] sm:$0xff] %v5983_v1  ;;  %v1602_v14 = vrot.slane %v1496_v24, 4  ;;  %v1887_v47 = vrot.slane %v1781_v17, 5  ;;  %v1780_v1 = vmul.f32 %v4306_v45, %v5368_v20  ;;  %v4326_v17 = vunpack.i.l.bf16 %v4325_v41  ;;  %v7838_v24 = vld [vmem:[#allocation20_spill] sm:$0xff] }
 0x13a   : > { %7829 = vst [vmem:[#allocation16_spill] sm:$0xff] %v5993_v11  ;;  %v6020_v11 = vmul.f32 %v4377_v44, %v5365_v30  ;;  %v1601_v0 = vsel %vm1574_vm2, %v7840_v6, %v1600_v37  ;;  %v6037_v25 = vmul.f32 %v4306_v45, %v5440_v53  ;;  %v6048_v49 = vmul.f32 %v4376_v59, %v5365_v30 }
 0x13b   : > { %7830 = vst [vmem:[#allocation73_spill] sm:$0xff] %v5996_v23  ;;  %v1605_v62 = vsel %vm1574_vm2, %v1602_v14, %v1604_v15  ;;  %v1603_v12 = vsel %vm1574_vm2, %v1600_v37, %v1602_v14  ;;  %v1885_v41 = vrot.slane %v1780_v1, 5  ;;  %v6051_v6 = vmul.f32 %v4376_v59, %v5368_v20 }
 0x13c   : > { %7833 = vst [vmem:[#allocation74_spill] sm:$0xff] %v6008_v54  ;;  %v6030_v46 = vadd.f32 %v1605_v62, %v7838_v24  ;;  %v6044_v54 = vadd.f32 %v1603_v12, %v7842_v38  ;;  %v1504_v37 = vmul.f32 %v4327_v32, %v5365_v30  ;;  %v1789_v14 = vmul.f32 %v4327_v32, %v5368_v20 }
 0x13d   : > { %7834 = vst [vmem:[#allocation75_spill] sm:$0xff] %v6011_v5  ;;  %v6024_v5 = vsel %vm1859_vm3, %v1887_v47, %v1889_v35  ;;  %v7841_v35 = vld [vmem:[#allocation21_spill] sm:$0xff]  ;;  %v1503_v24 = vmul.f32 %v4326_v17, %v5365_v30  ;;  %v1788_v38 = vmul.f32 %v4326_v17, %v5368_v20  ;;  %v6059_v1 = vmul.f32 %v4377_v44, %v5440_v53 }
 0x13e   : > { %7835 = vst [vmem:[#allocation76_spill] sm:$0xff] %v6016_v42  ;;  %v7605_v12 = vrot.slane %v6048_v49, 4  ;;  %v1903_v62 = vrot.slane %v1789_v14, 5  ;;  %v6067_v45 = vmul.f32 %v4327_v32, %v5440_v53  ;;  %v7848_v7 = vrot.slane %v5723_v63, 4  ;;  %v7851_v32 = vld [vmem:[#allocation10_spill] sm:$0xff] }
 0x13f   : > { %7836 = vst [vmem:[#allocation77_spill] sm:$0xff] %v6020_v11  ;;  %v1616_v42 = vrot.slane %v1503_v24, 4  ;;  %v1901_v23 = vrot.slane %v1788_v38, 5  ;;  %v7853_v15 = vrot.slane %v5726_v26, 5  ;;  %v3780_v63 = vld [vmem:[%s7512_s1 + $0x6] sm:$0x1] }
 0x140   : > { %7837 = vst [vmem:[#allocation78_spill] sm:$0xff] %v6024_v5  ;;  %v6041_v5 = vadd.f32 %v1601_v0, %v7841_v35  ;;  %v6063_v0 = vmul.f32 %v4376_v59, %v5440_v53  ;;  %v1618_v35 = vrot.slane %v1504_v37, 4  ;;  %v6078_v37 = vmul.f32 %v4326_v17, %v5440_v53  ;;  %v7856_v38 = vld [vmem:[#allocation22_spill] sm:$0xff] }
 0x141   : > { %7839 = vst [vmem:[#allocation20_spill] sm:$0xff] %v6030_v46  ;;  %v4320_v46 = vpop.permute.xlu0 %4319 }
 0x142   : > { %7843 = vst [vmem:[#allocation21_spill] sm:$0xff] %v6044_v54  ;;  %v7847_v54 = vrot.slane %v6020_v11, 4  ;;  %v1621_v59 = vsel %vm1574_vm2, %v1618_v35, %v7848_v7  ;;  %v6089_v11 = vsel %vm1859_vm3, %v1903_v62, %v7853_v15  ;;  %v7855_v7 = vrot.slane %v5555_v21, 5  ;;  %v3781_v21 = vld [vmem:[%s7512_s1 + $0x7] sm:$0x1] }
 0x143   : > { %7844 = vst [vmem:[#allocation18_spill] sm:$0xff] %v6059_v1  ;;  %v6084_v24 = vadd.f32 %v1621_v59, %v7851_v32  ;;  %v4322_v26 = vunpack.i.h.bf16 %v4320_v46  ;;  %v6105_v15 = vsel %vm1859_vm3, %v1885_v41, %v1887_v47  ;;  %v4321_v32 = vunpack.i.l.bf16 %v4320_v46 }
 0x144   : > { %7845 = vst [vmem:[#allocation79_spill] sm:$0xff] %v6063_v0  ;;  %v1659_v44 = vsel %vm1574_vm2, %v7605_v12, %v7847_v54  ;;  %v1619_v54 = vsel %vm1574_vm2, %v1616_v42, %v1618_v35  ;;  %v6098_v17 = vsel %vm1859_vm3, %v7855_v7, %v1885_v41  ;;  %v7859_v47 = vrot.slane %v6027_v51, 5 }
 0x145   : > { %7846 = vst [vmem:[#allocation80_spill] sm:$0xff] %v6067_v45  ;;  %v6081_v14 = vadd.f32 %v1659_v44, %v5712_v22  ;;  %v6102_v44 = vadd.f32 %v1619_v54, %v7856_v38  ;;  %v1502_v12 = vmul.f32 %v4322_v26, %v5365_v30  ;;  %v6115_v54 = vmul.f32 %v4322_v26, %v5368_v20  ;;  %v4390_v22 = vpop.permute.xlu2 %4389 }
 0x146   : > { %7849 = vst [vmem:[#allocation81_spill] sm:$0xff] %v6078_v37  ;;  %v2418_v38 = vunpack.c.l.bf16 %v3780_v63  ;;  %v7860_v41 = vrot.slane %v6051_v6, 5  ;;  %v6125_v46 = vsel %vm1859_vm3, %v1901_v23, %v1903_v62  ;;  %v1501_v7 = vmul.f32 %v4321_v32, %v5365_v30 }
 0x147   : > { %7850 = vst [vmem:[#allocation82_spill] sm:$0xff] %v6081_v14  ;;  %v1614_v14 = vrot.slane %v1502_v12, 4  ;;  %v1899_v1 = vrot.slane %v6115_v54, 5  ;;  %v6131_v63 = vmul.f32 %v4322_v26, %v5440_v53  ;;  %v2739_v0 = vunpack.c.l.bf16 %v3781_v21  ;;  %v4340_v12 = vpop.permute.xlu1 %4339 }
 0x148   : > { %7852 = vst [vmem:[#allocation10_spill] sm:$0xff] %v6084_v24  ;;  %v6122_v35 = vsel %vm1859_vm3, %v7860_v41, %v7859_v47  ;;  %v1612_v45 = vrot.slane %v1501_v7, 4  ;;  %v4392_v47 = vunpack.i.h.bf16 %v4390_v22  ;;  %v6138_v59 = vperm.slane %v2418_v38, 0 }
 0x149   : > { %7854 = vst [vmem:[#allocation83_spill] sm:$0xff] %v6089_v11  ;;  %v1786_v11 = vmul.f32 %v4321_v32, %v5368_v20  ;;  %v1617_v41 = vsel %vm1574_vm2, %v1614_v14, %v1616_v42  ;;  %v6136_v62 = vsel %vm1859_vm3, %v1899_v1, %v1901_v23  ;;  %v7866_v26 = vrot.slane %v5632_v60, 4  ;;  %v4335_v42 = vpop.permute.xlu0 %4334 }
 0x14a   : > { %7857 = vst [vmem:[#allocation22_spill] sm:$0xff] %v6102_v44  ;;  %v6141_v54 = vadd.f32 %v1617_v41, %v5438_v56  ;;  %v1615_v7 = vsel %vm1574_vm2, %v1612_v45, %v1614_v14  ;;  %v6148_v37 = vmul.f32 %v4321_v32, %v5440_v53  ;;  %v6157_v56 = vperm.slane %v2739_v0, 0  ;;  %v7870_v41 = vld [vmem:[#allocation24_spill] sm:$0xff] }
 0x14b   : > { %7858 = vst [vmem:[#allocation84_spill] sm:$0xff] %v6105_v15  ;;  %v1613_v21 = vsel %vm1574_vm2, %v7866_v26, %v1612_v45  ;;  %v1711_v60 = vadd.f32 %v5806_v39, %v7870_v41  ;;  %v7871_v26 = vrot.slane %v5797_v36, 5  ;;  %v7872_v45 = vld [vmem:[#allocation25_spill] sm:$0xff]  ;;  %v4342_v23 = vunpack.i.h.bf16 %v4340_v12 }
 0x14c   : > { %7861 = vst [vmem:[#allocation85_spill] sm:$0xff] %v6122_v35  ;;  %v4391_v35 = vunpack.i.l.bf16 %v4390_v22  ;;  %v6152_v38 = vadd.f32 %v1613_v21, %v5339_v31  ;;  %v7868_v22 = vld [vmem:[#allocation23_spill] sm:$0xff]  ;;  %v7873_v14 = vrot.slane %v7872_v45, 5  ;;  %v2645_v31 = vmul.f32 %v4392_v47, %v6138_v59  ;;  %v3782_v36 = vld [vmem:[%s7512_s1 + $0x8] sm:$0x1] }
 0x14d   : > { %7862 = vst [vmem:[#allocation86_spill] sm:$0xff] %v6125_v46  ;;  %v4341_v21 = vunpack.i.l.bf16 %v4340_v12  ;;  %v1795_v39 = vmul.f32 %v4342_v23, %v5368_v20  ;;  %v6174_v41 = vmul.f32 %v4392_v47, %v6157_v56  ;;  %v7874_v12 = vrot.slane %v5849_v16, 6 }
 0x14e   : > { %7863 = vst [vmem:[#allocation87_spill] sm:$0xff] %v6131_v63  ;;  %v1862_v32 = vsel %vm1859_vm3, %v7873_v14, %v7871_v26  ;;  %v1897_v63 = vrot.slane %v1786_v11, 5  ;;  %v4336_v26 = vunpack.i.l.bf16 %v4335_v42  ;;  %v6183_v24 = vmul.f32 %v4342_v23, %v5440_v53 }
 0x14f   : > { %7864 = vst [vmem:[#allocation88_spill] sm:$0xff] %v6136_v62  ;;  %v6155_v62 = vadd.f32 %v1615_v7, %v7868_v22  ;;  %v4337_v7 = vunpack.i.h.bf16 %v4335_v42  ;;  %v1996_v22 = vadd.f32 %v1862_v32, %v1711_v60  ;;  %v1794_v11 = vmul.f32 %v4341_v21, %v5368_v20 }
 0x150   : > { %7865 = vst [vmem:[#allocation89_spill] sm:$0xff] %v6141_v54  ;;  %v2052_v54 = vmul.f32 %v4391_v35, %v5440_v53  ;;  %v1509_v35 = vmul.f32 %v4341_v21, %v5365_v30  ;;  %v1915_v45 = vrot.slane %v1795_v39, 5  ;;  %v3019_v47 = vunpack.c.l.bf16 %v3782_v36 }
 0x151   : > { %7867 = vst [vmem:[#allocation90_spill] sm:$0xff] %v6148_v37  ;;  %v1508_v14 = vmul.f32 %v4337_v7, %v5365_v30  ;;  %v7876_v44 = vrot.slane %v5832_v2, 4  ;;  %v7877_v42 = vrot.slane %v5836_v40, 5  ;;  %v6241_v2 = vmul.f32 %v4337_v7, %v5440_v53 }
 0x152   : > { %7869 = vst [vmem:[#allocation23_spill] sm:$0xff] %v6155_v62  ;;  %v2145_v0 = vrot.slane %v2052_v54, 6  ;;  %v1510_v62 = vmul.f32 %v4342_v23, %v5365_v30  ;;  %v1628_v46 = vrot.slane %v1509_v35, 4  ;;  %v1913_v35 = vrot.slane %v1794_v11, 5  ;;  %v7887_v11 = vld [vmem:[#allocation30_spill] sm:$0xff] }
 0x153   : > { %7875 = vst [vmem:[#allocation24_spill] sm:$0xff] %v6183_v24  ;;  %v6191_v16 = vsel %vm1859_vm3, %v1915_v45, %v7877_v42  ;;  %v7892_v42 = vld [vmem:[#allocation37_spill] sm:$0xff]  ;;  %v4350_v24 = vpop.permute.xlu0 %4349 }
 0x154   : > { %v2147_v54 = vsel %vm2144_vm4, %v2145_v0, %v7874_v12  ;;  %v1630_v60 = vrot.slane %v1510_v62, 4  ;;  %7878 = vst [vmem:[#allocation25_spill] sm:$0xff] %v6191_v16  ;;  %v6194_v62 = vmul.f32 %v4341_v21, %v5440_v53  ;;  %v1626_v0 = vrot.slane %v1508_v14, 4  ;;  %v4405_v21 = vpop.permute.xlu2 %4404 }
 0x155   : > { %v2281_v32 = vadd.f32 %v2147_v54, %v1996_v22  ;;  %v7881_v22 = vld [vmem:[#allocation14_spill] sm:$0xff]  ;;  %v6208_v54 = vmul.f32 %v4337_v7, %v5368_v20  ;;  %v4355_v7 = vpop.permute.xlu1 %4354  ;;  %v6279_v16 = vmul.f32 %v4336_v26, %v5440_v53 }
 0x156   : > { %v1633_v15 = vsel %vm1574_vm2, %v1630_v60, %v7876_v44  ;;  %7879 = vst [vmem:[#allocation91_spill] sm:$0xff] %v6194_v62  ;;  %v1631_v36 = vsel %vm1574_vm2, %v1628_v46, %v1630_v60  ;;  %v7883_v44 = vld [vmem:[#allocation26_spill] sm:$0xff]  ;;  %v1629_v40 = vsel %vm1574_vm2, %v1626_v0, %v1628_v46 }
 0x157   : > { %v6196_v39 = vadd.f32 %v2645_v31, %v2281_v32  ;;  %v6199_v23 = vadd.f32 %v1633_v15, %v7881_v22  ;;  %v6204_v12 = vadd.f32 %v1631_v36, %v7883_v44  ;;  %v7885_v31 = vrot.slane %v5654_v48, 5 }
 0x158   : > { %v6216_v15 = vsel %vm1859_vm3, %v1897_v63, %v1899_v1  ;;  %v6219_v60 = vadd.f32 %v1629_v40, %v7887_v11  ;;  %v1507_v32 = vmul.f32 %v4336_v26, %v5365_v30  ;;  %v7617_v36 = vrot.slane %v6208_v54, 5  ;;  %v7891_v11 = vld [vmem:[#allocation36_spill] sm:$0xff] }
 0x159   : > { %7880 = vst [vmem:[#allocation92_spill] sm:$0xff] %v6196_v39  ;;  %v6213_v14 = vsel %vm1859_vm3, %v7885_v31, %v1897_v63  ;;  %v6227_v48 = vsel %vm1859_vm3, %v1913_v35, %v1915_v45  ;;  %v6229_v31 = vperm.slane %v3019_v47, 0  ;;  %v4407_v1 = vunpack.i.h.bf16 %v4405_v21 }
 0x15a   : > { %7882 = vst [vmem:[#allocation14_spill] sm:$0xff] %v6199_v23  ;;  %v1624_v44 = vrot.slane %v1507_v32, 4  ;;  %v6234_v63 = vsel %vm1859_vm3, %v7617_v36, %v1913_v35  ;;  %v4406_v40 = vunpack.i.l.bf16 %v4405_v21  ;;  %v2001_v46 = vadd.f32 %v7892_v42, %v7891_v11  ;;  %v7895_v35 = vld [vmem:[#allocation28_spill] sm:$0xff]  ;;  %v7896_v36 = vld [vmem:[#allocation27_spill] sm:$0xff] }
 0x15b   : > { %7884 = vst [vmem:[#allocation26_spill] sm:$0xff] %v6204_v12  ;;  %v2002_v22 = vadd.f32 %v5989_v10, %v5935_v43  ;;  %v7894_v45 = vrot.slane %v5717_v57, 4  ;;  %v6248_v39 = vmul.f32 %v4336_v26, %v5368_v20  ;;  %v2651_v43 = vmul.f32 %v4407_v1, %v6138_v59  ;;  %v7899_v11 = vld [vmem:[#allocation31_spill] sm:$0xff] }
 0x15c   : > { %7886 = vst [vmem:[#allocation93_spill] sm:$0xff] %v6216_v15  ;;  %v1627_v32 = vsel %vm1574_vm2, %v1624_v44, %v1626_v0  ;;  %v6258_v10 = vmul.f32 %v4407_v1, %v6157_v56  ;;  %v6261_v57 = vmul.f32 %v4407_v1, %v6229_v31  ;;  %v7900_v0 = vrot.slane %v7899_v11, 6 }
 0x15d   : > { %7888 = vst [vmem:[#allocation30_spill] sm:$0xff] %v6219_v60  ;;  %v1625_v47 = vsel %vm1574_vm2, %v7894_v45, %v1624_v44  ;;  %v6254_v42 = vadd.f32 %v1627_v32, %v7896_v36  ;;  %v7901_v44 = vld [vmem:[#allocation32_spill] sm:$0xff]  ;;  %v6276_v1 = vmul.f32 %v4406_v40, %v6157_v56  ;;  %v4356_v11 = vunpack.i.l.bf16 %v4355_v7 }
 0x15e   : > { %7889 = vst [vmem:[#allocation94_spill] sm:$0xff] %v6227_v48  ;;  %v6251_v21 = vadd.f32 %v1625_v47, %v7895_v35  ;;  %v7902_v45 = vrot.slane %v7901_v44, 6  ;;  %v7903_v47 = vrot.slane %v5931_v28, 6  ;;  %v7904_v36 = vmov %v7900_v0 }
 0x15f   : > { %7890 = vst [vmem:[#allocation95_spill] sm:$0xff] %v6234_v63  ;;  %v2650_v35 = vmul.f32 %v4406_v40, %v6138_v59  ;;  %v7624_v60 = vrot.slane %v6258_v10, 1  ;;  %v4352_v26 = vunpack.i.h.bf16 %v4350_v24 }
 0x160   : > { %7893 = vst [vmem:[#allocation36_spill] sm:$0xff] %v6241_v2  ;;  %v2157_v63 = vsel %vm2144_vm4, %v7902_v45, %v7900_v0  ;;  %v2159_v32 = vsel %vm2144_vm4, %v7904_v36, %v7903_v47  ;;  %v6282_v0 = vmul.f32 %v4406_v40, %v6229_v31  ;;  %v4357_v45 = vunpack.i.h.bf16 %v4355_v7  ;;  %v6303_v7 = vld [vmem:[#allocation3] ss:$0 sm:$0xff] }
 0x161   : > { %7897 = vst [vmem:[#allocation37_spill] sm:$0xff] %v6254_v42  ;;  %v2286_v42 = vadd.f32 %v2157_v63, %v2001_v46  ;;  %v2287_v62 = vadd.f32 %v2159_v32, %v2002_v22  ;;  %v7625_v46 = vrot.slane %v6276_v1, 1  ;;  %v1909_v40 = vrot.slane %v6248_v39, 5 }
 0x162   : > { %7898 = vst [vmem:[#allocation28_spill] sm:$0xff] %v6261_v57  ;;  %v1516_v63 = vmul.f32 %v4357_v45, %v5365_v30  ;;  %v6291_v32 = vmul.f32 %v4357_v45, %v5368_v20  ;;  %v7907_v2 = vrot.slane %v6261_v57, 2  ;;  %v7908_v48 = vrot.slane %v6282_v0, 2  ;;  %v4420_v57 = vpop.permute.xlu2 %4419 }
 0x163   : > { %7905 = vst [vmem:[#allocation27_spill] sm:$0xff] %v6279_v16  ;;  %v2695_v36 = vadd.f32 %v2650_v35, %v2286_v42  ;;  %v6285_v23 = vadd.f32 %v2651_v43, %v2287_v62  ;;  %v2848_v42 = vsel %vm695_vm0, %v7625_v46, %v7624_v60  ;;  %v1515_v62 = vmul.f32 %v4356_v11, %v5365_v30 }
 0x164   : > { %v6301_v43 = vmul.f32 %v4356_v11, %v5368_v20  ;;  %v1642_v22 = vrot.slane %v1516_v63, 4  ;;  %v7627_v47 = vrot.slane %v6291_v32, 5  ;;  %v3128_v60 = vsel %vm976_vm1, %v7908_v48, %v7907_v2  ;;  %v7913_v2 = vld [vmem:[#allocation19_spill] sm:$0xff] }
 0x165   : > { %7906 = vst [vmem:[#allocation31_spill] sm:$0xff] %v6285_v23  ;;  %v2975_v35 = vadd.f32 %v2848_v42, %v2695_v36  ;;  %v6313_v46 = vmul.f32 %v4357_v45, %v5440_v53  ;;  %v1640_v12 = vrot.slane %v1515_v62, 4  ;;  %v7910_v23 = vrot.slane %v5942_v58, 4 }
 0x166   : > { %v7911_v63 = vrot.slane %v5945_v4, 5  ;;  %v1514_v42 = vmul.f32 %v4352_v26, %v5365_v30  ;;  %v6332_v58 = vmul.f32 %v4352_v26, %v5368_v20 }
 0x167   : > { %7909 = vst [vmem:[#allocation32_spill] sm:$0xff] %v6313_v46  ;;  %v3255_v15 = vadd.f32 %v3128_v60, %v2975_v35  ;;  %v1645_v36 = vsel %vm1574_vm2, %v1642_v22, %v7910_v23  ;;  %v1643_v45 = vsel %vm1574_vm2, %v1640_v12, %v1642_v22  ;;  %v1925_v60 = vrot.slane %v6301_v43, 5  ;;  %v7915_v23 = vld [vmem:[#allocation33_spill] sm:$0xff] }
 0x168   : > { %v6323_v39 = vsel %vm1859_vm3, %v7627_v47, %v7911_v63  ;;  %v6327_v48 = vadd.f32 %v1645_v36, %v7913_v2  ;;  %v6336_v62 = vadd.f32 %v1643_v45, %v7915_v23  ;;  %v6339_v35 = vmul.f32 %v4356_v11, %v5440_v53  ;;  %v7919_v45 = vld [vmem:[#allocation38_spill] sm:$0xff] }
 0x169   : > { %7912 = vst [vmem:[#allocation96_spill] sm:$0xff] %v6323_v39  ;;  %v3304_v4 = vadd.f32 %v6303_v7, %v3255_v15  ;;  %v1638_v63 = vrot.slane %v1514_v42, 4  ;;  %v7628_v36 = vrot.slane %v6332_v58, 5  ;;  %v4351_v2 = vunpack.i.l.bf16 %v4350_v24 }
 0x16a   : > { %7914 = vst [vmem:[#allocation19_spill] sm:$0xff] %v6327_v48  ;;  %v4422_v22 = vunpack.i.h.bf16 %v4420_v57  ;;  %v7918_v43 = vrot.slane %v5720_v18, 5  ;;  %v2007_v23 = vadd.f32 %v5642_v29, %v7919_v45  ;;  %v7920_v11 = vrot.slane %v6208_v54, 5 }
 0x16b   : > { %7916 = vst [vmem:[#allocation33_spill] sm:$0xff] %v6336_v62  ;;  %v3349_v48 = vmax.f32 %v3304_v4, 0.0  ;;  %v1641_v15 = vsel %vm1574_vm2, %v1638_v63, %v1640_v12  ;;  %v6362_v18 = vsel %vm1859_vm3, %v7628_v36, %v1925_v60  ;;  %v1513_v24 = vmul.f32 %v4351_v2, %v5365_v30  ;;  %v4370_v12 = vpop.permute.xlu1 %4369 }
 0x16c   : > { %7917 = vst [vmem:[#allocation97_spill] sm:$0xff] %v6339_v35  ;;  %v6346_v39 = vsel %vm1859_vm3, %v7918_v43, %v1909_v40  ;;  %v6354_v42 = vsel %vm1859_vm3, %v1909_v40, %v7920_v11  ;;  %v6357_v47 = vadd.f32 %v1641_v15, %v5627_v27  ;;  %v6369_v54 = vmul.f32 %v4352_v26, %v5440_v53  ;;  %v7931_v35 = vld [vmem:[#allocation35_spill] sm:$0xff] }
 0x16d   : > { %7921 = vst [vmem:[#allocation38_spill] sm:$0xff] %v6354_v42  ;;  %v6372_v40 = vmul.f32 %v4422_v22, %v6157_v56  ;;  %v1636_v27 = vrot.slane %v1513_v24, 4  ;;  %v1798_v4 = vmul.f32 %v4351_v2, %v5368_v20  ;;  %v4421_v43 = vunpack.i.l.bf16 %v4420_v57 }
 0x16e   : > { %7922 = vst [vmem:[#allocation98_spill] sm:$0xff] %v6357_v47  ;;  %v2008_v15 = vadd.f32 %v6098_v17, %v6041_v5  ;;  %v6378_v45 = vmul.f32 %v4351_v2, %v5440_v53  ;;  %v6382_v11 = vmul.f32 %v4422_v22, %v6229_v31  ;;  %v7926_v26 = vrot.slane %v6037_v25, 6  ;;  %v4365_v47 = vpop.permute.xlu0 %4364 }
 0x16f   : > { %7923 = vst [vmem:[#allocation99_spill] sm:$0xff] %v6362_v18  ;;  %v7927_v29 = vrot.slane %v5567_v55, 6  ;;  %v7928_v57 = vrot.slane %v5820_v34, 4  ;;  %v1639_v5 = vsel %vm1574_vm2, %v1636_v27, %v1638_v63  ;;  %v6407_v63 = vmul.f32 %v4421_v43, %v6157_v56 }
 0x170   : > { %3395 = vst.msk [vmem:[#allocation2 + $0x28] sm:$0xff] %vm3389_vm5, %v3349_v48  ;;  %v2657_v48 = vmul.f32 %v4422_v22, %v6138_v59  ;;  %v7930_v22 = vrot.slane %v5584_v13, 6  ;;  %v6410_v55 = vmul.f32 %v4421_v43, %v6229_v31 }
 0x171   : > { %7924 = vst [vmem:[#allocation100_spill] sm:$0xff] %v6369_v54  ;;  %v2171_v24 = vsel %vm2144_vm4, %v7927_v29, %v7926_v26  ;;  %v1637_v36 = vsel %vm1574_vm2, %v7928_v57, %v1636_v27  ;;  %v7929_v2 = vmov %v7927_v29  ;;  %v7932_v29 = vld [vmem:[#allocation34_spill] sm:$0xff]  ;;  %v2656_v57 = vmul.f32 %v4421_v43, %v6138_v59 }
 0x172   : > { %7925 = vst [vmem:[#allocation101_spill] sm:$0xff] %v6378_v45  ;;  %v2169_v18 = vsel %vm2144_vm4, %v7930_v22, %v7929_v2  ;;  %v6400_v46 = vadd.f32 %v1637_v36, %v7931_v35  ;;  %v6403_v26 = vadd.f32 %v1639_v5, %v7932_v29  ;;  %v2293_v62 = vadd.f32 %v2171_v24, %v2008_v15 }
 0x173   : > { %v2292_v34 = vadd.f32 %v2169_v18, %v2007_v23  ;;  %v4372_v27 = vunpack.i.h.bf16 %v4370_v12  ;;  %v4371_v35 = vunpack.i.l.bf16 %v4370_v12  ;;  %v4367_v36 = vunpack.i.h.bf16 %v4365_v47 }
 0x174   : > { %7933 = vst [vmem:[#allocation35_spill] sm:$0xff] %v6403_v26  ;;  %v6413_v22 = vadd.f32 %v2657_v48, %v2293_v62  ;;  %v7635_v5 = vrot.slane %v6407_v63, 1  ;;  %v7934_v15 = vrot.slane %v6291_v32, 5  ;;  %v1921_v12 = vrot.slane %v1798_v4, 5 }
 0x175   : > { %v2701_v17 = vadd.f32 %v2656_v57, %v2292_v34  ;;  %v1522_v18 = vmul.f32 %v4372_v27, %v5365_v30  ;;  %v6425_v29 = vmul.f32 %v4372_v27, %v5368_v20  ;;  %v1521_v62 = vmul.f32 %v4371_v35, %v5365_v30 }
 0x176   : > { %v6421_v24 = vsel %vm1859_vm3, %v1925_v60, %v7934_v15  ;;  %v7936_v48 = vrot.slane %v6372_v40, 1  ;;  %v6434_v32 = vmul.f32 %v4371_v35, %v5368_v20  ;;  %v4366_v23 = vunpack.i.l.bf16 %v4365_v47 }
 0x177   : > { %7935 = vst [vmem:[#allocation34_spill] sm:$0xff] %v6421_v24  ;;  %v1654_v57 = vrot.slane %v1522_v18, 4  ;;  %v7636_v15 = vrot.slane %v6425_v29, 5  ;;  %v1652_v43 = vrot.slane %v1521_v62, 4  ;;  %v7937_v54 = vrot.slane %v6382_v11, 2 }
 0x178   : > { %v2860_v34 = vsel %vm695_vm0, %v7635_v5, %v7936_v48  ;;  %v7938_v4 = vrot.slane %v6410_v55, 2  ;;  %v7939_v24 = vrot.slane %v6048_v49, 4  ;;  %v1520_v48 = vmul.f32 %v4367_v36, %v5365_v30 }
 0x179   : > { %v2981_v60 = vadd.f32 %v2860_v34, %v2701_v17  ;;  %v7940_v17 = vld [vmem:[#allocation29_spill] sm:$0xff]  ;;  %v7942_v47 = vrot.slane %v6051_v6, 5  ;;  %v1655_v2 = vsel %vm1574_vm2, %v1652_v43, %v1654_v57 }
 0x17a   : > { %v3140_v26 = vsel %vm976_vm1, %v7938_v4, %v7937_v54  ;;  %v1657_v18 = vsel %vm1574_vm2, %v1654_v57, %v7939_v24  ;;  %v4435_v54 = vpop.permute.xlu2 %4434  ;;  %v7944_v4 = vld [vmem:[#allocation39_spill] sm:$0xff]  ;;  %v1937_v24 = vrot.slane %v6434_v32, 5  ;;  %v1650_v42 = vrot.slane %v1520_v48, 4 }
 0x17b   : > { %v3261_v5 = vadd.f32 %v3140_v26, %v2981_v60  ;;  %v6448_v34 = vadd.f32 %v1657_v18, %v7940_v17  ;;  %v6455_v62 = vsel %vm1859_vm3, %v7636_v15, %v7942_v47  ;;  %v6459_v49 = vadd.f32 %v1655_v2, %v7944_v4 }
 0x17c   : > { %7943 = vst [vmem:[#allocation102_spill] sm:$0xff] %v6455_v62  ;;  %v1805_v26 = vmul.f32 %v4367_v36, %v5368_v20  ;;  %v7946_v60 = vrot.slane %v5829_v33, 5  ;;  %v1519_v17 = vmul.f32 %v4366_v23, %v5365_v30  ;;  %v1804_v57 = vmul.f32 %v4366_v23, %v5368_v20 }
 0x17d   : > { %7941 = vst [vmem:[#allocation29_spill] sm:$0xff] %v6448_v34  ;;  %v3310_v18 = vadd.f32 %v6303_v7, %v3261_v5  ;;  %v7947_v47 = vrot.slane %v6332_v58, 5  ;;  %v1653_v32 = vsel %vm1574_vm2, %v1650_v42, %v1652_v43  ;;  %v4437_v4 = vunpack.i.h.bf16 %v4435_v54 }
 0x17e   : > { %7945 = vst [vmem:[#allocation39_spill] sm:$0xff] %v6459_v49  ;;  %v6466_v6 = vsel %vm1859_vm3, %v7946_v60, %v1921_v12  ;;  %v1935_v48 = vrot.slane %v1805_v26, 5  ;;  %v6478_v33 = vmul.f32 %v4372_v27, %v5440_v53  ;;  %v6481_v60 = vadd.f32 %v1653_v32, %v5648_v19 }
 0x17f   : > { %v6474_v2 = vsel %vm1859_vm3, %v1921_v12, %v7947_v47  ;;  %v3355_v15 = vmax.f32 %v3310_v18, 0.0  ;;  %v1648_v5 = vrot.slane %v1519_v17, 4  ;;  %v6484_v49 = vmul.f32 %v4371_v35, %v5440_v53  ;;  %v7957_v17 = vld [vmem:[#allocation41_spill] sm:$0xff] }
 0x180   : > { %7948 = vst [vmem:[#allocation103_spill] sm:$0xff] %v6474_v2  ;;  %v6487_v58 = vsel %vm1859_vm3, %v1935_v48, %v1937_v24  ;;  %v6490_v12 = vmul.f32 %v4367_v36, %v5440_v53  ;;  %v1933_v43 = vrot.slane %v1804_v57, 5  ;;  %v7954_v26 = vrot.slane %v5914_v52, 4  ;;  %v7958_v36 = vld [vmem:[#allocation40_spill] sm:$0xff]  ;;  %v7982_v2 = vld [vmem:[#allocation50_spill] sm:$0xff] }
 0x181   : > { %7949 = vst [vmem:[#allocation104_spill] sm:$0xff] %v6478_v33  ;;  %v1651_v19 = vsel %vm1574_vm2, %v1648_v5, %v1650_v42  ;;  %v6498_v18 = vmul.f32 %v4437_v4, %v6157_v56  ;;  %v6501_v35 = vmul.f32 %v4437_v4, %v6229_v31  ;;  %v6518_v42 = vmul.f32 %v4366_v23, %v5440_v53 }
 0x182   : > { %7950 = vst [vmem:[#allocation105_spill] sm:$0xff] %v6481_v60  ;;  %v1649_v27 = vsel %vm1574_vm2, %v7954_v26, %v1648_v5  ;;  %v6507_v32 = vadd.f32 %v1651_v19, %v7958_v36  ;;  %v6515_v57 = vsel %vm1859_vm3, %v1933_v43, %v1935_v48  ;;  %v2663_v5 = vmul.f32 %v4437_v4, %v6138_v59 }
 0x183   : > { %7951 = vst [vmem:[#allocation106_spill] sm:$0xff] %v6484_v49  ;;  %v6504_v47 = vadd.f32 %v1649_v27, %v7957_v17  ;;  %v4436_v26 = vunpack.i.l.bf16 %v4435_v54  ;;  %v6523_v17 = vpop.permute.xlu1 %4384  ;;  %v7961_v36 = vrot.slane %v5657_v9, 6  ;;  %v7962_v48 = vrot.slane %v5677_v8, 6 }
 0x184   : > { %7952 = vst [vmem:[#allocation107_spill] sm:$0xff] %v6487_v58  ;;  %v7960_v58 = vld [vmem:[#allocation42_spill] sm:$0xff] }
 0x185   : > { %7953 = vst [vmem:[#allocation108_spill] sm:$0xff] %v6490_v12  ;;  %v2013_v27 = vadd.f32 %v5734_v50, %v7960_v58  ;;  %v2181_v23 = vsel %vm2144_vm4, %v7962_v48, %v7961_v36  ;;  %v7964_v54 = vmov %v7961_v36  ;;  %v4380_v50 = vpop.permute.xlu0 %4379  ;;  %v6540_v19 = vmul.f32 %v4436_v26, %v6157_v56 }
 0x186   : > { %3401 = vst.msk [vmem:[#allocation2 + $0x58] sm:$0xff] %vm3389_vm5, %v3355_v15  ;;  %v7959_v15 = vrot.slane %v5921_v61, 5  ;;  %v2014_v61 = vadd.f32 %v6213_v14, %v6152_v38  ;;  %v6543_v38 = vmul.f32 %v4436_v26, %v6229_v31  ;;  %v4386_v48 = vunpack.i.l.bf16 %v6523_v17  ;;  %v4450_v14 = vpop.permute.xlu2 %4449 }
 0x187   : > { %7955 = vst [vmem:[#allocation109_spill] sm:$0xff] %v6498_v18  ;;  %v2298_v58 = vadd.f32 %v2181_v23, %v2013_v27  ;;  %v4382_v23 = vunpack.i.h.bf16 %v4380_v50  ;;  %v4381_v36 = vunpack.i.l.bf16 %v4380_v50 }
 0x188   : > { %7956 = vst [vmem:[#allocation110_spill] sm:$0xff] %v6501_v35  ;;  %v6512_v52 = vsel %vm1859_vm3, %v7959_v15, %v1933_v43  ;;  %v7963_v43 = vrot.slane %v6148_v37, 6  ;;  %v2662_v15 = vmul.f32 %v4436_v26, %v6138_v59  ;;  %v7640_v27 = vrot.slane %v6543_v38, 2 }
 0x189   : > { %v1527_v26 = vmul.f32 %v4386_v48, %v5365_v30  ;;  %v1526_v62 = vmul.f32 %v4382_v23, %v5365_v30  ;;  %v6583_v50 = vmul.f32 %v4381_v36, %v5368_v20 }
 0x18a   : > { %v2183_v4 = vsel %vm2144_vm4, %v7964_v54, %v7963_v43  ;;  %v2707_v9 = vadd.f32 %v2662_v15, %v2298_v58  ;;  %v7639_v43 = vrot.slane %v6540_v19, 1  ;;  %v7968_v15 = vrot.slane %v6498_v18, 1 }
 0x18b   : > { %v2299_v60 = vadd.f32 %v2183_v4, %v2014_v61  ;;  %v7966_v61 = vrot.slane %v6425_v29, 5  ;;  %v1664_v48 = vrot.slane %v1527_v26, 4  ;;  %v7969_v29 = vrot.slane %v6501_v35, 2 }
 0x18c   : > { %v2872_v54 = vsel %vm695_vm0, %v7639_v43, %v7968_v15  ;;  %v1662_v49 = vrot.slane %v1526_v62, 4  ;;  %v4452_v15 = vunpack.i.h.bf16 %v4450_v14  ;;  %v6589_v26 = vmul.f32 %v4382_v23, %v5440_v53 }
 0x18d   : > { %v6552_v34 = vadd.f32 %v2663_v5, %v2299_v60  ;;  %v6558_v4 = vsel %vm1859_vm3, %v1937_v24, %v7966_v61  ;;  %v2987_v5 = vadd.f32 %v2872_v54, %v2707_v9  ;;  %v3152_v24 = vsel %vm976_vm1, %v7640_v27, %v7969_v29 }
 0x18e   : > { %7967 = vst [vmem:[#allocation40_spill] sm:$0xff] %v6558_v4  ;;  %v7970_v61 = vunpack.i.h.bf16 %v6523_v17  ;;  %v6579_v4 = vmul.f32 %v4382_v23, %v5368_v20  ;;  %v1525_v9 = vmul.f32 %v4381_v36, %v5365_v30  ;;  %v6586_v54 = vsel %vm1574_vm2, %v1662_v49, %v1664_v48  ;;  %v7976_v23 = vld [vmem:[#allocation51_spill] sm:$0xff] }
 0x18f   : > { %7965 = vst [vmem:[#allocation41_spill] sm:$0xff] %v6552_v34  ;;  %v3267_v43 = vadd.f32 %v3152_v24, %v2987_v5  ;;  %v6592_v29 = vmul.f32 %v4452_v15, %v6157_v56  ;;  %v4451_v62 = vunpack.i.l.bf16 %v4450_v14  ;;  %v6597_v30 = vmul.f32 %v4452_v15, %v6229_v31  ;;  %v7995_v34 = vld [vmem:[#allocation52_spill] sm:$0xff] }
 0x190   : > { %v6576_v58 = vmul.f32 %v7970_v61, %v5368_v20  ;;  %7972 = vst [vmem:[#allocation111_spill] sm:$0xff] %v6579_v4  ;;  %v1660_v24 = vrot.slane %v1525_v9, 4  ;;  %v6600_v20 = vmul.f32 %v4381_v36, %v5440_v53  ;;  %v2669_v48 = vmul.f32 %v4452_v15, %v6138_v59  ;;  %v4400_v15 = vpop.permute.xlu1 %4399 }
 0x191   : > { %7973 = vst [vmem:[#allocation112_spill] sm:$0xff] %v6586_v54  ;;  %v3316_v5 = vadd.f32 %v6303_v7, %v3267_v43  ;;  %v2019_v27 = vadd.f32 %v7976_v23, %v5756_v3  ;;  %v2020_v60 = vadd.f32 %v6346_v39, %v6251_v21  ;;  %v7977_v54 = vld [vmem:[#allocation77_spill] sm:$0xff]  ;;  %v7980_v36 = vrot.slane %v6027_v51, 5  ;;  %v7984_v23 = vld [vmem:[#allocation43_spill] sm:$0xff] }
 0x192   : > { %7971 = vst [vmem:[#allocation42_spill] sm:$0xff] %v6576_v58  ;;  %v7978_v43 = vrot.slane %v7977_v54, 4  ;;  %v1663_v61 = vsel %vm1574_vm2, %v1660_v24, %v1662_v49  ;;  %v7979_v58 = vrot.slane %v6583_v50, 5  ;;  %v7985_v49 = vld [vmem:[#allocation45_spill] sm:$0xff]  ;;  %v4402_v39 = vunpack.i.h.bf16 %v4400_v15 }
 0x193   : > { %7974 = vst [vmem:[#allocation113_spill] sm:$0xff] %v6592_v29  ;;  %v3361_v14 = vmax.f32 %v3316_v5, 0.0  ;;  %v6622_v21 = vadd.f32 %v1663_v61, %v7984_v23  ;;  %v7986_v5 = vrot.slane %v7985_v49, 6  ;;  %v2668_v61 = vmul.f32 %v4451_v62, %v6138_v59  ;;  %v7994_v49 = vld [vmem:[#allocation53_spill] sm:$0xff] }
 0x194   : > { %7975 = vst [vmem:[#allocation114_spill] sm:$0xff] %v6597_v30  ;;  %v1661_v9 = vsel %vm1574_vm2, %v7978_v43, %v1660_v24  ;;  %v6616_v33 = vsel %vm1859_vm3, %v7980_v36, %v7979_v58  ;;  %v7987_v24 = vld [vmem:[#allocation46_spill] sm:$0xff]  ;;  %v7989_v43 = vrot.slane %v6279_v16, 6  ;;  %v6639_v36 = vmul.f32 %v4451_v62, %v6157_v56 }
 0x195   : > { %7981 = vst [vmem:[#allocation51_spill] sm:$0xff] %v6616_v33  ;;  %v6619_v3 = vadd.f32 %v1661_v9, %v7982_v2  ;;  %v7988_v51 = vrot.slane %v7987_v24, 6  ;;  %v7990_v2 = vmov %v7986_v5 }
 0x196   : > { %3407 = vst.msk [vmem:[#allocation2 + $0x88] sm:$0xff] %vm3389_vm5, %v3361_v14  ;;  %v2195_v9 = vsel %vm2144_vm4, %v7990_v2, %v7989_v43  ;;  %v6642_v14 = vmul.f32 %v4451_v62, %v6229_v31  ;;  %v7647_v33 = vrot.slane %v6639_v36, 1  ;;  %v2000_v43 = vadd.f32 %v7995_v34, %v7994_v49  ;;  %v8000_v34 = vld [vmem:[#allocation48_spill] sm:$0xff] }
 0x197   : > { %7983 = vst [vmem:[#allocation77_spill] sm:$0xff] %v6619_v3  ;;  %v2193_v58 = vsel %vm2144_vm4, %v7988_v51, %v7986_v5  ;;  %v2305_v54 = vadd.f32 %v2195_v9, %v2020_v60  ;;  %v4401_v5 = vunpack.i.l.bf16 %v4400_v15  ;;  %v7992_v51 = vld [vmem:[#allocation13_spill] sm:$0xff]  ;;  %v7993_v3 = vld [vmem:[#allocation54_spill] sm:$0xff]  ;;  %v7997_v60 = vrot.slane %v6592_v29, 1 }
 0x198   : > { %7991 = vst [vmem:[#allocation50_spill] sm:$0xff] %v6639_v36  ;;  %v2304_v23 = vadd.f32 %v2193_v58, %v2019_v27  ;;  %v1999_v16 = vadd.f32 %v7993_v3, %v7992_v51  ;;  %v7652_v18 = vrot.slane %v6642_v14, 2  ;;  %v2649_v27 = vmul.f32 %v4402_v39, %v6138_v59  ;;  %v7998_v58 = vld [vmem:[#allocation47_spill] sm:$0xff] }
 0x199   : > { %v6649_v35 = vadd.f32 %v2669_v48, %v2305_v54  ;;  %v2884_v62 = vsel %vm695_vm0, %v7647_v33, %v7997_v60  ;;  %v2750_v15 = vmul.f32 %v4402_v39, %v6157_v56  ;;  %v3030_v3 = vmul.f32 %v4402_v39, %v6229_v31  ;;  %v4395_v54 = vpop.permute.xlu0 %4394 }
 0x19a   : > { %v2713_v2 = vadd.f32 %v2668_v61, %v2304_v23  ;;  %v7999_v9 = vrot.slane %v7998_v58, 6  ;;  %v8001_v61 = vrot.slane %v8000_v34, 6  ;;  %v8002_v51 = vrot.slane %v6597_v30, 2 }
 0x19b   : > { %7996 = vst [vmem:[#allocation43_spill] sm:$0xff] %v6649_v35  ;;  %v8003_v60 = vrot.slane %v7901_v44, 6  ;;  %v2843_v29 = vrot.slane %v2750_v15, 1  ;;  %v3123_v37 = vrot.slane %v3030_v3, 2  ;;  %v4397_v30 = vunpack.i.h.bf16 %v4395_v54 }
 0x19c   : > { %v2153_v48 = vsel %vm2144_vm4, %v8001_v61, %v7999_v9  ;;  %v2993_v23 = vadd.f32 %v2884_v62, %v2713_v2  ;;  %v3164_v49 = vsel %vm976_vm1, %v7652_v18, %v8002_v51  ;;  %v8004_v33 = vmov %v7999_v9  ;;  %v8011_v18 = vld [vmem:[#allocation17_spill] sm:$0xff] }
 0x19d   : > { %v2155_v39 = vsel %vm2144_vm4, %v8004_v33, %v8003_v60  ;;  %v2284_v35 = vadd.f32 %v2153_v48, %v1999_v16  ;;  %v2648_v9 = vmul.f32 %v4401_v5, %v6138_v59  ;;  %v2749_v2 = vmul.f32 %v4401_v5, %v6157_v56 }
 0x19e   : > { %v2285_v36 = vadd.f32 %v2155_v39, %v2000_v43  ;;  %v3273_v61 = vadd.f32 %v3164_v49, %v2993_v23  ;;  %v3029_v62 = vmul.f32 %v4401_v5, %v6229_v31  ;;  %v8005_v51 = vunpack.i.h.bf16 %v6523_v17 }
 0x19f   : > { %v7653_v58 = vrot.slane %v6579_v4, 5  ;;  %v8007_v16 = vrot.slane %v6276_v1, 1  ;;  %v2693_v43 = vadd.f32 %v2648_v9, %v2284_v35  ;;  %v2841_v48 = vrot.slane %v2749_v2, 1 }
 0x1a0   : > { %v6681_v44 = vmul.f32 %v8005_v51, %v5440_v53  ;;  %v3322_v15 = vadd.f32 %v6303_v7, %v3273_v61  ;;  %v2694_v3 = vadd.f32 %v2649_v27, %v2285_v36  ;;  %v3121_v23 = vrot.slane %v3029_v62, 2  ;;  %v8009_v62 = vld [vmem:[#allocation15_spill] sm:$0xff] }
 0x1a1   : > { %v2846_v33 = vsel %vm695_vm0, %v2843_v29, %v8007_v16  ;;  %v8008_v17 = vrot.slane %v6282_v0, 2  ;;  %v2748_v60 = vmul.f32 %v4397_v30, %v6157_v56  ;;  %v2844_v1 = vsel %vm695_vm0, %v2841_v48, %v2843_v29  ;;  %v8010_v16 = vld [vmem:[#allocation56_spill] sm:$0xff] }
 0x1a2   : > { %8006 = vst [vmem:[#allocation45_spill] sm:$0xff] %v6681_v44  ;;  %v3367_v39 = vmax.f32 %v3322_v15, 0.0  ;;  %v2974_v51 = vadd.f32 %v2846_v33, %v2694_v3  ;;  %v2647_v35 = vmul.f32 %v4397_v30, %v6138_v59  ;;  %v2973_v9 = vadd.f32 %v2844_v1, %v2693_v43  ;;  %v8012_v15 = vld [vmem:[#allocation55_spill] sm:$0xff]  ;;  %v8013_v3 = vld [vmem:[#allocation49_spill] sm:$0xff] }
 0x1a3   : > { %v3126_v53 = vsel %vm976_vm1, %v3123_v37, %v8008_v17  ;;  %v2839_v36 = vrot.slane %v2748_v60, 1  ;;  %v3028_v27 = vmul.f32 %v4397_v30, %v6229_v31  ;;  %v4396_v61 = vunpack.i.l.bf16 %v4395_v54  ;;  %v8015_v43 = vld [vmem:[#allocation57_spill] sm:$0xff]  ;;  %v8048_v44 = vld [vmem:[#allocation7_spill] sm:$0xff] }
 0x1a4   : > { %3413 = vst.msk [vmem:[#allocation2 + $0xb8] sm:$0xff] %vm3389_vm5, %v3367_v39  ;;  %v3124_v2 = vsel %vm976_vm1, %v3121_v23, %v3123_v37  ;;  %v3254_v0 = vadd.f32 %v3126_v53, %v2974_v51  ;;  %v1997_v17 = vadd.f32 %v8010_v16, %v8009_v62  ;;  %v1998_v49 = vadd.f32 %v8012_v15, %v8011_v18  ;;  %v4465_v53 = vpop.permute.xlu2 %4464 }
 0x1a5   : > { %v3253_v29 = vadd.f32 %v3124_v2, %v2973_v9  ;;  %v3119_v33 = vrot.slane %v3028_v27, 2  ;;  %v8014_v5 = vrot.slane %v8013_v3, 6  ;;  %v8016_v60 = vrot.slane %v8015_v43, 6 }
 0x1a6   : > { %v8017_v54 = vrot.slane %v8000_v34, 6  ;;  %v3303_v1 = vadd.f32 %v6303_v7, %v3254_v0  ;;  %v2646_v18 = vmul.f32 %v4396_v61, %v6138_v59  ;;  %v2842_v27 = vsel %vm695_vm0, %v2839_v36, %v2841_v48 }
 0x1a7   : > { %v2149_v30 = vsel %vm2144_vm4, %v8016_v60, %v8014_v5  ;;  %v8018_v39 = vmov %v8014_v5  ;;  %v3302_v9 = vadd.f32 %v6303_v7, %v3253_v29  ;;  %v2747_v2 = vmul.f32 %v4396_v61, %v6157_v56 }
 0x1a8   : > { %v2151_v37 = vsel %vm2144_vm4, %v8018_v39, %v8017_v54  ;;  %v2282_v51 = vadd.f32 %v2149_v30, %v1997_v17  ;;  %v6719_v5 = vmul.f32 %v4396_v61, %v6229_v31  ;;  %v3348_v34 = vmax.f32 %v3303_v1, 0.0 }
 0x1a9   : > { %v2283_v62 = vadd.f32 %v2151_v37, %v1998_v49  ;;  %v4467_v3 = vunpack.i.h.bf16 %v4465_v53  ;;  %v3347_v43 = vmax.f32 %v3302_v9, 0.0  ;;  %v2837_v60 = vrot.slane %v2747_v2, 1  ;;  %v8024_v37 = vld [vmem:[#allocation60_spill] sm:$0xff]  ;;  %v8028_v2 = vld [vmem:[#allocation59_spill] sm:$0xff] }
 0x1aa   : > { %8019 = vst [vmem:[#allocation46_spill] sm:$0xff] %v6719_v5  ;;  %v2691_v16 = vadd.f32 %v2646_v18, %v2282_v51  ;;  %v7654_v0 = vrot.slane %v6719_v5, 2  ;;  %v4466_v49 = vunpack.i.l.bf16 %v4465_v53  ;;  %v3122_v17 = vsel %vm976_vm1, %v3119_v33, %v3121_v23  ;;  %v8025_v23 = vld [vmem:[#allocation64_spill] sm:$0xff]  ;;  %v8049_v5 = vld [vmem:[#allocation67_spill] sm:$0xff] }
 0x1ab   : > { %v2692_v15 = vadd.f32 %v2647_v35, %v2283_v62  ;;  %3394 = vst.msk [vmem:[#allocation2 + $0x20] sm:$0xff] %vm3389_vm5, %v3348_v34  ;;  %v2675_v48 = vmul.f32 %v4467_v3, %v6138_v59  ;;  %v6726_v30 = vmul.f32 %v4467_v3, %v6157_v56  ;;  %v8021_v35 = vrot.slane %v6174_v41, 1  ;;  %v4415_v41 = vpop.permute.xlu1 %4414 }
 0x1ac   : > { %3393 = vst.msk [vmem:[#allocation2 + $0x18] sm:$0xff] %vm3389_vm5, %v3347_v43  ;;  %v2840_v54 = vsel %vm695_vm0, %v2837_v60, %v2839_v36  ;;  %v6736_v39 = vmul.f32 %v4467_v3, %v6229_v31  ;;  %v2025_v53 = vadd.f32 %v8025_v23, %v8024_v37  ;;  %v3120_v51 = vsel %vm976_vm1, %v7654_v0, %v3119_v33  ;;  %v4410_v0 = vpop.permute.xlu0 %4409 }
 0x1ad   : > { %v2972_v29 = vadd.f32 %v2842_v27, %v2692_v15  ;;  %8020 = vst [vmem:[#allocation13_spill] sm:$0xff] %v6726_v30  ;;  %v6732_v61 = vsel %vm695_vm0, %v8021_v35, %v2837_v60  ;;  %v2971_v1 = vadd.f32 %v2840_v54, %v2691_v16  ;;  %v7655_v18 = vrot.slane %v6726_v30, 1  ;;  %v8026_v27 = vld [vmem:[#allocation58_spill] sm:$0xff] }
 0x1ae   : > { %8022 = vst [vmem:[#allocation54_spill] sm:$0xff] %v6732_v61  ;;  %v2026_v9 = vadd.f32 %v6466_v6, %v6400_v46  ;;  %v8027_v36 = vrot.slane %v8026_v27, 6  ;;  %v8029_v34 = vrot.slane %v8028_v2, 6  ;;  %v8030_v3 = vrot.slane %v6378_v45, 6  ;;  %v8087_v30 = vld [vmem:[#allocation78_spill] sm:$0xff] }
 0x1af   : > { %8023 = vst [vmem:[#allocation53_spill] sm:$0xff] %v6736_v39  ;;  %v3252_v62 = vadd.f32 %v3122_v17, %v2972_v29  ;;  %v2674_v33 = vmul.f32 %v4466_v49, %v6138_v59  ;;  %v3251_v60 = vadd.f32 %v3120_v51, %v2971_v1  ;;  %v6759_v46 = vmul.f32 %v4466_v49, %v6157_v56 }
 0x1b0   : > { %v2205_v15 = vsel %vm2144_vm4, %v8029_v34, %v8027_v36  ;;  %v8031_v16 = vmov %v8027_v36  ;;  %v7657_v6 = vrot.slane %v6736_v39, 2  ;;  %v6763_v54 = vmul.f32 %v4466_v49, %v6229_v31  ;;  %v8085_v39 = vld [vmem:[#allocation84_spill] sm:$0xff] }
 0x1b1   : > { %v2207_v43 = vsel %vm2144_vm4, %v8031_v16, %v8030_v3  ;;  %v3301_v17 = vadd.f32 %v6303_v7, %v3252_v62  ;;  %v2310_v29 = vadd.f32 %v2205_v15, %v2025_v53  ;;  %v4417_v37 = vunpack.i.h.bf16 %v4415_v41 }
 0x1b2   : > { %v2311_v35 = vadd.f32 %v2207_v43, %v2026_v9  ;;  %v3300_v23 = vadd.f32 %v6303_v7, %v3251_v60  ;;  %v7656_v34 = vrot.slane %v6759_v46, 1  ;;  %v8032_v53 = vrot.slane %v6583_v50, 5  ;;  %v3446_v16 = vld [vmem:[#allocation2 + $0x24] ss:$2 sm:$0x1]  ;;  %v8034_v60 = vld [vmem:[#allocation6_spill] sm:$0xff] }
 0x1b3   : > { %v3346_v27 = vmax.f32 %v3301_v17, 0.0  ;;  %v2719_v36 = vadd.f32 %v2674_v33, %v2310_v29  ;;  %v2756_v62 = vmul.f32 %v4417_v37, %v6157_v56  ;;  %v3036_v49 = vmul.f32 %v4417_v37, %v6229_v31  ;;  %v8035_v17 = vld [vmem:[#allocation66_spill] sm:$0xff] }
 0x1b4   : > { %v6772_v1 = vsel %vm1859_vm3, %v8032_v53, %v7653_v58  ;;  %v6774_v51 = vadd.f32 %v2675_v48, %v2311_v35  ;;  %v3345_v9 = vmax.f32 %v3300_v23, 0.0  ;;  %v2896_v15 = vsel %vm695_vm0, %v7656_v34, %v7655_v18  ;;  %v3450_v35 = vld [vmem:[#allocation2 + $0x25] ss:$2 sm:$0x1]  ;;  %v8038_v58 = vld [vmem:[#allocation62_spill] sm:$0xff] }
 0x1b5   : > { %3392 = vst.msk [vmem:[#allocation2 + $0x10] sm:$0xff] %vm3389_vm5, %v3346_v27  ;;  %v7658_v50 = vrot.slane %v6763_v54, 2  ;;  %v4416_v3 = vunpack.i.l.bf16 %v4415_v41  ;;  %v2999_v48 = vadd.f32 %v2896_v15, %v2719_v36  ;;  %v2655_v43 = vmul.f32 %v4417_v37, %v6138_v59  ;;  %v8036_v27 = vld [vmem:[#allocation9_spill] sm:$0xff]  ;;  %v8040_v15 = vld [vmem:[#allocation63_spill] sm:$0xff] }
 0x1b6   : > { %8033 = vst [vmem:[#allocation52_spill] sm:$0xff] %v6774_v51  ;;  %v2855_v33 = vrot.slane %v2756_v62, 1  ;;  %v2005_v29 = vadd.f32 %v8035_v17, %v8034_v60  ;;  %v8037_v41 = vld [vmem:[#allocation61_spill] sm:$0xff]  ;;  %v8039_v36 = vrot.slane %v8038_v58, 6  ;;  %v8041_v37 = vrot.slane %v8040_v15, 6 }
 0x1b7   : > { %3391 = vst.msk [vmem:[#allocation2 + $0x8] sm:$0xff] %vm3389_vm5, %v3345_v9  ;;  %v3176_v23 = vsel %vm976_vm1, %v7658_v50, %v7657_v6  ;;  %v2006_v53 = vadd.f32 %v8037_v41, %v8036_v27  ;;  %v8042_v60 = vrot.slane %v5584_v13, 6  ;;  %v3135_v34 = vrot.slane %v3036_v49, 2 }
 0x1b8   : > { %v2165_v62 = vsel %vm2144_vm4, %v8041_v37, %v8039_v36  ;;  %v8043_v17 = vmov %v8039_v36  ;;  %v3279_v18 = vadd.f32 %v3176_v23, %v2999_v48  ;;  %v2654_v27 = vmul.f32 %v4416_v3, %v6138_v59 }
 0x1b9   : > { %v2167_v9 = vsel %vm2144_vm4, %v8043_v17, %v8042_v60  ;;  %v2290_v6 = vadd.f32 %v2165_v62, %v2005_v29  ;;  %v2755_v41 = vmul.f32 %v4416_v3, %v6157_v56  ;;  %v3035_v4 = vmul.f32 %v4416_v3, %v6229_v31 }
 0x1ba   : > { %v2291_v50 = vadd.f32 %v2167_v9, %v2006_v53  ;;  %v3454_v36 = vmax.f32 %v3446_v16, %v3450_v35  ;;  %v3328_v13 = vadd.f32 %v6303_v7, %v3279_v18  ;;  %v8044_v58 = vrot.slane %v6407_v63, 1  ;;  %v8046_v18 = vld [vmem:[#allocation12_spill] sm:$0xff]  ;;  %v8047_v35 = vld [vmem:[#allocation73_spill] sm:$0xff] }
 0x1bb   : > { %v4412_v60 = vunpack.i.h.bf16 %v4410_v0  ;;  %v2699_v17 = vadd.f32 %v2654_v27, %v2290_v6  ;;  %v2853_v49 = vrot.slane %v2755_v41, 1  ;;  %v3133_v29 = vrot.slane %v3035_v4, 2 }
 0x1bc   : > { %v2858_v37 = vsel %vm695_vm0, %v2855_v33, %v8044_v58  ;;  %v2700_v48 = vadd.f32 %v2655_v43, %v2291_v50  ;;  %v3438_v23 = vld [vmem:[#allocation2 + $0x10] ss:$2 sm:$0x1]  ;;  %v3442_v53 = vld [vmem:[#allocation2 + $0x11] ss:$2 sm:$0x1]  ;;  %v2003_v63 = vadd.f32 %v8047_v35, %v8046_v18  ;;  %v4411_v58 = vunpack.i.l.bf16 %v4410_v0 }
 0x1bd   : > { %v8045_v62 = vrot.slane %v6410_v55, 2  ;;  %v2754_v3 = vmul.f32 %v4412_v60, %v6157_v56  ;;  %v3034_v16 = vmul.f32 %v4412_v60, %v6229_v31  ;;  %v3452_v4 = vmax.f32 %v3438_v23, %v3442_v53 }
 0x1be   : > { %v3373_v6 = vmax.f32 %v3328_v13, 0.0  ;;  %v2856_v50 = vsel %vm695_vm0, %v2853_v49, %v2855_v33  ;;  %v2980_v55 = vadd.f32 %v2858_v37, %v2700_v48  ;;  %v2653_v27 = vmul.f32 %v4412_v60, %v6138_v59  ;;  %v3464_v33 = vld [vmem:[%s6824_s18 + $0x4] sm:$0x1] }
 0x1bf   : > { %v3138_v9 = vsel %vm976_vm1, %v3135_v34, %v8045_v62  ;;  %v2979_v43 = vadd.f32 %v2856_v50, %v2699_v17  ;;  %v2851_v41 = vrot.slane %v2754_v3, 1  ;;  %v3456_v62 = vmax.f32 %v3452_v4, %v3454_v36  ;;  %v8052_v17 = vld [vmem:[#allocation65_spill] sm:$0xff] }
 0x1c0   : > { %3419 = vst.msk [vmem:[#allocation2 + $0xe8] sm:$0xff] %vm3389_vm5, %v3373_v6  ;;  %v3136_v18 = vsel %vm976_vm1, %v3133_v29, %v3135_v34  ;;  %v3260_v35 = vadd.f32 %v3138_v9, %v2980_v55  ;;  %v2004_v61 = vadd.f32 %v8049_v5, %v8048_v44  ;;  %v3131_v60 = vrot.slane %v3034_v16, 2  ;;  %v4480_v5 = vpop.permute.xlu2 %4479  ;;  %v6851_v4 = vld [vmem:[#allocation2 + $0x88] ss:$2 sm:$0x1] }
 0x1c1   : > { %v3259_v37 = vadd.f32 %v3136_v18, %v2979_v43  ;;  %v8053_v0 = vrot.slane %v8052_v17, 6  ;;  %v8054_v36 = vrot.slane %v5931_v28, 6  ;;  %v8055_v34 = vrot.slane %v8040_v15, 6  ;;  %v6853_v6 = vld [vmem:[#allocation2 + $0x89] ss:$2 sm:$0x1] }
 0x1c2   : > { %v3458_v53 = vpack.c.bf16 %v3456_v62, %v3456_v62  ;;  %v3309_v9 = vadd.f32 %v6303_v7, %v3260_v35  ;;  %v2854_v3 = vsel %vm695_vm0, %v2851_v41, %v2853_v49  ;;  %v2652_v15 = vmul.f32 %v4411_v58, %v6138_v59 }
 0x1c3   : > { %v2161_v48 = vsel %vm2144_vm4, %v8054_v36, %v8053_v0  ;;  %v8056_v23 = vmov %v8053_v0  ;;  %v3308_v28 = vadd.f32 %v6303_v7, %v3259_v37  ;;  %v2753_v55 = vmul.f32 %v4411_v58, %v6157_v56 }
 0x1c4   : > { %v2163_v44 = vsel %vm2144_vm4, %v8056_v23, %v8055_v34  ;;  %v2288_v16 = vadd.f32 %v2161_v48, %v2003_v63  ;;  %v3465_v43 = vsel %vm6834_vm8, %v3458_v53, %v3464_v33  ;;  %v3354_v62 = vmax.f32 %v3309_v9, 0.0  ;;  %v8060_v9 = vld [vmem:[#allocation31_spill] sm:$0xff] }
 0x1c5   : > { %v2289_v50 = vadd.f32 %v2163_v44, %v2004_v61  ;;  %v3033_v18 = vmul.f32 %v4411_v58, %v6229_v31  ;;  %v4482_v35 = vunpack.i.h.bf16 %v4480_v5  ;;  %3466 = vst [vmem:[%s6824_s18 + $0x4] sm:$0x1] %v3465_v43  ;;  %v3353_v49 = vmax.f32 %v3308_v28, 0.0 }
 0x1c6   : > { %v2697_v63 = vadd.f32 %v2652_v15, %v2288_v16  ;;  %v2849_v0 = vrot.slane %v2753_v55, 1  ;;  %3400 = vst.msk [vmem:[#allocation2 + $0x50] sm:$0xff] %vm3389_vm5, %v3354_v62  ;;  %v3134_v61 = vsel %vm976_vm1, %v3131_v60, %v3133_v29  ;;  %v8059_v58 = vrot.slane %v6258_v10, 1  ;;  %v8061_v15 = vld [vmem:[#allocation28_spill] sm:$0xff] }
 0x1c7   : > { %v2698_v17 = vadd.f32 %v2653_v27, %v2289_v50  ;;  %v3129_v36 = vrot.slane %v3033_v18, 2  ;;  %v2682_v48 = vmul.f32 %v4482_v35, %v6138_v59  ;;  %v6867_v33 = vld [vmem:[#allocation2 + $0xec] ss:$2 sm:$0x1]  ;;  %v4481_v53 = vunpack.i.l.bf16 %v4480_v5  ;;  %3399 = vst.msk [vmem:[#allocation2 + $0x48] sm:$0xff] %vm3389_vm5, %v3353_v49  ;;  %v8063_v18 = vld [vmem:[#allocation71_spill] sm:$0xff] }
 0x1c8   : > { %8057 = vst [vmem:[#allocation47_spill] sm:$0xff] %v6867_v33  ;;  %v6869_v34 = vld [vmem:[#allocation2 + $0xed] ss:$2 sm:$0x1]  ;;  %v2850_v23 = vsel %vm695_vm0, %v8059_v58, %v2849_v0  ;;  %v2852_v27 = vsel %vm695_vm0, %v2849_v0, %v2851_v41  ;;  %v6878_v28 = vmul.f32 %v4482_v35, %v6157_v56  ;;  %v6881_v50 = vmul.f32 %v4482_v35, %v6229_v31  ;;  %v4430_v35 = vpop.permute.xlu1 %4429  ;;  %v8065_v58 = vld [vmem:[#allocation11_spill] sm:$0xff]  ;;  %v8075_v10 = vld [vmem:[#allocation72_spill] sm:$0xff] }
 0x1c9   : > { %8058 = vst [vmem:[#allocation48_spill] sm:$0xff] %v6869_v34  ;;  %v2978_v44 = vadd.f32 %v2854_v3, %v2698_v17  ;;  %v2976_v16 = vadd.f32 %v2850_v23, %v8060_v9  ;;  %v2977_v29 = vadd.f32 %v2852_v27, %v2697_v63  ;;  %v8062_v55 = vrot.slane %v8061_v15, 2  ;;  %v8064_v49 = vld [vmem:[#allocation74_spill] sm:$0xff]  ;;  %v8067_v27 = vld [vmem:[#allocation68_spill] sm:$0xff] }
 0x1ca   : > { %v3132_v5 = vsel %vm976_vm1, %v3129_v36, %v3131_v60  ;;  %v2031_v63 = vadd.f32 %v8064_v49, %v8063_v18  ;;  %v2033_v17 = vadd.f32 %v6515_v57, %v6507_v32  ;;  %v8066_v23 = vrot.slane %v8065_v58, 6 }
 0x1cb   : > { %v3130_v41 = vsel %vm976_vm1, %v8062_v55, %v3129_v36  ;;  %v3258_v3 = vadd.f32 %v3134_v61, %v2978_v44  ;;  %v3257_v62 = vadd.f32 %v3132_v5, %v2977_v29  ;;  %v8068_v9 = vrot.slane %v8067_v27, 6 }
 0x1cc   : > { %v3256_v43 = vadd.f32 %v3130_v41, %v2976_v16  ;;  %v8069_v60 = vrot.slane %v6490_v12, 6  ;;  %v8070_v61 = vrot.slane %v6518_v42, 6  ;;  %v2680_v44 = vmul.f32 %v4481_v53, %v6138_v59  ;;  %v4425_v41 = vpop.permute.xlu0 %4424  ;;  %v8084_v12 = vld [vmem:[#allocation21_spill] sm:$0xff] }
 0x1cd   : > { %v3307_v0 = vadd.f32 %v6303_v7, %v3258_v3  ;;  %v2217_v15 = vsel %vm2144_vm4, %v8068_v9, %v8066_v23  ;;  %v3306_v32 = vadd.f32 %v6303_v7, %v3257_v62  ;;  %v6910_v5 = vmul.f32 %v4481_v53, %v6157_v56 }
 0x1ce   : > { %v2221_v36 = vsel %vm2144_vm4, %v8070_v61, %v8069_v60  ;;  %v3305_v16 = vadd.f32 %v6303_v7, %v3256_v43  ;;  %v2316_v57 = vadd.f32 %v2217_v15, %v2031_v63  ;;  %v4432_v3 = vunpack.i.h.bf16 %v4430_v35  ;;  %v3478_v60 = vld [vmem:[#allocation2 + $0x4c] ss:$2 sm:$0x1]  ;;  %v3482_v43 = vld [vmem:[#allocation2 + $0x4d] ss:$2 sm:$0x1] }
 0x1cf   : > { %v2318_v29 = vadd.f32 %v2221_v36, %v2033_v17  ;;  %v3351_v49 = vmax.f32 %v3306_v32, 0.0  ;;  %v3352_v23 = vmax.f32 %v3307_v0, 0.0  ;;  %v6913_v9 = vmul.f32 %v4481_v53, %v6229_v31 }
 0x1d0   : > { %v3350_v18 = vmax.f32 %v3305_v16, 0.0  ;;  %v6915_v61 = vadd.f32 %v2680_v44, %v2316_v57  ;;  %v2762_v63 = vmul.f32 %v4432_v3, %v6157_v56  ;;  %v3042_v17 = vmul.f32 %v4432_v3, %v6229_v31  ;;  %v8072_v44 = vld [vmem:[#allocation16_spill] sm:$0xff]  ;;  %v8073_v57 = vld [vmem:[#allocation75_spill] sm:$0xff] }
 0x1d1   : > { %v6917_v62 = vadd.f32 %v2682_v48, %v2318_v29  ;;  %v3486_v15 = vmax.f32 %v3478_v60, %v3482_v43  ;;  %v2661_v0 = vmul.f32 %v4432_v3, %v6138_v59  ;;  %v4431_v16 = vunpack.i.l.bf16 %v4430_v35  ;;  %3397 = vst.msk [vmem:[#allocation2 + $0x38] sm:$0xff] %vm3389_vm5, %v3351_v49  ;;  %v8074_v29 = vld [vmem:[#allocation8_spill] sm:$0xff]  ;;  %v8076_v60 = vld [vmem:[#allocation69_spill] sm:$0xff]  ;;  %v8078_v43 = vld [vmem:[#allocation70_spill] sm:$0xff] }
 0x1d2   : > { %3396 = vst.msk [vmem:[#allocation2 + $0x30] sm:$0xff] %vm3389_vm5, %v3350_v18  ;;  %v2867_v53 = vrot.slane %v2762_v63, 1  ;;  %v3147_v32 = vrot.slane %v3042_v17, 2  ;;  %v2011_v48 = vadd.f32 %v8073_v57, %v8072_v44  ;;  %v2012_v37 = vadd.f32 %v8075_v10, %v8074_v29 }
 0x1d3   : > { %8071 = vst [vmem:[#allocation15_spill] sm:$0xff] %v6917_v62  ;;  %v8077_v18 = vrot.slane %v8076_v60, 6  ;;  %v8079_v55 = vrot.slane %v8078_v43, 6  ;;  %v8080_v35 = vrot.slane %v5677_v8, 6  ;;  %v2660_v17 = vmul.f32 %v4431_v16, %v6138_v59 }
 0x1d4   : > { %3398 = vst.msk [vmem:[#allocation2 + $0x40] sm:$0xff] %vm3389_vm5, %v3352_v23  ;;  %v2761_v44 = vmul.f32 %v4431_v16, %v6157_v56  ;;  %v8082_v10 = vrot.slane %v6540_v19, 1  ;;  %v8083_v57 = vrot.slane %v6543_v38, 2  ;;  %v3041_v8 = vmul.f32 %v4431_v16, %v6229_v31  ;;  %v8086_v19 = vld [vmem:[#allocation20_spill] sm:$0xff] }
 0x1d5   : > { %v2177_v3 = vsel %vm2144_vm4, %v8079_v55, %v8077_v18  ;;  %v8081_v49 = vmov %v8077_v18  ;;  %v4427_v60 = vunpack.i.h.bf16 %v4425_v41  ;;  %v4426_v62 = vunpack.i.l.bf16 %v4425_v41 }
 0x1d6   : > { %v2179_v63 = vsel %vm2144_vm4, %v8081_v49, %v8080_v35  ;;  %v2870_v23 = vsel %vm695_vm0, %v2867_v53, %v8082_v10  ;;  %v3150_v29 = vsel %vm976_vm1, %v3147_v32, %v8083_v57  ;;  %v2296_v36 = vadd.f32 %v2177_v3, %v2011_v48 }
 0x1d7   : > { %v2297_v55 = vadd.f32 %v2179_v63, %v2012_v37  ;;  %v2865_v18 = vrot.slane %v2761_v44, 1  ;;  %v2009_v51 = vadd.f32 %v8085_v39, %v8084_v12  ;;  %v2010_v10 = vadd.f32 %v8087_v30, %v8086_v19 }
 0x1d8   : > { %v2705_v35 = vadd.f32 %v2660_v17, %v2296_v36  ;;  %v3145_v45 = vrot.slane %v3041_v8, 2  ;;  %v2659_v48 = vmul.f32 %v4427_v60, %v6138_v59  ;;  %v2760_v37 = vmul.f32 %v4427_v60, %v6157_v56  ;;  %v3470_v30 = vld [vmem:[#allocation2 + $0x38] ss:$2 sm:$0x1] }
 0x1d9   : > { %v2706_v49 = vadd.f32 %v2661_v0, %v2297_v55  ;;  %v2868_v38 = vsel %vm695_vm0, %v2865_v18, %v2867_v53  ;;  %v3468_v3 = vld [vmem:[#allocation2 + $0x28] ss:$2 sm:$0xff]  ;;  %v3472_v16 = vld [vmem:[#allocation2 + $0x29] ss:$2 sm:$0xff]  ;;  %v3040_v36 = vmul.f32 %v4427_v60, %v6229_v31  ;;  %v8088_v0 = vld [vmem:[#allocation76_spill] sm:$0xff]  ;;  %v8090_v12 = vrot.slane %v6037_v25, 6 }
 0x1da   : > { %v2985_v63 = vadd.f32 %v2868_v38, %v2705_v35  ;;  %v8089_v17 = vrot.slane %v8088_v0, 6  ;;  %v3474_v44 = vld [vmem:[#allocation2 + $0x39] ss:$2 sm:$0x1]  ;;  %v3483_v53 = vmax.f32 %v3468_v3, %v3472_v16  ;;  %v3148_v57 = vsel %vm976_vm1, %v3145_v45, %v3147_v32 }
 0x1db   : > { %v2986_v41 = vadd.f32 %v2870_v23, %v2706_v49  ;;  %v8091_v55 = vrot.slane %v8078_v43, 6  ;;  %v3476_v60 = vld [vmem:[#allocation2 + $0x3c] ss:$2 sm:$0xff]  ;;  %v3480_v49 = vld [vmem:[#allocation2 + $0x3d] ss:$2 sm:$0xff]  ;;  %v3484_v19 = vmax.f32 %v3470_v30, %v3474_v44  ;;  %v2863_v34 = vrot.slane %v2760_v37, 1 }
 0x1dc   : > { %v2173_v39 = vsel %vm2144_vm4, %v8090_v12, %v8089_v17  ;;  %v8092_v8 = vmov %v8089_v17  ;;  %v3265_v38 = vadd.f32 %v3148_v57, %v2985_v63  ;;  %v3485_v17 = vmax.f32 %v3476_v60, %v3480_v49 }
 0x1dd   : > { %v2175_v35 = vsel %vm2144_vm4, %v8092_v8, %v8091_v55  ;;  %v2294_v23 = vadd.f32 %v2173_v39, %v2009_v51  ;;  %v3266_v25 = vadd.f32 %v3150_v29, %v2986_v41  ;;  %v3143_v12 = vrot.slane %v3040_v36, 2  ;;  %v4495_v51 = vpop.permute.xlu2 %4494  ;;  %v3784_v39 = vld [vmem:[%s6824_s18 + $0xc] sm:$0x1] }
 0x1de   : > { %v2295_v33 = vadd.f32 %v2175_v35, %v2010_v10  ;;  %v2658_v3 = vmul.f32 %v4426_v62, %v6138_v59  ;;  %v3488_v32 = vmax.f32 %v3484_v19, %v3486_v15  ;;  %v3314_v43 = vadd.f32 %v6303_v7, %v3265_v38 }
 0x1df   : > { %v3315_v16 = vadd.f32 %v6303_v7, %v3266_v25  ;;  %v2866_v0 = vsel %vm695_vm0, %v2863_v34, %v2865_v18  ;;  %v3487_v55 = vmax.f32 %v3483_v53, %v3485_v17  ;;  %v3146_v30 = vsel %vm976_vm1, %v3143_v12, %v3145_v45 }
 0x1e0   : > { %v2703_v29 = vadd.f32 %v2658_v3, %v2294_v23  ;;  %v2704_v37 = vadd.f32 %v2659_v48, %v2295_v33  ;;  %v3490_v63 = vpack.c.bf16 %v3488_v32, %v3488_v32  ;;  %v3359_v41 = vmax.f32 %v3314_v43, 0.0  ;;  %v6999_v3 = vld [vmem:[#allocation3] ss:$0 sm:$0xff] }
 0x1e1   : > { %v3360_v10 = vmax.f32 %v3315_v16, 0.0  ;;  %v2759_v15 = vmul.f32 %v4426_v62, %v6157_v56  ;;  %v3489_v36 = vpack.c.bf16 %v3487_v55, %v3487_v55  ;;  %v3039_v7 = vmul.f32 %v4426_v62, %v6229_v31  ;;  %v7012_v55 = vld [vmem:[#allocation2 + $0x50] ss:$2 sm:$0xff] }
 0x1e2   : > { %v2984_v44 = vadd.f32 %v2866_v0, %v2704_v37  ;;  %v4497_v57 = vunpack.i.h.bf16 %v4495_v51  ;;  %v3494_v18 = vsel %vm6834_vm8, %v3490_v63, %v3784_v39  ;;  %3405 = vst.msk [vmem:[#allocation2 + $0x78] sm:$0xff] %vm3389_vm5, %v3359_v41  ;;  %v4496_v53 = vunpack.i.l.bf16 %v4495_v51 }
 0x1e3   : > { %v2861_v45 = vrot.slane %v2759_v15, 1  ;;  %v2032_v33 = vadd.f32 %v6512_v52, %v6504_v47  ;;  %3783 = vst.msk [vmem:[%s6824_s18 + $0x8] sm:$0xf] %vm3459_vm9, %v3489_v36  ;;  %v3141_v48 = vrot.slane %v3039_v7, 2  ;;  %v8093_v62 = vrot.slane %v6372_v40, 1 }
 0x1e4   : > { %v3264_v8 = vadd.f32 %v3146_v30, %v2984_v44  ;;  %v2681_v35 = vmul.f32 %v4497_v57, %v6138_v59  ;;  %v2782_v23 = vmul.f32 %v4497_v57, %v6157_v56  ;;  %3785 = vst [vmem:[%s6824_s18 + $0xc] sm:$0x1] %v3494_v18  ;;  %v3062_v19 = vmul.f32 %v4497_v57, %v6229_v31  ;;  %v7014_v30 = vld [vmem:[#allocation2 + $0x51] ss:$2 sm:$0xff]  ;;  %v4445_v44 = vpop.permute.xlu1 %4444 }
 0x1e5   : > { %v2862_v60 = vsel %vm695_vm0, %v8093_v62, %v2861_v45  ;;  %v2864_v49 = vsel %vm695_vm0, %v2861_v45, %v2863_v34  ;;  %v2039_v47 = vadd.f32 %v6772_v1, %v6622_v21  ;;  %3406 = vst.msk [vmem:[#allocation2 + $0x80] sm:$0xff] %vm3389_vm5, %v3360_v10  ;;  %v8094_v25 = vrot.slane %v6382_v11, 2 }
 0x1e6   : > { %v2982_v52 = vadd.f32 %v2862_v60, %v6413_v22  ;;  %v2983_v38 = vadd.f32 %v2864_v49, %v2703_v29  ;;  %v3144_v40 = vsel %vm976_vm1, %v3141_v48, %v3143_v12  ;;  %v3313_v34 = vadd.f32 %v6999_v3, %v3264_v8 }
 0x1e7   : > { %v3142_v17 = vsel %vm976_vm1, %v8094_v25, %v3141_v48  ;;  %v2907_v32 = vrot.slane %v2782_v23, 1  ;;  %v3187_v43 = vrot.slane %v3062_v19, 2  ;;  %v8095_v16 = vrot.slane %v6518_v42, 6 }
 0x1e8   : > { %v8096_v21 = vrot.slane %v8065_v58, 6  ;;  %v3262_v22 = vadd.f32 %v3142_v17, %v2982_v52  ;;  %v3263_v0 = vadd.f32 %v3144_v40, %v2983_v38  ;;  %v8097_v11 = vrot.slane %v6589_v26, 6 }
 0x1e9   : > { %v8098_v51 = vrot.slane %v6600_v20, 6  ;;  %v3358_v29 = vmax.f32 %v3313_v34, 0.0  ;;  %v2688_v42 = vmul.f32 %v4496_v53, %v6138_v59  ;;  %v7018_v58 = vmul.f32 %v4496_v53, %v6157_v56 }
 0x1ea   : > { %v2219_v1 = vsel %vm2144_vm4, %v8096_v21, %v8095_v16  ;;  %v3311_v63 = vadd.f32 %v6999_v3, %v3262_v22  ;;  %v3312_v41 = vadd.f32 %v6999_v3, %v3263_v0  ;;  %v8099_v15 = vrot.slane %v6910_v5, 1  ;;  %v8103_v16 = vld [vmem:[#allocation86_spill] sm:$0xff]  ;;  %v8105_v22 = vld [vmem:[#allocation83_spill] sm:$0xff] }
 0x1eb   : > { %v2233_v12 = vsel %vm2144_vm4, %v8098_v51, %v8097_v11  ;;  %v2317_v39 = vadd.f32 %v2219_v1, %v2032_v33  ;;  %v3185_v7 = vrot.slane %v6913_v9, 2  ;;  %3404 = vst.msk [vmem:[#allocation2 + $0x70] sm:$0xff] %vm3389_vm5, %v3358_v29  ;;  %v8100_v18 = vrot.slane %v6878_v28, 1  ;;  %v8106_v11 = vld [vmem:[#allocation80_spill] sm:$0xff] }
 0x1ec   : > { %v2324_v37 = vadd.f32 %v2233_v12, %v2039_v47  ;;  %v2908_v36 = vsel %vm695_vm0, %v8099_v15, %v2907_v32  ;;  %v3512_v48 = vmax.f32 %v7012_v55, %v7014_v30  ;;  %v3356_v8 = vmax.f32 %v3311_v63, 0.0  ;;  %v8108_v12 = vld [vmem:[#allocation81_spill] sm:$0xff] }
 0x1ed   : > { %v2726_v10 = vadd.f32 %v2681_v35, %v2317_v39  ;;  %v2910_v45 = vsel %vm695_vm0, %v2907_v32, %v8100_v18  ;;  %v3005_v33 = vadd.f32 %v2908_v36, %v6915_v61  ;;  %v3357_v35 = vmax.f32 %v3312_v41, 0.0  ;;  %v8102_v32 = vld [vmem:[#allocation22_spill] sm:$0xff] }
 0x1ee   : > { %v7027_v57 = vadd.f32 %v2688_v42, %v2324_v37  ;;  %v2921_v62 = vrot.slane %v7018_v58, 1  ;;  %v3188_v60 = vsel %vm976_vm1, %v3185_v7, %v3187_v43  ;;  %v8101_v49 = vrot.slane %v6881_v50, 2  ;;  %3402 = vst.msk [vmem:[#allocation2 + $0x60] sm:$0xff] %vm3389_vm5, %v3356_v8 }
 0x1ef   : > { %v3006_v23 = vadd.f32 %v2910_v45, %v2726_v10  ;;  %v4447_v47 = vunpack.i.h.bf16 %v4445_v44  ;;  %v7044_v61 = vmul.f32 %v4496_v53, %v6229_v31  ;;  %v3285_v52 = vadd.f32 %v3188_v60, %v3005_v33  ;;  %3403 = vst.msk [vmem:[#allocation2 + $0x68] sm:$0xff] %vm3389_vm5, %v3357_v35  ;;  %v8104_v53 = vld [vmem:[#allocation10_spill] sm:$0xff]  ;;  %v4440_v35 = vpop.permute.xlu0 %4439 }
 0x1f0   : > { %v3190_v19 = vsel %vm976_vm1, %v3187_v43, %v8101_v49  ;;  %v4446_v25 = vunpack.i.l.bf16 %v4445_v44  ;;  %v2017_v43 = vadd.f32 %v8103_v16, %v8102_v32  ;;  %v2018_v0 = vadd.f32 %v8105_v22, %v8104_v53 }
 0x1f1   : > { %v3286_v38 = vadd.f32 %v3190_v19, %v3006_v23  ;;  %v2667_v17 = vmul.f32 %v4447_v47, %v6138_v59  ;;  %v2768_v40 = vmul.f32 %v4447_v47, %v6157_v56  ;;  %v3048_v34 = vmul.f32 %v4447_v47, %v6229_v31  ;;  %v8112_v19 = vld [vmem:[#allocation50_spill] sm:$0xff] }
 0x1f2   : > { %v3334_v21 = vadd.f32 %v6999_v3, %v3285_v52  ;;  %v8107_v51 = vrot.slane %v8106_v11, 6  ;;  %v8109_v39 = vrot.slane %v8108_v12, 6  ;;  %v8110_v63 = vrot.slane %v7987_v24, 6  ;;  %v3507_v36 = vld [vmem:[#allocation2 + $0x74] ss:$2 sm:$0x1] }
 0x1f3   : > { %v3335_v1 = vadd.f32 %v6999_v3, %v3286_v38  ;;  %v2879_v37 = vrot.slane %v2768_v40, 1  ;;  %v3159_v42 = vrot.slane %v3048_v34, 2  ;;  %v3511_v44 = vld [vmem:[#allocation2 + $0x75] ss:$2 sm:$0x1]  ;;  %v2666_v45 = vmul.f32 %v4446_v25, %v6138_v59 }
 0x1f4   : > { %v2189_v29 = vsel %vm2144_vm4, %v8109_v39, %v8107_v51  ;;  %v8111_v41 = vmov %v8107_v51  ;;  %v2767_v33 = vmul.f32 %v4446_v25, %v6157_v56  ;;  %v3047_v8 = vmul.f32 %v4446_v25, %v6229_v31  ;;  %v8115_v25 = vld [vmem:[#allocation23_spill] sm:$0xff] }
 0x1f5   : > { %v2191_v10 = vsel %vm2144_vm4, %v8111_v41, %v8110_v63  ;;  %v2302_v15 = vadd.f32 %v2189_v29, %v2017_v43  ;;  %v3515_v23 = vmax.f32 %v3507_v36, %v3511_v44  ;;  %v3379_v60 = vmax.f32 %v3334_v21, 0.0  ;;  %v3499_v16 = vld [vmem:[#allocation2 + $0x60] ss:$2 sm:$0x1]  ;;  %v8117_v21 = vld [vmem:[#allocation89_spill] sm:$0xff] }
 0x1f6   : > { %v2303_v18 = vadd.f32 %v2191_v10, %v2018_v0  ;;  %v3380_v49 = vmax.f32 %v3335_v1, 0.0  ;;  %v8113_v24 = vrot.slane %v8112_v19, 1  ;;  %v8114_v52 = vrot.slane %v6642_v14, 2  ;;  %v3503_v43 = vld [vmem:[#allocation2 + $0x61] ss:$2 sm:$0x1] }
 0x1f7   : > { %v2711_v40 = vadd.f32 %v2666_v45, %v2302_v15  ;;  %v2877_v32 = vrot.slane %v2767_v33, 1  ;;  %v4442_v53 = vunpack.i.h.bf16 %v4440_v35  ;;  %v4441_v22 = vunpack.i.l.bf16 %v4440_v35  ;;  %v8116_v0 = vld [vmem:[#allocation93_spill] sm:$0xff]  ;;  %v8118_v1 = vld [vmem:[#allocation88_spill] sm:$0xff]  ;;  %3425 = vst.msk [vmem:[#allocation2 + $0x118] sm:$0xff] %vm3389_vm5, %v3379_v60  ;;  %v3787_v19 = vld [vmem:[%s6824_s18 + $0x14] sm:$0x1] }
 0x1f8   : > { %v2882_v47 = vsel %vm695_vm0, %v2879_v37, %v8113_v24  ;;  %v3162_v38 = vsel %vm976_vm1, %v3159_v42, %v8114_v52  ;;  %v2712_v34 = vadd.f32 %v2667_v17, %v2303_v18  ;;  %v2015_v11 = vadd.f32 %v8116_v0, %v8115_v25  ;;  %v3505_v39 = vld [vmem:[#allocation2 + $0x64] ss:$2 sm:$0xff]  ;;  %v3509_v29 = vld [vmem:[#allocation2 + $0x65] ss:$2 sm:$0xff]  ;;  %3426 = vst.msk [vmem:[#allocation2 + $0x120] sm:$0xff] %vm3389_vm5, %v3380_v49 }
 0x1f9   : > { %v2016_v51 = vadd.f32 %v8118_v1, %v8117_v21  ;;  %v3513_v63 = vmax.f32 %v3499_v16, %v3503_v43  ;;  %v2880_v14 = vsel %vm695_vm0, %v2877_v32, %v2879_v37  ;;  %v3157_v41 = vrot.slane %v3047_v8, 2  ;;  %v7084_v18 = vld [vmem:[#allocation2 + $0x78] ss:$2 sm:$0xff]  ;;  %v7086_v45 = vld [vmem:[#allocation2 + $0x79] ss:$2 sm:$0xff]  ;;  %v4460_v21 = vpop.permute.xlu1 %4459 }
 0x1fa   : > { %v2992_v17 = vadd.f32 %v2882_v47, %v2712_v34  ;;  %v3514_v10 = vmax.f32 %v3505_v39, %v3509_v29  ;;  %v2991_v15 = vadd.f32 %v2880_v14, %v2711_v40  ;;  %v2665_v36 = vmul.f32 %v4442_v53, %v6138_v59  ;;  %v8119_v47 = vld [vmem:[#allocation87_spill] sm:$0xff]  ;;  %v8121_v40 = vld [vmem:[#allocation90_spill] sm:$0xff] }
 0x1fb   : > { %v2766_v44 = vmul.f32 %v4442_v53, %v6157_v56  ;;  %v3517_v33 = vmax.f32 %v3513_v63, %v3515_v23  ;;  %v3160_v35 = vsel %vm976_vm1, %v3157_v41, %v3159_v42  ;;  %v3046_v37 = vmul.f32 %v4442_v53, %v6229_v31 }
 0x1fc   : > { %v3272_v60 = vadd.f32 %v3162_v38, %v2992_v17  ;;  %v3516_v8 = vmax.f32 %v3512_v48, %v3514_v10  ;;  %v3271_v49 = vadd.f32 %v3160_v35, %v2991_v15  ;;  %v8120_v52 = vrot.slane %v8119_v47, 6  ;;  %v8126_v35 = vld [vmem:[#allocation94_spill] sm:$0xff] }
 0x1fd   : > { %v2875_v24 = vrot.slane %v2766_v44, 1  ;;  %v8122_v34 = vrot.slane %v8121_v40, 6  ;;  %v3519_v23 = vpack.c.bf16 %v3517_v33, %v3517_v33  ;;  %v3155_v38 = vrot.slane %v3046_v37, 2  ;;  %v8125_v33 = vld [vmem:[#allocation26_spill] sm:$0xff] }
 0x1fe   : > { %v3321_v42 = vadd.f32 %v6999_v3, %v3272_v60  ;;  %v8123_v43 = vrot.slane %v8108_v12, 6  ;;  %v8124_v53 = vmov %v8120_v52  ;;  %v3541_v30 = vmax.f32 %v7084_v18, %v7086_v45  ;;  %v8159_v45 = vld [vmem:[#allocation33_spill] sm:$0xff] }
 0x1ff   : > { %v2185_v16 = vsel %vm2144_vm4, %v8122_v34, %v8120_v52  ;;  %v3518_v48 = vpack.c.bf16 %v3516_v8, %v3516_v8  ;;  %v3320_v25 = vadd.f32 %v6999_v3, %v3271_v49  ;;  %v3523_v1 = vsel %vm6834_vm8, %v3519_v23, %v3787_v19  ;;  %v8129_v34 = vld [vmem:[#allocation110_spill] sm:$0xff] }
 0x200   : > { %v2187_v55 = vsel %vm2144_vm4, %v8124_v53, %v8123_v43  ;;  %v2300_v0 = vadd.f32 %v2185_v16, %v2015_v11  ;;  %v3366_v39 = vmax.f32 %v3321_v42, 0.0  ;;  %v2878_v29 = vsel %vm695_vm0, %v2875_v24, %v2877_v32  ;;  %3788 = vst [vmem:[%s6824_s18 + $0x14] sm:$0x1] %v3523_v1  ;;  %v8131_v43 = vld [vmem:[#allocation41_spill] sm:$0xff] }
 0x201   : > { %v2301_v12 = vadd.f32 %v2187_v55, %v2016_v51  ;;  %3786 = vst.msk [vmem:[%s6824_s18 + $0x10] sm:$0xf] %vm3459_vm9, %v3518_v48  ;;  %v3365_v63 = vmax.f32 %v3320_v25, 0.0  ;;  %v2664_v14 = vmul.f32 %v4441_v22, %v6138_v59  ;;  %v2765_v17 = vmul.f32 %v4441_v22, %v6157_v56  ;;  %v8133_v1 = vld [vmem:[#allocation25_spill] sm:$0xff] }
 0x202   : > { %v3045_v10 = vmul.f32 %v4441_v22, %v6229_v31  ;;  %v3158_v11 = vsel %vm976_vm1, %v3155_v38, %v3157_v41  ;;  %v4462_v44 = vunpack.i.h.bf16 %v4460_v21  ;;  %v2023_v60 = vadd.f32 %v8126_v35, %v8125_v33  ;;  %3412 = vst.msk [vmem:[#allocation2 + $0xb0] sm:$0xff] %vm3389_vm5, %v3366_v39 }
 0x203   : > { %v2710_v15 = vadd.f32 %v2665_v36, %v2301_v12  ;;  %3411 = vst.msk [vmem:[#allocation2 + $0xa8] sm:$0xff] %vm3389_vm5, %v3365_v63  ;;  %v2709_v32 = vadd.f32 %v2664_v14, %v2300_v0  ;;  %v2873_v51 = vrot.slane %v2765_v17, 1  ;;  %v4461_v19 = vunpack.i.l.bf16 %v4460_v21  ;;  %v8127_v36 = vld [vmem:[#allocation109_spill] sm:$0xff]  ;;  %v8132_v21 = vld [vmem:[#allocation14_spill] sm:$0xff]  ;;  %v8136_v63 = vld [vmem:[#allocation91_spill] sm:$0xff] }
 0x204   : > { %v3153_v37 = vrot.slane %v3045_v10, 2  ;;  %v2673_v49 = vmul.f32 %v4462_v44, %v6138_v59  ;;  %v2774_v22 = vmul.f32 %v4462_v44, %v6157_v56  ;;  %v3054_v41 = vmul.f32 %v4462_v44, %v6229_v31 }
 0x205   : > { %v2990_v8 = vadd.f32 %v2878_v29, %v2710_v15  ;;  %v8128_v47 = vrot.slane %v8127_v36, 1  ;;  %v2876_v40 = vsel %vm695_vm0, %v2873_v51, %v2875_v24  ;;  %v8130_v16 = vrot.slane %v8129_v34, 2  ;;  %v8134_v29 = vld [vmem:[#allocation24_spill] sm:$0xff] }
 0x206   : > { %v3156_v42 = vsel %vm976_vm1, %v3153_v37, %v3155_v38  ;;  %v2989_v55 = vadd.f32 %v2876_v40, %v2709_v32  ;;  %v2891_v25 = vrot.slane %v2774_v22, 1  ;;  %v3171_v0 = vrot.slane %v3054_v41, 2  ;;  %v4455_v32 = vpop.permute.xlu0 %4454 }
 0x207   : > { %v2874_v52 = vsel %vm695_vm0, %v8128_v47, %v2873_v51  ;;  %v3154_v23 = vsel %vm976_vm1, %v8130_v16, %v3153_v37  ;;  %v3270_v48 = vadd.f32 %v3158_v11, %v2990_v8  ;;  %v2024_v39 = vadd.f32 %v8133_v1, %v8132_v21 }
 0x208   : > { %v2988_v53 = vadd.f32 %v2874_v52, %v8131_v43  ;;  %v8135_v12 = vrot.slane %v8134_v29, 6  ;;  %v8137_v14 = vrot.slane %v8136_v63, 6  ;;  %v8138_v17 = vrot.slane %v8028_v2, 6  ;;  %v8142_v29 = vld [vmem:[#allocation37_spill] sm:$0xff] }
 0x209   : > { %v3269_v44 = vadd.f32 %v3156_v42, %v2989_v55  ;;  %v3319_v11 = vadd.f32 %v6999_v3, %v3270_v48  ;;  %v8140_v33 = vrot.slane %v6759_v46, 1  ;;  %v8141_v51 = vrot.slane %v6763_v54, 2  ;;  %v7157_v40 = vld [vmem:[#allocation2 + $0xb0] ss:$2 sm:$0x1] }
 0x20a   : > { %v2201_v24 = vsel %vm2144_vm4, %v8137_v14, %v8135_v12  ;;  %v8139_v10 = vmov %v8135_v12  ;;  %v3268_v15 = vadd.f32 %v3154_v23, %v2988_v53  ;;  %v2672_v2 = vmul.f32 %v4461_v19, %v6138_v59  ;;  %v7159_v46 = vld [vmem:[#allocation2 + $0xb1] ss:$2 sm:$0x1] }
 0x20b   : > { %v2203_v38 = vsel %vm2144_vm4, %v8139_v10, %v8138_v17  ;;  %v2894_v35 = vsel %vm695_vm0, %v2891_v25, %v8140_v33  ;;  %v3174_v37 = vsel %vm976_vm1, %v3171_v0, %v8141_v51  ;;  %v2308_v8 = vadd.f32 %v2201_v24, %v2023_v60  ;;  %v8143_v12 = vld [vmem:[#allocation38_spill] sm:$0xff] }
 0x20c   : > { %v2309_v22 = vadd.f32 %v2203_v38, %v2024_v39  ;;  %v3317_v41 = vadd.f32 %v6999_v3, %v3268_v15  ;;  %v3318_v36 = vadd.f32 %v6999_v3, %v3269_v44  ;;  %v3364_v47 = vmax.f32 %v3319_v11, 0.0  ;;  %v8144_v44 = vld [vmem:[#allocation30_spill] sm:$0xff]  ;;  %v8145_v11 = vld [vmem:[#allocation95_spill] sm:$0xff] }
 0x20d   : > { %v2773_v52 = vmul.f32 %v4461_v19, %v6157_v56  ;;  %v2717_v34 = vadd.f32 %v2672_v2, %v2308_v8  ;;  %v3053_v54 = vmul.f32 %v4461_v19, %v6229_v31  ;;  %v4457_v23 = vunpack.i.h.bf16 %v4455_v32 }
 0x20e   : > { %v2718_v16 = vadd.f32 %v2673_v49, %v2309_v22  ;;  %v3571_v60 = vmax.f32 %v7157_v40, %v7159_v46  ;;  %v3362_v42 = vmax.f32 %v3317_v41, 0.0  ;;  %v3363_v43 = vmax.f32 %v3318_v36, 0.0  ;;  %3410 = vst.msk [vmem:[#allocation2 + $0xa0] sm:$0xff] %vm3389_vm5, %v3364_v47 }
 0x20f   : > { %v2889_v53 = vrot.slane %v2773_v52, 1  ;;  %v3169_v48 = vrot.slane %v3053_v54, 2  ;;  %v2671_v21 = vmul.f32 %v4457_v23, %v6138_v59  ;;  %v2772_v1 = vmul.f32 %v4457_v23, %v6157_v56  ;;  %v4475_v52 = vpop.permute.xlu1 %4474 }
 0x210   : > { %v2998_v55 = vadd.f32 %v2894_v35, %v2718_v16  ;;  %3408 = vst.msk [vmem:[#allocation2 + $0x90] sm:$0xff] %vm3389_vm5, %v3362_v42  ;;  %v3052_v19 = vmul.f32 %v4457_v23, %v6229_v31  ;;  %v4456_v39 = vunpack.i.l.bf16 %v4455_v32  ;;  %v2021_v14 = vadd.f32 %v8143_v12, %v8142_v29  ;;  %v8146_v35 = vld [vmem:[#allocation36_spill] sm:$0xff] }
 0x211   : > { %v2892_v49 = vsel %vm695_vm0, %v2889_v53, %v2891_v25  ;;  %3409 = vst.msk [vmem:[#allocation2 + $0x98] sm:$0xff] %vm3389_vm5, %v3363_v43  ;;  %v3172_v17 = vsel %vm976_vm1, %v3169_v48, %v3171_v0  ;;  %v2887_v38 = vrot.slane %v2772_v1, 1  ;;  %v2022_v33 = vadd.f32 %v8145_v11, %v8144_v44  ;;  %v8148_v25 = vld [vmem:[#allocation27_spill] sm:$0xff]  ;;  %v8152_v11 = vld [vmem:[#allocation113_spill] sm:$0xff] }
 0x212   : > { %v2997_v24 = vadd.f32 %v2892_v49, %v2717_v34  ;;  %v3278_v10 = vadd.f32 %v3174_v37, %v2998_v55  ;;  %v3167_v15 = vrot.slane %v3052_v19, 2  ;;  %v8147_v51 = vrot.slane %v8146_v35, 6 }
 0x213   : > { %v8149_v8 = vrot.slane %v8148_v25, 6  ;;  %v8150_v22 = vrot.slane %v8136_v63, 6  ;;  %v2890_v37 = vsel %vm695_vm0, %v2887_v38, %v2889_v53  ;;  %v2670_v54 = vmul.f32 %v4456_v39, %v6138_v59 }
 0x214   : > { %v8151_v2 = vmov %v8147_v51  ;;  %v3277_v36 = vadd.f32 %v3172_v17, %v2997_v24  ;;  %v3327_v0 = vadd.f32 %v6999_v3, %v3278_v10  ;;  %v3170_v34 = vsel %vm976_vm1, %v3167_v15, %v3169_v48 }
 0x215   : > { %v2197_v32 = vsel %vm2144_vm4, %v8149_v8, %v8147_v51  ;;  %v2199_v41 = vsel %vm2144_vm4, %v8151_v2, %v8150_v22  ;;  %v2771_v23 = vmul.f32 %v4456_v39, %v6157_v56  ;;  %v7191_v42 = vld [vmem:[#allocation2 + $0xa0] ss:$2 sm:$0xff]  ;;  %v7193_v63 = vld [vmem:[#allocation2 + $0xa1] ss:$2 sm:$0xff]  ;;  %v3051_v1 = vmul.f32 %v4456_v39, %v6229_v31 }
 0x216   : > { %v2306_v47 = vadd.f32 %v2197_v32, %v2021_v14  ;;  %v2307_v16 = vadd.f32 %v2199_v41, %v2022_v33  ;;  %v3326_v43 = vadd.f32 %v6999_v3, %v3277_v36  ;;  %v3372_v55 = vmax.f32 %v3327_v0, 0.0  ;;  %v8154_v32 = vld [vmem:[#allocation43_spill] sm:$0xff]  ;;  %v8155_v41 = vld [vmem:[#allocation114_spill] sm:$0xff] }
 0x217   : > { %v4477_v49 = vunpack.i.h.bf16 %v4475_v52  ;;  %v3570_v53 = vmax.f32 %v7191_v42, %v7193_v63  ;;  %v2885_v29 = vrot.slane %v2771_v23, 1  ;;  %v3165_v14 = vrot.slane %v3051_v1, 2 }
 0x218   : > { %v2715_v19 = vadd.f32 %v2670_v54, %v2306_v47  ;;  %v2716_v48 = vadd.f32 %v2671_v21, %v2307_v16  ;;  %v3371_v12 = vmax.f32 %v3326_v43, 0.0  ;;  %3418 = vst.msk [vmem:[#allocation2 + $0xe0] sm:$0xff] %vm3389_vm5, %v3372_v55  ;;  %v3534_v10 = vld [vmem:[#allocation2 + $0x8c] ss:$2 sm:$0xff]  ;;  %v8153_v39 = vrot.slane %v8152_v11, 1 }
 0x219   : > { %v2679_v24 = vmul.f32 %v4477_v49, %v6138_v59  ;;  %v7202_v17 = vmul.f32 %v4477_v49, %v6157_v56  ;;  %v3536_v44 = vld [vmem:[#allocation2 + $0x9c] ss:$2 sm:$0x1]  ;;  %v2888_v35 = vsel %vm695_vm0, %v2885_v29, %v2887_v38  ;;  %v7209_v21 = vmul.f32 %v4477_v49, %v6229_v31  ;;  %v3538_v25 = vld [vmem:[#allocation2 + $0x8d] ss:$2 sm:$0xff] }
 0x21a   : > { %v2886_v33 = vsel %vm695_vm0, %v8153_v39, %v2885_v29  ;;  %v2996_v51 = vadd.f32 %v2890_v37, %v2716_v48  ;;  %v3540_v8 = vld [vmem:[#allocation2 + $0x9d] ss:$2 sm:$0x1]  ;;  %3417 = vst.msk [vmem:[#allocation2 + $0xd8] sm:$0xff] %vm3389_vm5, %v3371_v12  ;;  %v2995_v2 = vadd.f32 %v2888_v35, %v2715_v19  ;;  %v8156_v36 = vrot.slane %v8155_v41, 2  ;;  %v4470_v39 = vpop.permute.xlu0 %4469 }
 0x21b   : > { %v2994_v22 = vadd.f32 %v2886_v33, %v8154_v32  ;;  %v3168_v47 = vsel %vm976_vm1, %v3165_v14, %v3167_v15  ;;  %v3543_v16 = vmax.f32 %v3534_v10, %v3538_v25  ;;  %v3544_v38 = vmax.f32 %v3536_v44, %v3540_v8  ;;  %v3790_v12 = vld [vmem:[%s6824_s18 + $0x1c] sm:$0x1]  ;;  %v8165_v25 = vld [vmem:[#allocation97_spill] sm:$0xff] }
 0x21c   : > { %v3166_v0 = vsel %vm976_vm1, %v8156_v36, %v3165_v14  ;;  %v3276_v37 = vadd.f32 %v3170_v34, %v2996_v51  ;;  %v2903_v54 = vrot.slane %v7202_v17, 1  ;;  %v3275_v43 = vadd.f32 %v3168_v47, %v2995_v2  ;;  %v8162_v44 = vld [vmem:[#allocation96_spill] sm:$0xff] }
 0x21d   : > { %v3274_v23 = vadd.f32 %v3166_v0, %v2994_v22  ;;  %v3183_v55 = vrot.slane %v7209_v21, 2  ;;  %v4476_v1 = vunpack.i.l.bf16 %v4475_v52  ;;  %v3545_v49 = vmax.f32 %v3541_v30, %v3543_v16  ;;  %v8160_v30 = vld [vmem:[#allocation34_spill] sm:$0xff]  ;;  %v8163_v51 = vld [vmem:[#allocation32_spill] sm:$0xff] }
 0x21e   : > { %v8157_v19 = vmax.f32 %v6851_v4, %v6853_v6  ;;  %v3325_v15 = vadd.f32 %v6999_v3, %v3276_v37  ;;  %v8158_v29 = vrot.slane %v6910_v5, 1  ;;  %v3324_v52 = vadd.f32 %v6999_v3, %v3275_v43  ;;  %v8161_v5 = vld [vmem:[#allocation19_spill] sm:$0xff] }
 0x21f   : > { %v3323_v14 = vadd.f32 %v6999_v3, %v3274_v23  ;;  %v3186_v18 = vsel %vm976_vm1, %v3183_v55, %v3185_v7  ;;  %v2029_v4 = vadd.f32 %v8160_v30, %v8159_v45  ;;  %v3547_v6 = vpack.c.bf16 %v3545_v49, %v3545_v49 }
 0x220   : > { %v3546_v48 = vmax.f32 %v8157_v19, %v3544_v38  ;;  %v2906_v34 = vsel %vm695_vm0, %v2903_v54, %v8158_v29  ;;  %v3370_v10 = vmax.f32 %v3325_v15, 0.0  ;;  %v2030_v11 = vadd.f32 %v8162_v44, %v8161_v5  ;;  %v8169_v29 = vld [vmem:[#allocation35_spill] sm:$0xff] }
 0x221   : > { %v3368_v33 = vmax.f32 %v3323_v14, 0.0  ;;  %v3369_v35 = vmax.f32 %v3324_v52, 0.0  ;;  %v8164_v21 = vrot.slane %v8163_v51, 6  ;;  %v8166_v8 = vrot.slane %v8165_v25, 6  ;;  %3789 = vst.msk [vmem:[%s6824_s18 + $0x18] sm:$0xf] %vm3459_vm9, %v3547_v6 }
 0x222   : > { %v3548_v17 = vpack.c.bf16 %v3546_v48, %v3546_v48  ;;  %v8167_v7 = vrot.slane %v8067_v27, 6  ;;  %v3586_v41 = vld [vmem:[#allocation2 + $0xd8] ss:$2 sm:$0x1]  ;;  %v2678_v47 = vmul.f32 %v4476_v1, %v6138_v59  ;;  %v2779_v38 = vmul.f32 %v4476_v1, %v6157_v56  ;;  %v7257_v43 = vld [vmem:[#allocation2 + $0xdc] ss:$2 sm:$0xff] }
 0x223   : > { %v2213_v9 = vsel %vm2144_vm4, %v8166_v8, %v8164_v21  ;;  %v8168_v32 = vmov %v8164_v21  ;;  %v3590_v16 = vld [vmem:[#allocation2 + $0xd9] ss:$2 sm:$0x1]  ;;  %v3059_v27 = vmul.f32 %v4476_v1, %v6229_v31  ;;  %v4472_v37 = vunpack.i.h.bf16 %v4470_v39  ;;  %v7259_v49 = vld [vmem:[#allocation2 + $0xdd] ss:$2 sm:$0xff]  ;;  %3414 = vst.msk [vmem:[#allocation2 + $0xc0] sm:$0xff] %vm3389_vm5, %v3368_v33 }
 0x224   : > { %v2215_v22 = vsel %vm2144_vm4, %v8168_v32, %v8167_v7  ;;  %v3552_v2 = vsel %vm6834_vm8, %v3548_v17, %v3790_v12  ;;  %v2314_v36 = vadd.f32 %v2213_v9, %v2029_v4  ;;  %v4471_v23 = vunpack.i.l.bf16 %v4470_v39  ;;  %v8170_v12 = vld [vmem:[#allocation103_spill] sm:$0xff]  ;;  %3415 = vst.msk [vmem:[#allocation2 + $0xc8] sm:$0xff] %vm3389_vm5, %v3369_v35  ;;  %v8172_v6 = vld [vmem:[#allocation48_spill] sm:$0xff]  ;;  %v3796_v39 = vld [vmem:[%s6824_s18 + $0x2c] sm:$0x1] }
 0x225   : > { %v2315_v0 = vadd.f32 %v2215_v22, %v2030_v11  ;;  %3791 = vst [vmem:[%s6824_s18 + $0x1c] sm:$0x1] %v3552_v2  ;;  %v3600_v19 = vmax.f32 %v3586_v41, %v3590_v16  ;;  %v2027_v14 = vadd.f32 %v8170_v12, %v8169_v29  ;;  %v3601_v52 = vmax.f32 %v7257_v43, %v7259_v49  ;;  %v8171_v4 = vld [vmem:[#allocation47_spill] sm:$0xff]  ;;  %v8174_v51 = vld [vmem:[#allocation98_spill] sm:$0xff]  ;;  %v8176_v9 = vld [vmem:[#allocation100_spill] sm:$0xff] }
 0x226   : > { %v2723_v48 = vadd.f32 %v2678_v47, %v2314_v36  ;;  %v2901_v1 = vrot.slane %v2779_v38, 1  ;;  %v3181_v45 = vrot.slane %v3059_v27, 2  ;;  %v2677_v30 = vmul.f32 %v4472_v37, %v6138_v59  ;;  %3416 = vst.msk [vmem:[#allocation2 + $0xd0] sm:$0xff] %vm3389_vm5, %v3370_v10  ;;  %v8175_v21 = vld [vmem:[#allocation99_spill] sm:$0xff]  ;;  %v8178_v32 = vld [vmem:[#allocation101_spill] sm:$0xff]  ;;  %v4490_v27 = vpop.permute.xlu1 %4489 }
 0x227   : > { %v2724_v15 = vadd.f32 %v2679_v24, %v2315_v0  ;;  %v8173_v17 = vmax.f32 %v8171_v4, %v8172_v6  ;;  %v2778_v24 = vmul.f32 %v4472_v37, %v6157_v56  ;;  %v3058_v11 = vmul.f32 %v4472_v37, %v6229_v31 }
 0x228   : > { %v2904_v33 = vsel %vm695_vm0, %v2901_v1, %v2903_v54  ;;  %v3184_v35 = vsel %vm976_vm1, %v3181_v45, %v3183_v55  ;;  %v2028_v8 = vadd.f32 %v8175_v21, %v8174_v51  ;;  %v8177_v7 = vrot.slane %v8176_v9, 6 }
 0x229   : > { %v3604_v5 = vmax.f32 %v3600_v19, %v8173_v17  ;;  %v3004_v44 = vadd.f32 %v2906_v34, %v2724_v15  ;;  %v8179_v22 = vrot.slane %v8178_v32, 6  ;;  %v3003_v2 = vadd.f32 %v2904_v33, %v2723_v48 }
 0x22a   : > { %v2899_v36 = vrot.slane %v2778_v24, 1  ;;  %v3179_v0 = vrot.slane %v3058_v11, 2  ;;  %v8180_v47 = vrot.slane %v8165_v25, 6  ;;  %v8181_v54 = vmov %v8177_v7  ;;  %v3563_v19 = vld [vmem:[#allocation2 + $0xb4] ss:$2 sm:$0xff] }
 0x22b   : > { %v2209_v10 = vsel %vm2144_vm4, %v8179_v22, %v8177_v7  ;;  %v3606_v34 = vpack.c.bf16 %v3604_v5, %v3604_v5  ;;  %v3284_v41 = vadd.f32 %v3186_v18, %v3004_v44  ;;  %v2676_v38 = vmul.f32 %v4471_v23, %v6138_v59  ;;  %v3567_v48 = vld [vmem:[#allocation2 + $0xb5] ss:$2 sm:$0xff]  ;;  %v3569_v4 = vld [vmem:[#allocation2 + $0xc5] ss:$2 sm:$0x1] }
 0x22c   : > { %v2211_v55 = vsel %vm2144_vm4, %v8181_v54, %v8180_v47  ;;  %v2312_v16 = vadd.f32 %v2209_v10, %v2027_v14  ;;  %v3283_v43 = vadd.f32 %v3184_v35, %v3003_v2  ;;  %v2902_v18 = vsel %vm695_vm0, %v2899_v36, %v2901_v1  ;;  %v3565_v14 = vld [vmem:[#allocation2 + $0xc4] ss:$2 sm:$0x1] }
 0x22d   : > { %v3610_v37 = vsel %vm6834_vm8, %v3606_v34, %v3796_v39  ;;  %v3333_v49 = vadd.f32 %v6999_v3, %v3284_v41  ;;  %v3182_v25 = vsel %vm976_vm1, %v3179_v0, %v3181_v45  ;;  %v2313_v15 = vadd.f32 %v2211_v55, %v2028_v8  ;;  %v3584_v1 = vld [vmem:[#allocation2 + $0xc8] ss:$2 sm:$0xff]  ;;  %v3588_v11 = vld [vmem:[#allocation2 + $0xc9] ss:$2 sm:$0xff]  ;;  %v3793_v10 = vld [vmem:[%s6824_s18 + $0x24] sm:$0x1] }
 0x22e   : > { %3797 = vst [vmem:[%s6824_s18 + $0x2c] sm:$0x1] %v3610_v37  ;;  %v2721_v29 = vadd.f32 %v2676_v38, %v2312_v16  ;;  %v2777_v12 = vmul.f32 %v4471_v23, %v6157_v56  ;;  %v3572_v6 = vmax.f32 %v3563_v19, %v3567_v48  ;;  %v3332_v17 = vadd.f32 %v6999_v3, %v3283_v43  ;;  %v8187_v48 = vld [vmem:[#allocation29_spill] sm:$0xff] }
 0x22f   : > { %v3057_v5 = vmul.f32 %v4471_v23, %v6229_v31  ;;  %v4492_v44 = vunpack.i.h.bf16 %v4490_v27  ;;  %v3573_v24 = vmax.f32 %v3565_v14, %v3569_v4  ;;  %v3378_v39 = vmax.f32 %v3333_v49, 0.0  ;;  %v8182_v23 = vld [vmem:[#allocation13_spill] sm:$0xff] }
 0x230   : > { %v2722_v33 = vadd.f32 %v2677_v30, %v2313_v15  ;;  %v2897_v35 = vrot.slane %v2777_v12, 1  ;;  %v3574_v45 = vmax.f32 %v3570_v53, %v3572_v6  ;;  %v3599_v51 = vmax.f32 %v3584_v1, %v3588_v11  ;;  %v8184_v53 = vld [vmem:[#allocation52_spill] sm:$0xff]  ;;  %v8189_v4 = vld [vmem:[#allocation77_spill] sm:$0xff]  ;;  %v8190_v6 = vld [vmem:[#allocation51_spill] sm:$0xff] }
 0x231   : > { %v3377_v21 = vmax.f32 %v3332_v17, 0.0  ;;  %v3177_v8 = vrot.slane %v3057_v5, 2  ;;  %v3575_v9 = vmax.f32 %v3571_v60, %v3573_v24  ;;  %3424 = vst.msk [vmem:[#allocation2 + $0x110] sm:$0xff] %vm3389_vm5, %v3378_v39  ;;  %v8183_v7 = vrot.slane %v8182_v23, 1  ;;  %v8185_v60 = vld [vmem:[#allocation53_spill] sm:$0xff]  ;;  %v8191_v11 = vld [vmem:[#allocation79_spill] sm:$0xff]  ;;  %v4485_v23 = vpop.permute.xlu0 %4484 }
 0x232   : > { %v2900_v30 = vsel %vm695_vm0, %v2897_v35, %v2899_v36  ;;  %v3002_v22 = vadd.f32 %v2902_v18, %v2722_v33  ;;  %v3576_v42 = vpack.c.bf16 %v3574_v45, %v3574_v45  ;;  %v3603_v63 = vmax.f32 %v3599_v51, %v3601_v52  ;;  %v8193_v39 = vld [vmem:[#allocation104_spill] sm:$0xff]  ;;  %v8196_v51 = vld [vmem:[#allocation18_spill] sm:$0xff] }
 0x233   : > { %v2898_v32 = vsel %vm695_vm0, %v8183_v7, %v2897_v35  ;;  %3423 = vst.msk [vmem:[#allocation2 + $0x108] sm:$0xff] %vm3389_vm5, %v3377_v21  ;;  %v3001_v40 = vadd.f32 %v2900_v30, %v2721_v29  ;;  %v3577_v46 = vpack.c.bf16 %v3575_v9, %v3575_v9  ;;  %v8186_v2 = vrot.slane %v8185_v60, 2  ;;  %v8198_v7 = vld [vmem:[#allocation42_spill] sm:$0xff] }
 0x234   : > { %v3000_v34 = vadd.f32 %v2898_v32, %v8184_v53  ;;  %v3180_v47 = vsel %vm976_vm1, %v3177_v8, %v3179_v0  ;;  %v3282_v54 = vadd.f32 %v3182_v25, %v3002_v22  ;;  %v3201_v36 = vrot.slane %v7044_v61, 2  ;;  %3792 = vst.msk [vmem:[%s6824_s18 + $0x20] sm:$0xf] %vm3459_vm9, %v3576_v42  ;;  %v8188_v25 = vld [vmem:[#allocation102_spill] sm:$0xff] }
 0x235   : > { %v3178_v41 = vsel %vm976_vm1, %v8186_v2, %v3177_v8  ;;  %v3605_v52 = vpack.c.bf16 %v3603_v63, %v3603_v63  ;;  %v3281_v16 = vadd.f32 %v3180_v47, %v3001_v40  ;;  %v3581_v38 = vsel %vm6834_vm8, %v3577_v46, %v3793_v10  ;;  %v8199_v40 = vld [vmem:[#allocation39_spill] sm:$0xff]  ;;  %v8200_v46 = vld [vmem:[#allocation40_spill] sm:$0xff] }
 0x236   : > { %v3280_v55 = vadd.f32 %v3178_v41, %v3000_v34  ;;  %v3331_v37 = vadd.f32 %v6999_v3, %v3282_v54  ;;  %v7324_v43 = vmul.f32 %v4492_v44, %v6157_v56  ;;  %v7327_v49 = vmul.f32 %v4492_v44, %v6229_v31  ;;  %3794 = vst [vmem:[%s6824_s18 + $0x24] sm:$0x1] %v3581_v38  ;;  %v8202_v54 = vld [vmem:[#allocation106_spill] sm:$0xff]  ;;  %v8204_v38 = vld [vmem:[#allocation105_spill] sm:$0xff] }
 0x237   : > { %v3330_v18 = vadd.f32 %v6999_v3, %v3281_v16  ;;  %v7332_v19 = vunpack.i.l.bf16 %v4490_v27  ;;  %v2036_v15 = vadd.f32 %v8188_v25, %v8187_v48  ;;  %3795 = vst.msk [vmem:[%s6824_s18 + $0x28] sm:$0xf] %vm3459_vm9, %v3605_v52  ;;  %v2038_v17 = vadd.f32 %v8190_v6, %v8189_v4 }
 0x238   : > { %v3329_v0 = vadd.f32 %v6999_v3, %v3280_v55  ;;  %v3376_v29 = vmax.f32 %v3331_v37, 0.0  ;;  %v2919_v12 = vrot.slane %v7324_v43, 1  ;;  %v3199_v14 = vrot.slane %v7327_v49, 2  ;;  %v3623_v5 = vld [vmem:[#allocation2 + $0x114] ss:$2 sm:$0x1] }
 0x239   : > { %v3627_v24 = vld [vmem:[#allocation2 + $0x115] ss:$2 sm:$0x1]  ;;  %v2687_v1 = vmul.f32 %v4492_v44, %v6138_v59  ;;  %v8192_v27 = vrot.slane %v8191_v11, 6  ;;  %v8194_v33 = vrot.slane %v8193_v39, 6  ;;  %v8195_v45 = vrot.slane %v6600_v20, 6 }
 0x23a   : > { %v8197_v21 = vrot.slane %v8196_v51, 6  ;;  %v7355_v9 = vmul.f32 %v7332_v19, %v6157_v56  ;;  %v1949_v32 = vrot.slane %v8198_v7, 5  ;;  %v3631_v44 = vmax.f32 %v3623_v5, %v3627_v24  ;;  %3422 = vst.msk [vmem:[#allocation2 + $0x100] sm:$0xff] %vm3389_vm5, %v3376_v29  ;;  %v8205_v37 = vld [vmem:[#allocation107_spill] sm:$0xff] }
 0x23b   : > { %v2227_v35 = vsel %vm2144_vm4, %v8194_v33, %v8192_v27  ;;  %v3374_v30 = vmax.f32 %v3329_v0, 0.0  ;;  %v3375_v22 = vmax.f32 %v3330_v18, 0.0  ;;  %v2922_v20 = vsel %vm695_vm0, %v2919_v12, %v2921_v62  ;;  %v4505_v27 = vpop.permute.xlu1 %4504 }
 0x23c   : > { %v2231_v8 = vsel %vm2144_vm4, %v8197_v21, %v8195_v45  ;;  %v3202_v10 = vsel %vm976_vm1, %v3199_v14, %v3201_v36  ;;  %v7369_v42 = vadd.f32 %v2227_v35, %v2036_v15  ;;  %v2915_v53 = vrot.slane %v7355_v9, 1 }
 0x23d   : > { %v2323_v63 = vadd.f32 %v2231_v8, %v2038_v17  ;;  %3420 = vst.msk [vmem:[#allocation2 + $0xf0] sm:$0xff] %vm3389_vm5, %v3374_v30  ;;  %v7375_v34 = vmul.f32 %v7332_v19, %v6229_v31  ;;  %v2035_v60 = vadd.f32 %v8200_v46, %v8199_v40  ;;  %v4487_v2 = vunpack.i.h.bf16 %v4485_v23  ;;  %v8207_v17 = vld [vmem:[#allocation108_spill] sm:$0xff] }
 0x23e   : > { %3421 = vst.msk [vmem:[#allocation2 + $0xf8] sm:$0xff] %vm3389_vm5, %v3375_v22  ;;  %v8201_v47 = vmov %v8194_v33  ;;  %v8203_v52 = vrot.slane %v8202_v54, 6  ;;  %v4486_v16 = vunpack.i.l.bf16 %v4485_v23  ;;  %v2034_v0 = vadd.f32 %v8205_v37, %v8204_v38 }
 0x23f   : > { %v2732_v41 = vadd.f32 %v2687_v1, %v2323_v63  ;;  %v3195_v18 = vrot.slane %v7375_v34, 2  ;;  %v2684_v25 = vmul.f32 %v4487_v2, %v6138_v59  ;;  %v2785_v15 = vmul.f32 %v4487_v2, %v6157_v56 }
 0x240   : > { %v2225_v55 = vsel %vm2144_vm4, %v8203_v52, %v8201_v47  ;;  %v3065_v4 = vmul.f32 %v4487_v2, %v6229_v31  ;;  %v8206_v6 = vmov %v8203_v52  ;;  %v8208_v5 = vrot.slane %v8207_v17, 6 }
 0x241   : > { %v2320_v48 = vadd.f32 %v2225_v55, %v2035_v60  ;;  %v3012_v29 = vadd.f32 %v2922_v20, %v2732_v41  ;;  %v2683_v1 = vmul.f32 %v4486_v16, %v6138_v59  ;;  %v2913_v33 = vrot.slane %v2785_v15, 1  ;;  %v3615_v21 = vld [vmem:[#allocation2 + $0x100] ss:$2 sm:$0x1]  ;;  %v3621_v63 = vld [vmem:[#allocation2 + $0x104] ss:$2 sm:$0xff] }
 0x242   : > { %v2223_v24 = vsel %vm2144_vm4, %v8208_v5, %v8206_v6  ;;  %v2784_v45 = vmul.f32 %v4486_v16, %v6157_v56  ;;  %v3619_v8 = vld [vmem:[#allocation2 + $0x101] ss:$2 sm:$0x1]  ;;  %v3064_v30 = vmul.f32 %v4486_v16, %v6229_v31  ;;  %v4507_v22 = vunpack.i.h.bf16 %v4505_v27  ;;  %v3625_v40 = vld [vmem:[#allocation2 + $0x105] ss:$2 sm:$0xff] }
 0x243   : > { %v2729_v39 = vadd.f32 %v2684_v25, %v2320_v48  ;;  %v2319_v35 = vadd.f32 %v2223_v24, %v2034_v0  ;;  %v3292_v23 = vadd.f32 %v3202_v10, %v3012_v29  ;;  %v4506_v20 = vunpack.i.l.bf16 %v4505_v27  ;;  %v3799_v25 = vld [vmem:[%s6824_s18 + $0x34] sm:$0x1] }
 0x244   : > { %v3629_v46 = vmax.f32 %v3615_v21, %v3619_v8  ;;  %v2916_v60 = vsel %vm695_vm0, %v2913_v33, %v2915_v53  ;;  %v3193_v2 = vrot.slane %v3065_v4, 2  ;;  %v3630_v47 = vmax.f32 %v3621_v63, %v3625_v40  ;;  %v8212_v40 = vld [vmem:[#allocation92_spill] sm:$0xff] }
 0x245   : > { %v2728_v41 = vadd.f32 %v2683_v1, %v2319_v35  ;;  %v3341_v54 = vadd.f32 %v6999_v3, %v3292_v23  ;;  %v3009_v52 = vadd.f32 %v2916_v60, %v2729_v39  ;;  %v2911_v55 = vrot.slane %v2784_v45, 1  ;;  %v3613_v10 = vld [vmem:[#allocation2 + $0xf0] ss:$2 sm:$0xff]  ;;  %v3617_v38 = vld [vmem:[#allocation2 + $0xf1] ss:$2 sm:$0xff] }
 0x246   : > { %v3633_v16 = vmax.f32 %v3629_v46, %v3631_v44  ;;  %v3196_v37 = vsel %vm976_vm1, %v3193_v2, %v3195_v18  ;;  %v3191_v0 = vrot.slane %v3064_v30, 2  ;;  %v3026_v48 = vmul.f32 %v4507_v22, %v6229_v31  ;;  %v8210_v44 = vld [vmem:[#allocation15_spill] sm:$0xff]  ;;  %v8213_v46 = vld [vmem:[#allocation54_spill] sm:$0xff] }
 0x247   : > { %v3628_v15 = vmax.f32 %v3613_v10, %v3617_v38  ;;  %v3386_v29 = vmax.f32 %v3341_v54, 0.0  ;;  %v3289_v4 = vadd.f32 %v3196_v37, %v3009_v52  ;;  %v8209_v6 = vrot.slane %v6878_v28, 1  ;;  %v8214_v52 = vld [vmem:[#allocation46_spill] sm:$0xff]  ;;  %v8216_v38 = vld [vmem:[#allocation45_spill] sm:$0xff] }
 0x248   : > { %v3635_v5 = vpack.c.bf16 %v3633_v16, %v3633_v16  ;;  %v2914_v24 = vsel %vm695_vm0, %v2911_v55, %v2913_v33  ;;  %v8211_v27 = vrot.slane %v6881_v50, 2  ;;  %v3194_v28 = vsel %vm976_vm1, %v3191_v0, %v3193_v2 }
 0x249   : > { %v2912_v17 = vsel %vm695_vm0, %v8209_v6, %v2911_v55  ;;  %v3632_v35 = vmax.f32 %v3628_v15, %v3630_v47  ;;  %3432 = vst.msk [vmem:[#allocation2 + $0x150] sm:$0xff] %vm3389_vm5, %v3386_v29  ;;  %v3338_v45 = vadd.f32 %v6999_v3, %v3289_v4  ;;  %v3008_v21 = vadd.f32 %v2914_v24, %v2728_v41  ;;  %v4500_v47 = vpop.permute.xlu0 %4499 }
 0x24a   : > { %v3007_v1 = vadd.f32 %v2912_v17, %v8210_v44  ;;  %v3192_v39 = vsel %vm976_vm1, %v8211_v27, %v3191_v0  ;;  %v3639_v8 = vsel %vm6834_vm8, %v3635_v5, %v3799_v25  ;;  %v3116_v33 = vrot.slane %v3026_v48, 2 }
 0x24b   : > { %v7422_v30 = vmul.f32 %v4506_v20, %v6157_v56  ;;  %v3634_v50 = vpack.c.bf16 %v3632_v35, %v3632_v35  ;;  %3800 = vst [vmem:[%s6824_s18 + $0x34] sm:$0x1] %v3639_v8  ;;  %v3383_v22 = vmax.f32 %v3338_v45, 0.0  ;;  %v3288_v63 = vadd.f32 %v3194_v28, %v3008_v21  ;;  %v8224_v21 = vld [vmem:[#allocation85_spill] sm:$0xff] }
 0x24c   : > { %v3287_v23 = vadd.f32 %v3192_v39, %v3007_v1  ;;  %v2970_v60 = vadd.f32 %v8213_v46, %v8212_v40  ;;  %v7430_v54 = vmul.f32 %v4506_v20, %v6229_v31  ;;  %v8215_v55 = vrot.slane %v8214_v52, 2  ;;  %v8220_v1 = vld [vmem:[#allocation112_spill] sm:$0xff]  ;;  %v8221_v39 = vld [vmem:[#allocation111_spill] sm:$0xff] }
 0x24d   : > { %v2923_v2 = vrot.slane %v7422_v30, 1  ;;  %v2234_v16 = vrot.slane %v8216_v38, 6  ;;  %3798 = vst.msk [vmem:[%s6824_s18 + $0x30] sm:$0xf] %vm3459_vm9, %v3634_v50  ;;  %v2685_v37 = vmul.f32 %v7332_v19, %v6138_v59  ;;  %v3337_v0 = vadd.f32 %v6999_v3, %v3288_v63  ;;  %v3444_v52 = vld [vmem:[#allocation2 + $0x14] ss:$2 sm:$0xff] }
 0x24e   : > { %v3336_v41 = vadd.f32 %v6999_v3, %v3287_v23  ;;  %v3118_v10 = vsel %vm976_vm1, %v3116_v33, %v8215_v55  ;;  %3429 = vst.msk [vmem:[#allocation2 + $0x138] sm:$0xff] %vm3389_vm5, %v3383_v22  ;;  %v3203_v15 = vrot.slane %v7430_v54, 2  ;;  %v4502_v29 = vunpack.i.h.bf16 %v4500_v47  ;;  %v3448_v55 = vld [vmem:[#allocation2 + $0x15] ss:$2 sm:$0xff] }
 0x24f   : > { %v3250_v48 = vadd.f32 %v3118_v10, %v2970_v60  ;;  %v2924_v20 = vsel %vm695_vm0, %v2921_v62, %v2923_v2  ;;  %v3382_v4 = vmax.f32 %v3337_v0, 0.0  ;;  %v4501_v5 = vunpack.i.l.bf16 %v4500_v47  ;;  %v8219_v62 = vld [vmem:[#allocation44_spill] sm:$0xff] }
 0x250   : > { %v3381_v25 = vmax.f32 %v3336_v41, 0.0  ;;  %v3013_v6 = vadd.f32 %v2924_v20, %v7027_v57  ;;  %v3204_v19 = vsel %vm976_vm1, %v3201_v36, %v3203_v15  ;;  %v8217_v24 = vrot.slane %v8196_v51, 6  ;;  %v8223_v51 = vld [vmem:[#allocation82_spill] sm:$0xff]  ;;  %v3642_v47 = vld [vmem:[#allocation2 + $0x118] ss:$2 sm:$0xff] }
 0x251   : > { %v3299_v17 = vadd.f32 %v6999_v3, %v3250_v48  ;;  %v8218_v44 = vrot.slane %v8191_v11, 6  ;;  %v1755_v27 = vadd.f32 %v8220_v1, %v8219_v62  ;;  %v8222_v57 = vrot.slane %v8221_v39, 5  ;;  %3428 = vst.msk [vmem:[#allocation2 + $0x130] sm:$0xff] %vm3389_vm5, %v3382_v4  ;;  %v3646_v41 = vld [vmem:[#allocation2 + $0x119] ss:$2 sm:$0xff] }
 0x252   : > { %3427 = vst.msk [vmem:[#allocation2 + $0x128] sm:$0xff] %vm3389_vm5, %v3381_v25  ;;  %v3293_v61 = vadd.f32 %v3204_v19, %v3013_v6  ;;  %v2689_v36 = vmul.f32 %v4502_v29, %v6138_v59  ;;  %v2037_v11 = vadd.f32 %v8224_v21, %v8223_v51  ;;  %v8225_v8 = vrot.slane %v6589_v26, 6  ;;  %v4510_v1 = vld [vmem:[#allocation3] ss:$0 sm:$0xff] }
 0x253   : > { %v2229_v58 = vsel %vm2144_vm4, %v8218_v44, %v8217_v24  ;;  %v1950_v35 = vsel %vm1859_vm3, %v8222_v57, %v1949_v32  ;;  %v3344_v45 = vmax.f32 %v3299_v17, 0.0  ;;  %v2686_v23 = vmul.f32 %v4501_v5, %v6138_v59 }
 0x254   : > { %v2040_v28 = vadd.f32 %v1950_v35, %v1755_v27  ;;  %v2235_v7 = vsel %vm2144_vm4, %v8225_v8, %v2234_v16  ;;  %v2787_v32 = vmul.f32 %v4501_v5, %v6157_v56  ;;  %v3342_v33 = vadd.f32 %v6999_v3, %v3293_v61 }
 0x255   : > { %3390 = vst.msk [vmem:[#allocation2] sm:$0xff] %vm3389_vm5, %v3344_v45  ;;  %v2322_v30 = vadd.f32 %v2229_v58, %v2037_v11  ;;  %v3067_v50 = vmul.f32 %v4501_v5, %v6229_v31  ;;  %v2730_v40 = vadd.f32 %v2685_v37, %v7369_v42  ;;  %v3652_v46 = vld [vmem:[#allocation2 + $0x13c] ss:$2 sm:$0x1]  ;;  %v3657_v25 = vmax.f32 %v3642_v47, %v3646_v41 }
 0x256   : > { %v2325_v22 = vadd.f32 %v2235_v7, %v2040_v28  ;;  %v2917_v63 = vrot.slane %v2787_v32, 1  ;;  %v3656_v60 = vld [vmem:[#allocation2 + $0x13d] ss:$2 sm:$0x1]  ;;  %v3387_v54 = vmax.f32 %v3342_v33, 0.0  ;;  %v3453_v19 = vmax.f32 %v3444_v52, %v3448_v55 }
 0x257   : > { %v2731_v26 = vadd.f32 %v2686_v23, %v2322_v30  ;;  %v3660_v10 = vmax.f32 %v3652_v46, %v3656_v60  ;;  %v3197_v42 = vrot.slane %v3067_v50, 2  ;;  %v3802_v58 = vld [vmem:[%s6824_s18 + $0x3c] sm:$0x1] }
 0x258   : > { %v2734_v59 = vadd.f32 %v2689_v36, %v2325_v22  ;;  %v2918_v56 = vsel %vm695_vm0, %v2915_v53, %v2917_v63  ;;  %v2920_v31 = vsel %vm695_vm0, %v2917_v63, %v2919_v12  ;;  %3433 = vst.msk [vmem:[#allocation2 + $0x158] sm:$0xff] %vm3389_vm5, %v3387_v54  ;;  %v3677_v36 = vld [vmem:[#allocation2 + $0x151] ss:$2 sm:$0x1]  ;;  %v3805_v63 = vld [vmem:[%s6824_s18 + $0x44] sm:$0x1] }
 0x259   : > { %v3010_v38 = vadd.f32 %v2918_v56, %v2730_v40  ;;  %v3644_v16 = vld [vmem:[#allocation2 + $0x128] ss:$2 sm:$0x1]  ;;  %v3648_v37 = vld [vmem:[#allocation2 + $0x129] ss:$2 sm:$0x1]  ;;  %v3011_v0 = vadd.f32 %v2920_v31, %v2731_v26  ;;  %v3198_v53 = vsel %vm976_vm1, %v3195_v18, %v3197_v42  ;;  %v3200_v43 = vsel %vm976_vm1, %v3197_v42, %v3199_v14 }
 0x25a   : > { %v3014_v48 = vadd.f32 %v2923_v2, %v2734_v59  ;;  %v3650_v20 = vld [vmem:[#allocation2 + $0x12c] ss:$2 sm:$0xff]  ;;  %v3654_v29 = vld [vmem:[#allocation2 + $0x12d] ss:$2 sm:$0xff]  ;;  %v3658_v9 = vmax.f32 %v3644_v16, %v3648_v37 }
 0x25b   : > { %v3659_v12 = vmax.f32 %v3650_v20, %v3654_v29  ;;  %v3290_v17 = vadd.f32 %v3198_v53, %v3010_v38  ;;  %v3291_v2 = vadd.f32 %v3200_v43, %v3011_v0 }
 0x25c   : > { %v3436_v4 = vld [vmem:[#allocation2] ss:$2 sm:$0xff]  ;;  %v3440_v6 = vld [vmem:[#allocation2 + $0x1] ss:$2 sm:$0xff]  ;;  %v3294_v5 = vadd.f32 %v3203_v15, %v3014_v48  ;;  %v3662_v24 = vmax.f32 %v3658_v9, %v3660_v10 }
 0x25d   : > { %v3451_v44 = vmax.f32 %v3436_v4, %v3440_v6  ;;  %v3661_v34 = vmax.f32 %v3657_v25, %v3659_v12  ;;  %v3339_v18 = vadd.f32 %v6999_v3, %v3290_v17  ;;  %v3340_v49 = vadd.f32 %v6999_v3, %v3291_v2  ;;  %v3673_v3 = vld [vmem:[#allocation2 + $0x150] ss:$2 sm:$0x1] }
 0x25e   : > { %v3664_v62 = vpack.c.bf16 %v3662_v24, %v3662_v24  ;;  %v3343_v27 = vadd.f32 %v4510_v1, %v3294_v5  ;;  %v3687_v32 = vmax.f32 %v3673_v3, %v3677_v36 }
 0x25f   : > { %v3455_v14 = vmax.f32 %v3451_v44, %v3453_v19  ;;  %v3663_v39 = vpack.c.bf16 %v3661_v34, %v3661_v34  ;;  %v3384_v35 = vmax.f32 %v3339_v18, 0.0  ;;  %v3385_v61 = vmax.f32 %v3340_v49, 0.0 }
 0x260   : > { %v3668_v15 = vsel %vm6834_vm8, %v3664_v62, %v3802_v58  ;;  %v3388_v45 = vmax.f32 %v3343_v27, 0.0 }
 0x261   : > { %v3457_v57 = vpack.c.bf16 %v3455_v14, %v3455_v14  ;;  %3801 = vst.msk [vmem:[%s6824_s18 + $0x38] sm:$0xf] %vm3459_vm9, %v3663_v39 }
 0x262   : > { %3803 = vst [vmem:[%s6824_s18 + $0x3c] sm:$0x1] %v3668_v15 }
 0x263   : > { %3460 = vst.msk [vmem:[%s6824_s18] sm:$0xf] %vm3459_vm9, %v3457_v57 }
 0x264   : > { %3430 = vst.msk [vmem:[#allocation2 + $0x140] sm:$0xff] %vm3389_vm5, %v3384_v35 }
 0x265   : > { %3431 = vst.msk [vmem:[#allocation2 + $0x148] sm:$0xff] %vm3389_vm5, %v3385_v61 }
 0x266   : > { %3435 = vst.msk [vmem:[#allocation2 + $0x160] sm:$0x3f] %vm3434_vm10, %v3388_v45 }
 0x26c   : > { %v3671_v51 = vld [vmem:[#allocation2 + $0x140] ss:$2 sm:$0xff]  ;;  %v3675_v21 = vld [vmem:[#allocation2 + $0x141] ss:$2 sm:$0xff] }
 0x26d   : > { %v3679_v11 = vld [vmem:[#allocation2 + $0x154] ss:$2 sm:$0xff]  ;;  %v3681_v28 = vld [vmem:[#allocation2 + $0x164] ss:$2 sm:$0x1]  ;;  %v3686_v8 = vmax.f32 %v3671_v51, %v3675_v21 }
 0x26e   : > { %v3683_v7 = vld [vmem:[#allocation2 + $0x155] ss:$2 sm:$0xff]  ;;  %v3685_v23 = vld [vmem:[#allocation2 + $0x165] ss:$2 sm:$0x1] }
 0x26f   : > { %v3688_v33 = vmax.f32 %v3679_v11, %v3683_v7  ;;  %v3689_v30 = vmax.f32 %v3681_v28, %v3685_v23 }
 0x271   : > { %v3690_v50 = vmax.f32 %v3686_v8, %v3688_v33  ;;  %v3691_v22 = vmax.f32 %v3687_v32, %v3689_v30 }
 0x273   : > { %v3692_v40 = vpack.c.bf16 %v3690_v50, %v3690_v50  ;;  %v3693_v46 = vpack.c.bf16 %v3691_v22, %v3691_v22 }
 0x275   : > { %3804 = vst.msk [vmem:[%s6824_s18 + $0x40] sm:$0xf] %vm3459_vm9, %v3692_v40  ;;  %v3697_v60 = vsel %vm6834_vm8, %v3693_v46, %v3805_v63 }
 0x276   : > { %3806 = vst [vmem:[%s6824_s18 + $0x44] sm:$0x1] %v3697_v60 }
 0x277 PF: > { %s14_s12 = sadd.s32 1, %s4551_s12  }
 0x278   : > { %p11_p7 = scmp.ge.s32.totalorder %s14_s12, 4  }
 0x27a   :  { %13 = sbr.rel (!%p11_p7) target bundleno = 1 (0x1), region = 154 }
 0x27f   :  { %3720 = vsyncpa [#allocation4], 1 }
 0x280   :  { %3722 = vsyncpa [#allocation4 + $0x1], 1 }

// kernel: bird_classifier_forward.11
= control target key start
LH: loop header
LB: loop body
LE: loop exit
PB: predicated region body
PF: predicated region fallthrough
CT: control target
= control target key end

     0   :  { %8 = vsyncpa [#allocation4], 0  ;;  %s1878_s0 = inlined_call_operand.vmem [shape: bf16[2,36,128], index: 0, kind: input, shape index: {}]   ;;  %s1879_s1 = inlined_call_operand.hbm [shape: bf16[9,128,128], index: 1, kind: input, shape index: {}]   ;;  %s1880_s2 = inlined_call_operand.hbm [shape: f32[1,128], index: 2, kind: input, shape index: {}]   ;;  %s1881_s3 = inlined_call_operand.vmem [shape: bf16[2,4,4,128], index: 3, kind: output, shape index: {}]  }
   0x1   :  { %9 = vsyncpa [#allocation6], 0  ;;  %s1752_s12 = smov 0  }
   0x2 LB: > { %s125_s15 = sshll.u32 %s1879_s1, 4  ;;  %s1221_s16 = sadd.s32 4294967295, %s1726_s12   ;;  %s1726_s12 = sphi %s1752_s12, %s15_s12   ;;  %s126_s15 = int_to_ptr.hbm [resolvable:$true] %s125_s15 }
   0x3   : > { %p1223_p0 = scmp.ge.s32.totalorder %s1726_s12, 1  ;;  %p114_p1 = scmp.lt.s32.totalorder %s1726_s12, 3 }
   0x4   : > { %p1635_p2 = scmp.eq.s32.totalorder %s1221_s16, 0  ;;  %s1728_s18 = smov [#allocation3]  }
   0x5   : > { %p1763_p3 = pnand %p1223_p0, %p114_p1  ;;  %s127_s19 = sshll.u32 %s1728_s18, 4  ;;  %s128_s19 = int_to_ptr.vmem [resolvable:$true] %s127_s19 }
   0x6   : > { %s140_s22 = sshll.u32 %s1880_s2, 4  ;;  %s1729_s23 = smov [#allocation5]   ;;  %s141_s22 = int_to_ptr.hbm [resolvable:$true] %s140_s22 }
   0x7   : > { %p1628_p4 = pneg %p1763_p3  ;;  %s142_s24 = sshll.u32 %s1729_s23, 4  ;;  %s143_s24 = int_to_ptr.vmem [resolvable:$true] %s142_s24 }
   0x8   : > { %s1730_s25 = smov 64   ;;  %s1731_s26 = smov 4  }
   0x9   : > { %p1629_p5 = pnand %p1635_p2, %p1628_p4  ;;  %163 = sbr.rel (%p1763_p3) target bundleno = 265 (0x109), region = 32 }
   0xb   : > { %1631 = dma.hbm_to_vmem [thread:$0]  (!%p1629_p5), %s126_s15, 9216, %s128_s19, [#allocation4], %s1730_s25, %s1730_s25, %s1731_s26  }
   0xc   : > { %1634 = dma.hbm_to_vmem [thread:$0]  (!%p1629_p5), %s141_s22, 16, %s143_s24, [#allocation6]  }
   0xe   : > { %1717 = dma.done.wait (%p1635_p2), [#allocation4], 9216  }
   0xf   : > { %1719 = vsyncadd (%p1635_p2), [#allocation4], 4294958080 }
  0x10   : > { %1721 = dma.done.wait (%p1635_p2), [#allocation6], 16  }
  0x11   : > { %1723 = vsyncadd (%p1635_p2), [#allocation6], 4294967280  ;;  %p193_p6 = scmp.lt.s32.totalorder %s1221_s16, 1  ;;  %v1542_v0 = vld [vmem:[#allocation3 + $0x78] sm:$0xff]  ;;  %v1541_v4 = vld [vmem:[#allocation3 + $0x70] sm:$0xff]  ;;  %vm424_vm1 = vcmask 1046528  }
  0x12   : > { %v1534_v1 = vld [vmem:[#allocation3 + $0x38] sm:$0xff]  ;;  %314 = vmatpush.bf16.msra.mxu0 %v1542_v0  ;;  %v1533_v5 = vld [vmem:[#allocation3 + $0x30] sm:$0xff]  ;;  %v1540_v8 = vld [vmem:[#allocation3 + $0x68] sm:$0xff]  ;;  %vm248_vm0 = vsmask.f32 7424  ;;  %vm530_vm2 = vcmask 1044480  }
  0x13   : > { %v1550_v2 = vld [vmem:[#allocation3 + $0xb8] sm:$0xff]  ;;  %s1884_s16 = smov (!%p193_p6, %s1221_s16), 1  ;;  %385 = vmatpush.bf16.msra.mxu1 %v1534_v1  ;;  %v1549_v6 = vld [vmem:[#allocation3 + $0xb0] sm:$0xff]  ;;  %v1532_v9 = vld [vmem:[#allocation3 + $0x28] sm:$0xff]  ;;  %vm626_vm3 = vsmask.f32 4352 }
  0x14   : > { %v1558_v3 = vld [vmem:[#allocation3 + $0xf8] sm:$0xff]  ;;  %478 = vmatpush.bf16.msra.mxu2 %v1550_v2  ;;  %v1557_v7 = vld [vmem:[#allocation3 + $0xf0] sm:$0xff]  ;;  %s1619_s27 = smul.u32 20, %s1884_s16  ;;  %v1548_v10 = vld [vmem:[#allocation3 + $0xa8] sm:$0xff]  ;;  %vm836_vm4 = vcmask 1045504   ;;  %s1526_s4 = sshll.u32 %s1884_s16, 3 }
  0x15   : > { %584 = vmatpush.bf16.msra.mxu3 %v1558_v3  ;;  %v1556_v11 = vld [vmem:[#allocation3 + $0xe8] sm:$0xff]  ;;  %v1539_v12 = vld [vmem:[#allocation3 + $0x60] sm:$0xff]  ;;  %v1538_v17 = vld [vmem:[#allocation3 + $0x58] sm:$0xff]  ;;  %vm932_vm5 = vsmask.f32 5376  ;;  %s202_s7 = scalar_lea.vmem %s1881_s3, %s1526_s4 }
  0x16   : > { %315 = vmatpush.bf16.msra.mxu0 %v1541_v4  ;;  %s1785_s30 = scalar_lea.vmem %s1878_s0, %s1619_s27  ;;  %v1531_v13 = vld [vmem:[#allocation3 + $0x20] sm:$0xff]  ;;  %v1530_v18 = vld [vmem:[#allocation3 + $0x18] sm:$0xff]  ;;  %v1537_v26 = vld [vmem:[#allocation3 + $0x50] sm:$0xff] }
  0x17   : > { %386 = vmatpush.bf16.msra.mxu1 %v1533_v5  ;;  %v1547_v14 = vld [vmem:[#allocation3 + $0xa0] sm:$0xff]  ;;  %v1788_v16 = vld [vmem:[%s1785_s30 + $0x4] sm:$0xff]   ;;  %v1546_v20 = vld [vmem:[#allocation3 + $0x98] sm:$0xff] }
  0x18   : > { %479 = vmatpush.bf16.msra.mxu2 %v1549_v6  ;;  %v1555_v15 = vld [vmem:[#allocation3 + $0xe0] sm:$0xff]  ;;  %v245_v19 = vunpack.c.h.b16 %v1788_v16  ;;  %v1554_v21 = vld [vmem:[#allocation3 + $0xd8] sm:$0xff]  ;;  %v1792_v22 = vld [vmem:[%s1785_s30] sm:$0xff]   ;;  %v525_v33 = vunpack.c.l.b16 %v1788_v16 }
  0x19   : > { %585 = vmatpush.bf16.msra.mxu3 %v1557_v7  ;;  %v499_v23 = vld [vmem:[%s1785_s30] sm:$0x8]  ;;  %v501_v24 = vld [vmem:[%s1785_s30 + $0x8] sm:$0xf]  ;;  %v502_v25 = vld [vmem:[%s1785_s30 + $0xc] sm:$0x3] }
  0x1a   : > { %316 = vmatpush.bf16.msra.mxu0 %v1540_v8  ;;  %v1529_v27 = vld [vmem:[#allocation3 + $0x10] sm:$0xff]  ;;  %v1797_v28 = vpack.c.b16 %v245_v19, %v245_v19  ;;  %v252_v29 = vshll.u32 %v1792_v22, 16  ;;  %v524_v32 = vunpack.c.l.b16 %v499_v23  ;;  %v1801_v34 = vunpack.c.l.b16 %v501_v24  ;;  %v1607_v36 = vld [vmem:[%s1785_s30] sm:$0xf0]  ;;  %v1608_v37 = vld [vmem:[%s1785_s30] sm:$0xe] }
  0x1b   : > { %387 = vmatpush.bf16.msra.mxu1 %v1532_v9  ;;  %v1545_v30 = vld [vmem:[#allocation3 + $0x90] sm:$0xff]  ;;  %v527_v35 = vunpack.c.l.b16 %v502_v25  ;;  %v1536_v38 = vld [vmem:[#allocation3 + $0x48] sm:$0xff]  ;;  %v250_v40 = vshrl.u32 %v1792_v22, 16  ;;  %v1609_v45 = vor.u32 %v1608_v37, %v1607_v36  ;;  %v1535_v48 = vld [vmem:[#allocation3 + $0x40] sm:$0xff] }
  0x1c   : > { %480 = vmatpush.bf16.msra.mxu2 %v1548_v10  ;;  %v1553_v31 = vld [vmem:[#allocation3 + $0xd0] sm:$0xff]  ;;  %v1528_v39 = vld [vmem:[#allocation3 + $0x8] sm:$0xff]  ;;  %v254_v41 = vrot.slane %v252_v29, 1  ;;  %v257_v42 = vshll.u32 %v1797_v28, 16  ;;  %v1809_v46 = vpack.c.b16 %v525_v33, %v524_v32  ;;  %v1527_v49 = vld [vmem:[#allocation3] sm:$0xff]  ;;  %v426_v55 = vrot.slane %v1797_v28, 1 }
  0x1d   : > { %586 = vmatpush.bf16.msra.mxu3 %v1556_v11  ;;  %v1544_v43 = vld [vmem:[#allocation3 + $0x88] sm:$0xff]  ;;  %v1812_v47 = vpack.c.b16 %v527_v35, %v1801_v34  ;;  %v1543_v52 = vld [vmem:[#allocation3 + $0x80] sm:$0xff]  ;;  %v425_v54 = vrot.slane %v1609_v45, 1  ;;  %v1566_v58 = vld [vmem:[#allocation3 + $0x138] sm:$0xff] }
  0x1e   : > { %317 = vmatpush.bf16.msra.mxu0 %v1539_v12  ;;  %v1552_v44 = vld [vmem:[#allocation3 + $0xc8] sm:$0xff]  ;;  %v255_v50 = vor.u32 %v254_v41, %v250_v40  ;;  %v1814_v51 = vrot.slane %v257_v42, 1  ;;  %v1551_v53 = vld [vmem:[#allocation3 + $0xc0] sm:$0xff]  ;;  %v531_v56 = vrot.slane %v1809_v46, 3  ;;  %v1574_v59 = vld [vmem:[#allocation3 + $0x178] sm:$0xff]  ;;  %v628_v41 = vshrl.u32 %v1809_v46, 16 }
  0x1f   : > { %388 = vmatpush.bf16.msra.mxu1 %v1531_v13  ;;  %v532_v57 = vrot.slane %v1812_v47, 3  ;;  %v427_v61 = vsel %vm424_vm1, %v425_v54, %v426_v55  ;;  %v1582_v62 = vld [vmem:[#allocation3 + $0x1b8] sm:$0xff]  ;;  %v1565_v1 = vld [vmem:[#allocation3 + $0x130] sm:$0xff]  ;;  %v1564_v5 = vld [vmem:[#allocation3 + $0x128] sm:$0xff]  ;;  %v631_v42 = vshll.u32 %v1809_v46, 16 }
  0x20   : > { %481 = vmatpush.bf16.msra.mxu2 %v1547_v14  ;;  %v260_v60 = vsel %vm248_vm0, %v255_v50, %v1814_v51  ;;  %v1590_v0 = vld [vmem:[#allocation3 + $0x1f8] sm:$0xff]  ;;  %v1573_v2 = vld [vmem:[#allocation3 + $0x170] sm:$0xff]  ;;  %v1572_v6 = vld [vmem:[#allocation3 + $0x168] sm:$0xff]  ;;  %v630_v46 = vrot.slane %v628_v41, 3 }
  0x21   : > { %587 = vmatpush.bf16.msra.mxu3 %v1555_v15  ;;  %v533_v63 = vsel %vm530_vm2, %v531_v56, %v532_v57  ;;  %v1581_v3 = vld [vmem:[#allocation3 + $0x1b0] sm:$0xff]  ;;  %v1580_v7 = vld [vmem:[#allocation3 + $0x1a8] sm:$0xff]  ;;  %v1563_v10 = vld [vmem:[#allocation3 + $0x120] sm:$0xff]  ;;  %v633_v54 = vrot.slane %v631_v42, 4 }
  0x22   : > { %318 = vmatpush.bf16.msra.mxu0 %v1538_v17  ;;  %v1589_v4 = vld [vmem:[#allocation3 + $0x1f0] sm:$0xff]  ;;  %v1588_v8 = vld [vmem:[#allocation3 + $0x1e8] sm:$0xff]  ;;  %v1571_v11 = vld [vmem:[#allocation3 + $0x160] sm:$0xff]  ;;  %v261_v17 = vshrl.u32 %v1797_v28, 16 }
  0x23   : > { %389 = vmatpush.bf16.msra.mxu1 %v1530_v18  ;;  %v205_v9 = vld [vmem:[%s1785_s30 + $0x8] sm:$0x7]  ;;  %v605_v12 = vld [vmem:[%s1785_s30 + $0xc] sm:$0x7]  ;;  %v805_v13 = vld [vmem:[%s1785_s30 + $0x4] sm:$0xc] }
  0x24   : > { %482 = vmatpush.bf16.msra.mxu2 %v1546_v20  ;;  %v1831_v14 = vld [vmem:[%s1785_s30 + $0x8] sm:$0xff]   ;;  %v911_v15 = vld [vmem:[%s1785_s30 + $0x10] sm:$0x3]  ;;  %v333_v18 = vunpack.c.l.b16 %v205_v9  ;;  %v1835_v19 = vunpack.c.l.b16 %v605_v12  ;;  %v1579_v20 = vld [vmem:[#allocation3 + $0x1a0] sm:$0xff]  ;;  %v830_v24 = vunpack.c.l.b16 %v805_v13  ;;  %v263_v29 = vor.u32 %v261_v17, %v1814_v51 }
  0x25   : > { %588 = vmatpush.bf16.msra.mxu3 %v1554_v21  ;;  %v1587_v21 = vld [vmem:[#allocation3 + $0x1e0] sm:$0xff]  ;;  %v1606_v23 = vunpack.c.h.b16 %v1831_v14  ;;  %v930_v25 = vunpack.c.l.b16 %v911_v15  ;;  %v1578_v32 = vld [vmem:[#allocation3 + $0x198] sm:$0xff]  ;;  %v1569_v40 = vld [vmem:[#allocation3 + $0x150] sm:$0xff] }
  0x26   : > { %319 = vmatpush.bf16.msra.mxu0 %v1537_v26  ;;  %v1562_v26 = vld [vmem:[#allocation3 + $0x118] sm:$0xff]  ;;  %v1560_v47 = vld [vmem:[#allocation3 + $0x108] sm:$0xff]  ;;  %v1597_v17 = vld [vmem:[#allocation3 + $0x230] sm:$0xff] }
  0x27   : > { %390 = vmatpush.bf16.msra.mxu1 %v1529_v27  ;;  %v1570_v27 = vld [vmem:[#allocation3 + $0x158] sm:$0xff]  ;;  %v1595_v16 = vld [vmem:[#allocation3 + $0x220] sm:$0xff] }
  0x28   : > { %483 = vmatpush.bf16.msra.mxu2 %v1545_v30  ;;  %v334_v30 = vpack.c.b16 %v333_v18, %v333_v18  ;;  %v1586_v35 = vld [vmem:[#allocation3 + $0x1d8] sm:$0xff]  ;;  %v1596_v18 = vld [vmem:[#allocation3 + $0x228] sm:$0xff] }
  0x29   : > { %589 = vmatpush.bf16.msra.mxu3 %v1553_v31  ;;  %v625_v31 = vpack.c.b16 %v1835_v19, %v1801_v34  ;;  %v808_v36 = vld [vmem:[%s1785_s30 + $0x10] sm:$0x1] }
  0x2a   : > { %320 = vmatpush.bf16.msra.mxu0 %v1536_v38  ;;  %v1847_v38 = vpack.c.b16 %v930_v25, %v1606_v23  ;;  %v833_v45 = vunpack.c.l.b16 %v808_v36 }
  0x2b   : > { %391 = vmatpush.bf16.msra.mxu1 %v1528_v39  ;;  %v1561_v39 = vld [vmem:[#allocation3 + $0x110] sm:$0xff] }
  0x2c   : > { %484 = vmatpush.bf16.msra.mxu2 %v1544_v43  ;;  %v636_v43 = vshrl.u32 %v625_v31, 16  ;;  %v945_v28 = vshll.u32 %v1847_v38, 16 }
  0x2d   : > { %590 = vmatpush.bf16.msra.mxu3 %v1552_v44  ;;  %v639_v44 = vshll.u32 %v625_v31, 16 }
  0x2e   : > { %321 = vmatpush.bf16.msra.mxu0 %v1535_v48  ;;  %v1577_v48 = vld [vmem:[#allocation3 + $0x190] sm:$0xff] }
  0x2f   : > { %392 = vmatpush.bf16.msra.mxu1 %v1527_v49  ;;  %v1585_v49 = vld [vmem:[#allocation3 + $0x1d0] sm:$0xff]  ;;  %v641_v56 = vrot.slane %v639_v44, 4 }
  0x30   : > { %485 = vmatpush.bf16.msra.mxu2 %v1543_v52  ;;  %v942_v52 = vshrl.u32 %v1847_v38, 16 }
  0x31   : > { %591 = vmatpush.bf16.msra.mxu3 %v1551_v53  ;;  %322 = vmatmul.bf16.vlgmr.msra.gmra.mxu0 %v260_v60  ;;  %v1568_v53 = vld [vmem:[#allocation3 + $0x148] sm:$0xff] }
  0x32   : > { %694 = vmatpush.bf16.msrb.mxu0 %v1566_v58  ;;  %393 = vmatmul.bf16.vlgmr.msra.gmra.mxu1 %v1792_v22  ;;  %v1605_v22 = vunpack.c.l.b16 %v1831_v14  ;;  %v1576_v58 = vld [vmem:[#allocation3 + $0x188] sm:$0xff] }
  0x33   : > { %784 = vmatpush.bf16.msrb.mxu1 %v1574_v59  ;;  %486 = vmatmul.bf16.vlgmr.msra.gmra.mxu2 %v427_v61  ;;  %v1584_v59 = vld [vmem:[#allocation3 + $0x1c8] sm:$0xff] }
  0x34   : > { %592 = vmatmul.bf16.vlgmr.msra.gmra.mxu3 %v533_v63  ;;  %890 = vmatpush.bf16.msrb.mxu2 %v1582_v62  ;;  %v1845_v37 = vpack.c.b16 %v1605_v22, %v830_v24  ;;  %v944_v62 = vrot.slane %v942_v52, 2  ;;  %v947_v63 = vrot.slane %v945_v28, 3  ;;  %v1592_v24 = vld [vmem:[#allocation3 + $0x208] sm:$0xff] }
  0x35   : > { %1000 = vmatpush.bf16.msrb.mxu3 %v1590_v0  ;;  %v1559_v0 = vld [vmem:[#allocation3 + $0x100] sm:$0xff] }
  0x36   : > { %695 = vmatpush.bf16.msrb.mxu0 %v1565_v1  ;;  %v934_v50 = vshrl.u32 %v1845_v37, 16  ;;  %v937_v51 = vshll.u32 %v1845_v37, 16  ;;  %v1567_v1 = vld [vmem:[#allocation3 + $0x140] sm:$0xff] }
  0x37   : > { %785 = vmatpush.bf16.msrb.mxu1 %v1573_v2  ;;  %v1598_v2 = vld [vmem:[#allocation3 + $0x238] sm:$0xff] }
  0x38   : > { %891 = vmatpush.bf16.msrb.mxu2 %v1581_v3  ;;  %v936_v60 = vrot.slane %v934_v50, 2  ;;  %v939_v61 = vrot.slane %v937_v51, 3  ;;  %v634_v3 = vor.u32 %v633_v54, %v630_v46 }
  0x39   : > { %1001 = vmatpush.bf16.msrb.mxu3 %v1589_v4 }
  0x3a   : > { %696 = vmatpush.bf16.msrb.mxu0 %v1564_v5  ;;  %v1575_v5 = vld [vmem:[#allocation3 + $0x180] sm:$0xff]  ;;  %v940_v9 = vor.u32 %v939_v61, %v936_v60 }
  0x3b   : > { %786 = vmatpush.bf16.msrb.mxu1 %v1572_v6  ;;  %v1583_v6 = vld [vmem:[#allocation3 + $0x1c0] sm:$0xff] }
  0x3c   : > { %892 = vmatpush.bf16.msrb.mxu2 %v1580_v7  ;;  %v837_v7 = vrot.slane %v1845_v37, 2 }
  0x3d   : > { %1002 = vmatpush.bf16.msrb.mxu3 %v1588_v8 }
  0x3e   : > { %697 = vmatpush.bf16.msrb.mxu0 %v1563_v10  ;;  %v948_v10 = vor.u32 %v947_v63, %v944_v62 }
  0x3f   : > { %787 = vmatpush.bf16.msrb.mxu1 %v1571_v11  ;;  %v732_v11 = vpack.c.b16 %v1801_v34, %v525_v33  ;;  %v1594_v33 = vld [vmem:[#allocation3 + $0x218] sm:$0xff]  ;;  %v733_v34 = vpack.c.b16 %v1835_v19, %v1835_v19  ;;  %v1043_v19 = vrot.slane %v1847_v38, 3 }
  0x40   : > { %893 = vmatpush.bf16.msrb.mxu2 %v1579_v20  ;;  %v949_v15 = vsel %vm932_vm5, %v940_v9, %v948_v10  ;;  %v1593_v20 = vld [vmem:[#allocation3 + $0x210] sm:$0xff] }
  0x41   : > { %1003 = vmatpush.bf16.msrb.mxu3 %v1587_v21  ;;  %327 = vmatmul.bf16.gmra.mxu0 %v263_v29  ;;  %v1021_v21 = vld [vmem:[%s1785_s30 + $0x4] sm:$0x8] }
  0x42   : > { %698 = vmatpush.bf16.msrb.mxu0 %v1562_v26  ;;  %398 = vmatmul.bf16.gmra.mxu1 %v334_v30  ;;  %v1591_v26 = vld [vmem:[#allocation3 + $0x200] sm:$0xff] }
  0x43   : > { %788 = vmatpush.bf16.msrb.mxu1 %v1570_v27  ;;  %491 = vmatmul.bf16.gmra.mxu2 %v426_v55  ;;  %v638_v55 = vrot.slane %v636_v43, 3 }
  0x44   : > { %597 = vmatmul.bf16.gmra.mxu3 %v532_v57  ;;  %894 = vmatpush.bf16.msrb.mxu2 %v1578_v32  ;;  %v835_v57 = vpack.c.b16 %v833_v45, %v1606_v23  ;;  %v1040_v23 = vunpack.c.l.b16 %v1021_v21 }
  0x45   : > { %1004 = vmatpush.bf16.msrb.mxu3 %v1586_v35  ;;  %v642_v4 = vor.u32 %v641_v56, %v638_v55 }
  0x46   : > { %699 = vmatpush.bf16.msrb.mxu0 %v1561_v39  ;;  %v838_v8 = vrot.slane %v835_v57, 2  ;;  %v1041_v25 = vpack.c.b16 %v1605_v22, %v1040_v23 }
  0x47   : > { %789 = vmatpush.bf16.msrb.mxu1 %v1569_v40  ;;  %v643_v12 = vsel %vm626_vm3, %v634_v3, %v642_v4 }
  0x48   : > { %895 = vmatpush.bf16.msrb.mxu2 %v1577_v48  ;;  %v839_v13 = vsel %vm836_vm4, %v837_v7, %v838_v8  ;;  %v1042_v27 = vrot.slane %v1041_v25, 3 }
  0x49   : > { %1005 = vmatpush.bf16.msrb.mxu3 %v1585_v49 }
  0x4a   : > { %700 = vmatpush.bf16.msrb.mxu0 %v1560_v47  ;;  %v1044_v29 = vsel %vm530_vm2, %v1042_v27, %v1043_v19 }
  0x4b   : > { %790 = vmatpush.bf16.msrb.mxu1 %v1568_v53 }
  0x4c   : > { %896 = vmatpush.bf16.msrb.mxu2 %v1576_v58 }
  0x4d   : > { %1006 = vmatpush.bf16.msrb.mxu3 %v1584_v59 }
  0x4e   : > { %701 = vmatpush.bf16.msrb.mxu0 %v1559_v0 }
  0x4f   : > { %791 = vmatpush.bf16.msrb.mxu1 %v1567_v1 }
  0x50   : > { %897 = vmatpush.bf16.msrb.mxu2 %v1575_v5 }
  0x51   : > { %1007 = vmatpush.bf16.msrb.mxu3 %v1583_v6  ;;  %702 = vmatmul.bf16.vlgmr.msrb.gmra.mxu0 %v643_v12 }
  0x52   : > { %1095 = vmatpush.bf16.msra.mxu0 %v1598_v2  ;;  %792 = vmatmul.bf16.vlgmr.msrb.gmra.mxu1 %v732_v11 }
  0x53   : > { %1611 = vmatpush.bf16.msra.mxu1 %v1598_v2  ;;  %898 = vmatmul.bf16.vlgmr.msrb.gmra.mxu2 %v839_v13  ;;  %v1651_v13 = vld [vmem:[#allocation5] ss:$0 sm:$0xff] }
  0x54   : > { %1008 = vmatmul.bf16.vlgmr.msrb.gmra.mxu3 %v949_v15 }
  0x56   : > { %1096 = vmatpush.bf16.msra.mxu0 %v1597_v17 }
  0x57   : > { %1612 = vmatpush.bf16.msra.mxu1 %v1597_v17 }
  0x5a   : > { %1097 = vmatpush.bf16.msra.mxu0 %v1596_v18 }
  0x5b   : > { %1613 = vmatpush.bf16.msra.mxu1 %v1596_v18 }
  0x5e   : > { %1098 = vmatpush.bf16.msra.mxu0 %v1595_v16 }
  0x5f   : > { %1614 = vmatpush.bf16.msra.mxu1 %v1595_v16 }
  0x61   : > { %707 = vmatmul.bf16.gmra.mxu0 %v642_v4 }
  0x62   : > { %1099 = vmatpush.bf16.msra.mxu0 %v1594_v33  ;;  %797 = vmatmul.bf16.gmra.mxu1 %v733_v34 }
  0x63   : > { %1615 = vmatpush.bf16.msra.mxu1 %v1594_v33  ;;  %903 = vmatmul.bf16.gmra.mxu2 %v838_v8 }
  0x64   : > { %1013 = vmatmul.bf16.gmra.mxu3 %v948_v10 }
  0x66   : > { %1100 = vmatpush.bf16.msra.mxu0 %v1593_v20 }
  0x67   : > { %1616 = vmatpush.bf16.msra.mxu1 %v1593_v20 }
  0x6a   : > { %1101 = vmatpush.bf16.msra.mxu0 %v1592_v24 }
  0x6b   : > { %1617 = vmatpush.bf16.msra.mxu1 %v1592_v24 }
  0x6e   : > { %1102 = vmatpush.bf16.msra.mxu0 %v1591_v26 }
  0x6f   : > { %1618 = vmatpush.bf16.msra.mxu1 %v1591_v26 }
  0x71   : > { %1103 = vmatmul.bf16.vlgmr.msra.gmra.mxu0 %v1044_v29 }
  0x72   : > { %1108 = vmatmul.bf16.vlgmr.msra.gmra.mxu1 %v1043_v19 }
  0xae   : > { %v323_v30 = vpop.f32.mrf.mxu0 }
  0xaf   : > { %v394_v31 = vpop.f32.mrf.mxu1 }
  0xb0   : > { %v395_v47 = vadd.f32 %v394_v31, %v323_v30 }
  0xb6   : > { %v487_v32 = vpop.f32.mrf.mxu2  ;;  %v325_v36 = vpop.f32.mrf.mxu0 }
  0xb7   : > { %v593_v35 = vpop.f32.mrf.mxu3  ;;  %v396_v37 = vpop.f32.mrf.mxu1  ;;  %v496_v46 = vadd.f32 %v487_v32, %v395_v47 }
  0xb8   : > { %v397_v61 = vadd.f32 %v396_v37, %v325_v36 }
  0xb9   : > { %v602_v59 = vadd.f32 %v593_v35, %v496_v46 }
  0xbe   : > { %v489_v14 = vpop.f32.mrf.mxu2  ;;  %v328_v39 = vpop.f32.mrf.mxu0 }
  0xbf   : > { %v595_v22 = vpop.f32.mrf.mxu3  ;;  %v399_v40 = vpop.f32.mrf.mxu1  ;;  %v497_v0 = vadd.f32 %v489_v14, %v397_v61 }
  0xc0   : > { %v400_v53 = vadd.f32 %v399_v40, %v328_v39 }
  0xc1   : > { %v603_v7 = vadd.f32 %v595_v22, %v497_v0 }
  0xc6   : > { %v492_v41 = vpop.f32.mrf.mxu2  ;;  %v330_v43 = vpop.f32.mrf.mxu0 }
  0xc7   : > { %v598_v42 = vpop.f32.mrf.mxu3  ;;  %v401_v38 = vpop.f32.mrf.mxu1  ;;  %v498_v54 = vadd.f32 %v492_v41, %v400_v53 }
  0xc9   : > { %v604_v60 = vadd.f32 %v598_v42, %v498_v54 }
  0xce   : > { %v494_v44 = vpop.f32.mrf.mxu2  ;;  %v703_v48 = vpop.f32.mrf.mxu0 }
  0xcf   : > { %v600_v45 = vpop.f32.mrf.mxu3  ;;  %v793_v49 = vpop.f32.mrf.mxu1  ;;  %v712_v62 = vadd.f32 %v703_v48, %v602_v59 }
  0xd1   : > { %v802_v5 = vadd.f32 %v793_v49, %v712_v62 }
  0xd6   : > { %v899_v50 = vpop.f32.mrf.mxu2  ;;  %v705_v52 = vpop.f32.mrf.mxu0 }
  0xd7   : > { %v1009_v51 = vpop.f32.mrf.mxu3  ;;  %v795_v28 = vpop.f32.mrf.mxu1  ;;  %v908_v8 = vadd.f32 %v899_v50, %v802_v5  ;;  %v713_v10 = vadd.f32 %v705_v52, %v603_v7 }
  0xd9   : > { %v1018_v11 = vadd.f32 %v1009_v51, %v908_v8  ;;  %v803_v33 = vadd.f32 %v795_v28, %v713_v10 }
  0xde   : > { %v901_v55 = vpop.f32.mrf.mxu2  ;;  %v708_v57 = vpop.f32.mrf.mxu0 }
  0xdf   : > { %v1011_v56 = vpop.f32.mrf.mxu3  ;;  %v798_v58 = vpop.f32.mrf.mxu1  ;;  %v714_v63 = vadd.f32 %v708_v57, %v604_v60  ;;  %v909_v21 = vadd.f32 %v901_v55, %v803_v33 }
  0xe1   : > { %v804_v6 = vadd.f32 %v798_v58, %v714_v63  ;;  %v1019_v27 = vadd.f32 %v1011_v56, %v909_v21 }
  0xe6   : > { %v904_v1 = vpop.f32.mrf.mxu2  ;;  %v710_v3 = vpop.f32.mrf.mxu0 }
  0xe7   : > { %v1014_v2 = vpop.f32.mrf.mxu3  ;;  %v800_v4 = vpop.f32.mrf.mxu1  ;;  %v910_v9 = vadd.f32 %v904_v1, %v804_v6 }
  0xe9   : > { %v1020_v12 = vadd.f32 %v1014_v2, %v910_v9 }
  0xee   : > { %v906_v15 = vpop.f32.mrf.mxu2  ;;  %v1104_v18 = vpop.f32.mrf.mxu0 }
  0xef   : > { %v1016_v17 = vpop.f32.mrf.mxu3  ;;  %v1109_v16 = vpop.f32.mrf.mxu1  ;;  %v1113_v34 = vadd.f32 %v1104_v18, %v1018_v11 }
  0xf0   : > { %v1115_v20 = vadd.f32 %v1109_v16, %v1020_v12 }
  0xf1   : > { %v1120_v23 = vadd.f32 %v1651_v13, %v1113_v34 }
  0xf2   : > { %v1122_v24 = vadd.f32 %v1651_v13, %v1115_v20 }
  0xf3   : > { %v1123_v25 = vmax.f32 %v1120_v23, 0.0 }
  0xf4   : > { %v1125_v26 = vmax.f32 %v1122_v24, 0.0 }
  0xf5   : > { %1126 = vst [vmem:[#allocation2] sm:$0xff] %v1123_v25 }
  0xf6   : > { %1128 = vst [vmem:[#allocation2 + $0x10] sm:$0x3f] %v1125_v26  ;;  %v1106_v19 = vpop.f32.mrf.mxu0 }
  0xf7   : > { %v1111_v29 = vpop.f32.mrf.mxu1  ;;  %v1114_v30 = vadd.f32 %v1106_v19, %v1019_v27 }
  0xf9   : > { %v1121_v31 = vadd.f32 %v1651_v13, %v1114_v30 }
  0xfb   : > { %v1124_v32 = vmax.f32 %v1121_v31, 0.0 }
  0xfc   : > { %v1129_v35 = vld [vmem:[#allocation2] sm:$0xf] }
  0xfd   : > { %v1130_v36 = vpack.c.bf16 %v1129_v35, %v1129_v35  ;;  %v1140_v37 = vld [vmem:[#allocation2 + $0x12] sm:$0xf]  ;;  %1127 = vst [vmem:[#allocation2 + $0x8] sm:$0xff] %v1124_v32 }
  0xfe   : > { %v1141_v14 = vpack.c.bf16 %v1140_v37, %v1140_v37 }
  0xff   : > { %1131 = vst [vmem:[%s202_s7] sm:$0x3] %v1130_v36 }
 0x100   : > { %1523 = vst [vmem:[%s202_s7 + $0x6] sm:$0x3] %v1141_v14 }
 0x104   : > { %v1132_v22 = vld [vmem:[#allocation2 + $0x6] sm:$0xf]  ;;  %v1136_v39 = vld [vmem:[#allocation2 + $0xc] sm:$0xf] }
 0x105   : > { %v1133_v40 = vpack.c.bf16 %v1132_v22, %v1132_v22  ;;  %v1137_v41 = vpack.c.bf16 %v1136_v39, %v1136_v39 }
 0x107   : > { %1521 = vst [vmem:[%s202_s7 + $0x2] sm:$0x3] %v1133_v40 }
 0x108   : > { %1522 = vst [vmem:[%s202_s7 + $0x4] sm:$0x3] %v1137_v41 }
 0x109 PF: > { %s15_s12 = sadd.s32 1, %s1726_s12  }
 0x10a   : > { %p12_p7 = scmp.ge.s32.totalorder %s15_s12, 4  }
 0x10c   :  { %14 = sbr.rel (!%p12_p7) target bundleno = 2 (0x2), region = 82 }
 0x111   :  { %1165 = vsyncpa [#allocation4], 1 }
 0x112   :  { %1167 = vsyncpa [#allocation4 + $0x1], 1 }
 0x113   :  { %1168 = vsyncpa [#allocation6], 1 }

// kernel: bird_classifier_forward.13
= control target key start
LH: loop header
LB: loop body
LE: loop exit
PB: predicated region body
PF: predicated region fallthrough
CT: control target
= control target key end

     0   :  { %8 = vsyncpa [#allocation4], 0  ;;  %s1179_s0 = inlined_call_operand.vmem [shape: bf16[2,4608], index: 0, kind: input, shape index: {}]   ;;  %s1180_s1 = inlined_call_operand.hbm [shape: bf16[4608,128], index: 1, kind: input, shape index: {}]   ;;  %s1181_s2 = inlined_call_operand.hbm [shape: f32[1,128], index: 2, kind: input, shape index: {}]   ;;  %s1182_s3 = inlined_call_operand.hbm [shape: f32[2,128], index: 3, kind: output, shape index: {}]  }
   0x1   :  { %10 = vsyncpa [#allocation4 + $0x1], 0 }
   0x2   :  { %11 = vsyncpa [#allocation7], 0 }
   0x3   :  { %12 = vsyncpa [#allocation5], 0  ;;  %s1026_s12 = smov 0   ;;  %s1028_s13 = smov 0  }
   0x4   :  { %s1030_s14 = smov 0   ;;  %s1032_s15 = smov 0  }
   0x5 LB: > { %s1045_s16 = sadd.s32 4294967295, %s999_s15   ;;  %s1048_s17 = sadd.s32 1, %s999_s15   ;;  %s999_s15 = sphi %s1032_s15, %s1190_s15   ;;  %s995_s14 = sphi %s1030_s14, %s1189_s14   ;;  %s991_s13 = sphi %s1028_s13, %s1188_s13   ;;  %s987_s12 = sphi %s1026_s12, %s1187_s12  }
   0x6   : > { %s48_s18 = ssub.s32 %s999_s15, %s1048_s17  ;;  %s51_s19 = sadd.s32 1, %s995_s14 }
   0x7   : > { %p49_p0 = scmp.eq.s32.totalorder %s48_s18, 0  ;;  %p58_p1 = scmp.ne.s32.totalorder %s995_s14, %s991_s13 }
   0x8   : > { %p59_p2 = scmp.eq.s32.totalorder %s999_s15, 0  ;;  %p64_p3 = scmp.ne.s32.totalorder %s991_s13, %s987_s12 }
   0x9   : > { %s1058_s20 = scalar_select %p49_p0, %s995_s14, %s51_s19  }
   0xa   : > { %p1060_p4 = por %p59_p2, %p58_p1  ;;  %p65_p5 = scmp.eq.s32.totalorder %s1045_s16, 0 }
   0xb   : > { %p631_p6 = scmp.ge.s32.totalorder %s999_s15, 1  ;;  %p117_p7 = scmp.lt.s32.totalorder %s999_s15, 10 }
   0xc   : > { %p1069_p8 = por %p65_p5, %p64_p3  ;;  %p632_p9 = scmp.ne.s32.totalorder %s1045_s16, 0 }
   0xd   : > { %p1074_p10 = pnand %p631_p6, %p117_p7  ;;  %s129_s26 = sshll.u32 %s1181_s2, 4  ;;  %s130_s26 = int_to_ptr.hbm [resolvable:$true] %s129_s26 }
   0xe   : > { %s1001_s27 = smov [#allocation6]   ;;  %p827_p13 = scmp.lt.s32.totalorder %s999_s15, 9 }
   0xf   : > { %p818_p11 = pneg %p1074_p10  ;;  %s131_s28 = sshll.u32 %s1001_s27, 4  ;;  %s132_s28 = int_to_ptr.vmem [resolvable:$true] %s131_s28 }
  0x10   : > { %s150_s29 = sand.u32 1, %s995_s14   ;;  %s775_s30 = sshll.u32 %s999_s15, 8 }
  0x11   : > { %p819_p12 = pnand %p818_p11, %p65_p5  ;;  %p1090_p0 = pnand %p827_p13, %p1060_p4 }
  0x12   : > { %s634_s5 = sshll.u32 %s150_s29, 8  ;;  %s159_s8 = scalar_lea.hbm %s1180_s1, %s775_s30 }
  0x13   : > { %821 = dma.hbm_to_vmem [thread:$0]  (!%p819_p12), %s130_s26, 16, %s132_s28, [#allocation7]  }
  0x14   : > { %s160_s9 = sshll.u32 %s159_s8, 4  ;;  %s154_s10 = scalar_lea.vmem [#allocation3], %s634_s5  ;;  %s161_s9 = int_to_ptr.hbm [resolvable:$true] %s160_s9 }
  0x15   : > { %s162_s11 = sshll.u32 %s154_s10, 4  ;;  %s151_s12 = scalar_lea.sflag [#allocation4], %s150_s29  ;;  %s163_s11 = int_to_ptr.vmem [resolvable:$true] %s162_s11 }
  0x16   : > { %s899_s18 = sshra.s32 %s161_s9, 4  ;;  %p903_p2 = pneg %p1090_p0  ;;  %s900_s18 = int_to_ptr.hbm [resolvable:$true] %s899_s18 }
  0x17   : > { %s901_s15 = scalar_lea.hbm %s900_s18, 256  ;;  %s906_s24 = scalar_lea.hbm %s1180_s1, 2304 }
  0x18   : > { %p902_p1 = scmp.ne.s32.totalorder %s900_s18, %s901_s15  ;;  %p907_p6 = scmp.lt.s32.totalorder %s900_s18, %s1180_s1 }
  0x19   : > { %p908_p7 = scmp.lt.s32.totalorder %s906_s24, %s901_s15 }
  0x1a   : > { %p904_p3 = pnand %p903_p2, %p902_p1 }
  0x1b   : > { %p909_p11 = por %p908_p7, %p907_p6 }
  0x1c   : > { %p905_p4 = pneg %p904_p3 }
  0x1e   : > { %p910_p12 = pnand %p909_p11, %p905_p4 }
  0x20   : > { %913 = shalt.err (!%p910_p12)
}
  0x21   : > { %s1002_s27 = smov 64   ;;  %s1003_s28 = smov 4  }
  0x22   : > { %825 = dma.hbm_to_vmem [thread:$0]  (!%p1090_p0), %s161_s9, 4096, %s163_s11, %s151_s12, %s1002_s27, %s1002_s27, %s1003_s28  }
  0x23   : > { %174 = sbr.rel (%p1074_p10) target bundleno = 238 (0xee), region = 32  ;;  %s176_s29 = sand.u32 (!%p1074_p10), 1, %s991_s13  }
  0x24   : > { %s638_s30 = sshll.u32 (!%p1074_p10), %s176_s29, 8  ;;  %s177_s5 = scalar_lea.sflag (!%p1074_p10), [#allocation4], %s176_s29 }
  0x25   : > { %s1110_s6 = scalar_lea.vmem (!%p1074_p10), [#allocation3], %s638_s30 }
  0x28   : > { %974 = dma.done.wait (%p1069_p8), %s177_s5, 4096  }
  0x29   : > { %976 = vsyncadd (%p1069_p8), %s177_s5, 4294963200 }
  0x2a   : > { %978 = dma.done.wait (%p65_p5), [#allocation7], 16  }
  0x2b   : > { %980 = vsyncadd (%p65_p5), [#allocation7], 4294967280  ;;  %s640_s23 = sshll.u32 %s1045_s16, 2  ;;  %217 = sbr.rel (%p632_p9) target bundleno = 50 (0x32), region = 44 }
  0x2c   : > { %p209_p10 = scmp.lt.s32.totalorder %s640_s23, 35 }
  0x2e   : > { %s1192_s23 = smov (!%p209_p10, %s640_s23), 35 }
  0x2f   : > { %s211_s8 = scalar_lea.vmem %s1179_s0, %s1192_s23 }
  0x30   : > { %v1004_v0 = vmov 0.0  }
  0x31   : > { %218 = vst [vmem:[#allocation2] sm:$0x3] %v1004_v0 }
  0x32 PF: > { %v783_v1 = vld [vmem:[%s1110_s6 + $0x38] sm:$0xff]  ;;  %v782_v5 = vld [vmem:[%s1110_s6 + $0x30] sm:$0xff]  ;;  %v781_v9 = vld [vmem:[%s1110_s6 + $0x28] sm:$0xff]  ;;  %p770_p5 = scmp.ne.s32.totalorder %s1045_s16, 8 }
  0x33   : > { %v791_v2 = vld [vmem:[%s1110_s6 + $0x78] sm:$0xff]  ;;  %487 = vmatpush.bf16.msra.mxu0 %v783_v1  ;;  %v790_v6 = vld [vmem:[%s1110_s6 + $0x70] sm:$0xff]  ;;  %v789_v10 = vld [vmem:[%s1110_s6 + $0x68] sm:$0xff] }
  0x34   : > { %v799_v3 = vld [vmem:[%s1110_s6 + $0xb8] sm:$0xff]  ;;  %500 = vmatpush.bf16.msra.mxu1 %v791_v2  ;;  %v798_v7 = vld [vmem:[%s1110_s6 + $0xb0] sm:$0xff]  ;;  %v797_v11 = vld [vmem:[%s1110_s6 + $0xa8] sm:$0xff] }
  0x35   : > { %v807_v4 = vld [vmem:[%s1110_s6 + $0xf8] sm:$0xff]  ;;  %513 = vmatpush.bf16.msra.mxu2 %v799_v3  ;;  %v806_v8 = vld [vmem:[%s1110_s6 + $0xf0] sm:$0xff]  ;;  %v805_v12 = vld [vmem:[%s1110_s6 + $0xe8] sm:$0xff] }
  0x36   : > { %526 = vmatpush.bf16.msra.mxu3 %v807_v4  ;;  %v780_v13 = vld [vmem:[%s1110_s6 + $0x20] sm:$0xff]  ;;  %v220_v15 = vld [vmem:[%s211_s8] sm:$0xf]  ;;  %v777_v26 = vld [vmem:[%s1110_s6 + $0x8] sm:$0xff] }
  0x37   : > { %488 = vmatpush.bf16.msra.mxu0 %v782_v5  ;;  %v788_v14 = vld [vmem:[%s1110_s6 + $0x60] sm:$0xff]  ;;  %286 = vst [vmem:[#allocation1] ss:$9 sm:$0xff] %v220_v15  ;;  %v779_v18 = vld [vmem:[%s1110_s6 + $0x18] sm:$0xff]  ;;  %v778_v22 = vld [vmem:[%s1110_s6 + $0x10] sm:$0xff] }
  0x38   : > { %501 = vmatpush.bf16.msra.mxu1 %v790_v6  ;;  %v796_v16 = vld [vmem:[%s1110_s6 + $0xa0] sm:$0xff]  ;;  %v787_v19 = vld [vmem:[%s1110_s6 + $0x58] sm:$0xff]  ;;  %v786_v23 = vld [vmem:[%s1110_s6 + $0x50] sm:$0xff] }
  0x39   : > { %514 = vmatpush.bf16.msra.mxu2 %v798_v7  ;;  %v804_v17 = vld [vmem:[%s1110_s6 + $0xe0] sm:$0xff]  ;;  %v795_v20 = vld [vmem:[%s1110_s6 + $0x98] sm:$0xff]  ;;  %v794_v24 = vld [vmem:[%s1110_s6 + $0x90] sm:$0xff] }
  0x3a   : > { %527 = vmatpush.bf16.msra.mxu3 %v806_v8  ;;  %v803_v21 = vld [vmem:[%s1110_s6 + $0xd8] sm:$0xff]  ;;  %v802_v25 = vld [vmem:[%s1110_s6 + $0xd0] sm:$0xff]  ;;  %v785_v27 = vld [vmem:[%s1110_s6 + $0x48] sm:$0xff] }
  0x3b   : > { %489 = vmatpush.bf16.msra.mxu0 %v781_v9  ;;  %v793_v28 = vld [vmem:[%s1110_s6 + $0x88] sm:$0xff]  ;;  %v776_v30 = vld [vmem:[%s1110_s6] sm:$0xff]  ;;  %v219_v46 = vld [vmem:[#allocation2] sm:$0x3] }
  0x3c   : > { %502 = vmatpush.bf16.msra.mxu1 %v789_v10  ;;  %v801_v29 = vld [vmem:[%s1110_s6 + $0xc8] sm:$0xff]  ;;  %v784_v31 = vld [vmem:[%s1110_s6 + $0x40] sm:$0xff] }
  0x3d   : > { %515 = vmatpush.bf16.msra.mxu2 %v797_v11  ;;  %v792_v32 = vld [vmem:[%s1110_s6 + $0x80] sm:$0xff] }
  0x3e   : > { %528 = vmatpush.bf16.msra.mxu3 %v805_v12  ;;  %v800_v33 = vld [vmem:[%s1110_s6 + $0xc0] sm:$0xff]  ;;  %v287_v34 = vld [vmem:[#allocation1] sm:$0xff]  ;;  %v289_v36 = vld [vmem:[#allocation1 + $0x12] sm:$0xff] }
  0x3f   : > { %490 = vmatpush.bf16.msra.mxu0 %v780_v13  ;;  %v288_v35 = vld [vmem:[#allocation1 + $0x9] sm:$0xff]  ;;  %v290_v37 = vld [vmem:[#allocation1 + $0x1b] sm:$0xff] }
  0x40   : > { %503 = vmatpush.bf16.msra.mxu1 %v788_v14 }
  0x41   : > { %516 = vmatpush.bf16.msra.mxu2 %v796_v16 }
  0x42   : > { %529 = vmatpush.bf16.msra.mxu3 %v804_v17 }
  0x43   : > { %491 = vmatpush.bf16.msra.mxu0 %v779_v18 }
  0x44   : > { %504 = vmatpush.bf16.msra.mxu1 %v787_v19 }
  0x45   : > { %517 = vmatpush.bf16.msra.mxu2 %v795_v20 }
  0x46   : > { %530 = vmatpush.bf16.msra.mxu3 %v803_v21 }
  0x47   : > { %492 = vmatpush.bf16.msra.mxu0 %v778_v22 }
  0x48   : > { %505 = vmatpush.bf16.msra.mxu1 %v786_v23 }
  0x49   : > { %518 = vmatpush.bf16.msra.mxu2 %v794_v24 }
  0x4a   : > { %531 = vmatpush.bf16.msra.mxu3 %v802_v25 }
  0x4b   : > { %493 = vmatpush.bf16.msra.mxu0 %v777_v26 }
  0x4c   : > { %506 = vmatpush.bf16.msra.mxu1 %v785_v27 }
  0x4d   : > { %519 = vmatpush.bf16.msra.mxu2 %v793_v28 }
  0x4e   : > { %532 = vmatpush.bf16.msra.mxu3 %v801_v29 }
  0x4f   : > { %494 = vmatpush.bf16.msra.mxu0 %v776_v30 }
  0x50   : > { %507 = vmatpush.bf16.msra.mxu1 %v784_v31 }
  0x51   : > { %520 = vmatpush.bf16.msra.mxu2 %v792_v32 }
  0x52   : > { %533 = vmatpush.bf16.msra.mxu3 %v800_v33  ;;  %495 = vmatmul.bf16.vlgmr.msra.gmra.mxu0 %v287_v34 }
  0x53   : > { %508 = vmatmul.bf16.vlgmr.msra.gmra.mxu1 %v288_v35 }
  0x54   : > { %521 = vmatmul.bf16.vlgmr.msra.gmra.mxu2 %v289_v36 }
  0x55   : > { %534 = vmatmul.bf16.vlgmr.msra.gmra.mxu3 %v290_v37 }
  0xcf   : > { %v496_v38 = vpop.f32.mrf.mxu0 }
  0xd0   : > { %v509_v39 = vpop.f32.mrf.mxu1 }
  0xd1   : > { %v510_v40 = vadd.f32 %v509_v39, %v496_v38 }
  0xd7   : > { %v522_v41 = vpop.f32.mrf.mxu2  ;;  %v498_v44 = vpop.f32.mrf.mxu0 }
  0xd8   : > { %v535_v42 = vpop.f32.mrf.mxu3  ;;  %v523_v43 = vadd.f32 %v522_v41, %v510_v40  ;;  %v511_v45 = vpop.f32.mrf.mxu1 }
  0xda   : > { %v536_v47 = vadd.f32 %v535_v42, %v523_v43 }
  0xdc   : > { %v539_v48 = vadd.f32 %v536_v47, %v219_v46  ;;  %544 = sbr.rel (%p770_p5) target bundleno = 233 (0xe9), region = 48 }
  0xde   : > { %540 = vst [vmem:[#allocation2] sm:$0x3] %v539_v48 }
  0xdf   : > { %v524_v49 = vpop.f32.mrf.mxu2 }
  0xe0   : > { %v537_v50 = vpop.f32.mrf.mxu3 }
  0xe1   : > { %v868_v52 = vld [vmem:[#allocation6] ss:$0 sm:$0xff] }
  0xe5   : > { %v545_v51 = vld [vmem:[#allocation2] sm:$0x3] }
  0xe6   : > { %v550_v53 = vadd.f32 %v868_v52, %v545_v51 }
  0xe8   : > { %551 = vst [vmem:[#allocation8] sm:$0x3] %v550_v53 }
  0xe9 PF: > { %p829_p8 = scmp.eq.s32.totalorder %s1045_s16, 8  ;;  %s1005_s22 = smov [#allocation8]  }
  0xea   : > { %s558_s9 = sshll.u32 %s1005_s22, 4  ;;  %s560_s12 = sshll.u32 %s1182_s3, 4  ;;  %s559_s9 = int_to_ptr.vmem [resolvable:$true] %s558_s9  ;;  %s561_s12 = int_to_ptr.hbm [resolvable:$true] %s560_s12 }
  0xeb   : > { %815 = dma.vmem_to_hbm [thread:$0]  (%p829_p8), %s559_s9, 32, %s561_s12, [#allocation5]  }
  0xec   : > { %982 = dma.done.wait (%p829_p8), [#allocation5], 32  }
  0xed   : > { %984 = vsyncadd (%p829_p8), [#allocation5], 4294967264 }
  0xee PF: > { %p15_p9 = scmp.ge.s32.totalorder %s1048_s17, 11   ;;  %s1187_s12 = smov %s991_s13 }
  0xef   : > { %s1188_s13 = smov %s995_s14  ;;  %s1189_s14 = smov %s1058_s20 }
  0xf0   : > { %s1190_s15 = smov %s1048_s17  ;;  %17 = sbr.rel (!%p15_p9) target bundleno = 5 (0x5), region = 84 }
  0xf5   :  { %574 = vsyncpa [#allocation4], 1 }
  0xf6   :  { %576 = vsyncpa [#allocation4 + $0x1], 1 }
  0xf7   :  { %577 = vsyncpa [#allocation7], 1 }
  0xf8   :  { %578 = vsyncpa [#allocation5], 1 }
  0xf9   :  { %580 = vsyncpa [#allocation5 + $0x1], 1 }

// kernel: bird_classifier_forward.12
= control target key start
LH: loop header
LB: loop body
LE: loop exit
PB: predicated region body
PF: predicated region fallthrough
CT: control target
= control target key end

     0   :  { %8 = vsyncpa [#allocation4], 0  ;;  %s2111_s0 = inlined_call_operand.vmem [shape: bf16[2,64,128], index: 0, kind: input, shape index: {}]   ;;  %s2112_s1 = inlined_call_operand.hbm [shape: bf16[9,128,128], index: 1, kind: input, shape index: {}]   ;;  %s2113_s2 = inlined_call_operand.hbm [shape: f32[1,128], index: 2, kind: input, shape index: {}]   ;;  %s2114_s3 = inlined_call_operand.vmem [shape: bf16[2,6,6,128], index: 3, kind: output, shape index: {}]  }
   0x1   :  { %9 = vsyncpa [#allocation6], 0  ;;  %s1944_s12 = smov 0  }
   0x2 LB: > { %s125_s15 = sshll.u32 %s2112_s1, 4  ;;  %s1367_s16 = sadd.s32 4294967295, %s1918_s12   ;;  %s1918_s12 = sphi %s1944_s12, %s15_s12   ;;  %s126_s15 = int_to_ptr.hbm [resolvable:$true] %s125_s15 }
   0x3   : > { %p1369_p0 = scmp.ge.s32.totalorder %s1918_s12, 1  ;;  %p114_p1 = scmp.lt.s32.totalorder %s1918_s12, 3 }
   0x4   : > { %p1809_p2 = scmp.eq.s32.totalorder %s1367_s16, 0  ;;  %s1920_s18 = smov [#allocation3]  }
   0x5   : > { %p1955_p3 = pnand %p1369_p0, %p114_p1  ;;  %s127_s19 = sshll.u32 %s1920_s18, 4  ;;  %s128_s19 = int_to_ptr.vmem [resolvable:$true] %s127_s19 }
   0x6   : > { %s140_s22 = sshll.u32 %s2113_s2, 4  ;;  %s1921_s23 = smov [#allocation5]   ;;  %s141_s22 = int_to_ptr.hbm [resolvable:$true] %s140_s22 }
   0x7   : > { %p1802_p4 = pneg %p1955_p3  ;;  %s142_s24 = sshll.u32 %s1921_s23, 4  ;;  %s143_s24 = int_to_ptr.vmem [resolvable:$true] %s142_s24 }
   0x8   : > { %s1922_s25 = smov 64   ;;  %s1923_s26 = smov 4  }
   0x9   : > { %p1803_p5 = pnand %p1809_p2, %p1802_p4  ;;  %163 = sbr.rel (%p1955_p3) target bundleno = 318 (0x13e), region = 32 }
   0xb   : > { %1805 = dma.hbm_to_vmem [thread:$0]  (!%p1803_p5), %s126_s15, 9216, %s128_s19, [#allocation4], %s1922_s25, %s1922_s25, %s1923_s26  }
   0xc   : > { %1808 = dma.hbm_to_vmem [thread:$0]  (!%p1803_p5), %s141_s22, 16, %s143_s24, [#allocation6]  }
   0xe   : > { %1902 = dma.done.wait (%p1809_p2), [#allocation4], 9216  }
   0xf   : > { %1904 = vsyncadd (%p1809_p2), [#allocation4], 4294958080 }
  0x10   : > { %1906 = dma.done.wait (%p1809_p2), [#allocation6], 16  }
  0x11   : > { %1908 = vsyncadd (%p1809_p2), [#allocation6], 4294967280  ;;  %p193_p6 = scmp.lt.s32.totalorder %s1367_s16, 1  ;;  %v1703_v0 = vld [vmem:[#allocation3 + $0x78] sm:$0xff]  ;;  %v1702_v2 = vld [vmem:[#allocation3 + $0x70] sm:$0xff]  ;;  %vm456_vm1 = vcmask 1046528  }
  0x12   : > { %v1711_v1 = vld [vmem:[#allocation3 + $0xb8] sm:$0xff]  ;;  %1777 = vmatpush.bf16.msra.mxu1 %v1703_v0  ;;  %333 = vmatpush.bf16.msra.mxu0 %v1703_v0  ;;  %v1710_v3 = vld [vmem:[#allocation3 + $0xb0] sm:$0xff]  ;;  %v1701_v6 = vld [vmem:[#allocation3 + $0x68] sm:$0xff]  ;;  %vm258_vm0 = vsmask.f32 7424 }
  0x13   : > { %s2117_s16 = smov (!%p193_p6, %s1367_s16), 1  ;;  %513 = vmatpush.bf16.msra.mxu2 %v1711_v1  ;;  %v1720_v4 = vld [vmem:[#allocation3 + $0xf8] sm:$0xff]  ;;  %v1719_v5 = vld [vmem:[#allocation3 + $0xf0] sm:$0xff]  ;;  %v1709_v7 = vld [vmem:[#allocation3 + $0xa8] sm:$0xff] }
  0x14   : > { %s1686_s27 = sshll.u32 %s2117_s16, 5  ;;  %632 = vmatpush.bf16.msra.mxu3 %v1720_v4  ;;  %v1718_v8 = vld [vmem:[#allocation3 + $0xe8] sm:$0xff]  ;;  %v1700_v9 = vld [vmem:[#allocation3 + $0x60] sm:$0xff]  ;;  %v1699_v14 = vld [vmem:[#allocation3 + $0x58] sm:$0xff]  ;;  %s1793_s4 = smul.u32 24, %s2117_s16 }
  0x15   : > { %s1977_s30 = scalar_lea.vmem %s2111_s0, %s1686_s27  ;;  %v1708_v12 = vld [vmem:[#allocation3 + $0xa0] sm:$0xff]  ;;  %v1707_v15 = vld [vmem:[#allocation3 + $0x98] sm:$0xff]  ;;  %v1698_v18 = vld [vmem:[#allocation3 + $0x50] sm:$0xff] }
  0x16   : > { %1778 = vmatpush.bf16.msra.mxu1 %v1702_v2  ;;  %334 = vmatpush.bf16.msra.mxu0 %v1702_v2  ;;  %v1980_v10 = vld [vmem:[%s1977_s30 + $0x10] sm:$0xff]   ;;  %v1986_v16 = vld [vmem:[%s1977_s30] sm:$0xff]   ;;  %v1716_v17 = vld [vmem:[#allocation3 + $0xd8] sm:$0xff]  ;;  %s2089_s7 = scalar_lea.vmem %s2114_s3, %s1793_s4 }
  0x17   : > { %514 = vmatpush.bf16.msra.mxu2 %v1710_v3  ;;  %v1983_v11 = vld [vmem:[%s1977_s30 + $0x10] sm:$0xf]   ;;  %v1989_v19 = vld [vmem:[%s1977_s30 + $0x8] sm:$0xff]  ;;  %v262_v20 = vshll.u32 %v1986_v16, 16  ;;  %v1706_v21 = vld [vmem:[#allocation3 + $0x90] sm:$0xff]  ;;  %v275_v24 = vshll.u32 %v1980_v10, 16 }
  0x18   : > { %633 = vmatpush.bf16.msra.mxu3 %v1719_v5  ;;  %v1717_v13 = vld [vmem:[#allocation3 + $0xe0] sm:$0xff]  ;;  %v1770_v22 = vld [vmem:[%s1977_s30] sm:$0xf0]  ;;  %v1771_v23 = vld [vmem:[%s1977_s30] sm:$0xe]  ;;  %v260_v27 = vshrl.u32 %v1986_v16, 16 }
  0x19   : > { %v1715_v25 = vld [vmem:[#allocation3 + $0xd0] sm:$0xff]  ;;  %v1697_v26 = vld [vmem:[#allocation3 + $0x48] sm:$0xff]  ;;  %v264_v28 = vrot.slane %v262_v20, 1  ;;  %v267_v29 = vshll.u32 %v1989_v19, 16  ;;  %v1772_v31 = vor.u32 %v1771_v23, %v1770_v22  ;;  %v1997_v32 = vrot.slane %v275_v24, 1  ;;  %v1696_v35 = vld [vmem:[#allocation3 + $0x40] sm:$0xff] }
  0x1a   : > { %1779 = vmatpush.bf16.msra.mxu1 %v1701_v6  ;;  %335 = vmatpush.bf16.msra.mxu0 %v1701_v6  ;;  %v1705_v30 = vld [vmem:[#allocation3 + $0x88] sm:$0xff]  ;;  %v279_v33 = vshrl.u32 %v1980_v10, 16  ;;  %v2001_v38 = vld [vmem:[%s1977_s30 + $0x4] sm:$0xff]   ;;  %v1704_v41 = vld [vmem:[#allocation3 + $0x80] sm:$0xff]  ;;  %v458_v43 = vrot.slane %v1989_v19, 1  ;;  %v271_v58 = vshrl.u32 %v1989_v19, 16 }
  0x1b   : > { %515 = vmatpush.bf16.msra.mxu2 %v1709_v7  ;;  %v1714_v34 = vld [vmem:[#allocation3 + $0xc8] sm:$0xff]  ;;  %v265_v36 = vor.u32 %v264_v28, %v260_v27  ;;  %v269_v37 = vrot.slane %v267_v29, 1  ;;  %v2004_v39 = vld [vmem:[%s1977_s30 + $0x4] sm:$0xf0]  ;;  %v457_v42 = vrot.slane %v1772_v31, 1  ;;  %v1713_v48 = vld [vmem:[#allocation3 + $0xc0] sm:$0xff] }
  0x1c   : > { %634 = vmatpush.bf16.msra.mxu3 %v1718_v8  ;;  %v1695_v40 = vld [vmem:[#allocation3 + $0x38] sm:$0xff]  ;;  %v281_v46 = vor.u32 %v279_v33, %v1997_v32  ;;  %v1694_v49 = vld [vmem:[#allocation3 + $0x30] sm:$0xff]  ;;  %v1693_v54 = vld [vmem:[#allocation3 + $0x28] sm:$0xff]  ;;  %v460_v1 = vrot.slane %v1980_v10, 1  ;;  %v684_v20 = vshrl.u32 %v2001_v38, 16 }
  0x1d   : > { %v1728_v44 = vld [vmem:[#allocation3 + $0x138] sm:$0xff]  ;;  %v270_v47 = vsel %vm258_vm0, %v265_v36, %v269_v37  ;;  %v459_v50 = vsel %vm456_vm1, %v457_v42, %v458_v43  ;;  %v1727_v52 = vld [vmem:[#allocation3 + $0x130] sm:$0xff]  ;;  %v1726_v56 = vld [vmem:[#allocation3 + $0x128] sm:$0xff]  ;;  %v273_v63 = vor.u32 %v271_v58, %v269_v37 }
  0x1e   : > { %1780 = vmatpush.bf16.msra.mxu1 %v1700_v9  ;;  %336 = vmatpush.bf16.msra.mxu0 %v1700_v9  ;;  %v1745_v45 = vld [vmem:[#allocation3 + $0x1b8] sm:$0xff]  ;;  %v1744_v53 = vld [vmem:[#allocation3 + $0x1b0] sm:$0xff]  ;;  %v1743_v57 = vld [vmem:[#allocation3 + $0x1a8] sm:$0xff]  ;;  %v461_v7 = vsel %vm456_vm1, %v458_v43, %v460_v1 }
  0x1f   : > { %516 = vmatpush.bf16.msra.mxu2 %v1708_v12  ;;  %v1753_v51 = vld [vmem:[#allocation3 + $0x1f8] sm:$0xff]  ;;  %v1752_v55 = vld [vmem:[#allocation3 + $0x1f0] sm:$0xff]  ;;  %v1692_v59 = vld [vmem:[#allocation3 + $0x20] sm:$0xff]  ;;  %v278_v4 = vsel %vm258_vm0, %v273_v63, %v1997_v32  ;;  %v686_v12 = vshll.u32 %v2001_v38, 16 }
  0x20   : > { %635 = vmatpush.bf16.msra.mxu3 %v1717_v13  ;;  %v1751_v60 = vld [vmem:[#allocation3 + $0x1e8] sm:$0xff]  ;;  %v1725_v61 = vld [vmem:[#allocation3 + $0x120] sm:$0xff]  ;;  %v1691_v0 = vld [vmem:[#allocation3 + $0x18] sm:$0xff] }
  0x21   : > { %v1742_v62 = vld [vmem:[#allocation3 + $0x1a0] sm:$0xff]  ;;  %v1724_v2 = vld [vmem:[#allocation3 + $0x118] sm:$0xff]  ;;  %v1690_v6 = vld [vmem:[#allocation3 + $0x10] sm:$0xff] }
  0x22   : > { %1781 = vmatpush.bf16.msra.mxu1 %v1699_v14  ;;  %337 = vmatpush.bf16.msra.mxu0 %v1699_v14  ;;  %v1741_v3 = vld [vmem:[#allocation3 + $0x198] sm:$0xff]  ;;  %v1750_v5 = vld [vmem:[#allocation3 + $0x1e0] sm:$0xff]  ;;  %v1723_v8 = vld [vmem:[#allocation3 + $0x110] sm:$0xff] }
  0x23   : > { %517 = vmatpush.bf16.msra.mxu2 %v1707_v15  ;;  %v1740_v9 = vld [vmem:[#allocation3 + $0x190] sm:$0xff]  ;;  %v2020_v13 = vld [vmem:[%s1977_s30 + $0xc] sm:$0xff]  ;;  %v1689_v15 = vld [vmem:[#allocation3 + $0x8] sm:$0xff] }
  0x24   : > { %636 = vmatpush.bf16.msra.mxu3 %v1716_v17  ;;  %v1749_v14 = vld [vmem:[#allocation3 + $0x1d8] sm:$0xff]  ;;  %v1722_v17 = vld [vmem:[#allocation3 + $0x108] sm:$0xff]  ;;  %v691_v22 = vshll.u32 %v2020_v13, 16  ;;  %v1748_v23 = vld [vmem:[#allocation3 + $0x1d0] sm:$0xff]  ;;  %v695_v43 = vshrl.u32 %v2020_v13, 16 }
  0x25   : > { %v1688_v24 = vld [vmem:[#allocation3] sm:$0xff]  ;;  %v1761_v28 = vld [vmem:[#allocation3 + $0x238] sm:$0xff]  ;;  %v1915_v31 = vld [vmem:[%s1977_s30 + $0x14] sm:$0x70] }
  0x26   : > { %1782 = vmatpush.bf16.msra.mxu1 %v1698_v18  ;;  %338 = vmatpush.bf16.msra.mxu0 %v1698_v18  ;;  %v1739_v18 = vld [vmem:[#allocation3 + $0x188] sm:$0xff]  ;;  %v1738_v27 = vld [vmem:[#allocation3 + $0x180] sm:$0xff]  ;;  %v1760_v37 = vld [vmem:[#allocation3 + $0x230] sm:$0xff] }
  0x27   : > { %518 = vmatpush.bf16.msra.mxu2 %v1706_v21  ;;  %v688_v21 = vrot.slane %v686_v12, 1  ;;  %v1747_v32 = vld [vmem:[#allocation3 + $0x1c8] sm:$0xff]  ;;  %v1732_v10 = vld [vmem:[#allocation3 + $0x158] sm:$0xff] }
  0x28   : > { %637 = vmatpush.bf16.msra.mxu3 %v1715_v25  ;;  %v1736_v25 = vld [vmem:[#allocation3 + $0x178] sm:$0xff]  ;;  %v2027_v33 = vld [vmem:[%s1977_s30 + $0x14] sm:$0xff]  }
  0x29   : > { %v689_v29 = vor.u32 %v688_v21, %v684_v20  ;;  %v1759_v42 = vld [vmem:[#allocation3 + $0x228] sm:$0xff]  ;;  %v809_v21 = vrot.slane %v2020_v13, 1 }
  0x2a   : > { %1783 = vmatpush.bf16.msra.mxu1 %v1697_v26  ;;  %339 = vmatpush.bf16.msra.mxu0 %v1697_v26  ;;  %v1721_v26 = vld [vmem:[#allocation3 + $0x100] sm:$0xff] }
  0x2b   : > { %519 = vmatpush.bf16.msra.mxu2 %v1705_v30  ;;  %v693_v30 = vrot.slane %v691_v22, 1  ;;  %v1914_v22 = vld [vmem:[%s1977_s30 + $0x18] sm:$0x70] }
  0x2c   : > { %638 = vmatpush.bf16.msra.mxu3 %v1714_v34  ;;  %v1911_v34 = vld [vmem:[%s1977_s30 + $0x14] sm:$0xf]  }
  0x2d   : > { %v694_v36 = vsel %vm258_vm0, %v689_v29, %v693_v30  ;;  %v811_v29 = vrot.slane %v2027_v33, 1 }
  0x2e   : > { %1784 = vmatpush.bf16.msra.mxu1 %v1696_v35  ;;  %340 = vmatpush.bf16.msra.mxu0 %v1696_v35  ;;  %v1735_v35 = vld [vmem:[#allocation3 + $0x170] sm:$0xff] }
  0x2f   : > { %520 = vmatpush.bf16.msra.mxu2 %v1704_v41  ;;  %v1912_v41 = vor.u32 %v1915_v31, %v1911_v34 }
  0x30   : > { %639 = vmatpush.bf16.msra.mxu3 %v1713_v48  ;;  %v2038_v48 = vld [vmem:[%s1977_s30 + $0x10] sm:$0xff] }
  0x31   : > { %341 = vmatmul.bf16.vlgmr.msra.gmra.mxu0 %v270_v47  ;;  %351 = vmatmul.bf16.vlgmr.msra.gmra.mxu1 %v281_v46  ;;  %v1758_v47 = vld [vmem:[#allocation3 + $0x220] sm:$0xff] }
  0x32   : > { %411 = vmatpush.bf16.msrb.mxu1 %v1695_v40  ;;  %757 = vmatpush.bf16.msrb.mxu0 %v1728_v44  ;;  %v1734_v40 = vld [vmem:[#allocation3 + $0x168] sm:$0xff]  ;;  %v1773_v44 = vld [vmem:[%s1977_s30 + $0x8] sm:$0xff]  }
  0x33   : > { %983 = vmatpush.bf16.msrb.mxu2 %v1745_v45  ;;  %640 = vmatmul.bf16.vlgmr.msra.gmra.mxu3 %v2001_v38  ;;  %v1746_v38 = vld [vmem:[#allocation3 + $0x1c0] sm:$0xff]  ;;  %v699_v45 = vshll.u32 %v2027_v33, 16  ;;  %v1037_v46 = vshll.u32 %v1773_v44, 16 }
  0x34   : > { %521 = vmatmul.bf16.vlgmr.msra.gmra.mxu2 %v459_v50  ;;  %1108 = vmatpush.bf16.msrb.mxu3 %v1753_v51  ;;  %v1035_v51 = vshrl.u32 %v1773_v44, 16 }
  0x35   : > { %v701_v50 = vrot.slane %v699_v45, 1 }
  0x36   : > { %412 = vmatpush.bf16.msrb.mxu1 %v1694_v49  ;;  %758 = vmatpush.bf16.msrb.mxu0 %v1727_v52  ;;  %v697_v49 = vor.u32 %v695_v43, %v693_v30  ;;  %v1039_v52 = vrot.slane %v1037_v46, 1 }
  0x37   : > { %984 = vmatpush.bf16.msrb.mxu2 %v1744_v53  ;;  %v1042_v53 = vshll.u32 %v2038_v48, 16 }
  0x38   : > { %1109 = vmatpush.bf16.msrb.mxu3 %v1752_v55  ;;  %v1731_v55 = vld [vmem:[#allocation3 + $0x150] sm:$0xff] }
  0x39   : > { %v1044_v58 = vrot.slane %v1042_v53, 1 }
  0x3a   : > { %413 = vmatpush.bf16.msrb.mxu1 %v1693_v54  ;;  %759 = vmatpush.bf16.msrb.mxu0 %v1726_v56  ;;  %v1757_v54 = vld [vmem:[#allocation3 + $0x218] sm:$0xff]  ;;  %v702_v56 = vsel %vm258_vm0, %v697_v49, %v701_v50 }
  0x3b   : > { %985 = vmatpush.bf16.msrb.mxu2 %v1743_v57  ;;  %v1040_v57 = vor.u32 %v1039_v52, %v1035_v51 }
  0x3c   : > { %1110 = vmatpush.bf16.msrb.mxu3 %v1751_v60  ;;  %v898_v60 = vld [vmem:[%s1977_s30 + $0x18] sm:$0xff]  }
  0x3d   : > { %v1045_v63 = vsel %vm258_vm0, %v1040_v57, %v1044_v58  ;;  %v1162_v30 = vrot.slane %v898_v60, 1 }
  0x3e   : > { %414 = vmatpush.bf16.msrb.mxu1 %v1692_v59  ;;  %760 = vmatpush.bf16.msrb.mxu0 %v1725_v61  ;;  %v1756_v59 = vld [vmem:[#allocation3 + $0x210] sm:$0xff]  ;;  %v1835_v61 = vld [vmem:[%s1977_s30 + $0x18] sm:$0xf]  }
  0x3f   : > { %986 = vmatpush.bf16.msrb.mxu2 %v1742_v62  ;;  %v1730_v62 = vld [vmem:[#allocation3 + $0x148] sm:$0xff] }
  0x40   : > { %1111 = vmatpush.bf16.msrb.mxu3 %v1750_v5  ;;  %v1046_v5 = vshrl.u32 %v2038_v48, 16 }
  0x41   : > { %346 = vmatmul.bf16.gmra.mxu0 %v278_v4 }
  0x42   : > { %415 = vmatpush.bf16.msrb.mxu1 %v1691_v0  ;;  %761 = vmatpush.bf16.msrb.mxu0 %v1724_v2  ;;  %v1755_v0 = vld [vmem:[#allocation3 + $0x208] sm:$0xff]  ;;  %v1754_v2 = vld [vmem:[#allocation3 + $0x200] sm:$0xff] }
  0x43   : > { %987 = vmatpush.bf16.msrb.mxu2 %v1741_v3  ;;  %645 = vmatmul.bf16.gmra.mxu3 %v2020_v13  ;;  %v703_v3 = vshrl.u32 %v2027_v33, 16  ;;  %v812_v13 = vsel %vm456_vm1, %v809_v21, %v811_v29 }
  0x44   : > { %526 = vmatmul.bf16.gmra.mxu2 %v461_v7  ;;  %1112 = vmatpush.bf16.msrb.mxu3 %v1749_v14  ;;  %v1831_v7 = vld [vmem:[%s1977_s30 + $0x4] sm:$0xe] }
  0x46   : > { %416 = vmatpush.bf16.msrb.mxu1 %v1690_v6  ;;  %762 = vmatpush.bf16.msrb.mxu0 %v1723_v8  ;;  %v1050_v6 = vshll.u32 %v898_v60, 16  ;;  %v705_v8 = vor.u32 %v703_v3, %v701_v50 }
  0x47   : > { %988 = vmatpush.bf16.msrb.mxu2 %v1740_v9  ;;  %v1048_v9 = vor.u32 %v1046_v5, %v1044_v58 }
  0x48   : > { %1113 = vmatpush.bf16.msrb.mxu3 %v1748_v23  ;;  %v1052_v12 = vrot.slane %v1050_v6, 1 }
  0x4a   : > { %417 = vmatpush.bf16.msrb.mxu1 %v1689_v15  ;;  %763 = vmatpush.bf16.msrb.mxu0 %v1722_v17  ;;  %v1053_v14 = vsel %vm258_vm0, %v1048_v9, %v1052_v12  ;;  %v1832_v15 = vor.u32 %v1831_v7, %v2004_v39  ;;  %v1774_v17 = vld [vmem:[%s1977_s30 + $0x8] sm:$0xf0] }
  0x4b   : > { %989 = vmatpush.bf16.msrb.mxu2 %v1739_v18 }
  0x4c   : > { %1114 = vmatpush.bf16.msrb.mxu3 %v1747_v32  ;;  %v808_v20 = vrot.slane %v1832_v15, 1 }
  0x4e   : > { %418 = vmatpush.bf16.msrb.mxu1 %v1688_v24  ;;  %764 = vmatpush.bf16.msrb.mxu0 %v1721_v26  ;;  %v1160_v24 = vrot.slane %v2038_v48, 1  ;;  %v1054_v26 = vshrl.u32 %v898_v60, 16 }
  0x4f   : > { %990 = vmatpush.bf16.msrb.mxu2 %v1738_v27 }
  0x50   : > { %1115 = vmatpush.bf16.msrb.mxu3 %v1746_v38  ;;  %v1056_v39 = vor.u32 %v1054_v26, %v1052_v12  ;;  %v1163_v31 = vsel %vm456_vm1, %v1160_v24, %v1162_v30 }
  0x51   : > { %419 = vmatmul.bf16.vlgmr.msrb.gmra.mxu1 %v1986_v16  ;;  %765 = vmatmul.bf16.vlgmr.msrb.gmra.mxu0 %v694_v36  ;;  %v1733_v16 = vld [vmem:[#allocation3 + $0x160] sm:$0xff] }
  0x52   : > { %864 = vmatpush.bf16.msra.mxu1 %v1736_v25  ;;  %1215 = vmatpush.bf16.msra.mxu0 %v1761_v28  ;;  %v810_v25 = vsel %vm456_vm1, %v808_v20, %v809_v21 }
  0x53   : > { %1785 = vmatpush.bf16.msra.mxu2 %v1761_v28  ;;  %650 = vmatmul.bf16.gmra.mxu3 %v1912_v41  ;;  %v1836_v28 = vor.u32 %v1914_v22, %v1835_v61 }
  0x54   : > { %531 = vmatmul.bf16.gmra.mxu2 %v460_v1  ;;  %v1729_v1 = vld [vmem:[#allocation3 + $0x140] sm:$0xff] }
  0x56   : > { %865 = vmatpush.bf16.msra.mxu1 %v1735_v35  ;;  %1216 = vmatpush.bf16.msra.mxu0 %v1760_v37 }
  0x57   : > { %1786 = vmatpush.bf16.msra.mxu2 %v1760_v37 }
  0x5a   : > { %866 = vmatpush.bf16.msra.mxu1 %v1734_v40  ;;  %1217 = vmatpush.bf16.msra.mxu0 %v1759_v42 }
  0x5b   : > { %1787 = vmatpush.bf16.msra.mxu2 %v1759_v42 }
  0x5e   : > { %867 = vmatpush.bf16.msra.mxu1 %v1733_v16  ;;  %1218 = vmatpush.bf16.msra.mxu0 %v1758_v47 }
  0x5f   : > { %1788 = vmatpush.bf16.msra.mxu2 %v1758_v47 }
  0x61   : > { %424 = vmatmul.bf16.gmra.mxu1 %v1989_v19  ;;  %770 = vmatmul.bf16.gmra.mxu0 %v702_v56  ;;  %v1913_v19 = vld [vmem:[%s1977_s30 + $0x10] sm:$0x70] }
  0x62   : > { %868 = vmatpush.bf16.msra.mxu1 %v1732_v10  ;;  %1219 = vmatpush.bf16.msra.mxu0 %v1757_v54  ;;  %v1829_v4 = vor.u32 %v1913_v19, %v1983_v11  ;;  %v1775_v11 = vld [vmem:[%s1977_s30 + $0x8] sm:$0xe] }
  0x63   : > { %1789 = vmatpush.bf16.msra.mxu2 %v1757_v54  ;;  %1116 = vmatmul.bf16.vlgmr.msrb.gmra.mxu3 %v1045_v63  ;;  %v1776_v18 = vor.u32 %v1775_v11, %v1774_v17  ;;  %v2080_v11 = vld [vmem:[#allocation5] ss:$0 sm:$0xff] }
  0x64   : > { %991 = vmatmul.bf16.vlgmr.msrb.gmra.mxu2 %v1773_v44 }
  0x65   : > { %v1159_v23 = vrot.slane %v1776_v18, 1 }
  0x66   : > { %869 = vmatpush.bf16.msra.mxu1 %v1731_v55  ;;  %1220 = vmatpush.bf16.msra.mxu0 %v1756_v59 }
  0x67   : > { %1790 = vmatpush.bf16.msra.mxu2 %v1756_v59  ;;  %v1161_v27 = vsel %vm456_vm1, %v1159_v23, %v1160_v24 }
  0x6a   : > { %870 = vmatpush.bf16.msra.mxu1 %v1730_v62  ;;  %1221 = vmatpush.bf16.msra.mxu0 %v1755_v0 }
  0x6b   : > { %1791 = vmatpush.bf16.msra.mxu2 %v1755_v0 }
  0x6e   : > { %871 = vmatpush.bf16.msra.mxu1 %v1729_v1  ;;  %1222 = vmatpush.bf16.msra.mxu0 %v1754_v2 }
  0x6f   : > { %1792 = vmatpush.bf16.msra.mxu2 %v1754_v2 }
  0x71   : > { %429 = vmatmul.bf16.gmra.mxu1 %v1829_v4  ;;  %775 = vmatmul.bf16.gmra.mxu0 %v705_v8 }
  0x73   : > { %1121 = vmatmul.bf16.gmra.mxu3 %v1053_v14 }
  0x74   : > { %996 = vmatmul.bf16.gmra.mxu2 %v2038_v48 }
  0x81   : > { %872 = vmatmul.bf16.vlgmr.msra.gmra.mxu1 %v810_v25  ;;  %1223 = vmatmul.bf16.vlgmr.msra.gmra.mxu0 %v1161_v27 }
  0x83   : > { %1126 = vmatmul.bf16.gmra.mxu3 %v1056_v39 }
  0x84   : > { %1001 = vmatmul.bf16.gmra.mxu2 %v1836_v28 }
  0x91   : > { %877 = vmatmul.bf16.gmra.mxu1 %v812_v13  ;;  %1228 = vmatmul.bf16.gmra.mxu0 %v1163_v31 }
  0x94   : > { %1233 = vmatmul.bf16.vlgmr.msra.gmra.mxu2 %v1162_v30 }
  0xa1   : > { %882 = vmatmul.bf16.gmra.mxu1 %v811_v29 }
  0xae   : > { %v342_v32 = vpop.f32.mrf.mxu0  ;;  %v2064_v36 = vpop.f32.mrf.mxu1 }
  0xb6   : > { %v344_v35 = vpop.f32.mrf.mxu0  ;;  %v641_v37 = vpop.f32.mrf.mxu3 }
  0xb7   : > { %v522_v34 = vpop.f32.mrf.mxu2  ;;  %v2066_v41 = vpop.f32.mrf.mxu1 }
  0xbe   : > { %v347_v40 = vpop.f32.mrf.mxu0  ;;  %v643_v33 = vpop.f32.mrf.mxu3 }
  0xbf   : > { %v524_v38 = vpop.f32.mrf.mxu2 }
  0xc6   : > { %v349_v16 = vpop.f32.mrf.mxu0  ;;  %v646_v45 = vpop.f32.mrf.mxu3 }
  0xc7   : > { %v527_v42 = vpop.f32.mrf.mxu2 }
  0xce   : > { %v420_v43 = vpop.f32.mrf.mxu1  ;;  %v766_v46 = vpop.f32.mrf.mxu0 }
  0xcf   : > { %v529_v44 = vpop.f32.mrf.mxu2  ;;  %v648_v49 = vpop.f32.mrf.mxu3  ;;  %v421_v60 = vadd.f32 %v420_v43, %v342_v32 }
  0xd1   : > { %v537_v62 = vadd.f32 %v522_v34, %v421_v60 }
  0xd3   : > { %v656_v19 = vadd.f32 %v641_v37, %v537_v62 }
  0xd5   : > { %v781_v4 = vadd.f32 %v766_v46, %v656_v19 }
  0xd6   : > { %v422_v47 = vpop.f32.mrf.mxu1  ;;  %v768_v10 = vpop.f32.mrf.mxu0 }
  0xd7   : > { %v2068_v48 = vpop.f32.mrf.mxu2  ;;  %v2072_v53 = vpop.f32.mrf.mxu3  ;;  %v423_v1 = vadd.f32 %v422_v47, %v344_v35 }
  0xd9   : > { %v538_v5 = vadd.f32 %v524_v38, %v423_v1 }
  0xdb   : > { %v657_v8 = vadd.f32 %v643_v33, %v538_v5 }
  0xdd   : > { %v782_v20 = vadd.f32 %v768_v10, %v657_v8 }
  0xde   : > { %v425_v50 = vpop.f32.mrf.mxu1  ;;  %v771_v52 = vpop.f32.mrf.mxu0 }
  0xdf   : > { %v2070_v51 = vpop.f32.mrf.mxu2  ;;  %v2074_v58 = vpop.f32.mrf.mxu3  ;;  %v426_v9 = vadd.f32 %v425_v50, %v347_v40 }
  0xe1   : > { %v539_v21 = vadd.f32 %v527_v42, %v426_v9 }
  0xe3   : > { %v658_v26 = vadd.f32 %v646_v45, %v539_v21 }
  0xe5   : > { %v783_v31 = vadd.f32 %v771_v52, %v658_v26 }
  0xe6   : > { %v427_v54 = vpop.f32.mrf.mxu1  ;;  %v773_v56 = vpop.f32.mrf.mxu0 }
  0xe7   : > { %v992_v55 = vpop.f32.mrf.mxu2  ;;  %v1117_v0 = vpop.f32.mrf.mxu3  ;;  %v428_v27 = vadd.f32 %v427_v54, %v349_v16 }
  0xe9   : > { %v540_v32 = vadd.f32 %v529_v44, %v428_v27 }
  0xeb   : > { %v659_v33 = vadd.f32 %v648_v49, %v540_v32 }
  0xed   : > { %v784_v10 = vadd.f32 %v773_v56, %v659_v33 }
  0xee   : > { %v430_v57 = vpop.f32.mrf.mxu1  ;;  %v2076_v61 = vpop.f32.mrf.mxu0 }
  0xef   : > { %v994_v59 = vpop.f32.mrf.mxu2  ;;  %v1119_v15 = vpop.f32.mrf.mxu3  ;;  %v431_v42 = vadd.f32 %v430_v57, %v2064_v36 }
  0xf1   : > { %v541_v50 = vadd.f32 %v2068_v48, %v431_v42 }
  0xf6   : > { %v432_v63 = vpop.f32.mrf.mxu1  ;;  %v2078_v2 = vpop.f32.mrf.mxu0 }
  0xf7   : > { %v997_v3 = vpop.f32.mrf.mxu2  ;;  %v1122_v13 = vpop.f32.mrf.mxu3  ;;  %v433_v60 = vadd.f32 %v432_v63, %v2066_v41 }
  0xfe   : > { %v873_v6 = vpop.f32.mrf.mxu1  ;;  %v1224_v14 = vpop.f32.mrf.mxu0 }
  0xff   : > { %v888_v7 = vadd.f32 %v873_v6, %v781_v4  ;;  %v999_v18 = vpop.f32.mrf.mxu2  ;;  %v1124_v52 = vpop.f32.mrf.mxu3  ;;  %v542_v4 = vadd.f32 %v2070_v51, %v433_v60 }
 0x101   : > { %v1007_v12 = vadd.f32 %v992_v55, %v888_v7  ;;  %v661_v41 = vadd.f32 %v2074_v58, %v542_v4 }
 0x103   : > { %v1132_v17 = vadd.f32 %v1117_v0, %v1007_v12  ;;  %v786_v51 = vadd.f32 %v2078_v2, %v661_v41 }
 0x105   : > { %v1239_v22 = vadd.f32 %v1224_v14, %v1132_v17 }
 0x106   : > { %v875_v23 = vpop.f32.mrf.mxu1  ;;  %v1226_v29 = vpop.f32.mrf.mxu0 }
 0x107   : > { %v1249_v24 = vadd.f32 %v2080_v11, %v1239_v22  ;;  %v889_v25 = vadd.f32 %v875_v23, %v782_v20  ;;  %v1002_v35 = vpop.f32.mrf.mxu2  ;;  %v1127_v8 = vpop.f32.mrf.mxu3 }
 0x109   : > { %v1255_v28 = vmax.f32 %v1249_v24, 0.0  ;;  %v1008_v39 = vadd.f32 %v994_v59, %v889_v25  ;;  %v660_v59 = vadd.f32 %v2072_v53, %v541_v50 }
 0x10b   : > { %1261 = vst [vmem:[#allocation2 + $0x28] sm:$0xff] %v1255_v28  ;;  %v1133_v30 = vadd.f32 %v1119_v15, %v1008_v39 }
 0x10d   : > { %v1240_v34 = vadd.f32 %v1226_v29, %v1133_v30 }
 0x10e   : > { %v878_v37 = vpop.f32.mrf.mxu1  ;;  %v1229_v45 = vpop.f32.mrf.mxu0 }
 0x10f   : > { %v1250_v38 = vadd.f32 %v2080_v11, %v1240_v34  ;;  %v890_v40 = vadd.f32 %v878_v37, %v783_v31  ;;  %v1004_v57 = vpop.f32.mrf.mxu2  ;;  %v1129_v24 = vpop.f32.mrf.mxu3 }
 0x111   : > { %v1256_v43 = vmax.f32 %v1250_v38, 0.0  ;;  %v1009_v16 = vadd.f32 %v997_v3, %v890_v40  ;;  %v785_v3 = vadd.f32 %v2076_v61, %v660_v59 }
 0x112   : > { %v1267_v44 = vld [vmem:[#allocation2 + $0x28] sm:$0x3f] }
 0x113   : > { %v1268_v46 = vpack.c.bf16 %v1267_v44, %v1267_v44  ;;  %1262 = vst [vmem:[#allocation2 + $0x10] sm:$0xff] %v1256_v43  ;;  %v1134_v47 = vadd.f32 %v1122_v13, %v1009_v16 }
 0x115   : > { %1269 = vst [vmem:[%s2089_s7] sm:$0x7] %v1268_v46  ;;  %v1241_v49 = vadd.f32 %v1229_v45, %v1134_v47 }
 0x116   : > { %v880_v36 = vpop.f32.mrf.mxu1  ;;  %v1231_v1 = vpop.f32.mrf.mxu0 }
 0x117   : > { %v1251_v54 = vadd.f32 %v2080_v11, %v1241_v49  ;;  %v891_v55 = vadd.f32 %v880_v36, %v784_v10  ;;  %v1234_v14 = vpop.f32.mrf.mxu2 }
 0x119   : > { %v1257_v62 = vmax.f32 %v1251_v54, 0.0  ;;  %v1010_v0 = vadd.f32 %v999_v18, %v891_v55 }
 0x11a   : > { %v1270_v19 = vld [vmem:[#allocation2 + $0x10] sm:$0x3f] }
 0x11b   : > { %v1271_v56 = vpack.c.bf16 %v1270_v19, %v1270_v19  ;;  %1263 = vst [vmem:[#allocation2 + $0x8] sm:$0xff] %v1257_v62  ;;  %v1135_v48 = vadd.f32 %v1124_v52, %v1010_v0 }
 0x11d   : > { %1679 = vst [vmem:[%s2089_s7 + $0x4] sm:$0x7] %v1271_v56  ;;  %v1242_v5 = vadd.f32 %v1231_v1, %v1135_v48 }
 0x11e   : > { %v883_v6 = vpop.f32.mrf.mxu1 }
 0x11f   : > { %v1252_v7 = vadd.f32 %v2080_v11, %v1242_v5  ;;  %v892_v53 = vadd.f32 %v883_v6, %v785_v3  ;;  %v1236_v27 = vpop.f32.mrf.mxu2 }
 0x121   : > { %v1258_v63 = vmax.f32 %v1252_v7, 0.0  ;;  %v1011_v9 = vadd.f32 %v1002_v35, %v892_v53 }
 0x122   : > { %v1274_v12 = vld [vmem:[#allocation2 + $0x8] sm:$0x3f] }
 0x123   : > { %v1275_v15 = vpack.c.bf16 %v1274_v12, %v1274_v12  ;;  %1264 = vst [vmem:[#allocation2] sm:$0xff] %v1258_v63  ;;  %v1136_v61 = vadd.f32 %v1127_v8, %v1011_v9 }
 0x125   : > { %1680 = vst [vmem:[%s2089_s7 + $0x8] sm:$0x7] %v1275_v15  ;;  %v1243_v17 = vadd.f32 %v1234_v14, %v1136_v61 }
 0x126   : > { %v885_v18 = vpop.f32.mrf.mxu1 }
 0x127   : > { %v1253_v20 = vadd.f32 %v2080_v11, %v1243_v17  ;;  %v893_v21 = vadd.f32 %v885_v18, %v786_v51 }
 0x129   : > { %v1259_v22 = vmax.f32 %v1253_v20, 0.0  ;;  %v1012_v23 = vadd.f32 %v1004_v57, %v893_v21 }
 0x12a   : > { %v1278_v58 = vld [vmem:[#allocation2] sm:$0x3f] }
 0x12b   : > { %v1279_v25 = vpack.c.bf16 %v1278_v58, %v1278_v58  ;;  %1265 = vst [vmem:[#allocation2 + $0x18] sm:$0xff] %v1259_v22  ;;  %v1137_v26 = vadd.f32 %v1129_v24, %v1012_v23 }
 0x12d   : > { %1681 = vst [vmem:[%s2089_s7 + $0xc] sm:$0x7] %v1279_v25  ;;  %v1244_v28 = vadd.f32 %v1236_v27, %v1137_v26 }
 0x12f   : > { %v1254_v2 = vadd.f32 %v2080_v11, %v1244_v28 }
 0x131   : > { %v1260_v39 = vmax.f32 %v1254_v2, 0.0 }
 0x132   : > { %v1282_v29 = vld [vmem:[#allocation2 + $0x18] sm:$0x3f] }
 0x133   : > { %v1283_v30 = vpack.c.bf16 %v1282_v29, %v1282_v29  ;;  %1266 = vst [vmem:[#allocation2 + $0x20] sm:$0x3f] %v1260_v39 }
 0x135   : > { %1682 = vst [vmem:[%s2089_s7 + $0x10] sm:$0x7] %v1283_v30 }
 0x13a   : > { %v1286_v13 = vld [vmem:[#allocation2 + $0x20] sm:$0x3f] }
 0x13b   : > { %v1287_v31 = vpack.c.bf16 %v1286_v13, %v1286_v13 }
 0x13d   : > { %1683 = vst [vmem:[%s2089_s7 + $0x14] sm:$0x7] %v1287_v31 }
 0x13e PF: > { %s15_s12 = sadd.s32 1, %s1918_s12  }
 0x13f   : > { %p12_p7 = scmp.ge.s32.totalorder %s15_s12, 4  }
 0x141   :  { %14 = sbr.rel (!%p12_p7) target bundleno = 2 (0x2), region = 84 }
 0x146   :  { %1311 = vsyncpa [#allocation4], 1 }
 0x147   :  { %1313 = vsyncpa [#allocation4 + $0x1], 1 }
 0x148   :  { %1314 = vsyncpa [#allocation6], 1 }

</bundles_post_ra>
